<compile_context>
chip_gen: v6e
topology: v6e:2x2x1
jax: 0.10.0
libtpu: 0.0.40
codegen_flags: <defaults>
</compile_context>

<pallas_src>
import jax
import jax.numpy as jnp
from jax.experimental import pallas as pl
from jax.experimental.pallas import tpu as pltpu

# ---------------- configuration (small, consistent with the module) ----------------
B = 2            # batch
T_IN = 6         # encoder sequence length
N_NODE = 16      # graph nodes
C_IN = 4         # input channels
H_DIM = 32       # hidden dim per layer
CHEBY_K = 3      # Chebyshev order
N_LAYER = 2      # stacked GCRU layers
HORIZON = 4      # decoder steps
TCOV_IN = 8      # time-covariate input dim
TCOV_H = 2       # tcov_h_dim
ST_MEMO_NUM = 4
ST_MEMO_DIM = 8
EMB_DIM = 20
DTYPE = jnp.float32
# Reference passes use_bias(=True) positionally into the kappa slot -> kappa == 1.0.


# =====================================================================================
# Fused Pallas kernel
# =====================================================================================
def st_net_kernel(
    # sequences (time folded into rows: row = t*B*N + b*N + n)
    x_all_ref,      # (T_IN*B*N, c_in + tcov_h)
    yt_all_ref,     # (HORIZON*B*N, tcov_h)
    # encoder layer 0 (kappa-folded, gate|cand column-fused)
    e0_wx, e0_b, e0_wgh, e0_wch,            # (in0,3H) (1,3H) (H,2H) (H,H)
    # encoder layer 1
    e1_wx, e1_b, e1_wgh, e1_wch,            # (H,3H) (bn,3H) (H,2H) (H,H)
    # decoder layer 0 (x rows split into y_time part (hoisted) and go part (per-step))
    d0_wyt, d0_b, d0_wgo, d0_wgh, d0_wch,   # (tcov_h,3H) (1,3H) (c_in,3H) (H,2H) (H,H)
    # decoder layer 1
    d1_wx, d1_b, d1_wgh, d1_wch,            # (H,3H) (bn,3H) (H,2H) (H,H)
    # ST-memory head + projection (lane-dense layouts, precombined in glue)
    wa_big,         # (H, N*md)       wa_big[h, n*md+m] == Wa[n*H+h, m]
    dmask,          # (bn, N*md)      1 where row's node matches the column block
    sel,            # (B, bn)         per-sample row-sum selector
    selT,           # (bn, B)         per-sample row-broadcast selector
    fold_memT,      # (N*md, M)       fold @ memory^T
    mem_fc,         # (M, N*md)       memory @ fc
    fold_wpm,       # (N*md, c_in)    fold @ Wp[mem rows]
    wph,            # (H, c_in)       Wp[h rows]
    bp,             # (bn, c_in)
    # output
    out_ref,        # (bn, HORIZON*c_in)
    # scratch
    pre0_ref,       # (T_IN*bn, 3H)
    preyt_ref,      # (HORIZON*bn, 3H)
):
    f32 = jnp.float32
    hd = e0_wgh.shape[0]
    two_hd = 2 * hd
    bn = sel.shape[1]
    t_in = x_all_ref.shape[0] // bn
    horizon = yt_all_ref.shape[0] // bn
    c_in = wph.shape[1]

    def dot(a, b):
        return jnp.dot(a, b, preferred_element_type=f32)

    # ---- hoisted, recurrence-independent contributions: one big matmul each ----
    pre0_ref[...] = dot(x_all_ref[...], e0_wx[...]) + e0_b[...]
    preyt_ref[...] = dot(yt_all_ref[...], d0_wyt[...]) + d0_b[...]

    def gru_step(pre3, hstate, wgh_ref, wch_ref):
        """One GCRU cell step with kappa==1.0 folded.  pre3 (bn, 3H) already contains
        every x-side contribution + biases; columns are [update H | reset H | cand H]
        matching torch.split order (u first, r second)."""
        gates = jax.nn.sigmoid(pre3[:, :two_hd] + dot(hstate, wgh_ref[...]))
        u = gates[:, :hd]          # update gate
        r = gates[:, hd:]          # reset gate
        c = jnp.tanh(pre3[:, two_hd:] + dot(r * hstate, wch_ref[...]))
        return (1.0 - u) * hstate + u * c

    # ------------------------- encoder (layers interleaved) -------------------------
    h0 = jnp.zeros((bn, hd), f32)
    h1 = jnp.zeros((bn, hd), f32)
    for t in range(t_in):                                    # unrolled (T_IN = 6)
        h0 = gru_step(pre0_ref[pl.ds(t * bn, bn), :], h0, e0_wgh, e0_wch)
        h1 = gru_step(dot(h0, e1_wx[...]) + e1_b[...], h1, e1_wgh, e1_wch)

    # --------------------- decoder + ST-memory head ----------------------
    ht0, ht1 = h0, h1
    go = None                                                # step 0: go == 0 exactly
    for t in range(horizon):                                 # unrolled (HORIZON = 4)
        pre_d0 = preyt_ref[pl.ds(t * bn, bn), :]
        if t > 0:
            pre_d0 = pre_d0 + dot(go, d0_wgo[...])
        ht0 = gru_step(pre_d0, ht0, d0_wgh, d0_wch)
        ht1 = gru_step(dot(ht0, d1_wx[...]) + d1_b[...], ht1, d1_wgh, d1_wch)

        # ST-memory query — all lane-dense matmuls, no cross-lane reductions:
        #   query      = (ht flat per sample) @ Wa           -> via wa_big + mask + sel
        #   att        = softmax(query @ memory^T)           -> fold_memT precombined
        #   att_memory = att @ memory @ fc                   -> mem_fc precombined
        #   proj(mem)  = att_memory(per node) @ Wp[mem rows]  -> fold_wpm precombined
        z = dot(ht1, wa_big[...]) * dmask[...]                         # (bn, N*md)
        att = jax.nn.softmax(dot(dot(sel[...], z), fold_memT[...]), axis=-1)  # (B, M)
        am_rows = dot(selT[...], dot(att, mem_fc[...])) * dmask[...]   # (bn, N*md)
        mem_contrib = dot(am_rows, fold_wpm[...])                      # (bn, c_in)

        # output projection (Wp split into h / memory row blocks) + ReLU
        out_t = jnp.maximum(dot(ht1, wph[...]) + mem_contrib + bp[...], 0.0)
        out_ref[:, t * c_in:(t + 1) * c_in] = out_t          # store retires per step
        go = out_t


# =====================================================================================
# Glue: parameter init, kappa-fold / weight fusion, tcov MLP, full forward
# =====================================================================================
def glorot(key, shape):
    fan_in, fan_out = shape[0], shape[-1]
    scale = jnp.sqrt(2.0 / (fan_in + fan_out)).astype(DTYPE)
    return scale * jax.random.normal(key, shape, dtype=DTYPE)


def init_params(key):
    keys = iter(jax.random.split(key, 64))
    params = {}

    def make_cell(h_in, h_out):
        h_cat = h_in + h_out
        return {
            "Wg": glorot(next(keys), (h_cat * CHEBY_K, 2 * h_out)),
            "bg": jnp.zeros((1, 2 * h_out), DTYPE),
            "Wc": glorot(next(keys), (h_cat * CHEBY_K, h_out)),
            "bc": jnp.zeros((1, h_out), DTYPE),
        }

    in0 = C_IN + TCOV_H
    params["enc"] = [make_cell(in0 if l == 0 else H_DIM, H_DIM) for l in range(N_LAYER)]
    params["dec"] = [make_cell(in0 if l == 0 else H_DIM, H_DIM) for l in range(N_LAYER)]

    # tcov MLP: Linear(TCOV_IN, 10) -> Linear(10, TCOV_H * N_NODE)
    params["mlp_w1"] = glorot(next(keys), (TCOV_IN, 10))
    params["mlp_b1"] = jnp.zeros((1, 10), DTYPE)
    params["mlp_w2"] = glorot(next(keys), (10, TCOV_H * N_NODE))
    params["mlp_b2"] = jnp.zeros((1, TCOV_H * N_NODE), DTYPE)

    # ST memory
    params["memory"] = glorot(next(keys), (ST_MEMO_NUM, ST_MEMO_DIM))
    params["Wa"] = glorot(next(keys), (N_NODE * H_DIM, ST_MEMO_DIM))
    params["fc"] = glorot(next(keys), (ST_MEMO_DIM, ST_MEMO_DIM * N_NODE))

    # output projection: Linear(h_dim + st_memo_dim, c_in) + ReLU
    params["Wp"] = glorot(next(keys), (H_DIM + ST_MEMO_DIM, C_IN))
    params["bp"] = jnp.zeros((1, C_IN), DTYPE)

    # Adaptive graph (kept for structural fidelity).  With kappa == 1.0 its
    # contribution is multiplied by zero in the reference math -> never enters kernel.
    v1 = glorot(next(keys), (N_NODE, EMB_DIM))
    v2 = glorot(next(keys), (EMB_DIM, N_NODE))
    params["adpG"] = jax.nn.softmax(jnp.maximum(v1 @ v2, 0.0), axis=1)
    return params


def tcov_mlp(params, t):
    h = t @ params["mlp_w1"] + params["mlp_b1"]
    return h @ params["mlp_w2"] + params["mlp_b2"]


def _fold_cell(cell, h_in):
    """kappa==1.0 fold of the mixhop Linear (sum the CHEBY_K identical input row
    blocks) + column-fuse gate|candidate weights that share the same x input.
    Returns (Wx (h_in, 3H), b (1, 3H), Wgh (H, 2H), Wch (H, H)), with fused columns
    ordered [gates 2H | cand H] and gate columns ordered [update H | reset H]."""
    h_cat = h_in + H_DIM
    wg = cell["Wg"].reshape(CHEBY_K, h_cat, -1).sum(axis=0)   # (h_cat, 2H)
    wc = cell["Wc"].reshape(CHEBY_K, h_cat, -1).sum(axis=0)   # (h_cat, H)
    wx = jnp.concatenate([wg[:h_in], wc[:h_in]], axis=1)      # (h_in, 3H)
    b = jnp.concatenate([cell["bg"], cell["bc"]], axis=1)     # (1, 3H)
    return wx, b, wg[h_in:], wc[h_in:]


def st_net_forward(params, x_seq, t_x, t_y):
    b, t_in, n, c_in = x_seq.shape
    horizon = t_y.shape[1]
    bn = b * n
    in0 = c_in + TCOV_H
    md = ST_MEMO_DIM
    three_h = 3 * H_DIM

    # ---- time covariates (tiny MLP, plain-JAX glue; same reshape as reference) ----
    x_time = tcov_mlp(params, t_x).reshape(b, t_in, n, TCOV_H)
    y_time = tcov_mlp(params, t_y).reshape(b, horizon, n, TCOV_H)

    x_in = jnp.concatenate([x_seq, x_time], axis=-1)                  # (B,T,N,in0)
    x_all = jnp.transpose(x_in, (1, 0, 2, 3)).reshape(t_in * bn, in0)
    y_all = jnp.transpose(y_time, (1, 0, 2, 3)).reshape(horizon * bn, TCOV_H)

    # ---- kappa==1.0 fold + gate|cand column fusion ----
    e0_wx, e0_b, e0_wgh, e0_wch = _fold_cell(params["enc"][0], in0)
    e1_wx, e1_b, e1_wgh, e1_wch = _fold_cell(params["enc"][1], H_DIM)
    d0_wx, d0_b, d0_wgh, d0_wch = _fold_cell(params["dec"][0], in0)
    d1_wx, d1_b, d1_wgh, d1_wch = _fold_cell(params["dec"][1], H_DIM)
    d0_wgo = d0_wx[:c_in]      # per-step (go) rows
    d0_wyt = d0_wx[c_in:]      # hoistable (y_time) rows

    # Biases used inside the unrolled per-step loops: pre-broadcast to (bn, .) so no
    # broadcast_in_dim is re-emitted per step.  Slab biases stay (1, 3H) (added once).
    e1_b_bn = jnp.tile(e1_b, (bn, 1))
    d1_b_bn = jnp.tile(d1_b, (bn, 1))
    bp_bn = jnp.tile(params["bp"], (bn, 1))

    # ---- ST-memory head in lane-dense layouts (column index j = n*md + m) ----
    wa_big = params["Wa"].reshape(n, H_DIM, md).transpose(1, 0, 2).reshape(H_DIM, n * md)
    dmask = jnp.tile(jnp.repeat(jnp.eye(n, dtype=DTYPE), md, axis=1), (b, 1))  # (bn,N*md)
    sel = jnp.repeat(jnp.eye(b, dtype=DTYPE), n, axis=1)        # (B, B*N)
    selT = sel.T                                                # (B*N, B)
    fold = jnp.tile(jnp.eye(md, dtype=DTYPE), (n, 1))           # (N*md, md)
    fold_memT = fold @ params["memory"].T                       # (N*md, M)
    mem_fc = params["memory"] @ params["fc"]                    # (M, N*md)
    fold_wpm = fold @ params["Wp"][H_DIM:]                      # (N*md, c_in)
    wph = params["Wp"][:H_DIM]                                  # (H, c_in)

    args = (
        x_all, y_all,
        e0_wx, e0_b, e0_wgh, e0_wch,
        e1_wx, e1_b_bn, e1_wgh, e1_wch,
        d0_wyt, d0_b, d0_wgo, d0_wgh, d0_wch,
        d1_wx, d1_b_bn, d1_wgh, d1_wch,
        wa_big, dmask, sel, selT, fold_memT, mem_fc, fold_wpm, wph, bp_bn,
    )

    # Advisory cost estimate (keeps XLA scheduling sane around the custom call).
    def gru_flops(h_in):
        return 2 * bn * (h_in + H_DIM) * (3 * H_DIM)
    flops = (t_in * (gru_flops(in0) + gru_flops(H_DIM))
             + horizon * (gru_flops(in0) + gru_flops(H_DIM)
                          + 2 * bn * H_DIM * (n * md)
                          + 4 * bn * (n * md) * md
                          + 2 * bn * (H_DIM + md) * c_in))
    transcendentals = (2 * t_in + 2 * horizon) * bn * 3 * H_DIM
    bytes_accessed = (sum(int(a.size) * a.dtype.itemsize for a in args)
                      + bn * horizon * c_in * 4)

    out2d = pl.pallas_call(
        st_net_kernel,
        out_shape=jax.ShapeDtypeStruct((bn, horizon * c_in), DTYPE),
        scratch_shapes=[
            pltpu.VMEM((t_in * bn, three_h), jnp.float32),     # hoisted enc-L0 slab
            pltpu.VMEM((horizon * bn, three_h), jnp.float32),  # hoisted dec-L0 y_time slab
        ],
        cost_estimate=pl.CostEstimate(flops=int(flops),
                                      transcendentals=int(transcendentals),
                                      bytes_accessed=int(bytes_accessed)),
        compiler_params=pltpu.CompilerParams(vmem_limit_bytes=32 * 1024 * 1024),
    )(*args)

    # (B*N, HORIZON*c_in) -> (B, HORIZON, N, c_in); ReLU already applied in-kernel
    # (the reference's trailing torch.relu is idempotent on top of the proj ReLU).
    out = out2d.reshape(b, n, horizon, c_in)
    return jnp.transpose(out, (0, 2, 1, 3))


# =====================================================================================
if __name__ == "__main__":
    key = jax.random.PRNGKey(0)
    k_param, k_x, k_tx, k_ty = jax.random.split(key, 4)

    params = init_params(k_param)
    x_seq = jax.random.normal(k_x, (B, T_IN, N_NODE, C_IN), dtype=DTYPE)
    t_x = jax.random.normal(k_tx, (B, T_IN, TCOV_IN), dtype=DTYPE)
    t_y = jax.random.normal(k_ty, (B, HORIZON, TCOV_IN), dtype=DTYPE)

    fwd = jax.jit(st_net_forward)
    out = jax.block_until_ready(fwd(params, x_seq, t_x, t_y))

    assert out.shape == (B, HORIZON, N_NODE, C_IN), out.shape
    assert bool(jnp.all(jnp.isfinite(out)))
    assert bool(jnp.all(out >= 0.0))   # ReLU output
    print("KERNEL_OK")
</pallas_src>

<mosaic_0001>
module attributes {stable_mosaic.version = 11 : i64} {
  func.func @st_net_kernel(%arg0: memref<192x6xf32, #tpu.memory_space<vmem>>, %arg1: memref<128x2xf32, #tpu.memory_space<vmem>>, %arg2: memref<6x96xf32, #tpu.memory_space<vmem>>, %arg3: memref<1x96xf32, #tpu.memory_space<vmem>>, %arg4: memref<32x64xf32, #tpu.memory_space<vmem>>, %arg5: memref<32x32xf32, #tpu.memory_space<vmem>>, %arg6: memref<32x96xf32, #tpu.memory_space<vmem>>, %arg7: memref<32x96xf32, #tpu.memory_space<vmem>>, %arg8: memref<32x64xf32, #tpu.memory_space<vmem>>, %arg9: memref<32x32xf32, #tpu.memory_space<vmem>>, %arg10: memref<2x96xf32, #tpu.memory_space<vmem>>, %arg11: memref<1x96xf32, #tpu.memory_space<vmem>>, %arg12: memref<4x96xf32, #tpu.memory_space<vmem>>, %arg13: memref<32x64xf32, #tpu.memory_space<vmem>>, %arg14: memref<32x32xf32, #tpu.memory_space<vmem>>, %arg15: memref<32x96xf32, #tpu.memory_space<vmem>>, %arg16: memref<32x96xf32, #tpu.memory_space<vmem>>, %arg17: memref<32x64xf32, #tpu.memory_space<vmem>>, %arg18: memref<32x32xf32, #tpu.memory_space<vmem>>, %arg19: memref<32x128xf32, #tpu.memory_space<vmem>>, %arg20: memref<32x128xf32, #tpu.memory_space<vmem>>, %arg21: memref<2x32xf32, #tpu.memory_space<vmem>>, %arg22: memref<32x2xf32, #tpu.memory_space<vmem>>, %arg23: memref<128x4xf32, #tpu.memory_space<vmem>>, %arg24: memref<4x128xf32, #tpu.memory_space<vmem>>, %arg25: memref<128x4xf32, #tpu.memory_space<vmem>>, %arg26: memref<32x4xf32, #tpu.memory_space<vmem>>, %arg27: memref<32x4xf32, #tpu.memory_space<vmem>>, %arg28: memref<32x16xf32, #tpu.memory_space<vmem>>, %arg29: memref<192x96xf32, #tpu.memory_space<vmem>>, %arg30: memref<128x96xf32, #tpu.memory_space<vmem>>) attributes {dimension_semantics = [], scalar_prefetch = 0 : i64, scratch_operands = 2 : i64, tpu.core_type = #tpu.core_type<tc>} {
    %c0 = arith.constant 0 : index
    %c0_0 = arith.constant 0 : index
    %0 = vector.load %arg0[%c0, %c0_0] : memref<192x6xf32, #tpu.memory_space<vmem>>, vector<192x6xf32>
    %c0_1 = arith.constant 0 : index
    %c0_2 = arith.constant 0 : index
    %1 = vector.load %arg2[%c0_1, %c0_2] : memref<6x96xf32, #tpu.memory_space<vmem>>, vector<6x96xf32>
    %cst = arith.constant dense<0.000000e+00> : vector<192x96xf32>
    %2 = tpu.matmul %0, %1, %cst {dimension_numbers = #tpu.dot_dimension_numbers<[1], [0], [0], [1], [0, 0, 1, 1], [], []>} : vector<192x6xf32>, vector<6x96xf32>, vector<192x96xf32> -> vector<192x96xf32>
    %c0_3 = arith.constant 0 : index
    %c0_4 = arith.constant 0 : index
    %3 = vector.load %arg3[%c0_3, %c0_4] : memref<1x96xf32, #tpu.memory_space<vmem>>, vector<1x96xf32>
    %4 = vector.broadcast %3 : vector<1x96xf32> to vector<192x96xf32>
    %5 = arith.addf %2, %4 : vector<192x96xf32>
    %c0_5 = arith.constant 0 : index
    %c0_6 = arith.constant 0 : index
    %6 = vector.load %arg29[%c0_5, %c0_6] : memref<192x96xf32, #tpu.memory_space<vmem>>, vector<192x96xf32>
    tpu.vector_store %arg29[%c0_5, %c0_6], %5 {strides = array<i32>} : memref<192x96xf32, #tpu.memory_space<vmem>>, vector<192x96xf32>,
    %c0_7 = arith.constant 0 : index
    %c0_8 = arith.constant 0 : index
    %7 = vector.load %arg1[%c0_7, %c0_8] : memref<128x2xf32, #tpu.memory_space<vmem>>, vector<128x2xf32>
    %c0_9 = arith.constant 0 : index
    %c0_10 = arith.constant 0 : index
    %8 = vector.load %arg10[%c0_9, %c0_10] : memref<2x96xf32, #tpu.memory_space<vmem>>, vector<2x96xf32>
    %cst_11 = arith.constant dense<0.000000e+00> : vector<128x96xf32>
    %9 = tpu.matmul %7, %8, %cst_11 {dimension_numbers = #tpu.dot_dimension_numbers<[1], [0], [0], [1], [0, 0, 1, 1], [], []>} : vector<128x2xf32>, vector<2x96xf32>, vector<128x96xf32> -> vector<128x96xf32>
    %c0_12 = arith.constant 0 : index
    %c0_13 = arith.constant 0 : index
    %10 = vector.load %arg11[%c0_12, %c0_13] : memref<1x96xf32, #tpu.memory_space<vmem>>, vector<1x96xf32>
    %11 = vector.broadcast %10 : vector<1x96xf32> to vector<128x96xf32>
    %12 = arith.addf %9, %11 : vector<128x96xf32>
    %c0_14 = arith.constant 0 : index
    %c0_15 = arith.constant 0 : index
    %13 = vector.load %arg30[%c0_14, %c0_15] : memref<128x96xf32, #tpu.memory_space<vmem>>, vector<128x96xf32>
    tpu.vector_store %arg30[%c0_14, %c0_15], %12 {strides = array<i32>} : memref<128x96xf32, #tpu.memory_space<vmem>>, vector<128x96xf32>,
    %cst_16 = arith.constant 0.000000e+00 : f32
    %14 = vector.broadcast %cst_16 : f32 to vector<32x32xf32>
    %cst_17 = arith.constant 0.000000e+00 : f32
    %15 = vector.broadcast %cst_17 : f32 to vector<32x32xf32>
    %c0_18 = arith.constant 0 : index
    %c0_19 = arith.constant 0 : index
    %16 = vector.load %arg29[%c0_18, %c0_19] : memref<192x96xf32, #tpu.memory_space<vmem>>, vector<32x96xf32>
    %17 = vector.extract_strided_slice %16 {offsets = [0, 0], sizes = [32, 64], strides = [1, 1]} : vector<32x96xf32> to vector<32x64xf32>
    %c0_20 = arith.constant 0 : index
    %c0_21 = arith.constant 0 : index
    %18 = vector.load %arg4[%c0_20, %c0_21] : memref<32x64xf32, #tpu.memory_space<vmem>>, vector<32x64xf32>
    %cst_22 = arith.constant dense<0.000000e+00> : vector<32x64xf32>
    %19 = tpu.matmul %14, %18, %cst_22 {dimension_numbers = #tpu.dot_dimension_numbers<[1], [0], [0], [1], [0, 0, 1, 1], [], []>} : vector<32x32xf32>, vector<32x64xf32>, vector<32x64xf32> -> vector<32x64xf32>
    %20 = arith.addf %17, %19 : vector<32x64xf32>
    %21 = arith.negf %20 : vector<32x64xf32>
    %22 = math.exp %21 : vector<32x64xf32>
    %cst_23 = arith.constant 1.000000e+00 : f32
    %23 = vector.broadcast %cst_23 : f32 to vector<32x64xf32>
    %24 = arith.addf %23, %22 : vector<32x64xf32>
    %25 = arith.divf %23, %24 : vector<32x64xf32>
    %26 = vector.extract_strided_slice %25 {offsets = [0, 0], sizes = [32, 32], strides = [1, 1]} : vector<32x64xf32> to vector<32x32xf32>
    %27 = vector.extract_strided_slice %25 {offsets = [0, 32], sizes = [32, 32], strides = [1, 1]} : vector<32x64xf32> to vector<32x32xf32>
    %28 = vector.extract_strided_slice %16 {offsets = [0, 64], sizes = [32, 32], strides = [1, 1]} : vector<32x96xf32> to vector<32x32xf32>
    %29 = arith.mulf %27, %14 : vector<32x32xf32>
    %c0_24 = arith.constant 0 : index
    %c0_25 = arith.constant 0 : index
    %30 = vector.load %arg5[%c0_24, %c0_25] : memref<32x32xf32, #tpu.memory_space<vmem>>, vector<32x32xf32>
    %cst_26 = arith.constant dense<0.000000e+00> : vector<32x32xf32>
    %31 = tpu.matmul %29, %30, %cst_26 {dimension_numbers = #tpu.dot_dimension_numbers<[1], [0], [0], [1], [0, 0, 1, 1], [], []>} : vector<32x32xf32>, vector<32x32xf32>, vector<32x32xf32> -> vector<32x32xf32>
    %32 = arith.addf %28, %31 : vector<32x32xf32>
    %33 = math.tanh %32 : vector<32x32xf32>
    %cst_27 = arith.constant 1.000000e+00 : f32
    %34 = vector.broadcast %cst_27 : f32 to vector<32x32xf32>
    %35 = arith.subf %34, %26 : vector<32x32xf32>
    %36 = arith.mulf %35, %14 : vector<32x32xf32>
    %37 = arith.mulf %26, %33 : vector<32x32xf32>
    %38 = arith.addf %36, %37 : vector<32x32xf32>
    %c0_28 = arith.constant 0 : index
    %c0_29 = arith.constant 0 : index
    %39 = vector.load %arg6[%c0_28, %c0_29] : memref<32x96xf32, #tpu.memory_space<vmem>>, vector<32x96xf32>
    %cst_30 = arith.constant dense<0.000000e+00> : vector<32x96xf32>
    %40 = tpu.matmul %38, %39, %cst_30 {dimension_numbers = #tpu.dot_dimension_numbers<[1], [0], [0], [1], [0, 0, 1, 1], [], []>} : vector<32x32xf32>, vector<32x96xf32>, vector<32x96xf32> -> vector<32x96xf32>
    %c0_31 = arith.constant 0 : index
    %c0_32 = arith.constant 0 : index
    %41 = vector.load %arg7[%c0_31, %c0_32] : memref<32x96xf32, #tpu.memory_space<vmem>>, vector<32x96xf32>
    %42 = arith.addf %40, %41 : vector<32x96xf32>
    %43 = vector.extract_strided_slice %42 {offsets = [0, 0], sizes = [32, 64], strides = [1, 1]} : vector<32x96xf32> to vector<32x64xf32>
    %c0_33 = arith.constant 0 : index
    %c0_34 = arith.constant 0 : index
    %44 = vector.load %arg8[%c0_33, %c0_34] : memref<32x64xf32, #tpu.memory_space<vmem>>, vector<32x64xf32>
    %cst_35 = arith.constant dense<0.000000e+00> : vector<32x64xf32>
    %45 = tpu.matmul %15, %44, %cst_35 {dimension_numbers = #tpu.dot_dimension_numbers<[1], [0], [0], [1], [0, 0, 1, 1], [], []>} : vector<32x32xf32>, vector<32x64xf32>, vector<32x64xf32> -> vector<32x64xf32>
    %46 = arith.addf %43, %45 : vector<32x64xf32>
    %47 = arith.negf %46 : vector<32x64xf32>
    %48 = math.exp %47 : vector<32x64xf32>
    %cst_36 = arith.constant 1.000000e+00 : f32
    %49 = vector.broadcast %cst_36 : f32 to vector<32x64xf32>
    %50 = arith.addf %49, %48 : vector<32x64xf32>
    %51 = arith.divf %49, %50 : vector<32x64xf32>
    %52 = vector.extract_strided_slice %51 {offsets = [0, 0], sizes = [32, 32], strides = [1, 1]} : vector<32x64xf32> to vector<32x32xf32>
    %53 = vector.extract_strided_slice %51 {offsets = [0, 32], sizes = [32, 32], strides = [1, 1]} : vector<32x64xf32> to vector<32x32xf32>
    %54 = vector.extract_strided_slice %42 {offsets = [0, 64], sizes = [32, 32], strides = [1, 1]} : vector<32x96xf32> to vector<32x32xf32>
    %55 = arith.mulf %53, %15 : vector<32x32xf32>
    %c0_37 = arith.constant 0 : index
    %c0_38 = arith.constant 0 : index
    %56 = vector.load %arg9[%c0_37, %c0_38] : memref<32x32xf32, #tpu.memory_space<vmem>>, vector<32x32xf32>
    %cst_39 = arith.constant dense<0.000000e+00> : vector<32x32xf32>
    %57 = tpu.matmul %55, %56, %cst_39 {dimension_numbers = #tpu.dot_dimension_numbers<[1], [0], [0], [1], [0, 0, 1, 1], [], []>} : vector<32x32xf32>, vector<32x32xf32>, vector<32x32xf32> -> vector<32x32xf32>
    %58 = arith.addf %54, %57 : vector<32x32xf32>
    %59 = math.tanh %58 : vector<32x32xf32>
    %cst_40 = arith.constant 1.000000e+00 : f32
    %60 = vector.broadcast %cst_40 : f32 to vector<32x32xf32>
    %61 = arith.subf %60, %52 : vector<32x32xf32>
    %62 = arith.mulf %61, %15 : vector<32x32xf32>
    %63 = arith.mulf %52, %59 : vector<32x32xf32>
    %64 = arith.addf %62, %63 : vector<32x32xf32>
    %c32 = arith.constant 32 : index
    %c0_41 = arith.constant 0 : index
    %65 = vector.load %arg29[%c32, %c0_41] : memref<192x96xf32, #tpu.memory_space<vmem>>, vector<32x96xf32>
    %66 = vector.extract_strided_slice %65 {offsets = [0, 0], sizes = [32, 64], strides = [1, 1]} : vector<32x96xf32> to vector<32x64xf32>
    %c0_42 = arith.constant 0 : index
    %c0_43 = arith.constant 0 : index
    %67 = vector.load %arg4[%c0_42, %c0_43] : memref<32x64xf32, #tpu.memory_space<vmem>>, vector<32x64xf32>
    %cst_44 = arith.constant dense<0.000000e+00> : vector<32x64xf32>
    %68 = tpu.matmul %38, %67, %cst_44 {dimension_numbers = #tpu.dot_dimension_numbers<[1], [0], [0], [1], [0, 0, 1, 1], [], []>} : vector<32x32xf32>, vector<32x64xf32>, vector<32x64xf32> -> vector<32x64xf32>
    %69 = arith.addf %66, %68 : vector<32x64xf32>
    %70 = arith.negf %69 : vector<32x64xf32>
    %71 = math.exp %70 : vector<32x64xf32>
    %cst_45 = arith.constant 1.000000e+00 : f32
    %72 = vector.broadcast %cst_45 : f32 to vector<32x64xf32>
    %73 = arith.addf %72, %71 : vector<32x64xf32>
    %74 = arith.divf %72, %73 : vector<32x64xf32>
    %75 = vector.extract_strided_slice %74 {offsets = [0, 0], sizes = [32, 32], strides = [1, 1]} : vector<32x64xf32> to vector<32x32xf32>
    %76 = vector.extract_strided_slice %74 {offsets = [0, 32], sizes = [32, 32], strides = [1, 1]} : vector<32x64xf32> to vector<32x32xf32>
    %77 = vector.extract_strided_slice %65 {offsets = [0, 64], sizes = [32, 32], strides = [1, 1]} : vector<32x96xf32> to vector<32x32xf32>
    %78 = arith.mulf %76, %38 : vector<32x32xf32>
    %c0_46 = arith.constant 0 : index
    %c0_47 = arith.constant 0 : index
    %79 = vector.load %arg5[%c0_46, %c0_47] : memref<32x32xf32, #tpu.memory_space<vmem>>, vector<32x32xf32>
    %cst_48 = arith.constant dense<0.000000e+00> : vector<32x32xf32>
    %80 = tpu.matmul %78, %79, %cst_48 {dimension_numbers = #tpu.dot_dimension_numbers<[1], [0], [0], [1], [0, 0, 1, 1], [], []>} : vector<32x32xf32>, vector<32x32xf32>, vector<32x32xf32> -> vector<32x32xf32>
    %81 = arith.addf %77, %80 : vector<32x32xf32>
    %82 = math.tanh %81 : vector<32x32xf32>
    %cst_49 = arith.constant 1.000000e+00 : f32
    %83 = vector.broadcast %cst_49 : f32 to vector<32x32xf32>
    %84 = arith.subf %83, %75 : vector<32x32xf32>
    %85 = arith.mulf %84, %38 : vector<32x32xf32>
    %86 = arith.mulf %75, %82 : vector<32x32xf32>
    %87 = arith.addf %85, %86 : vector<32x32xf32>
    %c0_50 = arith.constant 0 : index
    %c0_51 = arith.constant 0 : index
    %88 = vector.load %arg6[%c0_50, %c0_51] : memref<32x96xf32, #tpu.memory_space<vmem>>, vector<32x96xf32>
    %cst_52 = arith.constant dense<0.000000e+00> : vector<32x96xf32>
    %89 = tpu.matmul %87, %88, %cst_52 {dimension_numbers = #tpu.dot_dimension_numbers<[1], [0], [0], [1], [0, 0, 1, 1], [], []>} : vector<32x32xf32>, vector<32x96xf32>, vector<32x96xf32> -> vector<32x96xf32>
    %c0_53 = arith.constant 0 : index
    %c0_54 = arith.constant 0 : index
    %90 = vector.load %arg7[%c0_53, %c0_54] : memref<32x96xf32, #tpu.memory_space<vmem>>, vector<32x96xf32>
    %91 = arith.addf %89, %90 : vector<32x96xf32>
    %92 = vector.extract_strided_slice %91 {offsets = [0, 0], sizes = [32, 64], strides = [1, 1]} : vector<32x96xf32> to vector<32x64xf32>
    %c0_55 = arith.constant 0 : index
    %c0_56 = arith.constant 0 : index
    %93 = vector.load %arg8[%c0_55, %c0_56] : memref<32x64xf32, #tpu.memory_space<vmem>>, vector<32x64xf32>
    %cst_57 = arith.constant dense<0.000000e+00> : vector<32x64xf32>
    %94 = tpu.matmul %64, %93, %cst_57 {dimension_numbers = #tpu.dot_dimension_numbers<[1], [0], [0], [1], [0, 0, 1, 1], [], []>} : vector<32x32xf32>, vector<32x64xf32>, vector<32x64xf32> -> vector<32x64xf32>
    %95 = arith.addf %92, %94 : vector<32x64xf32>
    %96 = arith.negf %95 : vector<32x64xf32>
    %97 = math.exp %96 : vector<32x64xf32>
    %cst_58 = arith.constant 1.000000e+00 : f32
    %98 = vector.broadcast %cst_58 : f32 to vector<32x64xf32>
    %99 = arith.addf %98, %97 : vector<32x64xf32>
    %100 = arith.divf %98, %99 : vector<32x64xf32>
    %101 = vector.extract_strided_slice %100 {offsets = [0, 0], sizes = [32, 32], strides = [1, 1]} : vector<32x64xf32> to vector<32x32xf32>
    %102 = vector.extract_strided_slice %100 {offsets = [0, 32], sizes = [32, 32], strides = [1, 1]} : vector<32x64xf32> to vector<32x32xf32>
    %103 = vector.extract_strided_slice %91 {offsets = [0, 64], sizes = [32, 32], strides = [1, 1]} : vector<32x96xf32> to vector<32x32xf32>
    %104 = arith.mulf %102, %64 : vector<32x32xf32>
    %c0_59 = arith.constant 0 : index
    %c0_60 = arith.constant 0 : index
    %105 = vector.load %arg9[%c0_59, %c0_60] : memref<32x32xf32, #tpu.memory_space<vmem>>, vector<32x32xf32>
    %cst_61 = arith.constant dense<0.000000e+00> : vector<32x32xf32>
    %106 = tpu.matmul %104, %105, %cst_61 {dimension_numbers = #tpu.dot_dimension_numbers<[1], [0], [0], [1], [0, 0, 1, 1], [], []>} : vector<32x32xf32>, vector<32x32xf32>, vector<32x32xf32> -> vector<32x32xf32>
    %107 = arith.addf %103, %106 : vector<32x32xf32>
    %108 = math.tanh %107 : vector<32x32xf32>
    %cst_62 = arith.constant 1.000000e+00 : f32
    %109 = vector.broadcast %cst_62 : f32 to vector<32x32xf32>
    %110 = arith.subf %109, %101 : vector<32x32xf32>
    %111 = arith.mulf %110, %64 : vector<32x32xf32>
    %112 = arith.mulf %101, %108 : vector<32x32xf32>
    %113 = arith.addf %111, %112 : vector<32x32xf32>
    %c64 = arith.constant 64 : index
    %c0_63 = arith.constant 0 : index
    %114 = vector.load %arg29[%c64, %c0_63] : memref<192x96xf32, #tpu.memory_space<vmem>>, vector<32x96xf32>
    %115 = vector.extract_strided_slice %114 {offsets = [0, 0], sizes = [32, 64], strides = [1, 1]} : vector<32x96xf32> to vector<32x64xf32>
    %c0_64 = arith.constant 0 : index
    %c0_65 = arith.constant 0 : index
    %116 = vector.load %arg4[%c0_64, %c0_65] : memref<32x64xf32, #tpu.memory_space<vmem>>, vector<32x64xf32>
    %cst_66 = arith.constant dense<0.000000e+00> : vector<32x64xf32>
    %117 = tpu.matmul %87, %116, %cst_66 {dimension_numbers = #tpu.dot_dimension_numbers<[1], [0], [0], [1], [0, 0, 1, 1], [], []>} : vector<32x32xf32>, vector<32x64xf32>, vector<32x64xf32> -> vector<32x64xf32>
    %118 = arith.addf %115, %117 : vector<32x64xf32>
    %119 = arith.negf %118 : vector<32x64xf32>
    %120 = math.exp %119 : vector<32x64xf32>
    %cst_67 = arith.constant 1.000000e+00 : f32
    %121 = vector.broadcast %cst_67 : f32 to vector<32x64xf32>
    %122 = arith.addf %121, %120 : vector<32x64xf32>
    %123 = arith.divf %121, %122 : vector<32x64xf32>
    %124 = vector.extract_strided_slice %123 {offsets = [0, 0], sizes = [32, 32], strides = [1, 1]} : vector<32x64xf32> to vector<32x32xf32>
    %125 = vector.extract_strided_slice %123 {offsets = [0, 32], sizes = [32, 32], strides = [1, 1]} : vector<32x64xf32> to vector<32x32xf32>
    %126 = vector.extract_strided_slice %114 {offsets = [0, 64], sizes = [32, 32], strides = [1, 1]} : vector<32x96xf32> to vector<32x32xf32>
    %127 = arith.mulf %125, %87 : vector<32x32xf32>
    %c0_68 = arith.constant 0 : index
    %c0_69 = arith.constant 0 : index
    %128 = vector.load %arg5[%c0_68, %c0_69] : memref<32x32xf32, #tpu.memory_space<vmem>>, vector<32x32xf32>
    %cst_70 = arith.constant dense<0.000000e+00> : vector<32x32xf32>
    %129 = tpu.matmul %127, %128, %cst_70 {dimension_numbers = #tpu.dot_dimension_numbers<[1], [0], [0], [1], [0, 0, 1, 1], [], []>} : vector<32x32xf32>, vector<32x32xf32>, vector<32x32xf32> -> vector<32x32xf32>
    %130 = arith.addf %126, %129 : vector<32x32xf32>
    %131 = math.tanh %130 : vector<32x32xf32>
    %cst_71 = arith.constant 1.000000e+00 : f32
    %132 = vector.broadcast %cst_71 : f32 to vector<32x32xf32>
    %133 = arith.subf %132, %124 : vector<32x32xf32>
    %134 = arith.mulf %133, %87 : vector<32x32xf32>
    %135 = arith.mulf %124, %131 : vector<32x32xf32>
    %136 = arith.addf %134, %135 : vector<32x32xf32>
    %c0_72 = arith.constant 0 : index
    %c0_73 = arith.constant 0 : index
    %137 = vector.load %arg6[%c0_72, %c0_73] : memref<32x96xf32, #tpu.memory_space<vmem>>, vector<32x96xf32>
    %cst_74 = arith.constant dense<0.000000e+00> : vector<32x96xf32>
    %138 = tpu.matmul %136, %137, %cst_74 {dimension_numbers = #tpu.dot_dimension_numbers<[1], [0], [0], [1], [0, 0, 1, 1], [], []>} : vector<32x32xf32>, vector<32x96xf32>, vector<32x96xf32> -> vector<32x96xf32>
    %c0_75 = arith.constant 0 : index
    %c0_76 = arith.constant 0 : index
    %139 = vector.load %arg7[%c0_75, %c0_76] : memref<32x96xf32, #tpu.memory_space<vmem>>, vector<32x96xf32>
    %140 = arith.addf %138, %139 : vector<32x96xf32>
    %141 = vector.extract_strided_slice %140 {offsets = [0, 0], sizes = [32, 64], strides = [1, 1]} : vector<32x96xf32> to vector<32x64xf32>
    %c0_77 = arith.constant 0 : index
    %c0_78 = arith.constant 0 : index
    %142 = vector.load %arg8[%c0_77, %c0_78] : memref<32x64xf32, #tpu.memory_space<vmem>>, vector<32x64xf32>
    %cst_79 = arith.constant dense<0.000000e+00> : vector<32x64xf32>
    %143 = tpu.matmul %113, %142, %cst_79 {dimension_numbers = #tpu.dot_dimension_numbers<[1], [0], [0], [1], [0, 0, 1, 1], [], []>} : vector<32x32xf32>, vector<32x64xf32>, vector<32x64xf32> -> vector<32x64xf32>
    %144 = arith.addf %141, %143 : vector<32x64xf32>
    %145 = arith.negf %144 : vector<32x64xf32>
    %146 = math.exp %145 : vector<32x64xf32>
    %cst_80 = arith.constant 1.000000e+00 : f32
    %147 = vector.broadcast %cst_80 : f32 to vector<32x64xf32>
    %148 = arith.addf %147, %146 : vector<32x64xf32>
    %149 = arith.divf %147, %148 : vector<32x64xf32>
    %150 = vector.extract_strided_slice %149 {offsets = [0, 0], sizes = [32, 32], strides = [1, 1]} : vector<32x64xf32> to vector<32x32xf32>
    %151 = vector.extract_strided_slice %149 {offsets = [0, 32], sizes = [32, 32], strides = [1, 1]} : vector<32x64xf32> to vector<32x32xf32>
    %152 = vector.extract_strided_slice %140 {offsets = [0, 64], sizes = [32, 32], strides = [1, 1]} : vector<32x96xf32> to vector<32x32xf32>
    %153 = arith.mulf %151, %113 : vector<32x32xf32>
    %c0_81 = arith.constant 0 : index
    %c0_82 = arith.constant 0 : index
    %154 = vector.load %arg9[%c0_81, %c0_82] : memref<32x32xf32, #tpu.memory_space<vmem>>, vector<32x32xf32>
    %cst_83 = arith.constant dense<0.000000e+00> : vector<32x32xf32>
    %155 = tpu.matmul %153, %154, %cst_83 {dimension_numbers = #tpu.dot_dimension_numbers<[1], [0], [0], [1], [0, 0, 1, 1], [], []>} : vector<32x32xf32>, vector<32x32xf32>, vector<32x32xf32> -> vector<32x32xf32>
    %156 = arith.addf %152, %155 : vector<32x32xf32>
    %157 = math.tanh %156 : vector<32x32xf32>
    %cst_84 = arith.constant 1.000000e+00 : f32
    %158 = vector.broadcast %cst_84 : f32 to vector<32x32xf32>
    %159 = arith.subf %158, %150 : vector<32x32xf32>
    %160 = arith.mulf %159, %113 : vector<32x32xf32>
    %161 = arith.mulf %150, %157 : vector<32x32xf32>
    %162 = arith.addf %160, %161 : vector<32x32xf32>
    %c96 = arith.constant 96 : index
    %c0_85 = arith.constant 0 : index
    %163 = vector.load %arg29[%c96, %c0_85] : memref<192x96xf32, #tpu.memory_space<vmem>>, vector<32x96xf32>
    %164 = vector.extract_strided_slice %163 {offsets = [0, 0], sizes = [32, 64], strides = [1, 1]} : vector<32x96xf32> to vector<32x64xf32>
    %c0_86 = arith.constant 0 : index
    %c0_87 = arith.constant 0 : index
    %165 = vector.load %arg4[%c0_86, %c0_87] : memref<32x64xf32, #tpu.memory_space<vmem>>, vector<32x64xf32>
    %cst_88 = arith.constant dense<0.000000e+00> : vector<32x64xf32>
    %166 = tpu.matmul %136, %165, %cst_88 {dimension_numbers = #tpu.dot_dimension_numbers<[1], [0], [0], [1], [0, 0, 1, 1], [], []>} : vector<32x32xf32>, vector<32x64xf32>, vector<32x64xf32> -> vector<32x64xf32>
    %167 = arith.addf %164, %166 : vector<32x64xf32>
    %168 = arith.negf %167 : vector<32x64xf32>
    %169 = math.exp %168 : vector<32x64xf32>
    %cst_89 = arith.constant 1.000000e+00 : f32
    %170 = vector.broadcast %cst_89 : f32 to vector<32x64xf32>
    %171 = arith.addf %170, %169 : vector<32x64xf32>
    %172 = arith.divf %170, %171 : vector<32x64xf32>
    %173 = vector.extract_strided_slice %172 {offsets = [0, 0], sizes = [32, 32], strides = [1, 1]} : vector<32x64xf32> to vector<32x32xf32>
    %174 = vector.extract_strided_slice %172 {offsets = [0, 32], sizes = [32, 32], strides = [1, 1]} : vector<32x64xf32> to vector<32x32xf32>
    %175 = vector.extract_strided_slice %163 {offsets = [0, 64], sizes = [32, 32], strides = [1, 1]} : vector<32x96xf32> to vector<32x32xf32>
    %176 = arith.mulf %174, %136 : vector<32x32xf32>
    %c0_90 = arith.constant 0 : index
    %c0_91 = arith.constant 0 : index
    %177 = vector.load %arg5[%c0_90, %c0_91] : memref<32x32xf32, #tpu.memory_space<vmem>>, vector<32x32xf32>
    %cst_92 = arith.constant dense<0.000000e+00> : vector<32x32xf32>
    %178 = tpu.matmul %176, %177, %cst_92 {dimension_numbers = #tpu.dot_dimension_numbers<[1], [0], [0], [1], [0, 0, 1, 1], [], []>} : vector<32x32xf32>, vector<32x32xf32>, vector<32x32xf32> -> vector<32x32xf32>
    %179 = arith.addf %175, %178 : vector<32x32xf32>
    %180 = math.tanh %179 : vector<32x32xf32>
    %cst_93 = arith.constant 1.000000e+00 : f32
    %181 = vector.broadcast %cst_93 : f32 to vector<32x32xf32>
    %182 = arith.subf %181, %173 : vector<32x32xf32>
    %183 = arith.mulf %182, %136 : vector<32x32xf32>
    %184 = arith.mulf %173, %180 : vector<32x32xf32>
    %185 = arith.addf %183, %184 : vector<32x32xf32>
    %c0_94 = arith.constant 0 : index
    %c0_95 = arith.constant 0 : index
    %186 = vector.load %arg6[%c0_94, %c0_95] : memref<32x96xf32, #tpu.memory_space<vmem>>, vector<32x96xf32>
    %cst_96 = arith.constant dense<0.000000e+00> : vector<32x96xf32>
    %187 = tpu.matmul %185, %186, %cst_96 {dimension_numbers = #tpu.dot_dimension_numbers<[1], [0], [0], [1], [0, 0, 1, 1], [], []>} : vector<32x32xf32>, vector<32x96xf32>, vector<32x96xf32> -> vector<32x96xf32>
    %c0_97 = arith.constant 0 : index
    %c0_98 = arith.constant 0 : index
    %188 = vector.load %arg7[%c0_97, %c0_98] : memref<32x96xf32, #tpu.memory_space<vmem>>, vector<32x96xf32>
    %189 = arith.addf %187, %188 : vector<32x96xf32>
    %190 = vector.extract_strided_slice %189 {offsets = [0, 0], sizes = [32, 64], strides = [1, 1]} : vector<32x96xf32> to vector<32x64xf32>
    %c0_99 = arith.constant 0 : index
    %c0_100 = arith.constant 0 : index
    %191 = vector.load %arg8[%c0_99, %c0_100] : memref<32x64xf32, #tpu.memory_space<vmem>>, vector<32x64xf32>
    %cst_101 = arith.constant dense<0.000000e+00> : vector<32x64xf32>
    %192 = tpu.matmul %162, %191, %cst_101 {dimension_numbers = #tpu.dot_dimension_numbers<[1], [0], [0], [1], [0, 0, 1, 1], [], []>} : vector<32x32xf32>, vector<32x64xf32>, vector<32x64xf32> -> vector<32x64xf32>
    %193 = arith.addf %190, %192 : vector<32x64xf32>
    %194 = arith.negf %193 : vector<32x64xf32>
    %195 = math.exp %194 : vector<32x64xf32>
    %cst_102 = arith.constant 1.000000e+00 : f32
    %196 = vector.broadcast %cst_102 : f32 to vector<32x64xf32>
    %197 = arith.addf %196, %195 : vector<32x64xf32>
    %198 = arith.divf %196, %197 : vector<32x64xf32>
    %199 = vector.extract_strided_slice %198 {offsets = [0, 0], sizes = [32, 32], strides = [1, 1]} : vector<32x64xf32> to vector<32x32xf32>
    %200 = vector.extract_strided_slice %198 {offsets = [0, 32], sizes = [32, 32], strides = [1, 1]} : vector<32x64xf32> to vector<32x32xf32>
    %201 = vector.extract_strided_slice %189 {offsets = [0, 64], sizes = [32, 32], strides = [1, 1]} : vector<32x96xf32> to vector<32x32xf32>
    %202 = arith.mulf %200, %162 : vector<32x32xf32>
    %c0_103 = arith.constant 0 : index
    %c0_104 = arith.constant 0 : index
    %203 = vector.load %arg9[%c0_103, %c0_104] : memref<32x32xf32, #tpu.memory_space<vmem>>, vector<32x32xf32>
    %cst_105 = arith.constant dense<0.000000e+00> : vector<32x32xf32>
    %204 = tpu.matmul %202, %203, %cst_105 {dimension_numbers = #tpu.dot_dimension_numbers<[1], [0], [0], [1], [0, 0, 1, 1], [], []>} : vector<32x32xf32>, vector<32x32xf32>, vector<32x32xf32> -> vector<32x32xf32>
    %205 = arith.addf %201, %204 : vector<32x32xf32>
    %206 = math.tanh %205 : vector<32x32xf32>
    %cst_106 = arith.constant 1.000000e+00 : f32
    %207 = vector.broadcast %cst_106 : f32 to vector<32x32xf32>
    %208 = arith.subf %207, %199 : vector<32x32xf32>
    %209 = arith.mulf %208, %162 : vector<32x32xf32>
    %210 = arith.mulf %199, %206 : vector<32x32xf32>
    %211 = arith.addf %209, %210 : vector<32x32xf32>
    %c128 = arith.constant 128 : index
    %c0_107 = arith.constant 0 : index
    %212 = vector.load %arg29[%c128, %c0_107] : memref<192x96xf32, #tpu.memory_space<vmem>>, vector<32x96xf32>
    %213 = vector.extract_strided_slice %212 {offsets = [0, 0], sizes = [32, 64], strides = [1, 1]} : vector<32x96xf32> to vector<32x64xf32>
    %c0_108 = arith.constant 0 : index
    %c0_109 = arith.constant 0 : index
    %214 = vector.load %arg4[%c0_108, %c0_109] : memref<32x64xf32, #tpu.memory_space<vmem>>, vector<32x64xf32>
    %cst_110 = arith.constant dense<0.000000e+00> : vector<32x64xf32>
    %215 = tpu.matmul %185, %214, %cst_110 {dimension_numbers = #tpu.dot_dimension_numbers<[1], [0], [0], [1], [0, 0, 1, 1], [], []>} : vector<32x32xf32>, vector<32x64xf32>, vector<32x64xf32> -> vector<32x64xf32>
    %216 = arith.addf %213, %215 : vector<32x64xf32>
    %217 = arith.negf %216 : vector<32x64xf32>
    %218 = math.exp %217 : vector<32x64xf32>
    %cst_111 = arith.constant 1.000000e+00 : f32
    %219 = vector.broadcast %cst_111 : f32 to vector<32x64xf32>
    %220 = arith.addf %219, %218 : vector<32x64xf32>
    %221 = arith.divf %219, %220 : vector<32x64xf32>
    %222 = vector.extract_strided_slice %221 {offsets = [0, 0], sizes = [32, 32], strides = [1, 1]} : vector<32x64xf32> to vector<32x32xf32>
    %223 = vector.extract_strided_slice %221 {offsets = [0, 32], sizes = [32, 32], strides = [1, 1]} : vector<32x64xf32> to vector<32x32xf32>
    %224 = vector.extract_strided_slice %212 {offsets = [0, 64], sizes = [32, 32], strides = [1, 1]} : vector<32x96xf32> to vector<32x32xf32>
    %225 = arith.mulf %223, %185 : vector<32x32xf32>
    %c0_112 = arith.constant 0 : index
    %c0_113 = arith.constant 0 : index
    %226 = vector.load %arg5[%c0_112, %c0_113] : memref<32x32xf32, #tpu.memory_space<vmem>>, vector<32x32xf32>
    %cst_114 = arith.constant dense<0.000000e+00> : vector<32x32xf32>
    %227 = tpu.matmul %225, %226, %cst_114 {dimension_numbers = #tpu.dot_dimension_numbers<[1], [0], [0], [1], [0, 0, 1, 1], [], []>} : vector<32x32xf32>, vector<32x32xf32>, vector<32x32xf32> -> vector<32x32xf32>
    %228 = arith.addf %224, %227 : vector<32x32xf32>
    %229 = math.tanh %228 : vector<32x32xf32>
    %cst_115 = arith.constant 1.000000e+00 : f32
    %230 = vector.broadcast %cst_115 : f32 to vector<32x32xf32>
    %231 = arith.subf %230, %222 : vector<32x32xf32>
    %232 = arith.mulf %231, %185 : vector<32x32xf32>
    %233 = arith.mulf %222, %229 : vector<32x32xf32>
    %234 = arith.addf %232, %233 : vector<32x32xf32>
    %c0_116 = arith.constant 0 : index
    %c0_117 = arith.constant 0 : index
    %235 = vector.load %arg6[%c0_116, %c0_117] : memref<32x96xf32, #tpu.memory_space<vmem>>, vector<32x96xf32>
    %cst_118 = arith.constant dense<0.000000e+00> : vector<32x96xf32>
    %236 = tpu.matmul %234, %235, %cst_118 {dimension_numbers = #tpu.dot_dimension_numbers<[1], [0], [0], [1], [0, 0, 1, 1], [], []>} : vector<32x32xf32>, vector<32x96xf32>, vector<32x96xf32> -> vector<32x96xf32>
    %c0_119 = arith.constant 0 : index
    %c0_120 = arith.constant 0 : index
    %237 = vector.load %arg7[%c0_119, %c0_120] : memref<32x96xf32, #tpu.memory_space<vmem>>, vector<32x96xf32>
    %238 = arith.addf %236, %237 : vector<32x96xf32>
    %239 = vector.extract_strided_slice %238 {offsets = [0, 0], sizes = [32, 64], strides = [1, 1]} : vector<32x96xf32> to vector<32x64xf32>
    %c0_121 = arith.constant 0 : index
    %c0_122 = arith.constant 0 : index
    %240 = vector.load %arg8[%c0_121, %c0_122] : memref<32x64xf32, #tpu.memory_space<vmem>>, vector<32x64xf32>
    %cst_123 = arith.constant dense<0.000000e+00> : vector<32x64xf32>
    %241 = tpu.matmul %211, %240, %cst_123 {dimension_numbers = #tpu.dot_dimension_numbers<[1], [0], [0], [1], [0, 0, 1, 1], [], []>} : vector<32x32xf32>, vector<32x64xf32>, vector<32x64xf32> -> vector<32x64xf32>
    %242 = arith.addf %239, %241 : vector<32x64xf32>
    %243 = arith.negf %242 : vector<32x64xf32>
    %244 = math.exp %243 : vector<32x64xf32>
    %cst_124 = arith.constant 1.000000e+00 : f32
    %245 = vector.broadcast %cst_124 : f32 to vector<32x64xf32>
    %246 = arith.addf %245, %244 : vector<32x64xf32>
    %247 = arith.divf %245, %246 : vector<32x64xf32>
    %248 = vector.extract_strided_slice %247 {offsets = [0, 0], sizes = [32, 32], strides = [1, 1]} : vector<32x64xf32> to vector<32x32xf32>
    %249 = vector.extract_strided_slice %247 {offsets = [0, 32], sizes = [32, 32], strides = [1, 1]} : vector<32x64xf32> to vector<32x32xf32>
    %250 = vector.extract_strided_slice %238 {offsets = [0, 64], sizes = [32, 32], strides = [1, 1]} : vector<32x96xf32> to vector<32x32xf32>
    %251 = arith.mulf %249, %211 : vector<32x32xf32>
    %c0_125 = arith.constant 0 : index
    %c0_126 = arith.constant 0 : index
    %252 = vector.load %arg9[%c0_125, %c0_126] : memref<32x32xf32, #tpu.memory_space<vmem>>, vector<32x32xf32>
    %cst_127 = arith.constant dense<0.000000e+00> : vector<32x32xf32>
    %253 = tpu.matmul %251, %252, %cst_127 {dimension_numbers = #tpu.dot_dimension_numbers<[1], [0], [0], [1], [0, 0, 1, 1], [], []>} : vector<32x32xf32>, vector<32x32xf32>, vector<32x32xf32> -> vector<32x32xf32>
    %254 = arith.addf %250, %253 : vector<32x32xf32>
    %255 = math.tanh %254 : vector<32x32xf32>
    %cst_128 = arith.constant 1.000000e+00 : f32
    %256 = vector.broadcast %cst_128 : f32 to vector<32x32xf32>
    %257 = arith.subf %256, %248 : vector<32x32xf32>
    %258 = arith.mulf %257, %211 : vector<32x32xf32>
    %259 = arith.mulf %248, %255 : vector<32x32xf32>
    %260 = arith.addf %258, %259 : vector<32x32xf32>
    %c160 = arith.constant 160 : index
    %c0_129 = arith.constant 0 : index
    %261 = vector.load %arg29[%c160, %c0_129] : memref<192x96xf32, #tpu.memory_space<vmem>>, vector<32x96xf32>
    %262 = vector.extract_strided_slice %261 {offsets = [0, 0], sizes = [32, 64], strides = [1, 1]} : vector<32x96xf32> to vector<32x64xf32>
    %c0_130 = arith.constant 0 : index
    %c0_131 = arith.constant 0 : index
    %263 = vector.load %arg4[%c0_130, %c0_131] : memref<32x64xf32, #tpu.memory_space<vmem>>, vector<32x64xf32>
    %cst_132 = arith.constant dense<0.000000e+00> : vector<32x64xf32>
    %264 = tpu.matmul %234, %263, %cst_132 {dimension_numbers = #tpu.dot_dimension_numbers<[1], [0], [0], [1], [0, 0, 1, 1], [], []>} : vector<32x32xf32>, vector<32x64xf32>, vector<32x64xf32> -> vector<32x64xf32>
    %265 = arith.addf %262, %264 : vector<32x64xf32>
    %266 = arith.negf %265 : vector<32x64xf32>
    %267 = math.exp %266 : vector<32x64xf32>
    %cst_133 = arith.constant 1.000000e+00 : f32
    %268 = vector.broadcast %cst_133 : f32 to vector<32x64xf32>
    %269 = arith.addf %268, %267 : vector<32x64xf32>
    %270 = arith.divf %268, %269 : vector<32x64xf32>
    %271 = vector.extract_strided_slice %270 {offsets = [0, 0], sizes = [32, 32], strides = [1, 1]} : vector<32x64xf32> to vector<32x32xf32>
    %272 = vector.extract_strided_slice %270 {offsets = [0, 32], sizes = [32, 32], strides = [1, 1]} : vector<32x64xf32> to vector<32x32xf32>
    %273 = vector.extract_strided_slice %261 {offsets = [0, 64], sizes = [32, 32], strides = [1, 1]} : vector<32x96xf32> to vector<32x32xf32>
    %274 = arith.mulf %272, %234 : vector<32x32xf32>
    %c0_134 = arith.constant 0 : index
    %c0_135 = arith.constant 0 : index
    %275 = vector.load %arg5[%c0_134, %c0_135] : memref<32x32xf32, #tpu.memory_space<vmem>>, vector<32x32xf32>
    %cst_136 = arith.constant dense<0.000000e+00> : vector<32x32xf32>
    %276 = tpu.matmul %274, %275, %cst_136 {dimension_numbers = #tpu.dot_dimension_numbers<[1], [0], [0], [1], [0, 0, 1, 1], [], []>} : vector<32x32xf32>, vector<32x32xf32>, vector<32x32xf32> -> vector<32x32xf32>
    %277 = arith.addf %273, %276 : vector<32x32xf32>
    %278 = math.tanh %277 : vector<32x32xf32>
    %cst_137 = arith.constant 1.000000e+00 : f32
    %279 = vector.broadcast %cst_137 : f32 to vector<32x32xf32>
    %280 = arith.subf %279, %271 : vector<32x32xf32>
    %281 = arith.mulf %280, %234 : vector<32x32xf32>
    %282 = arith.mulf %271, %278 : vector<32x32xf32>
    %283 = arith.addf %281, %282 : vector<32x32xf32>
    %c0_138 = arith.constant 0 : index
    %c0_139 = arith.constant 0 : index
    %284 = vector.load %arg6[%c0_138, %c0_139] : memref<32x96xf32, #tpu.memory_space<vmem>>, vector<32x96xf32>
    %cst_140 = arith.constant dense<0.000000e+00> : vector<32x96xf32>
    %285 = tpu.matmul %283, %284, %cst_140 {dimension_numbers = #tpu.dot_dimension_numbers<[1], [0], [0], [1], [0, 0, 1, 1], [], []>} : vector<32x32xf32>, vector<32x96xf32>, vector<32x96xf32> -> vector<32x96xf32>
    %c0_141 = arith.constant 0 : index
    %c0_142 = arith.constant 0 : index
    %286 = vector.load %arg7[%c0_141, %c0_142] : memref<32x96xf32, #tpu.memory_space<vmem>>, vector<32x96xf32>
    %287 = arith.addf %285, %286 : vector<32x96xf32>
    %288 = vector.extract_strided_slice %287 {offsets = [0, 0], sizes = [32, 64], strides = [1, 1]} : vector<32x96xf32> to vector<32x64xf32>
    %c0_143 = arith.constant 0 : index
    %c0_144 = arith.constant 0 : index
    %289 = vector.load %arg8[%c0_143, %c0_144] : memref<32x64xf32, #tpu.memory_space<vmem>>, vector<32x64xf32>
    %cst_145 = arith.constant dense<0.000000e+00> : vector<32x64xf32>
    %290 = tpu.matmul %260, %289, %cst_145 {dimension_numbers = #tpu.dot_dimension_numbers<[1], [0], [0], [1], [0, 0, 1, 1], [], []>} : vector<32x32xf32>, vector<32x64xf32>, vector<32x64xf32> -> vector<32x64xf32>
    %291 = arith.addf %288, %290 : vector<32x64xf32>
    %292 = arith.negf %291 : vector<32x64xf32>
    %293 = math.exp %292 : vector<32x64xf32>
    %cst_146 = arith.constant 1.000000e+00 : f32
    %294 = vector.broadcast %cst_146 : f32 to vector<32x64xf32>
    %295 = arith.addf %294, %293 : vector<32x64xf32>
    %296 = arith.divf %294, %295 : vector<32x64xf32>
    %297 = vector.extract_strided_slice %296 {offsets = [0, 0], sizes = [32, 32], strides = [1, 1]} : vector<32x64xf32> to vector<32x32xf32>
    %298 = vector.extract_strided_slice %296 {offsets = [0, 32], sizes = [32, 32], strides = [1, 1]} : vector<32x64xf32> to vector<32x32xf32>
    %299 = vector.extract_strided_slice %287 {offsets = [0, 64], sizes = [32, 32], strides = [1, 1]} : vector<32x96xf32> to vector<32x32xf32>
    %300 = arith.mulf %298, %260 : vector<32x32xf32>
    %c0_147 = arith.constant 0 : index
    %c0_148 = arith.constant 0 : index
    %301 = vector.load %arg9[%c0_147, %c0_148] : memref<32x32xf32, #tpu.memory_space<vmem>>, vector<32x32xf32>
    %cst_149 = arith.constant dense<0.000000e+00> : vector<32x32xf32>
    %302 = tpu.matmul %300, %301, %cst_149 {dimension_numbers = #tpu.dot_dimension_numbers<[1], [0], [0], [1], [0, 0, 1, 1], [], []>} : vector<32x32xf32>, vector<32x32xf32>, vector<32x32xf32> -> vector<32x32xf32>
    %303 = arith.addf %299, %302 : vector<32x32xf32>
    %304 = math.tanh %303 : vector<32x32xf32>
    %cst_150 = arith.constant 1.000000e+00 : f32
    %305 = vector.broadcast %cst_150 : f32 to vector<32x32xf32>
    %306 = arith.subf %305, %297 : vector<32x32xf32>
    %307 = arith.mulf %306, %260 : vector<32x32xf32>
    %308 = arith.mulf %297, %304 : vector<32x32xf32>
    %309 = arith.addf %307, %308 : vector<32x32xf32>
    %c0_151 = arith.constant 0 : index
    %c0_152 = arith.constant 0 : index
    %310 = vector.load %arg30[%c0_151, %c0_152] : memref<128x96xf32, #tpu.memory_space<vmem>>, vector<32x96xf32>
    %311 = vector.extract_strided_slice %310 {offsets = [0, 0], sizes = [32, 64], strides = [1, 1]} : vector<32x96xf32> to vector<32x64xf32>
    %c0_153 = arith.constant 0 : index
    %c0_154 = arith.constant 0 : index
    %312 = vector.load %arg13[%c0_153, %c0_154] : memref<32x64xf32, #tpu.memory_space<vmem>>, vector<32x64xf32>
    %cst_155 = arith.constant dense<0.000000e+00> : vector<32x64xf32>
    %313 = tpu.matmul %283, %312, %cst_155 {dimension_numbers = #tpu.dot_dimension_numbers<[1], [0], [0], [1], [0, 0, 1, 1], [], []>} : vector<32x32xf32>, vector<32x64xf32>, vector<32x64xf32> -> vector<32x64xf32>
    %314 = arith.addf %311, %313 : vector<32x64xf32>
    %315 = arith.negf %314 : vector<32x64xf32>
    %316 = math.exp %315 : vector<32x64xf32>
    %cst_156 = arith.constant 1.000000e+00 : f32
    %317 = vector.broadcast %cst_156 : f32 to vector<32x64xf32>
    %318 = arith.addf %317, %316 : vector<32x64xf32>
    %319 = arith.divf %317, %318 : vector<32x64xf32>
    %320 = vector.extract_strided_slice %319 {offsets = [0, 0], sizes = [32, 32], strides = [1, 1]} : vector<32x64xf32> to vector<32x32xf32>
    %321 = vector.extract_strided_slice %319 {offsets = [0, 32], sizes = [32, 32], strides = [1, 1]} : vector<32x64xf32> to vector<32x32xf32>
    %322 = vector.extract_strided_slice %310 {offsets = [0, 64], sizes = [32, 32], strides = [1, 1]} : vector<32x96xf32> to vector<32x32xf32>
    %323 = arith.mulf %321, %283 : vector<32x32xf32>
    %c0_157 = arith.constant 0 : index
    %c0_158 = arith.constant 0 : index
    %324 = vector.load %arg14[%c0_157, %c0_158] : memref<32x32xf32, #tpu.memory_space<vmem>>, vector<32x32xf32>
    %cst_159 = arith.constant dense<0.000000e+00> : vector<32x32xf32>
    %325 = tpu.matmul %323, %324, %cst_159 {dimension_numbers = #tpu.dot_dimension_numbers<[1], [0], [0], [1], [0, 0, 1, 1], [], []>} : vector<32x32xf32>, vector<32x32xf32>, vector<32x32xf32> -> vector<32x32xf32>
    %326 = arith.addf %322, %325 : vector<32x32xf32>
    %327 = math.tanh %326 : vector<32x32xf32>
    %cst_160 = arith.constant 1.000000e+00 : f32
    %328 = vector.broadcast %cst_160 : f32 to vector<32x32xf32>
    %329 = arith.subf %328, %320 : vector<32x32xf32>
    %330 = arith.mulf %329, %283 : vector<32x32xf32>
    %331 = arith.mulf %320, %327 : vector<32x32xf32>
    %332 = arith.addf %330, %331 : vector<32x32xf32>
    %c0_161 = arith.constant 0 : index
    %c0_162 = arith.constant 0 : index
    %333 = vector.load %arg15[%c0_161, %c0_162] : memref<32x96xf32, #tpu.memory_space<vmem>>, vector<32x96xf32>
    %cst_163 = arith.constant dense<0.000000e+00> : vector<32x96xf32>
    %334 = tpu.matmul %332, %333, %cst_163 {dimension_numbers = #tpu.dot_dimension_numbers<[1], [0], [0], [1], [0, 0, 1, 1], [], []>} : vector<32x32xf32>, vector<32x96xf32>, vector<32x96xf32> -> vector<32x96xf32>
    %c0_164 = arith.constant 0 : index
    %c0_165 = arith.constant 0 : index
    %335 = vector.load %arg16[%c0_164, %c0_165] : memref<32x96xf32, #tpu.memory_space<vmem>>, vector<32x96xf32>
    %336 = arith.addf %334, %335 : vector<32x96xf32>
    %337 = vector.extract_strided_slice %336 {offsets = [0, 0], sizes = [32, 64], strides = [1, 1]} : vector<32x96xf32> to vector<32x64xf32>
    %c0_166 = arith.constant 0 : index
    %c0_167 = arith.constant 0 : index
    %338 = vector.load %arg17[%c0_166, %c0_167] : memref<32x64xf32, #tpu.memory_space<vmem>>, vector<32x64xf32>
    %cst_168 = arith.constant dense<0.000000e+00> : vector<32x64xf32>
    %339 = tpu.matmul %309, %338, %cst_168 {dimension_numbers = #tpu.dot_dimension_numbers<[1], [0], [0], [1], [0, 0, 1, 1], [], []>} : vector<32x32xf32>, vector<32x64xf32>, vector<32x64xf32> -> vector<32x64xf32>
    %340 = arith.addf %337, %339 : vector<32x64xf32>
    %341 = arith.negf %340 : vector<32x64xf32>
    %342 = math.exp %341 : vector<32x64xf32>
    %cst_169 = arith.constant 1.000000e+00 : f32
    %343 = vector.broadcast %cst_169 : f32 to vector<32x64xf32>
    %344 = arith.addf %343, %342 : vector<32x64xf32>
    %345 = arith.divf %343, %344 : vector<32x64xf32>
    %346 = vector.extract_strided_slice %345 {offsets = [0, 0], sizes = [32, 32], strides = [1, 1]} : vector<32x64xf32> to vector<32x32xf32>
    %347 = vector.extract_strided_slice %345 {offsets = [0, 32], sizes = [32, 32], strides = [1, 1]} : vector<32x64xf32> to vector<32x32xf32>
    %348 = vector.extract_strided_slice %336 {offsets = [0, 64], sizes = [32, 32], strides = [1, 1]} : vector<32x96xf32> to vector<32x32xf32>
    %349 = arith.mulf %347, %309 : vector<32x32xf32>
    %c0_170 = arith.constant 0 : index
    %c0_171 = arith.constant 0 : index
    %350 = vector.load %arg18[%c0_170, %c0_171] : memref<32x32xf32, #tpu.memory_space<vmem>>, vector<32x32xf32>
    %cst_172 = arith.constant dense<0.000000e+00> : vector<32x32xf32>
    %351 = tpu.matmul %349, %350, %cst_172 {dimension_numbers = #tpu.dot_dimension_numbers<[1], [0], [0], [1], [0, 0, 1, 1], [], []>} : vector<32x32xf32>, vector<32x32xf32>, vector<32x32xf32> -> vector<32x32xf32>
    %352 = arith.addf %348, %351 : vector<32x32xf32>
    %353 = math.tanh %352 : vector<32x32xf32>
    %cst_173 = arith.constant 1.000000e+00 : f32
    %354 = vector.broadcast %cst_173 : f32 to vector<32x32xf32>
    %355 = arith.subf %354, %346 : vector<32x32xf32>
    %356 = arith.mulf %355, %309 : vector<32x32xf32>
    %357 = arith.mulf %346, %353 : vector<32x32xf32>
    %358 = arith.addf %356, %357 : vector<32x32xf32>
    %c0_174 = arith.constant 0 : index
    %c0_175 = arith.constant 0 : index
    %359 = vector.load %arg19[%c0_174, %c0_175] : memref<32x128xf32, #tpu.memory_space<vmem>>, vector<32x128xf32>
    %cst_176 = arith.constant dense<0.000000e+00> : vector<32x128xf32>
    %360 = tpu.matmul %358, %359, %cst_176 {dimension_numbers = #tpu.dot_dimension_numbers<[1], [0], [0], [1], [0, 0, 1, 1], [], []>} : vector<32x32xf32>, vector<32x128xf32>, vector<32x128xf32> -> vector<32x128xf32>
    %c0_177 = arith.constant 0 : index
    %c0_178 = arith.constant 0 : index
    %361 = vector.load %arg20[%c0_177, %c0_178] : memref<32x128xf32, #tpu.memory_space<vmem>>, vector<32x128xf32>
    %362 = arith.mulf %360, %361 : vector<32x128xf32>
    %c0_179 = arith.constant 0 : index
    %c0_180 = arith.constant 0 : index
    %363 = vector.load %arg21[%c0_179, %c0_180] : memref<2x32xf32, #tpu.memory_space<vmem>>, vector<2x32xf32>
    %cst_181 = arith.constant dense<0.000000e+00> : vector<2x128xf32>
    %364 = tpu.matmul %363, %362, %cst_181 {dimension_numbers = #tpu.dot_dimension_numbers<[1], [0], [0], [1], [0, 0, 1, 1], [], []>} : vector<2x32xf32>, vector<32x128xf32>, vector<2x128xf32> -> vector<2x128xf32>
    %c0_182 = arith.constant 0 : index
    %c0_183 = arith.constant 0 : index
    %365 = vector.load %arg23[%c0_182, %c0_183] : memref<128x4xf32, #tpu.memory_space<vmem>>, vector<128x4xf32>
    %cst_184 = arith.constant dense<0.000000e+00> : vector<2x4xf32>
    %366 = tpu.matmul %364, %365, %cst_184 {dimension_numbers = #tpu.dot_dimension_numbers<[1], [0], [0], [1], [0, 0, 1, 1], [], []>} : vector<2x128xf32>, vector<128x4xf32>, vector<2x4xf32> -> vector<2x4xf32>
    %cst_185 = arith.constant dense<0xFF800000> : vector<2xf32>
    %367 = vector.multi_reduction <maximumf>, %366, %cst_185 [1] : vector<2x4xf32> to vector<2xf32>
    %cst_186 = arith.constant 0xFF800000 : f32
    %368 = vector.broadcast %cst_186 : f32 to vector<2xf32>
    %369 = arith.maximumf %368, %367 : vector<2xf32>
    %370 = vector.shape_cast %369 : vector<2xf32> to vector<2x1xf32>
    %371 = vector.broadcast %370 : vector<2x1xf32> to vector<2x4xf32>
    %372 = arith.subf %366, %371 : vector<2x4xf32>
    %373 = math.exp %372 : vector<2x4xf32>
    %cst_187 = arith.constant dense<0.000000e+00> : vector<2xf32>
    %374 = vector.multi_reduction <add>, %373, %cst_187 [1] : vector<2x4xf32> to vector<2xf32>
    %375 = vector.shape_cast %374 : vector<2xf32> to vector<2x1xf32>
    %376 = vector.broadcast %375 : vector<2x1xf32> to vector<2x4xf32>
    %377 = arith.divf %373, %376 : vector<2x4xf32>
    %c0_188 = arith.constant 0 : index
    %c0_189 = arith.constant 0 : index
    %378 = vector.load %arg22[%c0_188, %c0_189] : memref<32x2xf32, #tpu.memory_space<vmem>>, vector<32x2xf32>
    %c0_190 = arith.constant 0 : index
    %c0_191 = arith.constant 0 : index
    %379 = vector.load %arg24[%c0_190, %c0_191] : memref<4x128xf32, #tpu.memory_space<vmem>>, vector<4x128xf32>
    %cst_192 = arith.constant dense<0.000000e+00> : vector<2x128xf32>
    %380 = tpu.matmul %377, %379, %cst_192 {dimension_numbers = #tpu.dot_dimension_numbers<[1], [0], [0], [1], [0, 0, 1, 1], [], []>} : vector<2x4xf32>, vector<4x128xf32>, vector<2x128xf32> -> vector<2x128xf32>
    %cst_193 = arith.constant dense<0.000000e+00> : vector<32x128xf32>
    %381 = tpu.matmul %378, %380, %cst_193 {dimension_numbers = #tpu.dot_dimension_numbers<[1], [0], [0], [1], [0, 0, 1, 1], [], []>} : vector<32x2xf32>, vector<2x128xf32>, vector<32x128xf32> -> vector<32x128xf32>
    %c0_194 = arith.constant 0 : index
    %c0_195 = arith.constant 0 : index
    %382 = vector.load %arg20[%c0_194, %c0_195] : memref<32x128xf32, #tpu.memory_space<vmem>>, vector<32x128xf32>
    %383 = arith.mulf %381, %382 : vector<32x128xf32>
    %c0_196 = arith.constant 0 : index
    %c0_197 = arith.constant 0 : index
    %384 = vector.load %arg25[%c0_196, %c0_197] : memref<128x4xf32, #tpu.memory_space<vmem>>, vector<128x4xf32>
    %cst_198 = arith.constant dense<0.000000e+00> : vector<32x4xf32>
    %385 = tpu.matmul %383, %384, %cst_198 {dimension_numbers = #tpu.dot_dimension_numbers<[1], [0], [0], [1], [0, 0, 1, 1], [], []>} : vector<32x128xf32>, vector<128x4xf32>, vector<32x4xf32> -> vector<32x4xf32>
    %c0_199 = arith.constant 0 : index
    %c0_200 = arith.constant 0 : index
    %386 = vector.load %arg26[%c0_199, %c0_200] : memref<32x4xf32, #tpu.memory_space<vmem>>, vector<32x4xf32>
    %cst_201 = arith.constant dense<0.000000e+00> : vector<32x4xf32>
    %387 = tpu.matmul %358, %386, %cst_201 {dimension_numbers = #tpu.dot_dimension_numbers<[1], [0], [0], [1], [0, 0, 1, 1], [], []>} : vector<32x32xf32>, vector<32x4xf32>, vector<32x4xf32> -> vector<32x4xf32>
    %388 = arith.addf %387, %385 : vector<32x4xf32>
    %c0_202 = arith.constant 0 : index
    %c0_203 = arith.constant 0 : index
    %389 = vector.load %arg27[%c0_202, %c0_203] : memref<32x4xf32, #tpu.memory_space<vmem>>, vector<32x4xf32>
    %390 = arith.addf %388, %389 : vector<32x4xf32>
    %cst_204 = arith.constant 0.000000e+00 : f32
    %391 = vector.broadcast %cst_204 : f32 to vector<32x4xf32>
    %392 = arith.maximumf %390, %391 : vector<32x4xf32>
    %c0_205 = arith.constant 0 : index
    %c0_206 = arith.constant 0 : index
    %393 = vector.load %arg28[%c0_205, %c0_206] : memref<32x16xf32, #tpu.memory_space<vmem>>, vector<32x4xf32>
    tpu.vector_store %arg28[%c0_205, %c0_206], %392 {strides = array<i32>} : memref<32x16xf32, #tpu.memory_space<vmem>>, vector<32x4xf32>,
    %c32_207 = arith.constant 32 : index
    %c0_208 = arith.constant 0 : index
    %394 = vector.load %arg30[%c32_207, %c0_208] : memref<128x96xf32, #tpu.memory_space<vmem>>, vector<32x96xf32>
    %c0_209 = arith.constant 0 : index
    %c0_210 = arith.constant 0 : index
    %395 = vector.load %arg12[%c0_209, %c0_210] : memref<4x96xf32, #tpu.memory_space<vmem>>, vector<4x96xf32>
    %cst_211 = arith.constant dense<0.000000e+00> : vector<32x96xf32>
    %396 = tpu.matmul %392, %395, %cst_211 {dimension_numbers = #tpu.dot_dimension_numbers<[1], [0], [0], [1], [0, 0, 1, 1], [], []>} : vector<32x4xf32>, vector<4x96xf32>, vector<32x96xf32> -> vector<32x96xf32>
    %397 = arith.addf %394, %396 : vector<32x96xf32>
    %398 = vector.extract_strided_slice %397 {offsets = [0, 0], sizes = [32, 64], strides = [1, 1]} : vector<32x96xf32> to vector<32x64xf32>
    %c0_212 = arith.constant 0 : index
    %c0_213 = arith.constant 0 : index
    %399 = vector.load %arg13[%c0_212, %c0_213] : memref<32x64xf32, #tpu.memory_space<vmem>>, vector<32x64xf32>
    %cst_214 = arith.constant dense<0.000000e+00> : vector<32x64xf32>
    %400 = tpu.matmul %332, %399, %cst_214 {dimension_numbers = #tpu.dot_dimension_numbers<[1], [0], [0], [1], [0, 0, 1, 1], [], []>} : vector<32x32xf32>, vector<32x64xf32>, vector<32x64xf32> -> vector<32x64xf32>
    %401 = arith.addf %398, %400 : vector<32x64xf32>
    %402 = arith.negf %401 : vector<32x64xf32>
    %403 = math.exp %402 : vector<32x64xf32>
    %cst_215 = arith.constant 1.000000e+00 : f32
    %404 = vector.broadcast %cst_215 : f32 to vector<32x64xf32>
    %405 = arith.addf %404, %403 : vector<32x64xf32>
    %406 = arith.divf %404, %405 : vector<32x64xf32>
    %407 = vector.extract_strided_slice %406 {offsets = [0, 0], sizes = [32, 32], strides = [1, 1]} : vector<32x64xf32> to vector<32x32xf32>
    %408 = vector.extract_strided_slice %406 {offsets = [0, 32], sizes = [32, 32], strides = [1, 1]} : vector<32x64xf32> to vector<32x32xf32>
    %409 = vector.extract_strided_slice %397 {offsets = [0, 64], sizes = [32, 32], strides = [1, 1]} : vector<32x96xf32> to vector<32x32xf32>
    %410 = arith.mulf %408, %332 : vector<32x32xf32>
    %c0_216 = arith.constant 0 : index
    %c0_217 = arith.constant 0 : index
    %411 = vector.load %arg14[%c0_216, %c0_217] : memref<32x32xf32, #tpu.memory_space<vmem>>, vector<32x32xf32>
    %cst_218 = arith.constant dense<0.000000e+00> : vector<32x32xf32>
    %412 = tpu.matmul %410, %411, %cst_218 {dimension_numbers = #tpu.dot_dimension_numbers<[1], [0], [0], [1], [0, 0, 1, 1], [], []>} : vector<32x32xf32>, vector<32x32xf32>, vector<32x32xf32> -> vector<32x32xf32>
    %413 = arith.addf %409, %412 : vector<32x32xf32>
    %414 = math.tanh %413 : vector<32x32xf32>
    %cst_219 = arith.constant 1.000000e+00 : f32
    %415 = vector.broadcast %cst_219 : f32 to vector<32x32xf32>
    %416 = arith.subf %415, %407 : vector<32x32xf32>
    %417 = arith.mulf %416, %332 : vector<32x32xf32>
    %418 = arith.mulf %407, %414 : vector<32x32xf32>
    %419 = arith.addf %417, %418 : vector<32x32xf32>
    %c0_220 = arith.constant 0 : index
    %c0_221 = arith.constant 0 : index
    %420 = vector.load %arg15[%c0_220, %c0_221] : memref<32x96xf32, #tpu.memory_space<vmem>>, vector<32x96xf32>
    %cst_222 = arith.constant dense<0.000000e+00> : vector<32x96xf32>
    %421 = tpu.matmul %419, %420, %cst_222 {dimension_numbers = #tpu.dot_dimension_numbers<[1], [0], [0], [1], [0, 0, 1, 1], [], []>} : vector<32x32xf32>, vector<32x96xf32>, vector<32x96xf32> -> vector<32x96xf32>
    %c0_223 = arith.constant 0 : index
    %c0_224 = arith.constant 0 : index
    %422 = vector.load %arg16[%c0_223, %c0_224] : memref<32x96xf32, #tpu.memory_space<vmem>>, vector<32x96xf32>
    %423 = arith.addf %421, %422 : vector<32x96xf32>
    %424 = vector.extract_strided_slice %423 {offsets = [0, 0], sizes = [32, 64], strides = [1, 1]} : vector<32x96xf32> to vector<32x64xf32>
    %c0_225 = arith.constant 0 : index
    %c0_226 = arith.constant 0 : index
    %425 = vector.load %arg17[%c0_225, %c0_226] : memref<32x64xf32, #tpu.memory_space<vmem>>, vector<32x64xf32>
    %cst_227 = arith.constant dense<0.000000e+00> : vector<32x64xf32>
    %426 = tpu.matmul %358, %425, %cst_227 {dimension_numbers = #tpu.dot_dimension_numbers<[1], [0], [0], [1], [0, 0, 1, 1], [], []>} : vector<32x32xf32>, vector<32x64xf32>, vector<32x64xf32> -> vector<32x64xf32>
    %427 = arith.addf %424, %426 : vector<32x64xf32>
    %428 = arith.negf %427 : vector<32x64xf32>
    %429 = math.exp %428 : vector<32x64xf32>
    %cst_228 = arith.constant 1.000000e+00 : f32
    %430 = vector.broadcast %cst_228 : f32 to vector<32x64xf32>
    %431 = arith.addf %430, %429 : vector<32x64xf32>
    %432 = arith.divf %430, %431 : vector<32x64xf32>
    %433 = vector.extract_strided_slice %432 {offsets = [0, 0], sizes = [32, 32], strides = [1, 1]} : vector<32x64xf32> to vector<32x32xf32>
    %434 = vector.extract_strided_slice %432 {offsets = [0, 32], sizes = [32, 32], strides = [1, 1]} : vector<32x64xf32> to vector<32x32xf32>
    %435 = vector.extract_strided_slice %423 {offsets = [0, 64], sizes = [32, 32], strides = [1, 1]} : vector<32x96xf32> to vector<32x32xf32>
    %436 = arith.mulf %434, %358 : vector<32x32xf32>
    %c0_229 = arith.constant 0 : index
    %c0_230 = arith.constant 0 : index
    %437 = vector.load %arg18[%c0_229, %c0_230] : memref<32x32xf32, #tpu.memory_space<vmem>>, vector<32x32xf32>
    %cst_231 = arith.constant dense<0.000000e+00> : vector<32x32xf32>
    %438 = tpu.matmul %436, %437, %cst_231 {dimension_numbers = #tpu.dot_dimension_numbers<[1], [0], [0], [1], [0, 0, 1, 1], [], []>} : vector<32x32xf32>, vector<32x32xf32>, vector<32x32xf32> -> vector<32x32xf32>
    %439 = arith.addf %435, %438 : vector<32x32xf32>
    %440 = math.tanh %439 : vector<32x32xf32>
    %cst_232 = arith.constant 1.000000e+00 : f32
    %441 = vector.broadcast %cst_232 : f32 to vector<32x32xf32>
    %442 = arith.subf %441, %433 : vector<32x32xf32>
    %443 = arith.mulf %442, %358 : vector<32x32xf32>
    %444 = arith.mulf %433, %440 : vector<32x32xf32>
    %445 = arith.addf %443, %444 : vector<32x32xf32>
    %c0_233 = arith.constant 0 : index
    %c0_234 = arith.constant 0 : index
    %446 = vector.load %arg19[%c0_233, %c0_234] : memref<32x128xf32, #tpu.memory_space<vmem>>, vector<32x128xf32>
    %cst_235 = arith.constant dense<0.000000e+00> : vector<32x128xf32>
    %447 = tpu.matmul %445, %446, %cst_235 {dimension_numbers = #tpu.dot_dimension_numbers<[1], [0], [0], [1], [0, 0, 1, 1], [], []>} : vector<32x32xf32>, vector<32x128xf32>, vector<32x128xf32> -> vector<32x128xf32>
    %c0_236 = arith.constant 0 : index
    %c0_237 = arith.constant 0 : index
    %448 = vector.load %arg20[%c0_236, %c0_237] : memref<32x128xf32, #tpu.memory_space<vmem>>, vector<32x128xf32>
    %449 = arith.mulf %447, %448 : vector<32x128xf32>
    %c0_238 = arith.constant 0 : index
    %c0_239 = arith.constant 0 : index
    %450 = vector.load %arg21[%c0_238, %c0_239] : memref<2x32xf32, #tpu.memory_space<vmem>>, vector<2x32xf32>
    %cst_240 = arith.constant dense<0.000000e+00> : vector<2x128xf32>
    %451 = tpu.matmul %450, %449, %cst_240 {dimension_numbers = #tpu.dot_dimension_numbers<[1], [0], [0], [1], [0, 0, 1, 1], [], []>} : vector<2x32xf32>, vector<32x128xf32>, vector<2x128xf32> -> vector<2x128xf32>
    %c0_241 = arith.constant 0 : index
    %c0_242 = arith.constant 0 : index
    %452 = vector.load %arg23[%c0_241, %c0_242] : memref<128x4xf32, #tpu.memory_space<vmem>>, vector<128x4xf32>
    %cst_243 = arith.constant dense<0.000000e+00> : vector<2x4xf32>
    %453 = tpu.matmul %451, %452, %cst_243 {dimension_numbers = #tpu.dot_dimension_numbers<[1], [0], [0], [1], [0, 0, 1, 1], [], []>} : vector<2x128xf32>, vector<128x4xf32>, vector<2x4xf32> -> vector<2x4xf32>
    %cst_244 = arith.constant dense<0xFF800000> : vector<2xf32>
    %454 = vector.multi_reduction <maximumf>, %453, %cst_244 [1] : vector<2x4xf32> to vector<2xf32>
    %cst_245 = arith.constant 0xFF800000 : f32
    %455 = vector.broadcast %cst_245 : f32 to vector<2xf32>
    %456 = arith.maximumf %455, %454 : vector<2xf32>
    %457 = vector.shape_cast %456 : vector<2xf32> to vector<2x1xf32>
    %458 = vector.broadcast %457 : vector<2x1xf32> to vector<2x4xf32>
    %459 = arith.subf %453, %458 : vector<2x4xf32>
    %460 = math.exp %459 : vector<2x4xf32>
    %cst_246 = arith.constant dense<0.000000e+00> : vector<2xf32>
    %461 = vector.multi_reduction <add>, %460, %cst_246 [1] : vector<2x4xf32> to vector<2xf32>
    %462 = vector.shape_cast %461 : vector<2xf32> to vector<2x1xf32>
    %463 = vector.broadcast %462 : vector<2x1xf32> to vector<2x4xf32>
    %464 = arith.divf %460, %463 : vector<2x4xf32>
    %c0_247 = arith.constant 0 : index
    %c0_248 = arith.constant 0 : index
    %465 = vector.load %arg22[%c0_247, %c0_248] : memref<32x2xf32, #tpu.memory_space<vmem>>, vector<32x2xf32>
    %c0_249 = arith.constant 0 : index
    %c0_250 = arith.constant 0 : index
    %466 = vector.load %arg24[%c0_249, %c0_250] : memref<4x128xf32, #tpu.memory_space<vmem>>, vector<4x128xf32>
    %cst_251 = arith.constant dense<0.000000e+00> : vector<2x128xf32>
    %467 = tpu.matmul %464, %466, %cst_251 {dimension_numbers = #tpu.dot_dimension_numbers<[1], [0], [0], [1], [0, 0, 1, 1], [], []>} : vector<2x4xf32>, vector<4x128xf32>, vector<2x128xf32> -> vector<2x128xf32>
    %cst_252 = arith.constant dense<0.000000e+00> : vector<32x128xf32>
    %468 = tpu.matmul %465, %467, %cst_252 {dimension_numbers = #tpu.dot_dimension_numbers<[1], [0], [0], [1], [0, 0, 1, 1], [], []>} : vector<32x2xf32>, vector<2x128xf32>, vector<32x128xf32> -> vector<32x128xf32>
    %c0_253 = arith.constant 0 : index
    %c0_254 = arith.constant 0 : index
    %469 = vector.load %arg20[%c0_253, %c0_254] : memref<32x128xf32, #tpu.memory_space<vmem>>, vector<32x128xf32>
    %470 = arith.mulf %468, %469 : vector<32x128xf32>
    %c0_255 = arith.constant 0 : index
    %c0_256 = arith.constant 0 : index
    %471 = vector.load %arg25[%c0_255, %c0_256] : memref<128x4xf32, #tpu.memory_space<vmem>>, vector<128x4xf32>
    %cst_257 = arith.constant dense<0.000000e+00> : vector<32x4xf32>
    %472 = tpu.matmul %470, %471, %cst_257 {dimension_numbers = #tpu.dot_dimension_numbers<[1], [0], [0], [1], [0, 0, 1, 1], [], []>} : vector<32x128xf32>, vector<128x4xf32>, vector<32x4xf32> -> vector<32x4xf32>
    %c0_258 = arith.constant 0 : index
    %c0_259 = arith.constant 0 : index
    %473 = vector.load %arg26[%c0_258, %c0_259] : memref<32x4xf32, #tpu.memory_space<vmem>>, vector<32x4xf32>
    %cst_260 = arith.constant dense<0.000000e+00> : vector<32x4xf32>
    %474 = tpu.matmul %445, %473, %cst_260 {dimension_numbers = #tpu.dot_dimension_numbers<[1], [0], [0], [1], [0, 0, 1, 1], [], []>} : vector<32x32xf32>, vector<32x4xf32>, vector<32x4xf32> -> vector<32x4xf32>
    %475 = arith.addf %474, %472 : vector<32x4xf32>
    %c0_261 = arith.constant 0 : index
    %c0_262 = arith.constant 0 : index
    %476 = vector.load %arg27[%c0_261, %c0_262] : memref<32x4xf32, #tpu.memory_space<vmem>>, vector<32x4xf32>
    %477 = arith.addf %475, %476 : vector<32x4xf32>
    %cst_263 = arith.constant 0.000000e+00 : f32
    %478 = vector.broadcast %cst_263 : f32 to vector<32x4xf32>
    %479 = arith.maximumf %477, %478 : vector<32x4xf32>
    %c0_264 = arith.constant 0 : index
    %c4 = arith.constant 4 : index
    %480 = vector.load %arg28[%c0_264, %c4] : memref<32x16xf32, #tpu.memory_space<vmem>>, vector<32x4xf32>
    tpu.vector_store %arg28[%c0_264, %c4], %479 {strides = array<i32>} : memref<32x16xf32, #tpu.memory_space<vmem>>, vector<32x4xf32>,
    %c64_265 = arith.constant 64 : index
    %c0_266 = arith.constant 0 : index
    %481 = vector.load %arg30[%c64_265, %c0_266] : memref<128x96xf32, #tpu.memory_space<vmem>>, vector<32x96xf32>
    %c0_267 = arith.constant 0 : index
    %c0_268 = arith.constant 0 : index
    %482 = vector.load %arg12[%c0_267, %c0_268] : memref<4x96xf32, #tpu.memory_space<vmem>>, vector<4x96xf32>
    %cst_269 = arith.constant dense<0.000000e+00> : vector<32x96xf32>
    %483 = tpu.matmul %479, %482, %cst_269 {dimension_numbers = #tpu.dot_dimension_numbers<[1], [0], [0], [1], [0, 0, 1, 1], [], []>} : vector<32x4xf32>, vector<4x96xf32>, vector<32x96xf32> -> vector<32x96xf32>
    %484 = arith.addf %481, %483 : vector<32x96xf32>
    %485 = vector.extract_strided_slice %484 {offsets = [0, 0], sizes = [32, 64], strides = [1, 1]} : vector<32x96xf32> to vector<32x64xf32>
    %c0_270 = arith.constant 0 : index
    %c0_271 = arith.constant 0 : index
    %486 = vector.load %arg13[%c0_270, %c0_271] : memref<32x64xf32, #tpu.memory_space<vmem>>, vector<32x64xf32>
    %cst_272 = arith.constant dense<0.000000e+00> : vector<32x64xf32>
    %487 = tpu.matmul %419, %486, %cst_272 {dimension_numbers = #tpu.dot_dimension_numbers<[1], [0], [0], [1], [0, 0, 1, 1], [], []>} : vector<32x32xf32>, vector<32x64xf32>, vector<32x64xf32> -> vector<32x64xf32>
    %488 = arith.addf %485, %487 : vector<32x64xf32>
    %489 = arith.negf %488 : vector<32x64xf32>
    %490 = math.exp %489 : vector<32x64xf32>
    %cst_273 = arith.constant 1.000000e+00 : f32
    %491 = vector.broadcast %cst_273 : f32 to vector<32x64xf32>
    %492 = arith.addf %491, %490 : vector<32x64xf32>
    %493 = arith.divf %491, %492 : vector<32x64xf32>
    %494 = vector.extract_strided_slice %493 {offsets = [0, 0], sizes = [32, 32], strides = [1, 1]} : vector<32x64xf32> to vector<32x32xf32>
    %495 = vector.extract_strided_slice %493 {offsets = [0, 32], sizes = [32, 32], strides = [1, 1]} : vector<32x64xf32> to vector<32x32xf32>
    %496 = vector.extract_strided_slice %484 {offsets = [0, 64], sizes = [32, 32], strides = [1, 1]} : vector<32x96xf32> to vector<32x32xf32>
    %497 = arith.mulf %495, %419 : vector<32x32xf32>
    %c0_274 = arith.constant 0 : index
    %c0_275 = arith.constant 0 : index
    %498 = vector.load %arg14[%c0_274, %c0_275] : memref<32x32xf32, #tpu.memory_space<vmem>>, vector<32x32xf32>
    %cst_276 = arith.constant dense<0.000000e+00> : vector<32x32xf32>
    %499 = tpu.matmul %497, %498, %cst_276 {dimension_numbers = #tpu.dot_dimension_numbers<[1], [0], [0], [1], [0, 0, 1, 1], [], []>} : vector<32x32xf32>, vector<32x32xf32>, vector<32x32xf32> -> vector<32x32xf32>
    %500 = arith.addf %496, %499 : vector<32x32xf32>
    %501 = math.tanh %500 : vector<32x32xf32>
    %cst_277 = arith.constant 1.000000e+00 : f32
    %502 = vector.broadcast %cst_277 : f32 to vector<32x32xf32>
    %503 = arith.subf %502, %494 : vector<32x32xf32>
    %504 = arith.mulf %503, %419 : vector<32x32xf32>
    %505 = arith.mulf %494, %501 : vector<32x32xf32>
    %506 = arith.addf %504, %505 : vector<32x32xf32>
    %c0_278 = arith.constant 0 : index
    %c0_279 = arith.constant 0 : index
    %507 = vector.load %arg15[%c0_278, %c0_279] : memref<32x96xf32, #tpu.memory_space<vmem>>, vector<32x96xf32>
    %cst_280 = arith.constant dense<0.000000e+00> : vector<32x96xf32>
    %508 = tpu.matmul %506, %507, %cst_280 {dimension_numbers = #tpu.dot_dimension_numbers<[1], [0], [0], [1], [0, 0, 1, 1], [], []>} : vector<32x32xf32>, vector<32x96xf32>, vector<32x96xf32> -> vector<32x96xf32>
    %c0_281 = arith.constant 0 : index
    %c0_282 = arith.constant 0 : index
    %509 = vector.load %arg16[%c0_281, %c0_282] : memref<32x96xf32, #tpu.memory_space<vmem>>, vector<32x96xf32>
    %510 = arith.addf %508, %509 : vector<32x96xf32>
    %511 = vector.extract_strided_slice %510 {offsets = [0, 0], sizes = [32, 64], strides = [1, 1]} : vector<32x96xf32> to vector<32x64xf32>
    %c0_283 = arith.constant 0 : index
    %c0_284 = arith.constant 0 : index
    %512 = vector.load %arg17[%c0_283, %c0_284] : memref<32x64xf32, #tpu.memory_space<vmem>>, vector<32x64xf32>
    %cst_285 = arith.constant dense<0.000000e+00> : vector<32x64xf32>
    %513 = tpu.matmul %445, %512, %cst_285 {dimension_numbers = #tpu.dot_dimension_numbers<[1], [0], [0], [1], [0, 0, 1, 1], [], []>} : vector<32x32xf32>, vector<32x64xf32>, vector<32x64xf32> -> vector<32x64xf32>
    %514 = arith.addf %511, %513 : vector<32x64xf32>
    %515 = arith.negf %514 : vector<32x64xf32>
    %516 = math.exp %515 : vector<32x64xf32>
    %cst_286 = arith.constant 1.000000e+00 : f32
    %517 = vector.broadcast %cst_286 : f32 to vector<32x64xf32>
    %518 = arith.addf %517, %516 : vector<32x64xf32>
    %519 = arith.divf %517, %518 : vector<32x64xf32>
    %520 = vector.extract_strided_slice %519 {offsets = [0, 0], sizes = [32, 32], strides = [1, 1]} : vector<32x64xf32> to vector<32x32xf32>
    %521 = vector.extract_strided_slice %519 {offsets = [0, 32], sizes = [32, 32], strides = [1, 1]} : vector<32x64xf32> to vector<32x32xf32>
    %522 = vector.extract_strided_slice %510 {offsets = [0, 64], sizes = [32, 32], strides = [1, 1]} : vector<32x96xf32> to vector<32x32xf32>
    %523 = arith.mulf %521, %445 : vector<32x32xf32>
    %c0_287 = arith.constant 0 : index
    %c0_288 = arith.constant 0 : index
    %524 = vector.load %arg18[%c0_287, %c0_288] : memref<32x32xf32, #tpu.memory_space<vmem>>, vector<32x32xf32>
    %cst_289 = arith.constant dense<0.000000e+00> : vector<32x32xf32>
    %525 = tpu.matmul %523, %524, %cst_289 {dimension_numbers = #tpu.dot_dimension_numbers<[1], [0], [0], [1], [0, 0, 1, 1], [], []>} : vector<32x32xf32>, vector<32x32xf32>, vector<32x32xf32> -> vector<32x32xf32>
    %526 = arith.addf %522, %525 : vector<32x32xf32>
    %527 = math.tanh %526 : vector<32x32xf32>
    %cst_290 = arith.constant 1.000000e+00 : f32
    %528 = vector.broadcast %cst_290 : f32 to vector<32x32xf32>
    %529 = arith.subf %528, %520 : vector<32x32xf32>
    %530 = arith.mulf %529, %445 : vector<32x32xf32>
    %531 = arith.mulf %520, %527 : vector<32x32xf32>
    %532 = arith.addf %530, %531 : vector<32x32xf32>
    %c0_291 = arith.constant 0 : index
    %c0_292 = arith.constant 0 : index
    %533 = vector.load %arg19[%c0_291, %c0_292] : memref<32x128xf32, #tpu.memory_space<vmem>>, vector<32x128xf32>
    %cst_293 = arith.constant dense<0.000000e+00> : vector<32x128xf32>
    %534 = tpu.matmul %532, %533, %cst_293 {dimension_numbers = #tpu.dot_dimension_numbers<[1], [0], [0], [1], [0, 0, 1, 1], [], []>} : vector<32x32xf32>, vector<32x128xf32>, vector<32x128xf32> -> vector<32x128xf32>
    %c0_294 = arith.constant 0 : index
    %c0_295 = arith.constant 0 : index
    %535 = vector.load %arg20[%c0_294, %c0_295] : memref<32x128xf32, #tpu.memory_space<vmem>>, vector<32x128xf32>
    %536 = arith.mulf %534, %535 : vector<32x128xf32>
    %c0_296 = arith.constant 0 : index
    %c0_297 = arith.constant 0 : index
    %537 = vector.load %arg21[%c0_296, %c0_297] : memref<2x32xf32, #tpu.memory_space<vmem>>, vector<2x32xf32>
    %cst_298 = arith.constant dense<0.000000e+00> : vector<2x128xf32>
    %538 = tpu.matmul %537, %536, %cst_298 {dimension_numbers = #tpu.dot_dimension_numbers<[1], [0], [0], [1], [0, 0, 1, 1], [], []>} : vector<2x32xf32>, vector<32x128xf32>, vector<2x128xf32> -> vector<2x128xf32>
    %c0_299 = arith.constant 0 : index
    %c0_300 = arith.constant 0 : index
    %539 = vector.load %arg23[%c0_299, %c0_300] : memref<128x4xf32, #tpu.memory_space<vmem>>, vector<128x4xf32>
    %cst_301 = arith.constant dense<0.000000e+00> : vector<2x4xf32>
    %540 = tpu.matmul %538, %539, %cst_301 {dimension_numbers = #tpu.dot_dimension_numbers<[1], [0], [0], [1], [0, 0, 1, 1], [], []>} : vector<2x128xf32>, vector<128x4xf32>, vector<2x4xf32> -> vector<2x4xf32>
    %cst_302 = arith.constant dense<0xFF800000> : vector<2xf32>
    %541 = vector.multi_reduction <maximumf>, %540, %cst_302 [1] : vector<2x4xf32> to vector<2xf32>
    %cst_303 = arith.constant 0xFF800000 : f32
    %542 = vector.broadcast %cst_303 : f32 to vector<2xf32>
    %543 = arith.maximumf %542, %541 : vector<2xf32>
    %544 = vector.shape_cast %543 : vector<2xf32> to vector<2x1xf32>
    %545 = vector.broadcast %544 : vector<2x1xf32> to vector<2x4xf32>
    %546 = arith.subf %540, %545 : vector<2x4xf32>
    %547 = math.exp %546 : vector<2x4xf32>
    %cst_304 = arith.constant dense<0.000000e+00> : vector<2xf32>
    %548 = vector.multi_reduction <add>, %547, %cst_304 [1] : vector<2x4xf32> to vector<2xf32>
    %549 = vector.shape_cast %548 : vector<2xf32> to vector<2x1xf32>
    %550 = vector.broadcast %549 : vector<2x1xf32> to vector<2x4xf32>
    %551 = arith.divf %547, %550 : vector<2x4xf32>
    %c0_305 = arith.constant 0 : index
    %c0_306 = arith.constant 0 : index
    %552 = vector.load %arg22[%c0_305, %c0_306] : memref<32x2xf32, #tpu.memory_space<vmem>>, vector<32x2xf32>
    %c0_307 = arith.constant 0 : index
    %c0_308 = arith.constant 0 : index
    %553 = vector.load %arg24[%c0_307, %c0_308] : memref<4x128xf32, #tpu.memory_space<vmem>>, vector<4x128xf32>
    %cst_309 = arith.constant dense<0.000000e+00> : vector<2x128xf32>
    %554 = tpu.matmul %551, %553, %cst_309 {dimension_numbers = #tpu.dot_dimension_numbers<[1], [0], [0], [1], [0, 0, 1, 1], [], []>} : vector<2x4xf32>, vector<4x128xf32>, vector<2x128xf32> -> vector<2x128xf32>
    %cst_310 = arith.constant dense<0.000000e+00> : vector<32x128xf32>
    %555 = tpu.matmul %552, %554, %cst_310 {dimension_numbers = #tpu.dot_dimension_numbers<[1], [0], [0], [1], [0, 0, 1, 1], [], []>} : vector<32x2xf32>, vector<2x128xf32>, vector<32x128xf32> -> vector<32x128xf32>
    %c0_311 = arith.constant 0 : index
    %c0_312 = arith.constant 0 : index
    %556 = vector.load %arg20[%c0_311, %c0_312] : memref<32x128xf32, #tpu.memory_space<vmem>>, vector<32x128xf32>
    %557 = arith.mulf %555, %556 : vector<32x128xf32>
    %c0_313 = arith.constant 0 : index
    %c0_314 = arith.constant 0 : index
    %558 = vector.load %arg25[%c0_313, %c0_314] : memref<128x4xf32, #tpu.memory_space<vmem>>, vector<128x4xf32>
    %cst_315 = arith.constant dense<0.000000e+00> : vector<32x4xf32>
    %559 = tpu.matmul %557, %558, %cst_315 {dimension_numbers = #tpu.dot_dimension_numbers<[1], [0], [0], [1], [0, 0, 1, 1], [], []>} : vector<32x128xf32>, vector<128x4xf32>, vector<32x4xf32> -> vector<32x4xf32>
    %c0_316 = arith.constant 0 : index
    %c0_317 = arith.constant 0 : index
    %560 = vector.load %arg26[%c0_316, %c0_317] : memref<32x4xf32, #tpu.memory_space<vmem>>, vector<32x4xf32>
    %cst_318 = arith.constant dense<0.000000e+00> : vector<32x4xf32>
    %561 = tpu.matmul %532, %560, %cst_318 {dimension_numbers = #tpu.dot_dimension_numbers<[1], [0], [0], [1], [0, 0, 1, 1], [], []>} : vector<32x32xf32>, vector<32x4xf32>, vector<32x4xf32> -> vector<32x4xf32>
    %562 = arith.addf %561, %559 : vector<32x4xf32>
    %c0_319 = arith.constant 0 : index
    %c0_320 = arith.constant 0 : index
    %563 = vector.load %arg27[%c0_319, %c0_320] : memref<32x4xf32, #tpu.memory_space<vmem>>, vector<32x4xf32>
    %564 = arith.addf %562, %563 : vector<32x4xf32>
    %cst_321 = arith.constant 0.000000e+00 : f32
    %565 = vector.broadcast %cst_321 : f32 to vector<32x4xf32>
    %566 = arith.maximumf %564, %565 : vector<32x4xf32>
    %c0_322 = arith.constant 0 : index
    %c8 = arith.constant 8 : index
    %567 = vector.load %arg28[%c0_322, %c8] : memref<32x16xf32, #tpu.memory_space<vmem>>, vector<32x4xf32>
    tpu.vector_store %arg28[%c0_322, %c8], %566 {strides = array<i32>} : memref<32x16xf32, #tpu.memory_space<vmem>>, vector<32x4xf32>,
    %c96_323 = arith.constant 96 : index
    %c0_324 = arith.constant 0 : index
    %568 = vector.load %arg30[%c96_323, %c0_324] : memref<128x96xf32, #tpu.memory_space<vmem>>, vector<32x96xf32>
    %c0_325 = arith.constant 0 : index
    %c0_326 = arith.constant 0 : index
    %569 = vector.load %arg12[%c0_325, %c0_326] : memref<4x96xf32, #tpu.memory_space<vmem>>, vector<4x96xf32>
    %cst_327 = arith.constant dense<0.000000e+00> : vector<32x96xf32>
    %570 = tpu.matmul %566, %569, %cst_327 {dimension_numbers = #tpu.dot_dimension_numbers<[1], [0], [0], [1], [0, 0, 1, 1], [], []>} : vector<32x4xf32>, vector<4x96xf32>, vector<32x96xf32> -> vector<32x96xf32>
    %571 = arith.addf %568, %570 : vector<32x96xf32>
    %572 = vector.extract_strided_slice %571 {offsets = [0, 0], sizes = [32, 64], strides = [1, 1]} : vector<32x96xf32> to vector<32x64xf32>
    %c0_328 = arith.constant 0 : index
    %c0_329 = arith.constant 0 : index
    %573 = vector.load %arg13[%c0_328, %c0_329] : memref<32x64xf32, #tpu.memory_space<vmem>>, vector<32x64xf32>
    %cst_330 = arith.constant dense<0.000000e+00> : vector<32x64xf32>
    %574 = tpu.matmul %506, %573, %cst_330 {dimension_numbers = #tpu.dot_dimension_numbers<[1], [0], [0], [1], [0, 0, 1, 1], [], []>} : vector<32x32xf32>, vector<32x64xf32>, vector<32x64xf32> -> vector<32x64xf32>
    %575 = arith.addf %572, %574 : vector<32x64xf32>
    %576 = arith.negf %575 : vector<32x64xf32>
    %577 = math.exp %576 : vector<32x64xf32>
    %cst_331 = arith.constant 1.000000e+00 : f32
    %578 = vector.broadcast %cst_331 : f32 to vector<32x64xf32>
    %579 = arith.addf %578, %577 : vector<32x64xf32>
    %580 = arith.divf %578, %579 : vector<32x64xf32>
    %581 = vector.extract_strided_slice %580 {offsets = [0, 0], sizes = [32, 32], strides = [1, 1]} : vector<32x64xf32> to vector<32x32xf32>
    %582 = vector.extract_strided_slice %580 {offsets = [0, 32], sizes = [32, 32], strides = [1, 1]} : vector<32x64xf32> to vector<32x32xf32>
    %583 = vector.extract_strided_slice %571 {offsets = [0, 64], sizes = [32, 32], strides = [1, 1]} : vector<32x96xf32> to vector<32x32xf32>
    %584 = arith.mulf %582, %506 : vector<32x32xf32>
    %c0_332 = arith.constant 0 : index
    %c0_333 = arith.constant 0 : index
    %585 = vector.load %arg14[%c0_332, %c0_333] : memref<32x32xf32, #tpu.memory_space<vmem>>, vector<32x32xf32>
    %cst_334 = arith.constant dense<0.000000e+00> : vector<32x32xf32>
    %586 = tpu.matmul %584, %585, %cst_334 {dimension_numbers = #tpu.dot_dimension_numbers<[1], [0], [0], [1], [0, 0, 1, 1], [], []>} : vector<32x32xf32>, vector<32x32xf32>, vector<32x32xf32> -> vector<32x32xf32>
    %587 = arith.addf %583, %586 : vector<32x32xf32>
    %588 = math.tanh %587 : vector<32x32xf32>
    %cst_335 = arith.constant 1.000000e+00 : f32
    %589 = vector.broadcast %cst_335 : f32 to vector<32x32xf32>
    %590 = arith.subf %589, %581 : vector<32x32xf32>
    %591 = arith.mulf %590, %506 : vector<32x32xf32>
    %592 = arith.mulf %581, %588 : vector<32x32xf32>
    %593 = arith.addf %591, %592 : vector<32x32xf32>
    %c0_336 = arith.constant 0 : index
    %c0_337 = arith.constant 0 : index
    %594 = vector.load %arg15[%c0_336, %c0_337] : memref<32x96xf32, #tpu.memory_space<vmem>>, vector<32x96xf32>
    %cst_338 = arith.constant dense<0.000000e+00> : vector<32x96xf32>
    %595 = tpu.matmul %593, %594, %cst_338 {dimension_numbers = #tpu.dot_dimension_numbers<[1], [0], [0], [1], [0, 0, 1, 1], [], []>} : vector<32x32xf32>, vector<32x96xf32>, vector<32x96xf32> -> vector<32x96xf32>
    %c0_339 = arith.constant 0 : index
    %c0_340 = arith.constant 0 : index
    %596 = vector.load %arg16[%c0_339, %c0_340] : memref<32x96xf32, #tpu.memory_space<vmem>>, vector<32x96xf32>
    %597 = arith.addf %595, %596 : vector<32x96xf32>
    %598 = vector.extract_strided_slice %597 {offsets = [0, 0], sizes = [32, 64], strides = [1, 1]} : vector<32x96xf32> to vector<32x64xf32>
    %c0_341 = arith.constant 0 : index
    %c0_342 = arith.constant 0 : index
    %599 = vector.load %arg17[%c0_341, %c0_342] : memref<32x64xf32, #tpu.memory_space<vmem>>, vector<32x64xf32>
    %cst_343 = arith.constant dense<0.000000e+00> : vector<32x64xf32>
    %600 = tpu.matmul %532, %599, %cst_343 {dimension_numbers = #tpu.dot_dimension_numbers<[1], [0], [0], [1], [0, 0, 1, 1], [], []>} : vector<32x32xf32>, vector<32x64xf32>, vector<32x64xf32> -> vector<32x64xf32>
    %601 = arith.addf %598, %600 : vector<32x64xf32>
    %602 = arith.negf %601 : vector<32x64xf32>
    %603 = math.exp %602 : vector<32x64xf32>
    %cst_344 = arith.constant 1.000000e+00 : f32
    %604 = vector.broadcast %cst_344 : f32 to vector<32x64xf32>
    %605 = arith.addf %604, %603 : vector<32x64xf32>
    %606 = arith.divf %604, %605 : vector<32x64xf32>
    %607 = vector.extract_strided_slice %606 {offsets = [0, 0], sizes = [32, 32], strides = [1, 1]} : vector<32x64xf32> to vector<32x32xf32>
    %608 = vector.extract_strided_slice %606 {offsets = [0, 32], sizes = [32, 32], strides = [1, 1]} : vector<32x64xf32> to vector<32x32xf32>
    %609 = vector.extract_strided_slice %597 {offsets = [0, 64], sizes = [32, 32], strides = [1, 1]} : vector<32x96xf32> to vector<32x32xf32>
    %610 = arith.mulf %608, %532 : vector<32x32xf32>
    %c0_345 = arith.constant 0 : index
    %c0_346 = arith.constant 0 : index
    %611 = vector.load %arg18[%c0_345, %c0_346] : memref<32x32xf32, #tpu.memory_space<vmem>>, vector<32x32xf32>
    %cst_347 = arith.constant dense<0.000000e+00> : vector<32x32xf32>
    %612 = tpu.matmul %610, %611, %cst_347 {dimension_numbers = #tpu.dot_dimension_numbers<[1], [0], [0], [1], [0, 0, 1, 1], [], []>} : vector<32x32xf32>, vector<32x32xf32>, vector<32x32xf32> -> vector<32x32xf32>
    %613 = arith.addf %609, %612 : vector<32x32xf32>
    %614 = math.tanh %613 : vector<32x32xf32>
    %cst_348 = arith.constant 1.000000e+00 : f32
    %615 = vector.broadcast %cst_348 : f32 to vector<32x32xf32>
    %616 = arith.subf %615, %607 : vector<32x32xf32>
    %617 = arith.mulf %616, %532 : vector<32x32xf32>
    %618 = arith.mulf %607, %614 : vector<32x32xf32>
    %619 = arith.addf %617, %618 : vector<32x32xf32>
    %c0_349 = arith.constant 0 : index
    %c0_350 = arith.constant 0 : index
    %620 = vector.load %arg19[%c0_349, %c0_350] : memref<32x128xf32, #tpu.memory_space<vmem>>, vector<32x128xf32>
    %cst_351 = arith.constant dense<0.000000e+00> : vector<32x128xf32>
    %621 = tpu.matmul %619, %620, %cst_351 {dimension_numbers = #tpu.dot_dimension_numbers<[1], [0], [0], [1], [0, 0, 1, 1], [], []>} : vector<32x32xf32>, vector<32x128xf32>, vector<32x128xf32> -> vector<32x128xf32>
    %c0_352 = arith.constant 0 : index
    %c0_353 = arith.constant 0 : index
    %622 = vector.load %arg20[%c0_352, %c0_353] : memref<32x128xf32, #tpu.memory_space<vmem>>, vector<32x128xf32>
    %623 = arith.mulf %621, %622 : vector<32x128xf32>
    %c0_354 = arith.constant 0 : index
    %c0_355 = arith.constant 0 : index
    %624 = vector.load %arg21[%c0_354, %c0_355] : memref<2x32xf32, #tpu.memory_space<vmem>>, vector<2x32xf32>
    %cst_356 = arith.constant dense<0.000000e+00> : vector<2x128xf32>
    %625 = tpu.matmul %624, %623, %cst_356 {dimension_numbers = #tpu.dot_dimension_numbers<[1], [0], [0], [1], [0, 0, 1, 1], [], []>} : vector<2x32xf32>, vector<32x128xf32>, vector<2x128xf32> -> vector<2x128xf32>
    %c0_357 = arith.constant 0 : index
    %c0_358 = arith.constant 0 : index
    %626 = vector.load %arg23[%c0_357, %c0_358] : memref<128x4xf32, #tpu.memory_space<vmem>>, vector<128x4xf32>
    %cst_359 = arith.constant dense<0.000000e+00> : vector<2x4xf32>
    %627 = tpu.matmul %625, %626, %cst_359 {dimension_numbers = #tpu.dot_dimension_numbers<[1], [0], [0], [1], [0, 0, 1, 1], [], []>} : vector<2x128xf32>, vector<128x4xf32>, vector<2x4xf32> -> vector<2x4xf32>
    %cst_360 = arith.constant dense<0xFF800000> : vector<2xf32>
    %628 = vector.multi_reduction <maximumf>, %627, %cst_360 [1] : vector<2x4xf32> to vector<2xf32>
    %cst_361 = arith.constant 0xFF800000 : f32
    %629 = vector.broadcast %cst_361 : f32 to vector<2xf32>
    %630 = arith.maximumf %629, %628 : vector<2xf32>
    %631 = vector.shape_cast %630 : vector<2xf32> to vector<2x1xf32>
    %632 = vector.broadcast %631 : vector<2x1xf32> to vector<2x4xf32>
    %633 = arith.subf %627, %632 : vector<2x4xf32>
    %634 = math.exp %633 : vector<2x4xf32>
    %cst_362 = arith.constant dense<0.000000e+00> : vector<2xf32>
    %635 = vector.multi_reduction <add>, %634, %cst_362 [1] : vector<2x4xf32> to vector<2xf32>
    %636 = vector.shape_cast %635 : vector<2xf32> to vector<2x1xf32>
    %637 = vector.broadcast %636 : vector<2x1xf32> to vector<2x4xf32>
    %638 = arith.divf %634, %637 : vector<2x4xf32>
    %c0_363 = arith.constant 0 : index
    %c0_364 = arith.constant 0 : index
    %639 = vector.load %arg22[%c0_363, %c0_364] : memref<32x2xf32, #tpu.memory_space<vmem>>, vector<32x2xf32>
    %c0_365 = arith.constant 0 : index
    %c0_366 = arith.constant 0 : index
    %640 = vector.load %arg24[%c0_365, %c0_366] : memref<4x128xf32, #tpu.memory_space<vmem>>, vector<4x128xf32>
    %cst_367 = arith.constant dense<0.000000e+00> : vector<2x128xf32>
    %641 = tpu.matmul %638, %640, %cst_367 {dimension_numbers = #tpu.dot_dimension_numbers<[1], [0], [0], [1], [0, 0, 1, 1], [], []>} : vector<2x4xf32>, vector<4x128xf32>, vector<2x128xf32> -> vector<2x128xf32>
    %cst_368 = arith.constant dense<0.000000e+00> : vector<32x128xf32>
    %642 = tpu.matmul %639, %641, %cst_368 {dimension_numbers = #tpu.dot_dimension_numbers<[1], [0], [0], [1], [0, 0, 1, 1], [], []>} : vector<32x2xf32>, vector<2x128xf32>, vector<32x128xf32> -> vector<32x128xf32>
    %c0_369 = arith.constant 0 : index
    %c0_370 = arith.constant 0 : index
    %643 = vector.load %arg20[%c0_369, %c0_370] : memref<32x128xf32, #tpu.memory_space<vmem>>, vector<32x128xf32>
    %644 = arith.mulf %642, %643 : vector<32x128xf32>
    %c0_371 = arith.constant 0 : index
    %c0_372 = arith.constant 0 : index
    %645 = vector.load %arg25[%c0_371, %c0_372] : memref<128x4xf32, #tpu.memory_space<vmem>>, vector<128x4xf32>
    %cst_373 = arith.constant dense<0.000000e+00> : vector<32x4xf32>
    %646 = tpu.matmul %644, %645, %cst_373 {dimension_numbers = #tpu.dot_dimension_numbers<[1], [0], [0], [1], [0, 0, 1, 1], [], []>} : vector<32x128xf32>, vector<128x4xf32>, vector<32x4xf32> -> vector<32x4xf32>
    %c0_374 = arith.constant 0 : index
    %c0_375 = arith.constant 0 : index
    %647 = vector.load %arg26[%c0_374, %c0_375] : memref<32x4xf32, #tpu.memory_space<vmem>>, vector<32x4xf32>
    %cst_376 = arith.constant dense<0.000000e+00> : vector<32x4xf32>
    %648 = tpu.matmul %619, %647, %cst_376 {dimension_numbers = #tpu.dot_dimension_numbers<[1], [0], [0], [1], [0, 0, 1, 1], [], []>} : vector<32x32xf32>, vector<32x4xf32>, vector<32x4xf32> -> vector<32x4xf32>
    %649 = arith.addf %648, %646 : vector<32x4xf32>
    %c0_377 = arith.constant 0 : index
    %c0_378 = arith.constant 0 : index
    %650 = vector.load %arg27[%c0_377, %c0_378] : memref<32x4xf32, #tpu.memory_space<vmem>>, vector<32x4xf32>
    %651 = arith.addf %649, %650 : vector<32x4xf32>
    %cst_379 = arith.constant 0.000000e+00 : f32
    %652 = vector.broadcast %cst_379 : f32 to vector<32x4xf32>
    %653 = arith.maximumf %651, %652 : vector<32x4xf32>
    %c0_380 = arith.constant 0 : index
    %c12 = arith.constant 12 : index
    %654 = vector.load %arg28[%c0_380, %c12] : memref<32x16xf32, #tpu.memory_space<vmem>>, vector<32x4xf32>
    tpu.vector_store %arg28[%c0_380, %c12], %653 {strides = array<i32>} : memref<32x16xf32, #tpu.memory_space<vmem>>, vector<32x4xf32>,
    return
  }
}

</mosaic_0001>

<bundles_post_ra>
// kernel: st_net_forward.1
= control target key start
LH: loop header
LB: loop body
LE: loop exit
PB: predicated region body
PF: predicated region fallthrough
CT: control target
= control target key end

     0   :  { %vm194_vm0 = vcmask 1045504   ;;  %vm121_vm1 = vcmask 48128   ;;  %vm481_vm2 = vcmask 1041408   ;;  %vm432_vm3 = vcmask 15360   ;;  %s17746_s2 = inlined_call_operand.vmem [shape: f32[6,96], index: 2, kind: input, shape index: {}]   ;;  %s17747_s0 = inlined_call_operand.vmem [shape: f32[192,6], index: 0, kind: input, shape index: {}]   ;;  %s17748_s10 = inlined_call_operand.vmem [shape: f32[2,96], index: 10, kind: input, shape index: {}]   ;;  %s17749_s1 = inlined_call_operand.vmem [shape: f32[128,2], index: 1, kind: input, shape index: {}]   ;;  %s17750_s4 = inlined_call_operand.vmem [shape: f32[32,64], index: 4, kind: input, shape index: {}]   ;;  %s17751_s5 = inlined_call_operand.vmem [shape: f32[32,32], index: 5, kind: input, shape index: {}]   ;;  %s17752_s3 = inlined_call_operand.vmem [shape: f32[1,96], index: 3, kind: input, shape index: {}]   ;;  %s17753_s11 = inlined_call_operand.vmem [shape: f32[1,96], index: 11, kind: input, shape index: {}]   ;;  %s17754_s6 = inlined_call_operand.vmem [shape: f32[32,96], index: 6, kind: input, shape index: {}]   ;;  %s17755_s8 = inlined_call_operand.vmem [shape: f32[32,64], index: 8, kind: input, shape index: {}]   ;;  %s17756_s9 = inlined_call_operand.vmem [shape: f32[32,32], index: 9, kind: input, shape index: {}]   ;;  %s17757_s7 = inlined_call_operand.vmem [shape: f32[32,96], index: 7, kind: input, shape index: {}]   ;;  %s17758_s13 = inlined_call_operand.vmem [shape: f32[32,64], index: 13, kind: input, shape index: {}]   ;;  %s17759_s14 = inlined_call_operand.vmem [shape: f32[32,32], index: 14, kind: input, shape index: {}]   ;;  %s17760_s17 = inlined_call_operand.vmem [shape: f32[32,64], index: 17, kind: input, shape index: {}]   ;;  %s17761_s15 = inlined_call_operand.vmem [shape: f32[32,96], index: 15, kind: input, shape index: {}]   ;;  %s17762_s18 = inlined_call_operand.vmem [shape: f32[32,32], index: 18, kind: input, shape index: {}]   ;;  %s17763_s16 = inlined_call_operand.vmem [shape: f32[32,96], index: 16, kind: input, shape index: {}]   ;;  %s17764_s19 = inlined_call_operand.vmem [shape: f32[32,128], index: 19, kind: input, shape index: {}]   ;;  %s17765_s23 = inlined_call_operand.vmem [shape: f32[128,4], index: 23, kind: input, shape index: {}]   ;;  %s17766_s20 = inlined_call_operand.vmem [shape: f32[32,128], index: 20, kind: input, shape index: {}]   ;;  %s17767_s21 = inlined_call_operand.vmem [shape: f32[2,32], index: 21, kind: input, shape index: {}]   ;;  %s17768_s26 = inlined_call_operand.vmem [shape: f32[32,4], index: 26, kind: input, shape index: {}]   ;;  %s17769_s24 = inlined_call_operand.vmem [shape: f32[4,128], index: 24, kind: input, shape index: {}]   ;;  %s17770_s22 = inlined_call_operand.vmem [shape: f32[32,2], index: 22, kind: input, shape index: {}]   ;;  %s17771_s25 = inlined_call_operand.vmem [shape: f32[128,4], index: 25, kind: input, shape index: {}]   ;;  %s17772_s12 = inlined_call_operand.vmem [shape: f32[4,96], index: 12, kind: input, shape index: {}]   ;;  %s17773_s27 = inlined_call_operand.vmem [shape: f32[32,4], index: 27, kind: input, shape index: {}]   ;;  %s17774_s28 = inlined_call_operand.vmem [shape: f32[32,16], index: 28, kind: output, shape index: {}]  }
   0x1   :  { %17796 = sst [smem:[#allocation9_spill]] %s17746_s2  ;;  %v17788_v28 = vmov 0.0   ;;  %vm383_vm4 = vcmask 785408   ;;  %vm654_vm5 = vcmask 261120   ;;  %vm13673_vm6 = vmmov 0  }
   0x2   :  { %17797 = sst [smem:[#allocation10_spill]] %s17747_s0  ;;  %vm5782_vm7 = vcmask 25600   ;;  %vm5803_vm8 = vcmask 1043456   ;;  %vm5799_vm9 = vcmask 31744   ;;  %vm7680_vm10 = vcmask 64544  }
   0x3   :  { %17798 = sst [smem:[#allocation11_spill]] %s17748_s10  ;;  %s13670_s10 = smov 96   ;;  %vm9174_vm11 = vcmask 97344   ;;  %vm10668_vm12 = vcmask 130144  }
   0x4   :  { %17799 = sst [smem:[#allocation12_spill]] %s17749_s1 }
   0x5   :  { %17800 = sst [smem:[#allocation13_spill]] %s17750_s4 }
   0x6   :  { %17801 = sst [smem:[#allocation14_spill]] %s17751_s5 }
   0x7   :  { %17802 = sst [smem:[#allocation15_spill]] %s17752_s3 }
   0x8   :  { %17803 = sst [smem:[#allocation16_spill]] %s17753_s11 }
   0x9   :  { %17804 = sst [smem:[#allocation17_spill]] %s17754_s6 }
   0xa   :  { %17805 = sst [smem:[#allocation18_spill]] %s17755_s8 }
   0xb   :  { %17806 = sst [smem:[#allocation19_spill]] %s17756_s9  ;;  %s13676_s9 = smov 12  }
   0xc   :  { %17807 = sst [smem:[#allocation20_spill]] %s17757_s7 }
   0xd   :  { %17808 = sst [smem:[#allocation21_spill]] %s17758_s13 }
   0xe   :  { %s17809_s8 = sld [smem:[#allocation9_spill]] }
   0xf   :  { %s17810_s3 = sld [smem:[#allocation10_spill]] }
  0x10   :  { %s17811_s4 = sld [smem:[#allocation11_spill]] }
  0x11   :  { %s17812_s6 = sld [smem:[#allocation12_spill]] }
  0x12   :  { %s17813_s5 = sld [smem:[#allocation13_spill]] }
  0x13   :  { %s17814_s1 = sld [smem:[#allocation14_spill]] }
  0x14   :  { %v113_v0 = vld [vmem:[%s17809_s8] sm:$0x3f]  ;;  %s17815_s2 = sld [smem:[#allocation15_spill]]  ;;  %s13671_s8 = smov 64  }
  0x15   :  { %v111_v1 = vld [vmem:[%s17810_s3 + $0xb0] sm:$0xff]  ;;  %v112_v2 = vld [vmem:[%s17810_s3 + $0xb8] sm:$0xff]  ;;  %13077 = vmatprep.subr.msk.mxu1 %vm194_vm0, %v113_v0  ;;  %11789 = vmatprep.subr.msk.mxu0 %vm194_vm0, %v113_v0  ;;  %v89_v8 = vld [vmem:[%s17810_s3] sm:$0xff]  ;;  %s17816_s7 = sld [smem:[#allocation16_spill]] }
  0x16   :  { %11824 = vmatprep.mubr.msk.f32.mxu1 %vm121_vm1, %v111_v1  ;;  %v424_v3 = vld [vmem:[%s17811_s4] sm:$0x3]  ;;  %13078 = vmatpush3.msk.msra.mxu1 %vm194_vm0, %v113_v0  ;;  %v90_v10 = vld [vmem:[%s17810_s3 + $0x8] sm:$0xff]  ;;  %v91_v11 = vld [vmem:[%s17810_s3 + $0x10] sm:$0xff]  ;;  %s17817_s11 = sld [smem:[#allocation17_spill]] }
  0x17   :  { %v408_v4 = vld [vmem:[%s17812_s6] sm:$0xff]  ;;  %11825 = vmatmul.mubr.msk.f32.vlgmr.msra.gmra.mxu1 %vm121_vm1, %v112_v2  ;;  %11827 = vmatprep.subr.msk.mxu1 %vm481_vm2, %v424_v3  ;;  %v409_v6 = vld [vmem:[%s17812_s6 + $0x8] sm:$0xff]  ;;  %v410_v7 = vld [vmem:[%s17812_s6 + $0x10] sm:$0xff]  ;;  %s17820_s0 = sld [smem:[#allocation20_spill]] }
  0x18   :  { %v13843_v5 = vld [vmem:[%s17813_s5 + $0x18] sm:$0xff]  ;;  %11828 = vmatpush3.msk.msra.mxu1 %vm481_vm2, %v424_v3  ;;  %11829 = vmatprep.mubr.msk.f32.mxu1 %vm432_vm3, %v408_v4  ;;  %v13864_v9 = vld [vmem:[%s17813_s5 + $0x10] sm:$0xff]  ;;  %v13883_v13 = vld [vmem:[%s17813_s5 + $0x8] sm:$0xff]  ;;  %s17821_s29 = sld [smem:[#allocation21_spill]] }
  0x19   :  { %11853 = vmatprep.subr.mxu1 %v13843_v5  ;;  %11790 = vmatpush3.msk.msra.mxu0 %vm194_vm0, %v113_v0  ;;  %v411_v12 = vld [vmem:[%s17812_s6 + $0x18] sm:$0xff]  ;;  %v412_v14 = vld [vmem:[%s17812_s6 + $0x20] sm:$0xff]  ;;  %v413_v17 = vld [vmem:[%s17812_s6 + $0x28] sm:$0xff] }
  0x1a   :  { %11791 = vmatprep.mubr.msk.f32.mxu0 %vm121_vm1, %v89_v8  ;;  %v92_v15 = vld [vmem:[%s17810_s3 + $0x18] sm:$0xff]  ;;  %v13897_v16 = vld [vmem:[%s17813_s5] sm:$0xff]  ;;  %v414_v18 = vld [vmem:[%s17812_s6 + $0x30] sm:$0xff] }
  0x1b   :  { %11830 = vmatmul.mubr.msk.f32.vlgmr.msra.gmra.mxu1 %vm432_vm3, %v409_v6  ;;  %11792 = vmatmul.mubr.msk.f32.vlgmr.msra.gmra.mxu0 %vm121_vm1, %v90_v10  ;;  %v415_v19 = vld [vmem:[%s17812_s6 + $0x38] sm:$0xff]  ;;  %v416_v20 = vld [vmem:[%s17812_s6 + $0x40] sm:$0xff]  ;;  %v417_v21 = vld [vmem:[%s17812_s6 + $0x48] sm:$0xff] }
  0x1c   :  { %11832 = vmatprep.mubr.msk.f32.mxu1 %vm432_vm3, %v410_v7  ;;  %11854 = vmatpush3.msra.mxu1 %v13843_v5  ;;  %v418_v22 = vld [vmem:[%s17812_s6 + $0x50] sm:$0xff]  ;;  %v419_v23 = vld [vmem:[%s17812_s6 + $0x58] sm:$0xff]  ;;  %v420_v24 = vld [vmem:[%s17812_s6 + $0x60] sm:$0xff] }
  0x1d   :  { %11855 = vmatprep.subr.mxu1 %v13864_v9  ;;  %11794 = vmatprep.mubr.msk.f32.mxu0 %vm121_vm1, %v91_v11  ;;  %v421_v25 = vld [vmem:[%s17812_s6 + $0x68] sm:$0xff]  ;;  %v422_v26 = vld [vmem:[%s17812_s6 + $0x70] sm:$0xff]  ;;  %v423_v27 = vld [vmem:[%s17812_s6 + $0x78] sm:$0xff]  ;;  %s17818_s6 = sld [smem:[#allocation18_spill]] }
  0x1e   :  { %11856 = vmatpush3.msra.mxu1 %v13864_v9  ;;  %v13957_v29 = vld [vmem:[%s17814_s1 + $0x18] sm:$0xff]  ;;  %v13962_v30 = vld [vmem:[%s17814_s1 + $0x10] sm:$0xff]  ;;  %v13971_v31 = vld [vmem:[%s17815_s2] ss:$0 sm:$0xff] }
  0x1f   :  { %11833 = vmatmul.mubr.msk.f32.gmra.mxu1 %vm432_vm3, %v411_v12  ;;  %11857 = vmatprep.subr.mxu1 %v13883_v13  ;;  %v13977_v35 = vld [vmem:[%s17816_s7] ss:$0 sm:$0xff]  ;;  %s17819_s7 = sld [smem:[#allocation19_spill]] }
  0x20   :  { %11835 = vmatprep.mubr.msk.f32.mxu1 %vm432_vm3, %v412_v14  ;;  %11858 = vmatpush3.msra.mxu1 %v13883_v13 }
  0x21   :  { %11795 = vmatmul.mubr.msk.f32.gmra.mxu0 %vm121_vm1, %v92_v15  ;;  %11859 = vmatprep.subr.mxu1 %v13897_v16 }
  0x22   :  { %11860 = vmatpush3.msra.mxu1 %v13897_v16 }
  0x23   :  { %11836 = vmatmul.mubr.msk.f32.gmra.mxu1 %vm432_vm3, %v413_v17  ;;  %11867 = vmatprep.subr.mxu1 %v13957_v29 }
  0x24   :  { %11838 = vmatprep.mubr.msk.f32.mxu1 %vm432_vm3, %v414_v18 }
  0x27   :  { %11839 = vmatmul.mubr.msk.f32.gmra.mxu1 %vm432_vm3, %v415_v19 }
  0x28   :  { %11841 = vmatprep.mubr.msk.f32.mxu1 %vm432_vm3, %v416_v20 }
  0x2b   :  { %11842 = vmatmul.mubr.msk.f32.gmra.mxu1 %vm432_vm3, %v417_v21 }
  0x2c   :  { %11844 = vmatprep.mubr.msk.f32.mxu1 %vm432_vm3, %v418_v22 }
  0x2f   :  { %11845 = vmatmul.mubr.msk.f32.gmra.mxu1 %vm432_vm3, %v419_v23 }
  0x30   :  { %11847 = vmatprep.mubr.msk.f32.mxu1 %vm432_vm3, %v420_v24 }
  0x33   :  { %11848 = vmatmul.mubr.msk.f32.gmra.mxu1 %vm432_vm3, %v421_v25 }
  0x34   :  { %11850 = vmatprep.mubr.msk.f32.mxu1 %vm432_vm3, %v422_v26 }
  0x37   :  { %11851 = vmatmul.mubr.msk.f32.gmra.mxu1 %vm432_vm3, %v423_v27 }
  0x38   :  { %11861 = vmatprep.mubr.f32.mxu1 %v17788_v28 }
  0x3b   :  { %11862 = vmatmul.mubr.f32.vlgmr.msra.gmra.mxu1 %v17788_v28 }
  0x3c   :  { %11864 = vmatprep.mubr.f32.mxu1 %v17788_v28  ;;  %11868 = vmatpush3.msra.mxu1 %v13957_v29 }
  0x3d   :  { %11869 = vmatprep.subr.mxu1 %v13962_v30 }
  0x3e   :  { %11870 = vmatpush3.msra.mxu1 %v13962_v30 }
  0x3f   :  { %11865 = vmatmul.mubr.f32.gmra.mxu1 %v17788_v28 }
  0xd7   :  { %v11826_v32 = vpop.f32.mrf.mxu1 }
  0xd8   :  { %v380_v33 = vadd.f32 %v11826_v32, %v13971_v31 }
  0xd9   :  { %v374_v34 = vpop.f32.mrf.mxu1 }
  0xda   :  { %407 = vst.msk [vmem:[#allocation2 + $0xb8] sm:$0xff] %vm383_vm4, %v380_v33  ;;  %v375_v36 = vadd.f32 %v13971_v31, %v374_v34 }
  0xdb   :  { %v11831_v37 = vpop.f32.mrf.mxu1  ;;  %v11793_v38 = vpop.f32.mrf.mxu0 }
  0xdc   :  { %406 = vst.msk [vmem:[#allocation2 + $0xb0] sm:$0xff] %vm383_vm4, %v375_v36  ;;  %v557_v39 = vadd.f32 %v11831_v37, %v13977_v35  ;;  %v270_v40 = vadd.f32 %v11793_v38, %v13971_v31 }
  0xdd   :  { %v551_v41 = vpop.f32.mrf.mxu1  ;;  %v264_v42 = vpop.f32.mrf.mxu0 }
  0xde   :  { %631 = vst.msk [vmem:[#allocation3 + $0x8] sm:$0xff] %vm383_vm4, %v557_v39  ;;  %v552_v43 = vadd.f32 %v13977_v35, %v551_v41  ;;  %385 = vst.msk [vmem:[#allocation2 + $0x8] sm:$0xff] %vm383_vm4, %v270_v40  ;;  %v265_v44 = vadd.f32 %v13971_v31, %v264_v42 }
  0xdf   :  { %v11834_v45 = vpop.f32.mrf.mxu1 }
  0xe0   :  { %630 = vst.msk [vmem:[#allocation3] sm:$0xff] %vm383_vm4, %v552_v43  ;;  %v567_v46 = vadd.f32 %v11834_v45, %v13977_v35  ;;  %384 = vst.msk [vmem:[#allocation2] sm:$0xff] %vm383_vm4, %v265_v44  ;;  %v14037_v45 = vld [vmem:[%s17814_s1 + $0x8] sm:$0xff] }
  0xe1   :  { %v561_v47 = vpop.f32.mrf.mxu1  ;;  %v11796_v48 = vpop.f32.mrf.mxu0  ;;  %11871 = vmatprep.subr.mxu1 %v14037_v45 }
  0xe2   :  { %633 = vst.msk [vmem:[#allocation3 + $0x18] sm:$0xff] %vm383_vm4, %v567_v46  ;;  %v562_v49 = vadd.f32 %v13977_v35, %v561_v47  ;;  %v280_v50 = vadd.f32 %v11796_v48, %v13971_v31  ;;  %v14043_v46 = vld [vmem:[%s17814_s1] sm:$0xff]  ;;  %11872 = vmatpush3.msra.mxu1 %v14037_v45 }
  0xe3   :  { %v11837_v51 = vpop.f32.mrf.mxu1  ;;  %v274_v52 = vpop.f32.mrf.mxu0  ;;  %11873 = vmatprep.subr.mxu1 %v14043_v46 }
  0xe4   :  { %632 = vst.msk [vmem:[#allocation3 + $0x10] sm:$0xff] %vm383_vm4, %v562_v49  ;;  %v577_v53 = vadd.f32 %v11837_v51, %v13977_v35  ;;  %387 = vst.msk [vmem:[#allocation2 + $0x18] sm:$0xff] %vm383_vm4, %v280_v50  ;;  %v275_v54 = vadd.f32 %v13971_v31, %v274_v52  ;;  %11874 = vmatpush3.msra.mxu1 %v14043_v46 }
  0xe5   :  { %v571_v55 = vpop.f32.mrf.mxu1  ;;  %v14019_v15 = vld [vmem:[#allocation2 + $0x8] sm:$0xff] }
  0xe6   :  { %635 = vst.msk [vmem:[#allocation3 + $0x28] sm:$0xff] %vm383_vm4, %v577_v53  ;;  %v572_v56 = vadd.f32 %v13977_v35, %v571_v55  ;;  %386 = vst.msk [vmem:[#allocation2 + $0x10] sm:$0xff] %vm383_vm4, %v275_v54 }
  0xe7   :  { %v11840_v57 = vpop.f32.mrf.mxu1  ;;  %v14025_v20 = vld [vmem:[#allocation2] sm:$0xff] }
  0xe8   :  { %634 = vst.msk [vmem:[#allocation3 + $0x20] sm:$0xff] %vm383_vm4, %v572_v56  ;;  %v587_v58 = vadd.f32 %v11840_v57, %v13977_v35 }
  0xe9   :  { %v581_v59 = vpop.f32.mrf.mxu1 }
  0xea   :  { %637 = vst.msk [vmem:[#allocation3 + $0x38] sm:$0xff] %vm383_vm4, %v587_v58  ;;  %v582_v60 = vadd.f32 %v13977_v35, %v581_v59 }
  0xeb   :  { %v11843_v61 = vpop.f32.mrf.mxu1  ;;  %v14027_v22 = vld [vmem:[#allocation2 + $0x18] sm:$0xff] }
  0xec   :  { %636 = vst.msk [vmem:[#allocation3 + $0x30] sm:$0xff] %vm383_vm4, %v582_v60  ;;  %v597_v62 = vadd.f32 %v11843_v61, %v13977_v35 }
  0xed   :  { %v591_v63 = vpop.f32.mrf.mxu1  ;;  %v14031_v32 = vld [vmem:[#allocation2 + $0x10] sm:$0xff] }
  0xee   :  { %639 = vst.msk [vmem:[#allocation3 + $0x48] sm:$0xff] %vm383_vm4, %v597_v62  ;;  %v592_v0 = vadd.f32 %v13977_v35, %v591_v63  ;;  %v93_v63 = vld [vmem:[%s17810_s3 + $0x20] sm:$0xff] }
  0xef   :  { %v11846_v1 = vpop.f32.mrf.mxu1  ;;  %11797 = vmatprep.mubr.msk.f32.mxu0 %vm121_vm1, %v93_v63 }
  0xf0   :  { %638 = vst.msk [vmem:[#allocation3 + $0x40] sm:$0xff] %vm383_vm4, %v592_v0  ;;  %v607_v2 = vadd.f32 %v11846_v1, %v13977_v35  ;;  %v94_v0 = vld [vmem:[%s17810_s3 + $0x28] sm:$0xff]  ;;  %v95_v1 = vld [vmem:[%s17810_s3 + $0x30] sm:$0xff] }
  0xf1   :  { %v601_v3 = vpop.f32.mrf.mxu1  ;;  %11798 = vmatmul.mubr.msk.f32.gmra.mxu0 %vm121_vm1, %v94_v0 }
  0xf2   :  { %641 = vst.msk [vmem:[#allocation3 + $0x58] sm:$0xff] %vm383_vm4, %v607_v2  ;;  %v602_v4 = vadd.f32 %v13977_v35, %v601_v3  ;;  %v14085_v2 = vld [vmem:[%s17817_s11 + $0x18] sm:$0xff]  ;;  %v14093_v3 = vld [vmem:[%s17817_s11 + $0x10] sm:$0xff]  ;;  %11800 = vmatprep.mubr.msk.f32.mxu0 %vm121_vm1, %v95_v1 }
  0xf3   :  { %v11849_v6 = vpop.f32.mrf.mxu1  ;;  %11881 = vmatprep.subr.mxu0 %v14085_v2 }
  0xf4   :  { %640 = vst.msk [vmem:[#allocation3 + $0x50] sm:$0xff] %vm383_vm4, %v602_v4  ;;  %v617_v7 = vadd.f32 %v11849_v6, %v13977_v35  ;;  %11882 = vmatpush3.msra.mxu0 %v14085_v2  ;;  %v96_v4 = vld [vmem:[%s17810_s3 + $0x38] sm:$0xff]  ;;  %v97_v6 = vld [vmem:[%s17810_s3 + $0x40] sm:$0xff] }
  0xf5   :  { %v611_v8 = vpop.f32.mrf.mxu1  ;;  %11883 = vmatprep.subr.mxu0 %v14093_v3  ;;  %11801 = vmatmul.mubr.msk.f32.gmra.mxu0 %vm121_vm1, %v96_v4 }
  0xf6   :  { %643 = vst.msk [vmem:[#allocation3 + $0x68] sm:$0xff] %vm383_vm4, %v617_v7  ;;  %v612_v10 = vadd.f32 %v13977_v35, %v611_v8  ;;  %v14107_v7 = vld [vmem:[%s17817_s11 + $0x8] sm:$0xff]  ;;  %11884 = vmatpush3.msra.mxu0 %v14093_v3  ;;  %v14113_v8 = vld [vmem:[%s17818_s6 + $0x18] sm:$0xff]  ;;  %11803 = vmatprep.mubr.msk.f32.mxu0 %vm121_vm1, %v97_v6 }
  0xf7   :  { %v11852_v11 = vpop.f32.mrf.mxu1  ;;  %11885 = vmatprep.subr.mxu0 %v14107_v7  ;;  %11895 = vmatprep.subr.mxu1 %v14113_v8 }
  0xf8   :  { %642 = vst.msk [vmem:[#allocation3 + $0x60] sm:$0xff] %vm383_vm4, %v612_v10  ;;  %v627_v12 = vadd.f32 %v11852_v11, %v13977_v35  ;;  %v98_v10 = vld [vmem:[%s17810_s3 + $0x48] sm:$0xff]  ;;  %11886 = vmatpush3.msra.mxu0 %v14107_v7  ;;  %v14125_v11 = vld [vmem:[%s17818_s6 + $0x10] sm:$0xff] }
  0xf9   :  { %v621_v14 = vpop.f32.mrf.mxu1  ;;  %11804 = vmatmul.mubr.msk.f32.gmra.mxu0 %vm121_vm1, %v98_v10 }
  0xfa   :  { %645 = vst.msk [vmem:[#allocation3 + $0x78] sm:$0xff] %vm383_vm4, %v627_v12  ;;  %v622_v17 = vadd.f32 %v13977_v35, %v621_v14  ;;  %v14130_v12 = vld [vmem:[%s17817_s11] sm:$0xff]  ;;  %v99_v14 = vld [vmem:[%s17810_s3 + $0x50] sm:$0xff] }
  0xfb   :  { %v11863_v18 = vpop.f32.mrf.mxu1  ;;  %11887 = vmatprep.subr.mxu0 %v14130_v12  ;;  %11806 = vmatprep.mubr.msk.f32.mxu0 %vm121_vm1, %v99_v14 }
  0xfc   :  { %644 = vst.msk [vmem:[#allocation3 + $0x70] sm:$0xff] %vm383_vm4, %v622_v17  ;;  %v744_v19 = vadd.f32 %v11863_v18, %v14019_v15  ;;  %v14141_v17 = vld [vmem:[%s17818_s6 + $0x8] sm:$0xff]  ;;  %11888 = vmatpush3.msra.mxu0 %v14130_v12  ;;  %v100_v18 = vld [vmem:[%s17810_s3 + $0x58] sm:$0xff] }
  0xfd   :  { %v724_v21 = vpop.f32.mrf.mxu1  ;;  %11807 = vmatmul.mubr.msk.f32.gmra.mxu0 %vm121_vm1, %v100_v18 }
  0xfe   :  { %v10722_v23 = vmul.f32 -1.442695, %v744_v19  ;;  %v743_v24 = vadd.f32 %v724_v21, %v14025_v20  ;;  %v14154_v19 = vld [vmem:[%s17818_s6] sm:$0xff] }
  0xff   :  { %v11866_v25 = vpop.f32.mrf.mxu1  ;;  %v101_v21 = vld [vmem:[%s17810_s3 + $0x60] sm:$0xff] }
 0x100   :  { %13087 = vpow2.f32 %v10722_v23  ;;  %v10721_v26 = vmul.f32 -1.442695, %v743_v24  ;;  %v746_v27 = vadd.f32 %v11866_v25, %v14027_v22  ;;  %11809 = vmatprep.mubr.msk.f32.mxu0 %vm121_vm1, %v101_v21  ;;  %v102_v23 = vld [vmem:[%s17810_s3 + $0x68] sm:$0xff]  ;;  %v103_v24 = vld [vmem:[%s17810_s3 + $0x70] sm:$0xff]  ;;  %v104_v25 = vld [vmem:[%s17810_s3 + $0x78] sm:$0xff] }
 0x101   :  { %v734_v33 = vpop.f32.mrf.mxu1  ;;  %11810 = vmatmul.mubr.msk.f32.gmra.mxu0 %vm121_vm1, %v102_v23 }
 0x102   :  { %13089 = vpow2.f32 %v10721_v26  ;;  %v10724_v34 = vmul.f32 -1.442695, %v746_v27  ;;  %v745_v35 = vadd.f32 %v734_v33, %v14031_v32  ;;  %11812 = vmatprep.mubr.msk.f32.mxu0 %vm121_vm1, %v103_v24  ;;  %v105_v26 = vld [vmem:[%s17810_s3 + $0x80] sm:$0xff] }
 0x104   :  { %13091 = vpow2.f32 %v10724_v34  ;;  %v10723_v36 = vmul.f32 -1.442695, %v745_v35  ;;  %v109_v35 = vld [vmem:[%s17810_s3 + $0xa0] sm:$0xff] }
 0x105   :  { %11813 = vmatmul.mubr.msk.f32.gmra.mxu0 %vm121_vm1, %v104_v25 }
 0x106   :  { %13093 = vpow2.f32 %v10723_v36  ;;  %11815 = vmatprep.mubr.msk.f32.mxu0 %vm121_vm1, %v105_v26 }
 0x10d   :  { %v13088_v37 = vpop.eup %13087 }
 0x10e   :  { %v760_v39 = vadd.f32 1.0, %v13088_v37  ;;  %v110_v37 = vld [vmem:[%s17810_s3 + $0xa8] sm:$0xff] }
 0x10f   :  { %v13090_v38 = vpop.eup %13089 }
 0x110   :  { %v759_v40 = vadd.f32 1.0, %v13090_v38 }
 0x111   :  { %v13092_v41 = vpop.eup %13091 }
 0x112   :  { %13095 = vrcp.f32 %v759_v40  ;;  %v762_v43 = vadd.f32 1.0, %v13092_v41 }
 0x113   :  { %v13094_v42 = vpop.eup %13093  ;;  %13097 = vrcp.f32 %v760_v39 }
 0x114   :  { %v761_v44 = vadd.f32 1.0, %v13094_v42 }
 0x116   :  { %13099 = vrcp.f32 %v761_v44 }
 0x117   :  { %13101 = vrcp.f32 %v762_v43 }
 0x11f   :  { %v14048_v47 = vpop.eup %13095 }
 0x120   :  { %v771_v48 = vmul.f32 0.0, %v14048_v47  ;;  %v14051_v49 = vpop.eup %13097 }
 0x121   :  { %v772_v52 = vmul.f32 0.0, %v14051_v49 }
 0x122   :  { %783 = vrot.lane.b32.xlu0 %v771_v48, %s13670_s10 }
 0x123   :  { %v14054_v50 = vpop.eup %13099 }
 0x124   :  { %v773_v51 = vmul.f32 0.0, %v14054_v50  ;;  %v14058_v53 = vpop.eup %13101  ;;  %v910_v63 = vsub.f32 1.0, %v14054_v50 }
 0x125   :  { %v774_v54 = vmul.f32 0.0, %v14058_v53 }
 0x126   :  { %787 = vrot.lane.b32.xlu1 %v773_v51, %s13670_s10  ;;  %785 = vrot.lane.b32.xlu0 %v772_v52, %s13670_s10  ;;  %v914_v23 = vmul.f32 0.0, %v910_v63 }
 0x12a   :  { %789 = vrot.lane.b32.xlu1 %v774_v54, %s13670_s10 }
 0x194   :  { %v784_v55 = vpop.permute.xlu0 %783 }
 0x195   :  { %11875 = vmatprep.mubr.msk.f32.mxu1 %vm654_vm5, %v784_v55 }
 0x198   :  { %v788_v56 = vpop.permute.xlu1 %787  ;;  %v786_v57 = vpop.permute.xlu0 %785 }
 0x199   :  { %11876 = vmatmul.mubr.msk.f32.vlgmr.msra.gmra.mxu1 %vm654_vm5, %v786_v57 }
 0x19a   :  { %11878 = vmatprep.mubr.msk.f32.mxu1 %vm654_vm5, %v788_v56  ;;  %11896 = vmatpush3.msra.mxu1 %v14113_v8  ;;  %v911_v56 = vsub.f32 1.0, %v14058_v53 }
 0x19b   :  { %11897 = vmatprep.subr.mxu1 %v14125_v11 }
 0x19c   :  { %v790_v58 = vpop.permute.xlu1 %789  ;;  %11898 = vmatpush3.msra.mxu1 %v14125_v11  ;;  %v915_v6 = vmul.f32 0.0, %v911_v56 }
 0x19d   :  { %11879 = vmatmul.mubr.msk.f32.gmra.mxu1 %vm654_vm5, %v790_v58  ;;  %11899 = vmatprep.subr.mxu1 %v14141_v17 }
 0x19e   :  { %11903 = vmatprep.mubr.f32.mxu1 %v17788_v28  ;;  %11900 = vmatpush3.msra.mxu1 %v14141_v17 }
 0x19f   :  { %11901 = vmatprep.subr.mxu1 %v14154_v19 }
 0x1a0   :  { %11902 = vmatpush3.msra.mxu1 %v14154_v19 }
 0x1a1   :  { %11904 = vmatmul.mubr.f32.vlgmr.msra.gmra.mxu1 %v17788_v28  ;;  %11923 = vmatprep.subr.mxu1 %v13843_v5 }
 0x1a2   :  { %11924 = vmatpush3.msra.mxu1 %v13843_v5  ;;  %11906 = vmatprep.mubr.f32.mxu1 %v17788_v28  ;;  %v106_v5 = vld [vmem:[%s17810_s3 + $0x88] sm:$0xff] }
 0x1a3   :  { %11925 = vmatprep.subr.mxu1 %v13864_v9  ;;  %11816 = vmatmul.mubr.msk.f32.gmra.mxu0 %vm121_vm1, %v106_v5 }
 0x1a4   :  { %11926 = vmatpush3.msra.mxu1 %v13864_v9  ;;  %v107_v9 = vld [vmem:[%s17810_s3 + $0x90] sm:$0xff] }
 0x1a5   :  { %11907 = vmatmul.mubr.f32.gmra.mxu1 %v17788_v28  ;;  %11927 = vmatprep.subr.mxu1 %v13883_v13 }
 0x1a6   :  { %11928 = vmatpush3.msra.mxu1 %v13883_v13  ;;  %11818 = vmatprep.mubr.msk.f32.mxu0 %vm121_vm1, %v107_v9  ;;  %v108_v13 = vld [vmem:[%s17810_s3 + $0x98] sm:$0xff]  ;;  %s13672_s3 = smov 32  }
 0x1a7   :  { %11929 = vmatprep.subr.mxu1 %v13897_v16  ;;  %11819 = vmatmul.mubr.msk.f32.gmra.mxu0 %vm121_vm1, %v108_v13 }
 0x1a8   :  { %11930 = vmatpush3.msra.mxu1 %v13897_v16  ;;  %11821 = vmatprep.mubr.msk.f32.mxu0 %vm121_vm1, %v109_v35 }
 0x1a9   :  { %11951 = vmatprep.subr.mxu1 %v14085_v2 }
 0x1ab   :  { %11822 = vmatmul.mubr.msk.f32.gmra.mxu0 %vm121_vm1, %v110_v37 }
 0x1b1   :  { %v11799_v43 = vpop.f32.mrf.mxu0 }
 0x1b2   :  { %v290_v44 = vadd.f32 %v11799_v43, %v13971_v31 }
 0x1b3   :  { %v284_v48 = vpop.f32.mrf.mxu0 }
 0x1b4   :  { %389 = vst.msk [vmem:[#allocation2 + $0x28] sm:$0xff] %vm383_vm4, %v290_v44  ;;  %v285_v52 = vadd.f32 %v13971_v31, %v284_v48 }
 0x1b5   :  { %v11802_v57 = vpop.f32.mrf.mxu0 }
 0x1b6   :  { %388 = vst.msk [vmem:[#allocation2 + $0x20] sm:$0xff] %vm383_vm4, %v285_v52  ;;  %v14307_v52 = vld [vmem:[%s17819_s7 + $0x18] sm:$0xff] }
 0x1b7   :  { %v294_v0 = vpop.f32.mrf.mxu0  ;;  %11909 = vmatprep.subr.mxu0 %v14307_v52 }
 0x1b9   :  { %v11805_v14 = vpop.f32.mrf.mxu0 }
 0x259   :  { %v11877_v59 = vpop.f32.mrf.mxu1 }
 0x25a   :  { %890 = vrot.lane.b32.xlu1 %v11877_v59, %s13671_s8  ;;  %v300_v59 = vadd.f32 %v11802_v57, %v13971_v31 }
 0x25b   :  { %v865_v60 = vpop.f32.mrf.mxu1 }
 0x25c   :  { %888 = vrot.lane.b32.xlu0 %v865_v60, %s13671_s8  ;;  %391 = vst.msk [vmem:[#allocation2 + $0x38] sm:$0xff] %vm383_vm4, %v300_v59  ;;  %v14329_v59 = vld [vmem:[%s17820_s0 + $0x8] sm:$0xff] }
 0x25d   :  { %v11880_v61 = vpop.f32.mrf.mxu1 }
 0x25e   :  { %894 = vrot.lane.b32.xlu1 %v11880_v61, %s13671_s8 }
 0x25f   :  { %v875_v62 = vpop.f32.mrf.mxu1 }
 0x260   :  { %892 = vrot.lane.b32.xlu0 %v875_v62, %s13671_s8 }
 0x2cc   :  { %v891_v27 = vpop.permute.xlu1 %890 }
 0x2cd   :  { %v901_v33 = vadd.f32 %v891_v27, %v14019_v15 }
 0x2ce   :  { %v889_v16 = vpop.permute.xlu0 %888 }
 0x2cf   :  { %13103 = vtanh.f32 %v901_v33  ;;  %v900_v34 = vadd.f32 %v889_v16, %v14025_v20 }
 0x2d0   :  { %v895_v36 = vpop.permute.xlu1 %894 }
 0x2d1   :  { %13105 = vtanh.f32 %v900_v34  ;;  %v903_v38 = vadd.f32 %v895_v36, %v14027_v22  ;;  %v909_v22 = vsub.f32 1.0, %v14051_v49 }
 0x2d2   :  { %v893_v15 = vpop.permute.xlu0 %892 }
 0x2d3   :  { %13107 = vtanh.f32 %v903_v38  ;;  %v902_v20 = vadd.f32 %v893_v15, %v14031_v32  ;;  %v908_v32 = vsub.f32 1.0, %v14048_v47  ;;  %v913_v54 = vmul.f32 0.0, %v909_v22 }
 0x2d5   :  { %13109 = vtanh.f32 %v902_v20  ;;  %v912_v61 = vmul.f32 0.0, %v908_v32 }
 0x2dc   :  { %v13104_v39 = vpop.eup %13103 }
 0x2dd   :  { %922 = vrot.lane.b32.xlu1 %v13104_v39, %s13671_s8 }
 0x2de   :  { %v13106_v40 = vpop.eup %13105 }
 0x2df   :  { %920 = vrot.lane.b32.xlu0 %v13106_v40, %s13671_s8 }
 0x2e0   :  { %v13108_v41 = vpop.eup %13107 }
 0x2e1   :  { %926 = vrot.lane.b32.xlu1 %v13108_v41, %s13671_s8 }
 0x2e2   :  { %v13110_v42 = vpop.eup %13109 }
 0x2e3   :  { %924 = vrot.lane.b32.xlu0 %v13110_v42, %s13671_s8 }
 0x34f   :  { %v923_v51 = vpop.permute.xlu1 %922 }
 0x350   :  { %v933_v55 = vmul.f32 %v14051_v49, %v923_v51  ;;  %v295_v49 = vadd.f32 %v13971_v31, %v294_v0  ;;  %v14339_v0 = vld [vmem:[#allocation2 + $0x28] sm:$0xff] }
 0x351   :  { %v921_v58 = vpop.permute.xlu0 %920 }
 0x352   :  { %v14230_v60 = vadd.f32 %v933_v55, %v913_v54  ;;  %v932_v62 = vmul.f32 %v14048_v47, %v921_v58  ;;  %390 = vst.msk [vmem:[#allocation2 + $0x30] sm:$0xff] %vm383_vm4, %v295_v49  ;;  %v310_v47 = vadd.f32 %v11805_v14, %v13971_v31  ;;  %v14312_v54 = vld [vmem:[%s17819_s7 + $0x10] sm:$0xff]  ;;  %v11905_v55 = vpop.f32.mrf.mxu1 }
 0x353   :  { %v927_v1 = vpop.permute.xlu1 %926 }
 0x354   :  { %v14236_v4 = vadd.f32 %v932_v62, %v912_v61  ;;  %v935_v10 = vmul.f32 %v14058_v53, %v927_v1  ;;  %1450 = vrot.lane.b32.xlu1 %v14230_v60, %s13672_s3  ;;  %v304_v53 = vpop.f32.mrf.mxu0  ;;  %393 = vst.msk [vmem:[#allocation2 + $0x48] sm:$0xff] %vm383_vm4, %v310_v47  ;;  %v1115_v56 = vpop.f32.mrf.mxu1  ;;  %v14334_v62 = vld [vmem:[%s17820_s0] sm:$0xff] }
 0x355   :  { %v925_v18 = vpop.permute.xlu0 %924  ;;  %v305_v25 = vadd.f32 %v13971_v31, %v304_v53  ;;  %v14351_v47 = vld [vmem:[#allocation2 + $0x20] sm:$0xff] }
 0x356   :  { %v14243_v21 = vadd.f32 %v935_v10, %v915_v6  ;;  %v934_v24 = vmul.f32 %v14054_v50, %v925_v18  ;;  %1448 = vrot.lane.b32.xlu0 %v14236_v4, %s13672_s3  ;;  %11889 = vmatprep.mubr.msk.f32.mxu0 %vm654_vm5, %v14236_v4  ;;  %v11808_v50 = vpop.f32.mrf.mxu0  ;;  %v11908_v57 = vpop.f32.mrf.mxu1  ;;  %v14345_v10 = vld [vmem:[%s17820_s0 + $0x18] sm:$0xff] }
 0x357   :  { %11931 = vmatprep.mubr.msk.f32.mxu1 %vm654_vm5, %v14236_v4  ;;  %11890 = vmatmul.mubr.msk.f32.vlgmr.msra.gmra.mxu0 %vm654_vm5, %v14230_v60  ;;  %392 = vst.msk [vmem:[#allocation2 + $0x40] sm:$0xff] %vm383_vm4, %v305_v25  ;;  %v320_v5 = vadd.f32 %v11808_v50, %v13971_v31  ;;  %v14357_v50 = vld [vmem:[%s17820_s0 + $0x10] sm:$0xff] }
 0x358   :  { %v14256_v26 = vadd.f32 %v934_v24, %v914_v23  ;;  %11932 = vmatmul.mubr.msk.f32.vlgmr.msra.gmra.mxu1 %vm654_vm5, %v14230_v60  ;;  %1454 = vrot.lane.b32.xlu1 %v14243_v21, %s13672_s3  ;;  %v314_v9 = vpop.f32.mrf.mxu0  ;;  %v1125_v58 = vpop.f32.mrf.mxu1 }
 0x359   :  { %11952 = vmatpush3.msra.mxu1 %v14085_v2  ;;  %395 = vst.msk [vmem:[#allocation2 + $0x58] sm:$0xff] %vm383_vm4, %v320_v5  ;;  %v315_v13 = vadd.f32 %v13971_v31, %v314_v9  ;;  %11910 = vmatpush3.msra.mxu0 %v14307_v52 }
 0x35a   :  { %1452 = vrot.lane.b32.xlu0 %v14256_v26, %s13672_s3  ;;  %11892 = vmatprep.mubr.msk.f32.mxu0 %vm654_vm5, %v14256_v26  ;;  %v11811_v27 = vpop.f32.mrf.mxu0 }
 0x35b   :  { %11934 = vmatprep.mubr.msk.f32.mxu1 %vm654_vm5, %v14256_v26  ;;  %11893 = vmatmul.mubr.msk.f32.gmra.mxu0 %vm654_vm5, %v14243_v21  ;;  %394 = vst.msk [vmem:[#allocation2 + $0x50] sm:$0xff] %vm383_vm4, %v315_v13  ;;  %v330_v33 = vadd.f32 %v11811_v27, %v13971_v31  ;;  %v14363_v27 = vld [vmem:[#allocation2 + $0x38] sm:$0xff] }
 0x35c   :  { %11935 = vmatmul.mubr.msk.f32.gmra.mxu1 %vm654_vm5, %v14243_v21  ;;  %11953 = vmatprep.subr.mxu1 %v14093_v3  ;;  %v324_v16 = vpop.f32.mrf.mxu0 }
 0x35d   :  { %11954 = vmatpush3.msra.mxu1 %v14093_v3  ;;  %397 = vst.msk [vmem:[#allocation2 + $0x68] sm:$0xff] %vm383_vm4, %v330_v33  ;;  %v325_v34 = vadd.f32 %v13971_v31, %v324_v16  ;;  %11911 = vmatprep.subr.mxu0 %v14312_v54 }
 0x35e   :  { %11955 = vmatprep.subr.mxu1 %v14107_v7  ;;  %v11814_v35 = vpop.f32.mrf.mxu0  ;;  %11912 = vmatpush3.msra.mxu0 %v14312_v54 }
 0x35f   :  { %11956 = vmatpush3.msra.mxu1 %v14107_v7  ;;  %396 = vst.msk [vmem:[#allocation2 + $0x60] sm:$0xff] %vm383_vm4, %v325_v34  ;;  %v340_v36 = vadd.f32 %v11814_v35, %v13971_v31 }
 0x360   :  { %11957 = vmatprep.subr.mxu1 %v14130_v12  ;;  %v334_v37 = vpop.f32.mrf.mxu0 }
 0x361   :  { %11958 = vmatpush3.msra.mxu1 %v14130_v12  ;;  %399 = vst.msk [vmem:[#allocation2 + $0x78] sm:$0xff] %vm383_vm4, %v340_v36  ;;  %v335_v38 = vadd.f32 %v13971_v31, %v334_v37 }
 0x362   :  { %v11817_v15 = vpop.f32.mrf.mxu0  ;;  %11979 = vmatprep.subr.mxu1 %v14307_v52 }
 0x363   :  { %398 = vst.msk [vmem:[#allocation2 + $0x70] sm:$0xff] %vm383_vm4, %v335_v38  ;;  %v350_v20 = vadd.f32 %v11817_v15, %v13971_v31  ;;  %v14370_v15 = vld [vmem:[#allocation2 + $0x30] sm:$0xff] }
 0x364   :  { %v344_v39 = vpop.f32.mrf.mxu0 }
 0x365   :  { %401 = vst.msk [vmem:[#allocation2 + $0x88] sm:$0xff] %vm383_vm4, %v350_v20  ;;  %v345_v40 = vadd.f32 %v13971_v31, %v344_v39 }
 0x366   :  { %v11820_v41 = vpop.f32.mrf.mxu0 }
 0x367   :  { %400 = vst.msk [vmem:[#allocation2 + $0x80] sm:$0xff] %vm383_vm4, %v345_v40  ;;  %v360_v42 = vadd.f32 %v11820_v41, %v13971_v31 }
 0x368   :  { %v354_v22 = vpop.f32.mrf.mxu0 }
 0x369   :  { %403 = vst.msk [vmem:[#allocation2 + $0x98] sm:$0xff] %vm383_vm4, %v360_v42  ;;  %v355_v43 = vadd.f32 %v13971_v31, %v354_v22 }
 0x36a   :  { %v11823_v44 = vpop.f32.mrf.mxu0 }
 0x36b   :  { %402 = vst.msk [vmem:[#allocation2 + $0x90] sm:$0xff] %vm383_vm4, %v355_v43  ;;  %v370_v32 = vadd.f32 %v11823_v44, %v13971_v31 }
 0x36c   :  { %v364_v48 = vpop.f32.mrf.mxu0 }
 0x36d   :  { %405 = vst.msk [vmem:[#allocation2 + $0xa8] sm:$0xff] %vm383_vm4, %v370_v32  ;;  %v365_v51 = vadd.f32 %v13971_v31, %v364_v48  ;;  %v14320_v31 = vld [vmem:[%s17819_s7 + $0x8] sm:$0xff] }
 0x36e   :  { %11913 = vmatprep.subr.mxu0 %v14320_v31 }
 0x36f   :  { %404 = vst.msk [vmem:[#allocation2 + $0xa0] sm:$0xff] %vm383_vm4, %v365_v51  ;;  %11914 = vmatpush3.msra.mxu0 %v14320_v31 }
 0x417   :  { %v11891_v61 = vpop.f32.mrf.mxu0 }
 0x418   :  { %v14337_v63 = vadd.f32 %v11891_v61, %v14329_v59  ;;  %v11933_v1 = vpop.f32.mrf.mxu1 }
 0x419   :  { %v1421_v49 = vadd.f32 %v11933_v1, %v14339_v0  ;;  %v1026_v6 = vpop.f32.mrf.mxu0 }
 0x41a   :  { %v1135_v14 = vadd.f32 %v11905_v55, %v14337_v63  ;;  %v14349_v18 = vadd.f32 %v1026_v6, %v14334_v62  ;;  %v1401_v23 = vpop.f32.mrf.mxu1 }
 0x41b   :  { %v10746_v24 = vmul.f32 -1.442695, %v1421_v49  ;;  %v1420_v53 = vadd.f32 %v1401_v23, %v14351_v47  ;;  %v11894_v25 = vpop.f32.mrf.mxu0 }
 0x41c   :  { %v10734_v5 = vmul.f32 -1.442695, %v1135_v14  ;;  %v1134_v9 = vadd.f32 %v1115_v56, %v14349_v18  ;;  %v14361_v13 = vadd.f32 %v11894_v25, %v14345_v10  ;;  %v11936_v33 = vpop.f32.mrf.mxu1 }
 0x41d   :  { %v10745_v16 = vmul.f32 -1.442695, %v1420_v53  ;;  %v1423_v34 = vadd.f32 %v11936_v33, %v14363_v27  ;;  %v1036_v35 = vpop.f32.mrf.mxu0 }
 0x41e   :  { %13111 = vpow2.f32 %v10734_v5  ;;  %v10733_v36 = vmul.f32 -1.442695, %v1134_v9  ;;  %v1137_v37 = vadd.f32 %v11908_v57, %v14361_v13  ;;  %v14368_v38 = vadd.f32 %v1036_v35, %v14357_v50  ;;  %v1411_v20 = vpop.f32.mrf.mxu1 }
 0x41f   :  { %13113 = vpow2.f32 %v10746_v24  ;;  %v10748_v39 = vmul.f32 -1.442695, %v1423_v34  ;;  %v1422_v40 = vadd.f32 %v1411_v20, %v14370_v15  ;;  %v1451_v20 = vpop.permute.xlu1 %1450 }
 0x420   :  { %13115 = vpow2.f32 %v10733_v36  ;;  %v10736_v41 = vmul.f32 -1.442695, %v1137_v37  ;;  %v1136_v42 = vadd.f32 %v1125_v58, %v14368_v38  ;;  %v14377_v58 = vld [vmem:[%s17819_s7] sm:$0xff] }
 0x421   :  { %13117 = vpow2.f32 %v10745_v16  ;;  %v10747_v43 = vmul.f32 -1.442695, %v1422_v40  ;;  %11915 = vmatprep.subr.mxu0 %v14377_v58 }
 0x422   :  { %13119 = vpow2.f32 %v10736_v41  ;;  %v10735_v22 = vmul.f32 -1.442695, %v1136_v42  ;;  %11916 = vmatpush3.msra.mxu0 %v14377_v58  ;;  %v1449_v41 = vpop.permute.xlu0 %1448 }
 0x423   :  { %13121 = vpow2.f32 %v10748_v39  ;;  %11937 = vmatprep.subr.mxu0 %v13957_v29 }
 0x424   :  { %13123 = vpow2.f32 %v10735_v22 }
 0x425   :  { %13125 = vpow2.f32 %v10747_v43 }
 0x42b   :  { %v13112_v44 = vpop.eup %13111 }
 0x42c   :  { %v13114_v32 = vpop.eup %13113  ;;  %v1151_v48 = vadd.f32 1.0, %v13112_v44 }
 0x42d   :  { %v13116_v51 = vpop.eup %13115  ;;  %v1437_v61 = vadd.f32 1.0, %v13114_v32  ;;  %v1455_v32 = vpop.permute.xlu1 %1454 }
 0x42e   :  { %v13118_v55 = vpop.eup %13117  ;;  %13127 = vrcp.f32 %v1151_v48  ;;  %v1150_v56 = vadd.f32 1.0, %v13116_v51  ;;  %v1453_v51 = vpop.permute.xlu0 %1452 }
 0x42f   :  { %v13120_v57 = vpop.eup %13119  ;;  %v1436_v14 = vadd.f32 1.0, %v13118_v55 }
 0x430   :  { %v13122_v1 = vpop.eup %13121  ;;  %13129 = vrcp.f32 %v1150_v56  ;;  %v1153_v49 = vadd.f32 1.0, %v13120_v57 }
 0x431   :  { %v13124_v6 = vpop.eup %13123  ;;  %v1439_v53 = vadd.f32 1.0, %v13122_v1 }
 0x432   :  { %13131 = vrcp.f32 %v1153_v49  ;;  %v1152_v23 = vadd.f32 1.0, %v13124_v6  ;;  %v13126_v24 = vpop.eup %13125 }
 0x433   :  { %13133 = vrcp.f32 %v1437_v61  ;;  %v1438_v25 = vadd.f32 1.0, %v13126_v24 }
 0x434   :  { %13135 = vrcp.f32 %v1152_v23 }
 0x435   :  { %13137 = vrcp.f32 %v1436_v14 }
 0x436   :  { %13139 = vrcp.f32 %v1439_v53 }
 0x437   :  { %13141 = vrcp.f32 %v1438_v25 }
 0x43b   :  { %v14382_v5 = vpop.eup %13127 }
 0x43c   :  { %v1163_v9 = vmul.f32 0.0, %v14382_v5 }
 0x43d   :  { %v14385_v33 = vpop.eup %13129 }
 0x43e   :  { %1176 = vrot.lane.b32.xlu1 %v1163_v9, %s13670_s10  ;;  %v1162_v16 = vmul.f32 0.0, %v14385_v33 }
 0x43f   :  { %v14389_v34 = vpop.eup %13131 }
 0x440   :  { %v14391_v35 = vpop.eup %13133  ;;  %1174 = vrot.lane.b32.xlu0 %v1162_v16, %s13670_s10  ;;  %v1165_v36 = vmul.f32 0.0, %v14389_v34 }
 0x441   :  { %v14395_v37 = vpop.eup %13135  ;;  %v1461_v42 = vmul.f32 %v14391_v35, %v1451_v20 }
 0x442   :  { %1180 = vrot.lane.b32.xlu1 %v1165_v36, %s13670_s10  ;;  %v1164_v39 = vmul.f32 0.0, %v14395_v37  ;;  %v14399_v40 = vpop.eup %13137 }
 0x443   :  { %v14403_v22 = vpop.eup %13139  ;;  %v1460_v43 = vmul.f32 %v14399_v40, %v1449_v41 }
 0x444   :  { %1178 = vrot.lane.b32.xlu0 %v1164_v39, %s13670_s10  ;;  %v14407_v44 = vpop.eup %13141  ;;  %v1463_v48 = vmul.f32 %v14403_v22, %v1455_v32 }
 0x445   :  { %v1462_v55 = vmul.f32 %v14407_v44, %v1453_v51 }
 0x446   :  { %1470 = vrot.lane.b32.xlu1 %v1461_v42, %s13670_s10 }
 0x448   :  { %1468 = vrot.lane.b32.xlu0 %v1460_v43, %s13670_s10 }
 0x44a   :  { %1474 = vrot.lane.b32.xlu1 %v1463_v48, %s13670_s10 }
 0x44c   :  { %1472 = vrot.lane.b32.xlu0 %v1462_v55, %s13670_s10 }
 0x4b0   :  { %v1177_v56 = vpop.permute.xlu1 %1176 }
 0x4b2   :  { %v1175_v57 = vpop.permute.xlu0 %1174 }
 0x4b3   :  { %11917 = vmatprep.mubr.msk.f32.mxu0 %vm654_vm5, %v1175_v57 }
 0x4b4   :  { %11918 = vmatmul.mubr.msk.f32.vlgmr.msra.gmra.mxu0 %vm654_vm5, %v1177_v56  ;;  %v1181_v61 = vpop.permute.xlu1 %1180 }
 0x4b5   :  { %11938 = vmatpush3.msra.mxu0 %v13957_v29 }
 0x4b6   :  { %11939 = vmatprep.subr.mxu0 %v13962_v30  ;;  %v1179_v1 = vpop.permute.xlu0 %1178 }
 0x4b7   :  { %11920 = vmatprep.mubr.msk.f32.mxu0 %vm654_vm5, %v1179_v1  ;;  %11940 = vmatpush3.msra.mxu0 %v13962_v30  ;;  %v1299_v1 = vsub.f32 1.0, %v14385_v33 }
 0x4b8   :  { %11941 = vmatprep.subr.mxu0 %v14037_v45  ;;  %11921 = vmatmul.mubr.msk.f32.gmra.mxu0 %vm654_vm5, %v1181_v61  ;;  %v1471_v49 = vpop.permute.xlu1 %1470 }
 0x4b9   :  { %11942 = vmatpush3.msra.mxu0 %v14037_v45  ;;  %v14440_v45 = vld [vmem:[%s17813_s5 + $0x18] sm:$0xff] }
 0x4ba   :  { %11943 = vmatprep.subr.mxu0 %v14043_v46  ;;  %v1469_v6 = vpop.permute.xlu0 %1468 }
 0x4bb   :  { %11944 = vmatpush3.msra.mxu0 %v14043_v46  ;;  %11945 = vmatprep.mubr.msk.f32.mxu0 %vm654_vm5, %v1469_v6 }
 0x4bc   :  { %11946 = vmatmul.mubr.msk.f32.vlgmr.msra.gmra.mxu0 %vm654_vm5, %v1471_v49  ;;  %11965 = vmatprep.subr.mxu0 %v14113_v8  ;;  %v1475_v30 = vpop.permute.xlu1 %1474 }
 0x4bd   :  { %11966 = vmatpush3.msra.mxu0 %v14113_v8 }
 0x4be   :  { %v1473_v29 = vpop.permute.xlu0 %1472  ;;  %11967 = vmatprep.subr.mxu0 %v14125_v11 }
 0x4bf   :  { %11948 = vmatprep.mubr.msk.f32.mxu0 %vm654_vm5, %v1473_v29  ;;  %11968 = vmatpush3.msra.mxu0 %v14125_v11 }
 0x4c0   :  { %11949 = vmatmul.mubr.msk.f32.gmra.mxu0 %vm654_vm5, %v1475_v30  ;;  %11969 = vmatprep.subr.mxu0 %v14141_v17 }
 0x4c1   :  { %11970 = vmatpush3.msra.mxu0 %v14141_v17 }
 0x4c2   :  { %11971 = vmatprep.subr.mxu0 %v14154_v19 }
 0x4c3   :  { %11972 = vmatpush3.msra.mxu0 %v14154_v19 }
 0x4c4   :  { %11993 = vmatprep.subr.mxu0 %v14440_v45 }
 0x574   :  { %v11919_v46 = vpop.f32.mrf.mxu0 }
 0x575   :  { %1281 = vrot.lane.b32.xlu1 %v11919_v46, %s13671_s8 }
 0x576   :  { %v1256_v8 = vpop.f32.mrf.mxu0 }
 0x577   :  { %1279 = vrot.lane.b32.xlu0 %v1256_v8, %s13671_s8  ;;  %v1303_v8 = vmul.f32 0.0, %v1299_v1 }
 0x578   :  { %v11922_v11 = vpop.f32.mrf.mxu0 }
 0x57a   :  { %v1266_v14 = vpop.f32.mrf.mxu0 }
 0x57c   :  { %v11947_v17 = vpop.f32.mrf.mxu0 }
 0x57d   :  { %1575 = vrot.lane.b32.xlu1 %v11947_v17, %s13671_s8  ;;  %v1593_v17 = vsub.f32 1.0, %v14399_v40 }
 0x57e   :  { %v1550_v23 = vpop.f32.mrf.mxu0 }
 0x57f   :  { %1573 = vrot.lane.b32.xlu0 %v1550_v23, %s13671_s8 }
 0x580   :  { %v11950_v19 = vpop.f32.mrf.mxu0 }
 0x581   :  { %1579 = vrot.lane.b32.xlu1 %v11950_v19, %s13671_s8 }
 0x582   :  { %v1560_v24 = vpop.f32.mrf.mxu0 }
 0x583   :  { %1577 = vrot.lane.b32.xlu0 %v1560_v24, %s13671_s8  ;;  %v14490_v24 = vld [vmem:[%s17813_s5 + $0x10] sm:$0xff] }
 0x585   :  { %1285 = vrot.lane.b32.xlu1 %v11922_v11, %s13671_s8 }
 0x587   :  { %1283 = vrot.lane.b32.xlu0 %v1266_v14, %s13671_s8 }
 0x5e7   :  { %v1282_v53 = vpop.permute.xlu1 %1281 }
 0x5e8   :  { %v1292_v25 = vadd.f32 %v1282_v53, %v14337_v63  ;;  %v1597_v53 = vmul.f32 %v1593_v17, %v14236_v4  ;;  %v1302_v4 = vsub.f32 1.0, %v14389_v34 }
 0x5e9   :  { %v1280_v9 = vpop.permute.xlu0 %1279 }
 0x5ea   :  { %13143 = vtanh.f32 %v1292_v25  ;;  %v1291_v16 = vadd.f32 %v1280_v9, %v14349_v18  ;;  %v1595_v9 = vsub.f32 1.0, %v14407_v44 }
 0x5ec   :  { %13145 = vtanh.f32 %v1291_v16 }
 0x5ef   :  { %v1576_v36 = vpop.permute.xlu1 %1575 }
 0x5f0   :  { %v1586_v20 = vadd.f32 %v1576_v36, %v14339_v0 }
 0x5f1   :  { %v1574_v39 = vpop.permute.xlu0 %1573 }
 0x5f2   :  { %13147 = vtanh.f32 %v1586_v20  ;;  %v1585_v41 = vadd.f32 %v1574_v39, %v14351_v47  ;;  %v14502_v20 = vld [vmem:[%s17813_s5 + $0x8] sm:$0xff] }
 0x5f3   :  { %v1580_v42 = vpop.permute.xlu1 %1579 }
 0x5f4   :  { %13149 = vtanh.f32 %v1585_v41  ;;  %v1588_v43 = vadd.f32 %v1580_v42, %v14363_v27  ;;  %v14515_v42 = vld [vmem:[%s17813_s5] sm:$0xff] }
 0x5f5   :  { %v1578_v32 = vpop.permute.xlu0 %1577 }
 0x5f6   :  { %13151 = vtanh.f32 %v1588_v43  ;;  %v1587_v63 = vadd.f32 %v1578_v32, %v14370_v15  ;;  %v1599_v43 = vmul.f32 %v1595_v9, %v14256_v26  ;;  %v1306_v26 = vmul.f32 0.0, %v1302_v4 }
 0x5f7   :  { %v13144_v48 = vpop.eup %13143  ;;  %v1286_v51 = vpop.permute.xlu1 %1285 }
 0x5f8   :  { %13153 = vtanh.f32 %v1587_v63  ;;  %v1294_v18 = vadd.f32 %v1286_v51, %v14361_v13  ;;  %1313 = vrot.lane.b32.xlu1 %v13144_v48, %s13671_s8  ;;  %v1301_v63 = vsub.f32 1.0, %v14395_v37 }
 0x5f9   :  { %v13146_v0 = vpop.eup %13145  ;;  %v1284_v55 = vpop.permute.xlu0 %1283 }
 0x5fa   :  { %13155 = vtanh.f32 %v1294_v18  ;;  %v1293_v47 = vadd.f32 %v1284_v55, %v14368_v38  ;;  %1311 = vrot.lane.b32.xlu0 %v13146_v0, %s13671_s8  ;;  %v1300_v38 = vsub.f32 1.0, %v14382_v5 }
 0x5fc   :  { %13157 = vtanh.f32 %v1293_v47  ;;  %v1304_v6 = vmul.f32 0.0, %v1300_v38 }
 0x5ff   :  { %v13148_v27 = vpop.eup %13147 }
 0x600   :  { %1607 = vrot.lane.b32.xlu1 %v13148_v27, %s13671_s8 }
 0x601   :  { %v13150_v56 = vpop.eup %13149 }
 0x602   :  { %1605 = vrot.lane.b32.xlu0 %v13150_v56, %s13671_s8 }
 0x603   :  { %v13152_v15 = vpop.eup %13151 }
 0x604   :  { %1611 = vrot.lane.b32.xlu1 %v13152_v15, %s13671_s8 }
 0x605   :  { %v13154_v13 = vpop.eup %13153 }
 0x606   :  { %1609 = vrot.lane.b32.xlu0 %v13154_v13, %s13671_s8 }
 0x607   :  { %v13156_v57 = vpop.eup %13155 }
 0x608   :  { %1317 = vrot.lane.b32.xlu1 %v13156_v57, %s13671_s8 }
 0x609   :  { %v13158_v61 = vpop.eup %13157 }
 0x60a   :  { %1315 = vrot.lane.b32.xlu0 %v13158_v61, %s13671_s8 }
 0x66a   :  { %v1314_v49 = vpop.permute.xlu1 %1313 }
 0x66b   :  { %v1324_v29 = vmul.f32 %v14382_v5, %v1314_v49  ;;  %v1594_v5 = vsub.f32 1.0, %v14391_v35 }
 0x66c   :  { %v1312_v30 = vpop.permute.xlu0 %1311 }
 0x66d   :  { %v14470_v46 = vadd.f32 %v1324_v29, %v1304_v6  ;;  %v1323_v11 = vmul.f32 %v14385_v33, %v1312_v30  ;;  %v1598_v16 = vmul.f32 %v1594_v5, %v14230_v60  ;;  %v14603_v29 = vld [vmem:[#allocation2 + $0x48] sm:$0xff] }
 0x66f   :  { %v14473_v14 = vadd.f32 %v1323_v11, %v1303_v8  ;;  %1849 = vrot.lane.b32.xlu1 %v14470_v46, %s13672_s3 }
 0x671   :  { %1847 = vrot.lane.b32.xlu0 %v14473_v14, %s13672_s3  ;;  %11973 = vmatprep.mubr.msk.f32.mxu0 %vm654_vm5, %v14473_v14 }
 0x672   :  { %v1608_v23 = vpop.permute.xlu1 %1607  ;;  %11974 = vmatmul.mubr.msk.f32.vlgmr.msra.gmra.mxu0 %vm654_vm5, %v14470_v46 }
 0x673   :  { %11994 = vmatpush3.msra.mxu0 %v14440_v45  ;;  %v1618_v33 = vmul.f32 %v14391_v35, %v1608_v23  ;;  %v1596_v35 = vsub.f32 1.0, %v14403_v22  ;;  %v14609_v23 = vld [vmem:[#allocation2 + $0x58] sm:$0xff] }
 0x674   :  { %v1606_v19 = vpop.permute.xlu0 %1605  ;;  %11995 = vmatprep.subr.mxu0 %v14490_v24 }
 0x675   :  { %v1617_v25 = vmul.f32 %v14399_v40, %v1606_v19  ;;  %11996 = vmatpush3.msra.mxu0 %v14490_v24  ;;  %v14509_v40 = vadd.f32 %v1618_v33, %v1598_v16 }
 0x676   :  { %v1612_v36 = vpop.permute.xlu1 %1611  ;;  %11997 = vmatprep.subr.mxu0 %v14502_v20 }
 0x677   :  { %v14505_v39 = vadd.f32 %v1617_v25, %v1597_v53  ;;  %11998 = vmatpush3.msra.mxu0 %v14502_v20  ;;  %v1620_v60 = vmul.f32 %v14403_v22, %v1612_v36  ;;  %v1600_v22 = vmul.f32 %v1596_v35, %v14243_v21  ;;  %v1305_v21 = vmul.f32 0.0, %v1301_v63  ;;  %v14612_v25 = vld [vmem:[#allocation2 + $0x50] sm:$0xff] }
 0x678   :  { %v1610_v41 = vpop.permute.xlu0 %1609  ;;  %11999 = vmatprep.subr.mxu0 %v14515_v42 }
 0x679   :  { %v1619_v32 = vmul.f32 %v14407_v44, %v1610_v41  ;;  %11959 = vmatprep.mubr.msk.f32.mxu1 %vm654_vm5, %v14505_v39  ;;  %12000 = vmatpush3.msra.mxu0 %v14515_v42  ;;  %v14532_v18 = vadd.f32 %v1620_v60, %v1600_v22 }
 0x67a   :  { %v1318_v48 = vpop.permute.xlu1 %1317  ;;  %11960 = vmatmul.mubr.msk.f32.vlgmr.msra.gmra.mxu1 %vm654_vm5, %v14509_v40  ;;  %12021 = vmatprep.subr.mxu0 %v14085_v2 }
 0x67b   :  { %v14528_v51 = vadd.f32 %v1619_v32, %v1599_v43  ;;  %v1326_v44 = vmul.f32 %v14389_v34, %v1318_v48  ;;  %11980 = vmatpush3.msra.mxu1 %v14307_v52 }
 0x67c   :  { %v1316_v0 = vpop.permute.xlu0 %1315  ;;  %11981 = vmatprep.subr.mxu1 %v14312_v54 }
 0x67d   :  { %v14535_v55 = vadd.f32 %v1326_v44, %v1306_v26  ;;  %v1325_v47 = vmul.f32 %v14395_v37, %v1316_v0  ;;  %11962 = vmatprep.mubr.msk.f32.mxu1 %vm654_vm5, %v14528_v51  ;;  %11982 = vmatpush3.msra.mxu1 %v14312_v54  ;;  %v14564_v54 = vld [vmem:[%s17814_s1 + $0x18] sm:$0xff] }
 0x67e   :  { %11963 = vmatmul.mubr.msk.f32.gmra.mxu1 %vm654_vm5, %v14532_v18  ;;  %11983 = vmatprep.subr.mxu1 %v14320_v31 }
 0x67f   :  { %v14544_v34 = vadd.f32 %v1325_v47, %v1305_v21  ;;  %1853 = vrot.lane.b32.xlu1 %v14535_v55, %s13672_s3  ;;  %11984 = vmatpush3.msra.mxu1 %v14320_v31 }
 0x680   :  { %11985 = vmatprep.subr.mxu1 %v14377_v58 }
 0x681   :  { %1851 = vrot.lane.b32.xlu0 %v14544_v34, %s13672_s3  ;;  %11976 = vmatprep.mubr.msk.f32.mxu0 %vm654_vm5, %v14544_v34 }
 0x682   :  { %11977 = vmatmul.mubr.msk.f32.gmra.mxu0 %vm654_vm5, %v14535_v55  ;;  %11986 = vmatpush3.msra.mxu1 %v14377_v58 }
 0x683   :  { %2143 = vrot.lane.b32.xlu1 %v14509_v40, %s13672_s3  ;;  %12001 = vmatprep.mubr.msk.f32.mxu0 %vm654_vm5, %v14505_v39 }
 0x684   :  { %12007 = vmatprep.subr.mxu1 %v14564_v54 }
 0x685   :  { %2141 = vrot.lane.b32.xlu0 %v14505_v39, %s13672_s3 }
 0x686   :  { %12002 = vmatmul.mubr.msk.f32.vlgmr.msra.gmra.mxu0 %vm654_vm5, %v14509_v40 }
 0x687   :  { %2147 = vrot.lane.b32.xlu1 %v14532_v18, %s13672_s3  ;;  %12004 = vmatprep.mubr.msk.f32.mxu0 %vm654_vm5, %v14528_v51 }
 0x688   :  { %12022 = vmatpush3.msra.mxu0 %v14085_v2 }
 0x689   :  { %2145 = vrot.lane.b32.xlu0 %v14528_v51, %s13672_s3  ;;  %12023 = vmatprep.subr.mxu0 %v14093_v3 }
 0x68a   :  { %12005 = vmatmul.mubr.msk.f32.gmra.mxu0 %vm654_vm5, %v14532_v18 }
 0x68b   :  { %12024 = vmatpush3.msra.mxu0 %v14093_v3 }
 0x68c   :  { %12025 = vmatprep.subr.mxu0 %v14107_v7 }
 0x68d   :  { %12026 = vmatpush3.msra.mxu0 %v14107_v7 }
 0x68e   :  { %12027 = vmatprep.subr.mxu0 %v14130_v12 }
 0x68f   :  { %12028 = vmatpush3.msra.mxu0 %v14130_v12 }
 0x690   :  { %12049 = vmatprep.subr.mxu0 %v14307_v52 }
 0x732   :  { %v11975_v2 = vpop.f32.mrf.mxu0 }
 0x734   :  { %v1800_v15 = vpop.f32.mrf.mxu0 }
 0x73a   :  { %v11961_v31 = vpop.f32.mrf.mxu1 }
 0x73b   :  { %v14588_v37 = vadd.f32 %v11961_v31, %v14329_v59 }
 0x73c   :  { %v1703_v27 = vpop.f32.mrf.mxu1 }
 0x73d   :  { %v1820_v56 = vadd.f32 %v11975_v2, %v14588_v37  ;;  %v14592_v3 = vadd.f32 %v1703_v27, %v14334_v62  ;;  %v1850_v2 = vpop.permute.xlu1 %1849 }
 0x73e   :  { %v11964_v13 = vpop.f32.mrf.mxu1 }
 0x73f   :  { %v10762_v7 = vmul.f32 -1.442695, %v1820_v56  ;;  %v1819_v57 = vadd.f32 %v1800_v15, %v14592_v3  ;;  %v14596_v52 = vadd.f32 %v11964_v13, %v14345_v10  ;;  %v14606_v10 = vld [vmem:[#allocation2 + $0x40] sm:$0xff]  ;;  %v1848_v15 = vpop.permute.xlu0 %1847 }
 0x740   :  { %v1713_v61 = vpop.f32.mrf.mxu1 }
 0x741   :  { %13159 = vpow2.f32 %v10762_v7  ;;  %v10761_v12 = vmul.f32 -1.442695, %v1819_v57  ;;  %v14599_v59 = vadd.f32 %v1713_v61, %v14357_v50  ;;  %v1854_v57 = vpop.permute.xlu1 %1853 }
 0x742   :  { %v11978_v38 = vpop.f32.mrf.mxu0 }
 0x743   :  { %13161 = vpow2.f32 %v10761_v12  ;;  %v1822_v1 = vadd.f32 %v11978_v38, %v14596_v52  ;;  %v1852_v38 = vpop.permute.xlu0 %1851 }
 0x744   :  { %v1810_v62 = vpop.f32.mrf.mxu0 }
 0x745   :  { %v10764_v49 = vmul.f32 -1.442695, %v1822_v1  ;;  %v1821_v6 = vadd.f32 %v1810_v62, %v14599_v59 }
 0x746   :  { %v12003_v30 = vpop.f32.mrf.mxu0 }
 0x747   :  { %13163 = vpow2.f32 %v10764_v49  ;;  %v10763_v8 = vmul.f32 -1.442695, %v1821_v6  ;;  %v2114_v11 = vadd.f32 %v12003_v30, %v14603_v29  ;;  %v2144_v6 = vpop.permute.xlu1 %2143 }
 0x748   :  { %v2094_v17 = vpop.f32.mrf.mxu0 }
 0x749   :  { %13165 = vpow2.f32 %v10763_v8  ;;  %v10774_v5 = vmul.f32 -1.442695, %v2114_v11  ;;  %v2113_v50 = vadd.f32 %v2094_v17, %v14606_v10  ;;  %v2142_v11 = vpop.permute.xlu0 %2141 }
 0x74a   :  { %v12006_v33 = vpop.f32.mrf.mxu0 }
 0x74b   :  { %13167 = vpow2.f32 %v10774_v5  ;;  %v10773_v19 = vmul.f32 -1.442695, %v2113_v50  ;;  %v2116_v53 = vadd.f32 %v12006_v33, %v14609_v23 }
 0x74c   :  { %v2104_v9 = vpop.f32.mrf.mxu0 }
 0x74d   :  { %13169 = vpow2.f32 %v10773_v19  ;;  %v10776_v16 = vmul.f32 -1.442695, %v2116_v53  ;;  %v2115_v35 = vadd.f32 %v2104_v9, %v14612_v25  ;;  %v2148_v19 = vpop.permute.xlu1 %2147 }
 0x74e   :  { %v13160_v36 = vpop.eup %13159 }
 0x74f   :  { %v1836_v4 = vadd.f32 1.0, %v13160_v36  ;;  %13171 = vpow2.f32 %v10776_v16  ;;  %v10775_v60 = vmul.f32 -1.442695, %v2115_v35  ;;  %v2146_v16 = vpop.permute.xlu0 %2145 }
 0x750   :  { %v13162_v41 = vpop.eup %13161 }
 0x751   :  { %13173 = vrcp.f32 %v1836_v4  ;;  %v1835_v43 = vadd.f32 1.0, %v13162_v41  ;;  %v14653_v41 = vld [vmem:[%s17814_s1 + $0x10] sm:$0xff] }
 0x752   :  { %13175 = vpow2.f32 %v10775_v60 }
 0x753   :  { %13177 = vrcp.f32 %v1835_v43 }
 0x754   :  { %v13164_v32 = vpop.eup %13163 }
 0x755   :  { %v1838_v63 = vadd.f32 1.0, %v13164_v32  ;;  %v14660_v32 = vld [vmem:[%s17814_s1 + $0x8] sm:$0xff] }
 0x756   :  { %v13166_v22 = vpop.eup %13165 }
 0x757   :  { %13179 = vrcp.f32 %v1838_v63  ;;  %v1837_v48 = vadd.f32 1.0, %v13166_v22  ;;  %v14669_v63 = vld [vmem:[%s17814_s1] sm:$0xff] }
 0x758   :  { %v13168_v26 = vpop.eup %13167 }
 0x759   :  { %13181 = vrcp.f32 %v1837_v48  ;;  %v2130_v44 = vadd.f32 1.0, %v13168_v26  ;;  %v14676_v26 = vld [vmem:[%s17818_s6 + $0x18] sm:$0xff] }
 0x75a   :  { %v13170_v0 = vpop.eup %13169 }
 0x75b   :  { %13183 = vrcp.f32 %v2130_v44  ;;  %v2129_v21 = vadd.f32 1.0, %v13170_v0  ;;  %v14685_v44 = vld [vmem:[%s17818_s6 + $0x10] sm:$0xff] }
 0x75c   :  { %v13172_v47 = vpop.eup %13171 }
 0x75d   :  { %13185 = vrcp.f32 %v2129_v21  ;;  %v2132_v31 = vadd.f32 1.0, %v13172_v47  ;;  %v14693_v47 = vld [vmem:[%s17818_s6 + $0x8] sm:$0xff] }
 0x75e   :  { %v14615_v27 = vpop.eup %13173 }
 0x75f   :  { %v13176_v56 = vpop.eup %13175  ;;  %13187 = vrcp.f32 %v2132_v31  ;;  %v1860_v13 = vmul.f32 %v14615_v27, %v1850_v2  ;;  %v14701_v2 = vld [vmem:[%s17818_s6] sm:$0xff] }
 0x760   :  { %v14618_v7 = vpop.eup %13177  ;;  %v2131_v61 = vadd.f32 1.0, %v13176_v56 }
 0x761   :  { %1869 = vrot.lane.b32.xlu1 %v1860_v13, %s13670_s10  ;;  %v1859_v12 = vmul.f32 %v14618_v7, %v1848_v15 }
 0x762   :  { %13189 = vrcp.f32 %v2131_v61 }
 0x763   :  { %1867 = vrot.lane.b32.xlu0 %v1859_v12, %s13670_s10 }
 0x764   :  { %v14623_v1 = vpop.eup %13179 }
 0x765   :  { %v1862_v62 = vmul.f32 %v14623_v1, %v1854_v57 }
 0x766   :  { %v14626_v49 = vpop.eup %13181 }
 0x767   :  { %1873 = vrot.lane.b32.xlu1 %v1862_v62, %s13670_s10  ;;  %v1861_v30 = vmul.f32 %v14626_v49, %v1852_v38 }
 0x768   :  { %v14630_v8 = vpop.eup %13183 }
 0x769   :  { %1871 = vrot.lane.b32.xlu0 %v1861_v30, %s13670_s10  ;;  %v2154_v17 = vmul.f32 %v14630_v8, %v2144_v6 }
 0x76a   :  { %v14634_v5 = vpop.eup %13185 }
 0x76b   :  { %2163 = vrot.lane.b32.xlu1 %v2154_v17, %s13670_s10  ;;  %v2153_v50 = vmul.f32 %v14634_v5, %v2142_v11 }
 0x76c   :  { %v14638_v33 = vpop.eup %13187 }
 0x76d   :  { %2161 = vrot.lane.b32.xlu0 %v2153_v50, %s13670_s10  ;;  %v2156_v53 = vmul.f32 %v14638_v33, %v2148_v19 }
 0x76f   :  { %v14642_v9 = vpop.eup %13189  ;;  %2167 = vrot.lane.b32.xlu1 %v2156_v53, %s13670_s10 }
 0x770   :  { %v2155_v35 = vmul.f32 %v14642_v9, %v2146_v16 }
 0x772   :  { %2165 = vrot.lane.b32.xlu0 %v2155_v35, %s13670_s10 }
 0x7d3   :  { %v1870_v36 = vpop.permute.xlu1 %1869 }
 0x7d5   :  { %v1868_v4 = vpop.permute.xlu0 %1867 }
 0x7d6   :  { %11987 = vmatprep.mubr.msk.f32.mxu1 %vm654_vm5, %v1868_v4 }
 0x7d7   :  { %11988 = vmatmul.mubr.msk.f32.vlgmr.msra.gmra.mxu1 %vm654_vm5, %v1870_v36 }
 0x7d8   :  { %12008 = vmatpush3.msra.mxu1 %v14564_v54 }
 0x7d9   :  { %v1874_v60 = vpop.permute.xlu1 %1873  ;;  %12009 = vmatprep.subr.mxu1 %v14653_v41 }
 0x7da   :  { %12010 = vmatpush3.msra.mxu1 %v14653_v41 }
 0x7db   :  { %v1872_v43 = vpop.permute.xlu0 %1871  ;;  %12011 = vmatprep.subr.mxu1 %v14660_v32 }
 0x7dc   :  { %11990 = vmatprep.mubr.msk.f32.mxu1 %vm654_vm5, %v1872_v43  ;;  %12012 = vmatpush3.msra.mxu1 %v14660_v32 }
 0x7dd   :  { %11991 = vmatmul.mubr.msk.f32.gmra.mxu1 %vm654_vm5, %v1874_v60  ;;  %12013 = vmatprep.subr.mxu1 %v14669_v63  ;;  %v2164_v22 = vpop.permute.xlu1 %2163 }
 0x7de   :  { %12014 = vmatpush3.msra.mxu1 %v14669_v63 }
 0x7df   :  { %v2162_v48 = vpop.permute.xlu0 %2161  ;;  %12035 = vmatprep.subr.mxu1 %v14676_v26 }
 0x7e0   :  { %12015 = vmatprep.mubr.msk.f32.mxu1 %vm654_vm5, %v2162_v48 }
 0x7e1   :  { %12016 = vmatmul.mubr.msk.f32.vlgmr.msra.gmra.mxu1 %vm654_vm5, %v2164_v22  ;;  %v2168_v21 = vpop.permute.xlu1 %2167 }
 0x7e2   :  { %12036 = vmatpush3.msra.mxu1 %v14676_v26 }
 0x7e3   :  { %12037 = vmatprep.subr.mxu1 %v14685_v44 }
 0x7e4   :  { %v2166_v0 = vpop.permute.xlu0 %2165  ;;  %12038 = vmatpush3.msra.mxu1 %v14685_v44 }
 0x7e5   :  { %12018 = vmatprep.mubr.msk.f32.mxu1 %vm654_vm5, %v2166_v0  ;;  %12039 = vmatprep.subr.mxu1 %v14693_v47 }
 0x7e6   :  { %12019 = vmatmul.mubr.msk.f32.gmra.mxu1 %vm654_vm5, %v2168_v21  ;;  %v1992_v21 = vsub.f32 1.0, %v14618_v7 }
 0x7e7   :  { %12040 = vmatpush3.msra.mxu1 %v14693_v47 }
 0x7e8   :  { %12041 = vmatprep.subr.mxu1 %v14701_v2 }
 0x7e9   :  { %12042 = vmatpush3.msra.mxu1 %v14701_v2 }
 0x7ea   :  { %12063 = vmatprep.subr.mxu1 %v14440_v45 }
 0x897   :  { %v11989_v31 = vpop.f32.mrf.mxu1 }
 0x898   :  { %1974 = vrot.lane.b32.xlu1 %v11989_v31, %s13671_s8 }
 0x899   :  { %v1949_v56 = vpop.f32.mrf.mxu1 }
 0x89a   :  { %1972 = vrot.lane.b32.xlu0 %v1949_v56, %s13671_s8 }
 0x89d   :  { %v11992_v15 = vpop.f32.mrf.mxu1 }
 0x89f   :  { %v1959_v13 = vpop.f32.mrf.mxu1 }
 0x8a1   :  { %v12017_v57 = vpop.f32.mrf.mxu1 }
 0x8a2   :  { %2268 = vrot.lane.b32.xlu1 %v12017_v57, %s13671_s8 }
 0x8a3   :  { %v2243_v61 = vpop.f32.mrf.mxu1 }
 0x8a4   :  { %2266 = vrot.lane.b32.xlu0 %v2243_v61, %s13671_s8  ;;  %v1996_v61 = vmul.f32 %v1992_v21, %v14473_v14  ;;  %v2287_v14 = vsub.f32 1.0, %v14630_v8 }
 0x8a6   :  { %v12020_v12 = vpop.f32.mrf.mxu1 }
 0x8a7   :  { %2272 = vrot.lane.b32.xlu1 %v12020_v12, %s13671_s8 }
 0x8a8   :  { %v2253_v38 = vpop.f32.mrf.mxu1 }
 0x8a9   :  { %2270 = vrot.lane.b32.xlu0 %v2253_v38, %s13671_s8 }
 0x8ab   :  { %1978 = vrot.lane.b32.xlu1 %v11992_v15, %s13671_s8 }
 0x8ad   :  { %1976 = vrot.lane.b32.xlu0 %v1959_v13, %s13671_s8 }
 0x90a   :  { %v1975_v62 = vpop.permute.xlu1 %1974 }
 0x90b   :  { %v1985_v6 = vadd.f32 %v1975_v62, %v14588_v37 }
 0x90c   :  { %v1973_v30 = vpop.permute.xlu0 %1972 }
 0x90d   :  { %13191 = vtanh.f32 %v1985_v6  ;;  %v1984_v11 = vadd.f32 %v1973_v30, %v14592_v3 }
 0x90f   :  { %13193 = vtanh.f32 %v1984_v11  ;;  %v2288_v11 = vsub.f32 1.0, %v14642_v9 }
 0x914   :  { %v2269_v17 = vpop.permute.xlu1 %2268 }
 0x915   :  { %v2279_v50 = vadd.f32 %v2269_v17, %v14603_v29 }
 0x916   :  { %v2267_v19 = vpop.permute.xlu0 %2266 }
 0x917   :  { %13195 = vtanh.f32 %v2279_v50  ;;  %v2278_v53 = vadd.f32 %v2267_v19, %v14606_v10  ;;  %v2292_v19 = vmul.f32 %v2288_v11, %v14528_v51 }
 0x919   :  { %13197 = vtanh.f32 %v2278_v53  ;;  %v2273_v16 = vpop.permute.xlu1 %2272  ;;  %v1994_v53 = vsub.f32 1.0, %v14626_v49 }
 0x91a   :  { %v13192_v35 = vpop.eup %13191  ;;  %v2281_v36 = vadd.f32 %v2273_v16, %v14609_v23 }
 0x91b   :  { %v2271_v4 = vpop.permute.xlu0 %2270  ;;  %2006 = vrot.lane.b32.xlu1 %v13192_v35, %s13671_s8 }
 0x91c   :  { %v13194_v37 = vpop.eup %13193  ;;  %13199 = vtanh.f32 %v2281_v36  ;;  %v2280_v3 = vadd.f32 %v2271_v4, %v14612_v25  ;;  %v14796_v4 = vld [vmem:[%s17819_s7 + $0x10] sm:$0xff] }
 0x91d   :  { %v1979_v60 = vpop.permute.xlu1 %1978  ;;  %2004 = vrot.lane.b32.xlu0 %v13194_v37, %s13671_s8 }
 0x91e   :  { %13201 = vtanh.f32 %v2280_v3  ;;  %v1987_v29 = vadd.f32 %v1979_v60, %v14596_v52  ;;  %v1998_v60 = vmul.f32 %v1994_v53, %v14544_v34  ;;  %v14857_v34 = vld [vmem:[%s17817_s11 + $0x8] sm:$0xff] }
 0x91f   :  { %v1977_v43 = vpop.permute.xlu0 %1976 }
 0x920   :  { %13203 = vtanh.f32 %v1987_v29  ;;  %v1986_v10 = vadd.f32 %v1977_v43, %v14599_v59  ;;  %v1993_v59 = vsub.f32 1.0, %v14615_v27 }
 0x922   :  { %13205 = vtanh.f32 %v1986_v10  ;;  %v1997_v56 = vmul.f32 %v1993_v59, %v14470_v46  ;;  %v2286_v46 = vsub.f32 1.0, %v14634_v5 }
 0x924   :  { %v13196_v22 = vpop.eup %13195  ;;  %v2290_v6 = vmul.f32 %v2286_v46, %v14505_v39  ;;  %v1995_v39 = vsub.f32 1.0, %v14623_v1 }
 0x925   :  { %2300 = vrot.lane.b32.xlu1 %v13196_v22, %s13671_s8  ;;  %v14872_v22 = vld [vmem:[%s17820_s0 + $0x8] sm:$0xff] }
 0x926   :  { %v13198_v23 = vpop.eup %13197  ;;  %v1999_v51 = vmul.f32 %v1995_v39, %v14535_v55  ;;  %v14908_v39 = vld [vmem:[#allocation2 + $0x60] sm:$0xff] }
 0x927   :  { %2298 = vrot.lane.b32.xlu0 %v13198_v23, %s13671_s8 }
 0x929   :  { %v13200_v48 = vpop.eup %13199 }
 0x92a   :  { %2304 = vrot.lane.b32.xlu1 %v13200_v48, %s13671_s8 }
 0x92b   :  { %v13202_v25 = vpop.eup %13201 }
 0x92c   :  { %2302 = vrot.lane.b32.xlu0 %v13202_v25, %s13671_s8 }
 0x92d   :  { %v13204_v0 = vpop.eup %13203 }
 0x92e   :  { %2010 = vrot.lane.b32.xlu1 %v13204_v0, %s13671_s8  ;;  %v14881_v0 = vld [vmem:[%s17820_s0] sm:$0xff] }
 0x92f   :  { %v13206_v52 = vpop.eup %13205 }
 0x930   :  { %2008 = vrot.lane.b32.xlu0 %v13206_v52, %s13671_s8 }
 0x98d   :  { %v2007_v31 = vpop.permute.xlu1 %2006 }
 0x98e   :  { %v2017_v15 = vmul.f32 %v14615_v27, %v2007_v31 }
 0x98f   :  { %v2005_v13 = vpop.permute.xlu0 %2004 }
 0x990   :  { %v14734_v57 = vadd.f32 %v2017_v15, %v1997_v56  ;;  %v2016_v12 = vmul.f32 %v14618_v7, %v2005_v13 }
 0x992   :  { %v14738_v38 = vadd.f32 %v2016_v12, %v1996_v61  ;;  %2542 = vrot.lane.b32.xlu1 %v14734_v57, %s13672_s3  ;;  %v14890_v61 = vld [vmem:[%s17820_s0 + $0x18] sm:$0xff] }
 0x994   :  { %2540 = vrot.lane.b32.xlu0 %v14738_v38, %s13672_s3  ;;  %12043 = vmatprep.mubr.msk.f32.mxu1 %vm654_vm5, %v14738_v38 }
 0x995   :  { %12044 = vmatmul.mubr.msk.f32.vlgmr.msra.gmra.mxu1 %vm654_vm5, %v14734_v57 }
 0x996   :  { %12064 = vmatpush3.msra.mxu1 %v14440_v45  ;;  %v2291_v45 = vmul.f32 %v2287_v14, %v14509_v40  ;;  %v14898_v14 = vld [vmem:[%s17820_s0 + $0x10] sm:$0xff] }
 0x997   :  { %v2301_v27 = vpop.permute.xlu1 %2300  ;;  %12065 = vmatprep.subr.mxu1 %v14490_v24 }
 0x998   :  { %12066 = vmatpush3.msra.mxu1 %v14490_v24  ;;  %v2311_v7 = vmul.f32 %v14630_v8, %v2301_v27  ;;  %v2289_v24 = vsub.f32 1.0, %v14638_v33 }
 0x999   :  { %v2299_v62 = vpop.permute.xlu0 %2298  ;;  %12067 = vmatprep.subr.mxu1 %v14502_v20 }
 0x99a   :  { %v2310_v30 = vmul.f32 %v14634_v5, %v2299_v62  ;;  %12068 = vmatpush3.msra.mxu1 %v14502_v20  ;;  %v14765_v50 = vadd.f32 %v2311_v7, %v2291_v45  ;;  %v14771_v20 = vld [vmem:[%s17817_s11 + $0x18] sm:$0xff]  ;;  %v2293_v16 = vmul.f32 %v2289_v24, %v14532_v18  ;;  %v14905_v45 = vld [vmem:[#allocation2 + $0x68] sm:$0xff] }
 0x99b   :  { %12069 = vmatprep.subr.mxu1 %v14515_v42 }
 0x99c   :  { %v14761_v17 = vadd.f32 %v2310_v30, %v2290_v6  ;;  %v2305_v8 = vpop.permute.xlu1 %2304  ;;  %12070 = vmatpush3.msra.mxu1 %v14515_v42 }
 0x99d   :  { %12091 = vmatprep.subr.mxu1 %v14771_v20  ;;  %v2313_v40 = vmul.f32 %v14638_v33, %v2305_v8  ;;  %v14786_v33 = vld [vmem:[%s17819_s7 + $0x18] sm:$0xff] }
 0x99e   :  { %v2303_v5 = vpop.permute.xlu0 %2302  ;;  %12029 = vmatprep.mubr.msk.f32.mxu0 %vm654_vm5, %v14761_v17 }
 0x99f   :  { %v2312_v42 = vmul.f32 %v14642_v9, %v2303_v5  ;;  %12030 = vmatmul.mubr.msk.f32.vlgmr.msra.gmra.mxu0 %vm654_vm5, %v14765_v50  ;;  %v14799_v18 = vadd.f32 %v2313_v40, %v2293_v16 }
 0x9a0   :  { %v2011_v35 = vpop.permute.xlu1 %2010  ;;  %12050 = vmatpush3.msra.mxu0 %v14786_v33 }
 0x9a1   :  { %v14789_v36 = vadd.f32 %v2312_v42, %v2292_v19  ;;  %v2019_v9 = vmul.f32 %v14623_v1, %v2011_v35  ;;  %12051 = vmatprep.subr.mxu0 %v14796_v4  ;;  %v14811_v1 = vld [vmem:[%s17819_s7 + $0x8] sm:$0xff]  ;;  %v14911_v42 = vld [vmem:[#allocation2 + $0x78] sm:$0xff] }
 0x9a2   :  { %v2009_v37 = vpop.permute.xlu0 %2008  ;;  %12052 = vmatpush3.msra.mxu0 %v14796_v4 }
 0x9a3   :  { %v14802_v3 = vadd.f32 %v2019_v9, %v1999_v51  ;;  %v2018_v55 = vmul.f32 %v14626_v49, %v2009_v37  ;;  %12032 = vmatprep.mubr.msk.f32.mxu0 %vm654_vm5, %v14789_v36  ;;  %12053 = vmatprep.subr.mxu0 %v14811_v1  ;;  %v14864_v49 = vld [vmem:[%s17817_s11] sm:$0xff]  ;;  %v14914_v51 = vld [vmem:[#allocation2 + $0x70] sm:$0xff] }
 0x9a4   :  { %12033 = vmatmul.mubr.msk.f32.gmra.mxu0 %vm654_vm5, %v14799_v18 }
 0x9a5   :  { %v14816_v29 = vadd.f32 %v2018_v55, %v1998_v60  ;;  %2546 = vrot.lane.b32.xlu1 %v14802_v3, %s13672_s3  ;;  %12054 = vmatpush3.msra.mxu0 %v14811_v1 }
 0x9a6   :  { %12055 = vmatprep.subr.mxu0 %v14377_v58 }
 0x9a7   :  { %2544 = vrot.lane.b32.xlu0 %v14816_v29, %s13672_s3  ;;  %12046 = vmatprep.mubr.msk.f32.mxu1 %vm654_vm5, %v14816_v29 }
 0x9a8   :  { %12047 = vmatmul.mubr.msk.f32.gmra.mxu1 %vm654_vm5, %v14802_v3  ;;  %12056 = vmatpush3.msra.mxu0 %v14377_v58  ;;  %v14848_v58 = vld [vmem:[%s17817_s11 + $0x10] sm:$0xff] }
 0x9a9   :  { %2836 = vrot.lane.b32.xlu1 %v14765_v50, %s13672_s3  ;;  %12071 = vmatprep.mubr.msk.f32.mxu1 %vm654_vm5, %v14761_v17 }
 0x9aa   :  { %12077 = vmatprep.subr.mxu0 %v14564_v54 }
 0x9ab   :  { %2834 = vrot.lane.b32.xlu0 %v14761_v17, %s13672_s3 }
 0x9ac   :  { %12072 = vmatmul.mubr.msk.f32.vlgmr.msra.gmra.mxu1 %vm654_vm5, %v14765_v50 }
 0x9ad   :  { %2840 = vrot.lane.b32.xlu1 %v14799_v18, %s13672_s3  ;;  %12074 = vmatprep.mubr.msk.f32.mxu1 %vm654_vm5, %v14789_v36 }
 0x9ae   :  { %12092 = vmatpush3.msra.mxu1 %v14771_v20 }
 0x9af   :  { %2838 = vrot.lane.b32.xlu0 %v14789_v36, %s13672_s3  ;;  %12093 = vmatprep.subr.mxu1 %v14848_v58 }
 0x9b0   :  { %12075 = vmatmul.mubr.msk.f32.gmra.mxu1 %vm654_vm5, %v14799_v18 }
 0x9b1   :  { %12094 = vmatpush3.msra.mxu1 %v14848_v58 }
 0x9b2   :  { %12095 = vmatprep.subr.mxu1 %v14857_v34 }
 0x9b3   :  { %12096 = vmatpush3.msra.mxu1 %v14857_v34 }
 0x9b4   :  { %12097 = vmatprep.subr.mxu1 %v14864_v49 }
 0x9b5   :  { %12098 = vmatpush3.msra.mxu1 %v14864_v49 }
 0x9b6   :  { %12119 = vmatprep.subr.mxu1 %v14786_v33 }
 0xa55   :  { %v12045_v43 = vpop.f32.mrf.mxu1 }
 0xa57   :  { %v2493_v59 = vpop.f32.mrf.mxu1 }
 0xa5f   :  { %v12031_v10 = vpop.f32.mrf.mxu0 }
 0xa60   :  { %v14875_v23 = vadd.f32 %v14872_v22, %v12031_v10 }
 0xa61   :  { %v2396_v48 = vpop.f32.mrf.mxu0 }
 0xa62   :  { %v2513_v25 = vadd.f32 %v12045_v43, %v14875_v23  ;;  %v14884_v52 = vadd.f32 %v14881_v0, %v2396_v48 }
 0xa64   :  { %v10790_v21 = vmul.f32 -1.442695, %v2513_v25  ;;  %v2512_v31 = vadd.f32 %v2493_v59, %v14884_v52  ;;  %v12034_v56 = vpop.f32.mrf.mxu0 }
 0xa65   :  { %v14893_v12 = vadd.f32 %v14890_v61, %v12034_v56 }
 0xa66   :  { %13207 = vpow2.f32 %v10790_v21  ;;  %v10789_v15 = vmul.f32 -1.442695, %v2512_v31  ;;  %v2406_v13 = vpop.f32.mrf.mxu0 }
 0xa67   :  { %v14901_v27 = vadd.f32 %v14898_v14, %v2406_v13 }
 0xa68   :  { %13209 = vpow2.f32 %v10789_v15  ;;  %v12048_v46 = vpop.f32.mrf.mxu1 }
 0xa69   :  { %v2515_v7 = vadd.f32 %v12048_v46, %v14893_v12 }
 0xa6a   :  { %v2503_v62 = vpop.f32.mrf.mxu1 }
 0xa6b   :  { %v10792_v6 = vmul.f32 -1.442695, %v2515_v7  ;;  %v2514_v30 = vadd.f32 %v2503_v62, %v14901_v27 }
 0xa6c   :  { %v12073_v11 = vpop.f32.mrf.mxu1 }
 0xa6d   :  { %13211 = vpow2.f32 %v10792_v6  ;;  %v10791_v24 = vmul.f32 -1.442695, %v2514_v30  ;;  %v2807_v8 = vadd.f32 %v12073_v11, %v14905_v45  ;;  %v2543_v6 = vpop.permute.xlu1 %2542 }
 0xa6e   :  { %v2787_v40 = vpop.f32.mrf.mxu1 }
 0xa6f   :  { %13213 = vpow2.f32 %v10791_v24  ;;  %v10802_v5 = vmul.f32 -1.442695, %v2807_v8  ;;  %v2806_v19 = vadd.f32 %v2787_v40, %v14908_v39  ;;  %v2541_v8 = vpop.permute.xlu0 %2540 }
 0xa70   :  { %v12076_v53 = vpop.f32.mrf.mxu1 }
 0xa71   :  { %13215 = vpow2.f32 %v10802_v5  ;;  %v10801_v16 = vmul.f32 -1.442695, %v2806_v19  ;;  %v2809_v35 = vadd.f32 %v12076_v53, %v14911_v42  ;;  %v2547_v53 = vpop.permute.xlu1 %2546 }
 0xa72   :  { %v2797_v9 = vpop.f32.mrf.mxu1 }
 0xa73   :  { %v13208_v37 = vpop.eup %13207  ;;  %13217 = vpow2.f32 %v10801_v16  ;;  %v10804_v60 = vmul.f32 -1.442695, %v2809_v35  ;;  %v2808_v55 = vadd.f32 %v2797_v9, %v14914_v51  ;;  %v2545_v35 = vpop.permute.xlu0 %2544 }
 0xa74   :  { %v2529_v43 = vadd.f32 1.0, %v13208_v37 }
 0xa75   :  { %v13210_v10 = vpop.eup %13209  ;;  %13219 = vpow2.f32 %v10804_v60  ;;  %v10803_v48 = vmul.f32 -1.442695, %v2808_v55  ;;  %v2837_v55 = vpop.permute.xlu1 %2836 }
 0xa76   :  { %13221 = vrcp.f32 %v2529_v43  ;;  %v2528_v25 = vadd.f32 1.0, %v13210_v10 }
 0xa77   :  { %13223 = vpow2.f32 %v10803_v48  ;;  %v2835_v48 = vpop.permute.xlu0 %2834 }
 0xa78   :  { %13225 = vrcp.f32 %v2528_v25 }
 0xa7a   :  { %v13212_v59 = vpop.eup %13211 }
 0xa7b   :  { %v2531_v21 = vadd.f32 1.0, %v13212_v59 }
 0xa7c   :  { %v13214_v31 = vpop.eup %13213 }
 0xa7d   :  { %13227 = vrcp.f32 %v2531_v21  ;;  %v2530_v56 = vadd.f32 1.0, %v13214_v31 }
 0xa7e   :  { %v13216_v15 = vpop.eup %13215 }
 0xa7f   :  { %13229 = vrcp.f32 %v2530_v56  ;;  %v2823_v13 = vadd.f32 1.0, %v13216_v15  ;;  %v2841_v56 = vpop.permute.xlu1 %2840 }
 0xa80   :  { %v13218_v46 = vpop.eup %13217 }
 0xa81   :  { %13231 = vrcp.f32 %v2823_v13  ;;  %v2822_v7 = vadd.f32 1.0, %v13218_v46  ;;  %v2839_v46 = vpop.permute.xlu0 %2838 }
 0xa82   :  { %v13220_v62 = vpop.eup %13219 }
 0xa83   :  { %v14917_v30 = vpop.eup %13221  ;;  %13233 = vrcp.f32 %v2822_v7  ;;  %v2825_v11 = vadd.f32 1.0, %v13220_v62 }
 0xa84   :  { %v13224_v24 = vpop.eup %13223  ;;  %v2553_v40 = vmul.f32 %v14917_v30, %v2543_v6 }
 0xa85   :  { %v14920_v5 = vpop.eup %13225  ;;  %13235 = vrcp.f32 %v2825_v11  ;;  %v2824_v19 = vadd.f32 1.0, %v13224_v24 }
 0xa86   :  { %2562 = vrot.lane.b32.xlu1 %v2553_v40, %s13670_s10  ;;  %v2552_v16 = vmul.f32 %v14920_v5, %v2541_v8 }
 0xa87   :  { %13237 = vrcp.f32 %v2824_v19 }
 0xa88   :  { %2560 = vrot.lane.b32.xlu0 %v2552_v16, %s13670_s10 }
 0xa8a   :  { %v14925_v9 = vpop.eup %13227 }
 0xa8b   :  { %v2555_v37 = vmul.f32 %v14925_v9, %v2547_v53 }
 0xa8c   :  { %v14928_v60 = vpop.eup %13229 }
 0xa8d   :  { %2566 = vrot.lane.b32.xlu1 %v2555_v37, %s13670_s10  ;;  %v2554_v43 = vmul.f32 %v14928_v60, %v2545_v35 }
 0xa8e   :  { %v14932_v10 = vpop.eup %13231 }
 0xa8f   :  { %2564 = vrot.lane.b32.xlu0 %v2554_v43, %s13670_s10  ;;  %v2847_v25 = vmul.f32 %v14932_v10, %v2837_v55 }
 0xa90   :  { %v14936_v59 = vpop.eup %13233 }
 0xa91   :  { %2856 = vrot.lane.b32.xlu1 %v2847_v25, %s13670_s10  ;;  %v2846_v21 = vmul.f32 %v14936_v59, %v2835_v48 }
 0xa92   :  { %v14940_v31 = vpop.eup %13235 }
 0xa93   :  { %2854 = vrot.lane.b32.xlu0 %v2846_v21, %s13670_s10  ;;  %v2849_v15 = vmul.f32 %v14940_v31, %v2841_v56 }
 0xa94   :  { %v14944_v13 = vpop.eup %13237 }
 0xa95   :  { %2860 = vrot.lane.b32.xlu1 %v2849_v15, %s13670_s10  ;;  %v2848_v7 = vmul.f32 %v14944_v13, %v2839_v46 }
 0xa97   :  { %2858 = vrot.lane.b32.xlu0 %v2848_v7, %s13670_s10 }
 0xaf8   :  { %v2563_v6 = vpop.permute.xlu1 %2562 }
 0xafa   :  { %v2561_v62 = vpop.permute.xlu0 %2560 }
 0xafb   :  { %12057 = vmatprep.mubr.msk.f32.mxu0 %vm654_vm5, %v2561_v62 }
 0xafc   :  { %12058 = vmatmul.mubr.msk.f32.vlgmr.msra.gmra.mxu0 %vm654_vm5, %v2563_v6 }
 0xafd   :  { %12078 = vmatpush3.msra.mxu0 %v14564_v54 }
 0xafe   :  { %12079 = vmatprep.subr.mxu0 %v14653_v41 }
 0xaff   :  { %v2567_v11 = vpop.permute.xlu1 %2566  ;;  %12080 = vmatpush3.msra.mxu0 %v14653_v41 }
 0xb00   :  { %12081 = vmatprep.subr.mxu0 %v14660_v32 }
 0xb01   :  { %v2565_v24 = vpop.permute.xlu0 %2564  ;;  %12082 = vmatpush3.msra.mxu0 %v14660_v32 }
 0xb02   :  { %12060 = vmatprep.mubr.msk.f32.mxu0 %vm654_vm5, %v2565_v24  ;;  %12083 = vmatprep.subr.mxu0 %v14669_v63 }
 0xb03   :  { %12061 = vmatmul.mubr.msk.f32.gmra.mxu0 %vm654_vm5, %v2567_v11  ;;  %v2857_v8 = vpop.permute.xlu1 %2856 }
 0xb04   :  { %12084 = vmatpush3.msra.mxu0 %v14669_v63  ;;  %v14975_v63 = vld [vmem:[%s17813_s5 + $0x18] sm:$0xff] }
 0xb05   :  { %v2855_v54 = vpop.permute.xlu0 %2854  ;;  %12105 = vmatprep.subr.mxu0 %v14676_v26 }
 0xb06   :  { %12085 = vmatprep.mubr.msk.f32.mxu0 %vm654_vm5, %v2855_v54 }
 0xb07   :  { %12086 = vmatmul.mubr.msk.f32.vlgmr.msra.gmra.mxu0 %vm654_vm5, %v2857_v8  ;;  %v2861_v32 = vpop.permute.xlu1 %2860 }
 0xb08   :  { %12106 = vmatpush3.msra.mxu0 %v14676_v26 }
 0xb09   :  { %v2859_v41 = vpop.permute.xlu0 %2858  ;;  %12107 = vmatprep.subr.mxu0 %v14685_v44 }
 0xb0a   :  { %12088 = vmatprep.mubr.msk.f32.mxu0 %vm654_vm5, %v2859_v41  ;;  %12108 = vmatpush3.msra.mxu0 %v14685_v44  ;;  %v2685_v41 = vsub.f32 1.0, %v14920_v5 }
 0xb0b   :  { %12089 = vmatmul.mubr.msk.f32.gmra.mxu0 %vm654_vm5, %v2861_v32  ;;  %12109 = vmatprep.subr.mxu0 %v14693_v47 }
 0xb0c   :  { %12110 = vmatpush3.msra.mxu0 %v14693_v47 }
 0xb0d   :  { %12111 = vmatprep.subr.mxu0 %v14701_v2 }
 0xb0e   :  { %12112 = vmatpush3.msra.mxu0 %v14701_v2 }
 0xb0f   :  { %12133 = vmatprep.subr.mxu0 %v14975_v63 }
 0xbbc   :  { %v12059_v26 = vpop.f32.mrf.mxu0 }
 0xbbd   :  { %2667 = vrot.lane.b32.xlu1 %v12059_v26, %s13671_s8 }
 0xbbe   :  { %v2642_v44 = vpop.f32.mrf.mxu0 }
 0xbbf   :  { %2665 = vrot.lane.b32.xlu0 %v2642_v44, %s13671_s8 }
 0xbc3   :  { %v12062_v40 = vpop.f32.mrf.mxu0 }
 0xbc5   :  { %v2652_v19 = vpop.f32.mrf.mxu0 }
 0xbc7   :  { %v12087_v47 = vpop.f32.mrf.mxu0 }
 0xbc8   :  { %2961 = vrot.lane.b32.xlu1 %v12087_v47, %s13671_s8  ;;  %v2689_v47 = vmul.f32 %v2685_v41, %v14738_v38  ;;  %v15025_v38 = vld [vmem:[%s17813_s5 + $0x10] sm:$0xff] }
 0xbc9   :  { %v2936_v53 = vpop.f32.mrf.mxu0 }
 0xbca   :  { %2959 = vrot.lane.b32.xlu0 %v2936_v53, %s13671_s8 }
 0xbcb   :  { %v12090_v2 = vpop.f32.mrf.mxu0 }
 0xbcc   :  { %2965 = vrot.lane.b32.xlu1 %v12090_v2, %s13671_s8 }
 0xbcd   :  { %v2946_v16 = vpop.f32.mrf.mxu0 }
 0xbce   :  { %2963 = vrot.lane.b32.xlu0 %v2946_v16, %s13671_s8  ;;  %v15033_v16 = vld [vmem:[%s17813_s5 + $0x8] sm:$0xff] }
 0xbd0   :  { %2671 = vrot.lane.b32.xlu1 %v12062_v40, %s13671_s8 }
 0xbd2   :  { %2669 = vrot.lane.b32.xlu0 %v2652_v19, %s13671_s8 }
 0xc2f   :  { %v2668_v35 = vpop.permute.xlu1 %2667 }
 0xc30   :  { %v2678_v37 = vadd.f32 %v2668_v35, %v14875_v23 }
 0xc31   :  { %v2666_v55 = vpop.permute.xlu0 %2665 }
 0xc32   :  { %13239 = vtanh.f32 %v2678_v37  ;;  %v2677_v43 = vadd.f32 %v2666_v55, %v14884_v52 }
 0xc34   :  { %13241 = vtanh.f32 %v2677_v43 }
 0xc3a   :  { %v2962_v48 = vpop.permute.xlu1 %2961 }
 0xc3b   :  { %v2972_v25 = vadd.f32 %v2962_v48, %v14905_v45  ;;  %v2981_v48 = vsub.f32 1.0, %v14944_v13 }
 0xc3c   :  { %v2960_v21 = vpop.permute.xlu0 %2959 }
 0xc3d   :  { %13243 = vtanh.f32 %v2972_v25  ;;  %v2971_v56 = vadd.f32 %v2960_v21, %v14908_v39  ;;  %v15044_v25 = vld [vmem:[%s17813_s5] sm:$0xff]  ;;  %s13674_s5 = smov 4  }
 0xc3e   :  { %v2966_v15 = vpop.permute.xlu1 %2965 }
 0xc3f   :  { %v13240_v46 = vpop.eup %13239  ;;  %13245 = vtanh.f32 %v2971_v56  ;;  %v2974_v7 = vadd.f32 %v2966_v15, %v14911_v42 }
 0xc40   :  { %v2964_v62 = vpop.permute.xlu0 %2963  ;;  %2699 = vrot.lane.b32.xlu1 %v13240_v46, %s13671_s8 }
 0xc41   :  { %v13242_v23 = vpop.eup %13241  ;;  %13247 = vtanh.f32 %v2974_v7  ;;  %v2973_v52 = vadd.f32 %v2964_v62, %v14914_v51  ;;  %v2985_v62 = vmul.f32 %v2981_v48, %v14789_v36 }
 0xc42   :  { %v2672_v6 = vpop.permute.xlu1 %2671  ;;  %2697 = vrot.lane.b32.xlu0 %v13242_v23, %s13671_s8  ;;  %v2687_v23 = vsub.f32 1.0, %v14928_v60 }
 0xc43   :  { %13249 = vtanh.f32 %v2973_v52  ;;  %v2680_v45 = vadd.f32 %v2672_v6, %v14893_v12 }
 0xc44   :  { %v2670_v11 = vpop.permute.xlu0 %2669 }
 0xc45   :  { %13251 = vtanh.f32 %v2680_v45  ;;  %v2679_v39 = vadd.f32 %v2670_v11, %v14901_v27  ;;  %v2686_v27 = vsub.f32 1.0, %v14917_v30 }
 0xc47   :  { %13253 = vtanh.f32 %v2679_v39  ;;  %v2690_v26 = vmul.f32 %v2686_v27, %v14734_v57  ;;  %v2979_v57 = vsub.f32 1.0, %v14936_v59 }
 0xc49   :  { %v2983_v55 = vmul.f32 %v2979_v57, %v14761_v17  ;;  %v2688_v17 = vsub.f32 1.0, %v14925_v9 }
 0xc4a   :  { %v13244_v24 = vpop.eup %13243 }
 0xc4b   :  { %2993 = vrot.lane.b32.xlu1 %v13244_v24, %s13671_s8 }
 0xc4c   :  { %v13246_v42 = vpop.eup %13245 }
 0xc4d   :  { %2991 = vrot.lane.b32.xlu0 %v13246_v42, %s13671_s8 }
 0xc4e   :  { %v13248_v8 = vpop.eup %13247 }
 0xc4f   :  { %2997 = vrot.lane.b32.xlu1 %v13248_v8, %s13671_s8 }
 0xc50   :  { %v13250_v51 = vpop.eup %13249 }
 0xc51   :  { %2995 = vrot.lane.b32.xlu0 %v13250_v51, %s13671_s8 }
 0xc52   :  { %v13252_v54 = vpop.eup %13251 }
 0xc53   :  { %2703 = vrot.lane.b32.xlu1 %v13252_v54, %s13671_s8 }
 0xc54   :  { %v13254_v12 = vpop.eup %13253 }
 0xc55   :  { %2701 = vrot.lane.b32.xlu0 %v13254_v12, %s13671_s8 }
 0xcb2   :  { %v2700_v32 = vpop.permute.xlu1 %2699 }
 0xcb3   :  { %v2710_v44 = vmul.f32 %v14917_v30, %v2700_v32  ;;  %v2980_v30 = vsub.f32 1.0, %v14932_v10 }
 0xcb4   :  { %v2698_v40 = vpop.permute.xlu0 %2697 }
 0xcb5   :  { %v15006_v19 = vadd.f32 %v2710_v44, %v2690_v26  ;;  %v2709_v53 = vmul.f32 %v14920_v5, %v2698_v40  ;;  %v2984_v21 = vmul.f32 %v2980_v30, %v14765_v50  ;;  %v15147_v44 = vld [vmem:[#allocation2 + $0x88] sm:$0xff] }
 0xcb7   :  { %v15010_v2 = vadd.f32 %v2709_v53, %v2689_v47  ;;  %3235 = vrot.lane.b32.xlu1 %v15006_v19, %s13672_s3 }
 0xcb9   :  { %3233 = vrot.lane.b32.xlu0 %v15010_v2, %s13672_s3  ;;  %12113 = vmatprep.mubr.msk.f32.mxu0 %vm654_vm5, %v15010_v2 }
 0xcba   :  { %12114 = vmatmul.mubr.msk.f32.vlgmr.msra.gmra.mxu0 %vm654_vm5, %v15006_v19 }
 0xcbb   :  { %12134 = vmatpush3.msra.mxu0 %v14975_v63 }
 0xcbc   :  { %12135 = vmatprep.subr.mxu0 %v15025_v38 }
 0xcbd   :  { %v2994_v5 = vpop.permute.xlu1 %2993  ;;  %12136 = vmatpush3.msra.mxu0 %v15025_v38 }
 0xcbe   :  { %12137 = vmatprep.subr.mxu0 %v15033_v16  ;;  %v3004_v35 = vmul.f32 %v14932_v10, %v2994_v5  ;;  %v2982_v10 = vsub.f32 1.0, %v14940_v31  ;;  %v15153_v5 = vld [vmem:[#allocation2 + $0x98] sm:$0xff] }
 0xcbf   :  { %v2992_v37 = vpop.permute.xlu0 %2991  ;;  %12138 = vmatpush3.msra.mxu0 %v15033_v16 }
 0xcc0   :  { %v3003_v43 = vmul.f32 %v14936_v59, %v2992_v37  ;;  %12139 = vmatprep.subr.mxu0 %v15044_v25  ;;  %v15054_v59 = vadd.f32 %v3004_v35, %v2984_v21  ;;  %v2986_v52 = vmul.f32 %v2982_v10, %v14799_v18  ;;  %v2691_v18 = vmul.f32 %v2687_v23, %v14816_v29  ;;  %v15091_v29 = vld [vmem:[%s17819_s7] sm:$0xff] }
 0xcc1   :  { %v2998_v56 = vpop.permute.xlu1 %2997  ;;  %12140 = vmatpush3.msra.mxu0 %v15044_v25 }
 0xcc2   :  { %v15050_v15 = vadd.f32 %v3003_v43, %v2983_v55  ;;  %12161 = vmatprep.subr.mxu0 %v14771_v20  ;;  %v3006_v46 = vmul.f32 %v14940_v31, %v2998_v56  ;;  %v2692_v31 = vmul.f32 %v2688_v17, %v14802_v3  ;;  %v15156_v43 = vld [vmem:[#allocation2 + $0x90] sm:$0xff] }
 0xcc3   :  { %v2996_v7 = vpop.permute.xlu0 %2995 }
 0xcc4   :  { %v3005_v50 = vmul.f32 %v14944_v13, %v2996_v7  ;;  %12099 = vmatprep.mubr.msk.f32.mxu1 %vm654_vm5, %v15050_v15  ;;  %v15070_v36 = vadd.f32 %v3006_v46, %v2986_v52 }
 0xcc5   :  { %v2704_v6 = vpop.permute.xlu1 %2703  ;;  %12100 = vmatmul.mubr.msk.f32.vlgmr.msra.gmra.mxu1 %vm654_vm5, %v15054_v59 }
 0xcc6   :  { %v15065_v45 = vadd.f32 %v3005_v50, %v2985_v62  ;;  %v2712_v11 = vmul.f32 %v14925_v9, %v2704_v6  ;;  %12120 = vmatpush3.msra.mxu1 %v14786_v33 }
 0xcc7   :  { %v2702_v13 = vpop.permute.xlu0 %2701  ;;  %12121 = vmatprep.subr.mxu1 %v14796_v4 }
 0xcc8   :  { %v15073_v39 = vadd.f32 %v2712_v11, %v2692_v31  ;;  %v2711_v24 = vmul.f32 %v14928_v60, %v2702_v13  ;;  %12102 = vmatprep.mubr.msk.f32.mxu1 %vm654_vm5, %v15065_v45  ;;  %12122 = vmatpush3.msra.mxu1 %v14796_v4  ;;  %v15108_v4 = vld [vmem:[%s17814_s1 + $0x18] sm:$0xff] }
 0xcc9   :  { %12103 = vmatmul.mubr.msk.f32.gmra.mxu1 %vm654_vm5, %v15070_v36  ;;  %12123 = vmatprep.subr.mxu1 %v14811_v1 }
 0xcca   :  { %v15083_v3 = vadd.f32 %v2711_v24, %v2691_v18  ;;  %3239 = vrot.lane.b32.xlu1 %v15073_v39, %s13672_s3  ;;  %12124 = vmatpush3.msra.mxu1 %v14811_v1 }
 0xccb   :  { %12125 = vmatprep.subr.mxu1 %v15091_v29 }
 0xccc   :  { %3237 = vrot.lane.b32.xlu0 %v15083_v3, %s13672_s3  ;;  %12116 = vmatprep.mubr.msk.f32.mxu0 %vm654_vm5, %v15083_v3 }
 0xccd   :  { %12117 = vmatmul.mubr.msk.f32.gmra.mxu0 %vm654_vm5, %v15073_v39  ;;  %12126 = vmatpush3.msra.mxu1 %v15091_v29 }
 0xcce   :  { %3529 = vrot.lane.b32.xlu1 %v15054_v59, %s13672_s3  ;;  %12141 = vmatprep.mubr.msk.f32.mxu0 %vm654_vm5, %v15050_v15 }
 0xccf   :  { %12147 = vmatprep.subr.mxu1 %v15108_v4 }
 0xcd0   :  { %3527 = vrot.lane.b32.xlu0 %v15050_v15, %s13672_s3 }
 0xcd1   :  { %12142 = vmatmul.mubr.msk.f32.vlgmr.msra.gmra.mxu0 %vm654_vm5, %v15054_v59 }
 0xcd2   :  { %3533 = vrot.lane.b32.xlu1 %v15070_v36, %s13672_s3  ;;  %12144 = vmatprep.mubr.msk.f32.mxu0 %vm654_vm5, %v15065_v45 }
 0xcd3   :  { %12162 = vmatpush3.msra.mxu0 %v14771_v20 }
 0xcd4   :  { %3531 = vrot.lane.b32.xlu0 %v15065_v45, %s13672_s3  ;;  %12163 = vmatprep.subr.mxu0 %v14848_v58 }
 0xcd5   :  { %12145 = vmatmul.mubr.msk.f32.gmra.mxu0 %vm654_vm5, %v15070_v36 }
 0xcd6   :  { %12164 = vmatpush3.msra.mxu0 %v14848_v58 }
 0xcd7   :  { %12165 = vmatprep.subr.mxu0 %v14857_v34 }
 0xcd8   :  { %12166 = vmatpush3.msra.mxu0 %v14857_v34 }
 0xcd9   :  { %12167 = vmatprep.subr.mxu0 %v14864_v49 }
 0xcda   :  { %12168 = vmatpush3.msra.mxu0 %v14864_v49 }
 0xcdb   :  { %12189 = vmatprep.subr.mxu0 %v14786_v33 }
 0xd7a   :  { %v12115_v20 = vpop.f32.mrf.mxu0 }
 0xd7c   :  { %v3186_v8 = vpop.f32.mrf.mxu0 }
 0xd85   :  { %v12101_v1 = vpop.f32.mrf.mxu1 }
 0xd86   :  { %v15132_v9 = vadd.f32 %v14872_v22, %v12101_v1 }
 0xd87   :  { %v3089_v60 = vpop.f32.mrf.mxu1 }
 0xd88   :  { %v3206_v42 = vadd.f32 %v12115_v20, %v15132_v9  ;;  %v15136_v58 = vadd.f32 %v14881_v0, %v3089_v60  ;;  %v3236_v20 = vpop.permute.xlu1 %3235 }
 0xd89   :  { %v12104_v51 = vpop.f32.mrf.mxu1 }
 0xd8a   :  { %v10818_v34 = vmul.f32 -1.442695, %v3206_v42  ;;  %v3205_v54 = vadd.f32 %v3186_v8, %v15136_v58  ;;  %v15140_v33 = vadd.f32 %v14890_v61, %v12104_v51  ;;  %v15150_v61 = vld [vmem:[#allocation2 + $0x80] sm:$0xff]  ;;  %v3234_v8 = vpop.permute.xlu0 %3233 }
 0xd8b   :  { %v3099_v12 = vpop.f32.mrf.mxu1 }
 0xd8c   :  { %13255 = vpow2.f32 %v10818_v34  ;;  %v10817_v49 = vmul.f32 -1.442695, %v3205_v54  ;;  %v15143_v22 = vadd.f32 %v14898_v14, %v3099_v12  ;;  %v3240_v54 = vpop.permute.xlu1 %3239 }
 0xd8d   :  { %v12118_v27 = vpop.f32.mrf.mxu0 }
 0xd8e   :  { %13257 = vpow2.f32 %v10817_v49  ;;  %v3208_v41 = vadd.f32 %v12118_v27, %v15140_v33  ;;  %v3238_v27 = vpop.permute.xlu0 %3237 }
 0xd8f   :  { %v3196_v0 = vpop.f32.mrf.mxu0 }
 0xd90   :  { %v10820_v32 = vmul.f32 -1.442695, %v3208_v41  ;;  %v3207_v26 = vadd.f32 %v3196_v0, %v15143_v22 }
 0xd91   :  { %v12143_v40 = vpop.f32.mrf.mxu0 }
 0xd92   :  { %13259 = vpow2.f32 %v10820_v32  ;;  %v10819_v47 = vmul.f32 -1.442695, %v3207_v26  ;;  %v3500_v53 = vadd.f32 %v12143_v40, %v15147_v44  ;;  %v3530_v26 = vpop.permute.xlu1 %3529 }
 0xd93   :  { %v3480_v57 = vpop.f32.mrf.mxu0 }
 0xd94   :  { %13261 = vpow2.f32 %v10819_v47  ;;  %v10830_v30 = vmul.f32 -1.442695, %v3500_v53  ;;  %v3499_v14 = vadd.f32 %v3480_v57, %v15150_v61  ;;  %v3528_v53 = vpop.permute.xlu0 %3527 }
 0xd95   :  { %v12146_v35 = vpop.f32.mrf.mxu0 }
 0xd96   :  { %13263 = vpow2.f32 %v10830_v30  ;;  %v10829_v37 = vmul.f32 -1.442695, %v3499_v14  ;;  %v3502_v55 = vadd.f32 %v12146_v35, %v15153_v5 }
 0xd97   :  { %v3490_v48 = vpop.f32.mrf.mxu0 }
 0xd98   :  { %13265 = vpow2.f32 %v10829_v37  ;;  %v10832_v21 = vmul.f32 -1.442695, %v3502_v55  ;;  %v3501_v10 = vadd.f32 %v3490_v48, %v15156_v43  ;;  %v3534_v37 = vpop.permute.xlu1 %3533 }
 0xd99   :  { %v13256_v56 = vpop.eup %13255 }
 0xd9a   :  { %v3222_v17 = vadd.f32 1.0, %v13256_v56  ;;  %13267 = vpow2.f32 %v10832_v21  ;;  %v10831_v46 = vmul.f32 -1.442695, %v3501_v10  ;;  %v3532_v21 = vpop.permute.xlu0 %3531 }
 0xd9b   :  { %v13258_v7 = vpop.eup %13257 }
 0xd9c   :  { %13269 = vrcp.f32 %v3222_v17  ;;  %v3221_v62 = vadd.f32 1.0, %v13258_v7  ;;  %v15197_v7 = vld [vmem:[%s17814_s1 + $0x10] sm:$0xff] }
 0xd9d   :  { %13271 = vpow2.f32 %v10831_v46 }
 0xd9e   :  { %13273 = vrcp.f32 %v3221_v62 }
 0xd9f   :  { %v13260_v50 = vpop.eup %13259 }
 0xda0   :  { %v3224_v23 = vadd.f32 1.0, %v13260_v50  ;;  %v15204_v50 = vld [vmem:[%s17814_s1 + $0x8] sm:$0xff] }
 0xda1   :  { %v13262_v52 = vpop.eup %13261 }
 0xda2   :  { %13275 = vrcp.f32 %v3224_v23  ;;  %v3223_v6 = vadd.f32 1.0, %v13262_v52  ;;  %v15213_v23 = vld [vmem:[%s17814_s1] sm:$0xff] }
 0xda3   :  { %v13264_v31 = vpop.eup %13263 }
 0xda4   :  { %13277 = vrcp.f32 %v3223_v6  ;;  %v3516_v11 = vadd.f32 1.0, %v13264_v31  ;;  %v15220_v31 = vld [vmem:[%s17818_s6 + $0x18] sm:$0xff] }
 0xda5   :  { %v13266_v13 = vpop.eup %13265 }
 0xda6   :  { %13279 = vrcp.f32 %v3516_v11  ;;  %v3515_v18 = vadd.f32 1.0, %v13266_v13  ;;  %v15229_v11 = vld [vmem:[%s17818_s6 + $0x10] sm:$0xff] }
 0xda7   :  { %v13268_v24 = vpop.eup %13267 }
 0xda8   :  { %13281 = vrcp.f32 %v3515_v18  ;;  %v3518_v1 = vadd.f32 1.0, %v13268_v24  ;;  %v15237_v24 = vld [vmem:[%s17818_s6 + $0x8] sm:$0xff] }
 0xda9   :  { %v15159_v60 = vpop.eup %13269 }
 0xdaa   :  { %v13272_v42 = vpop.eup %13271  ;;  %13283 = vrcp.f32 %v3518_v1  ;;  %v3246_v51 = vmul.f32 %v15159_v60, %v3236_v20  ;;  %v15245_v20 = vld [vmem:[%s17818_s6] sm:$0xff] }
 0xdab   :  { %v15162_v34 = vpop.eup %13273  ;;  %v3517_v12 = vadd.f32 1.0, %v13272_v42 }
 0xdac   :  { %3255 = vrot.lane.b32.xlu1 %v3246_v51, %s13670_s10  ;;  %v3245_v49 = vmul.f32 %v15162_v34, %v3234_v8 }
 0xdad   :  { %13285 = vrcp.f32 %v3517_v12 }
 0xdae   :  { %3253 = vrot.lane.b32.xlu0 %v3245_v49, %s13670_s10 }
 0xdaf   :  { %v15167_v41 = vpop.eup %13275 }
 0xdb0   :  { %v3248_v0 = vmul.f32 %v15167_v41, %v3240_v54 }
 0xdb1   :  { %v15170_v32 = vpop.eup %13277 }
 0xdb2   :  { %3259 = vrot.lane.b32.xlu1 %v3248_v0, %s13670_s10  ;;  %v3247_v40 = vmul.f32 %v15170_v32, %v3238_v27 }
 0xdb3   :  { %v15174_v47 = vpop.eup %13279 }
 0xdb4   :  { %3257 = vrot.lane.b32.xlu0 %v3247_v40, %s13670_s10  ;;  %v3540_v57 = vmul.f32 %v15174_v47, %v3530_v26 }
 0xdb5   :  { %v15178_v30 = vpop.eup %13281 }
 0xdb6   :  { %3549 = vrot.lane.b32.xlu1 %v3540_v57, %s13670_s10  ;;  %v3539_v14 = vmul.f32 %v15178_v30, %v3528_v53 }
 0xdb7   :  { %v15182_v35 = vpop.eup %13283 }
 0xdb8   :  { %3547 = vrot.lane.b32.xlu0 %v3539_v14, %s13670_s10  ;;  %v3542_v55 = vmul.f32 %v15182_v35, %v3534_v37 }
 0xdba   :  { %v15186_v48 = vpop.eup %13285  ;;  %3553 = vrot.lane.b32.xlu1 %v3542_v55, %s13670_s10 }
 0xdbb   :  { %v3541_v10 = vmul.f32 %v15186_v48, %v3532_v21 }
 0xdbd   :  { %3551 = vrot.lane.b32.xlu0 %v3541_v10, %s13670_s10 }
 0xe1e   :  { %v3256_v56 = vpop.permute.xlu1 %3255 }
 0xe20   :  { %v3254_v17 = vpop.permute.xlu0 %3253 }
 0xe21   :  { %12127 = vmatprep.mubr.msk.f32.mxu1 %vm654_vm5, %v3254_v17 }
 0xe22   :  { %12128 = vmatmul.mubr.msk.f32.vlgmr.msra.gmra.mxu1 %vm654_vm5, %v3256_v56 }
 0xe23   :  { %12148 = vmatpush3.msra.mxu1 %v15108_v4 }
 0xe24   :  { %v3260_v46 = vpop.permute.xlu1 %3259  ;;  %12149 = vmatprep.subr.mxu1 %v15197_v7 }
 0xe25   :  { %12150 = vmatpush3.msra.mxu1 %v15197_v7 }
 0xe26   :  { %v3258_v62 = vpop.permute.xlu0 %3257  ;;  %12151 = vmatprep.subr.mxu1 %v15204_v50 }
 0xe27   :  { %12130 = vmatprep.mubr.msk.f32.mxu1 %vm654_vm5, %v3258_v62  ;;  %12152 = vmatpush3.msra.mxu1 %v15204_v50 }
 0xe28   :  { %12131 = vmatmul.mubr.msk.f32.gmra.mxu1 %vm654_vm5, %v3260_v46  ;;  %12153 = vmatprep.subr.mxu1 %v15213_v23  ;;  %v3550_v52 = vpop.permute.xlu1 %3549 }
 0xe29   :  { %12154 = vmatpush3.msra.mxu1 %v15213_v23 }
 0xe2a   :  { %v3548_v6 = vpop.permute.xlu0 %3547  ;;  %12175 = vmatprep.subr.mxu1 %v15220_v31 }
 0xe2b   :  { %12155 = vmatprep.mubr.msk.f32.mxu1 %vm654_vm5, %v3548_v6 }
 0xe2c   :  { %12156 = vmatmul.mubr.msk.f32.vlgmr.msra.gmra.mxu1 %vm654_vm5, %v3550_v52  ;;  %v3554_v18 = vpop.permute.xlu1 %3553 }
 0xe2d   :  { %12176 = vmatpush3.msra.mxu1 %v15220_v31 }
 0xe2e   :  { %12177 = vmatprep.subr.mxu1 %v15229_v11 }
 0xe2f   :  { %v3552_v13 = vpop.permute.xlu0 %3551  ;;  %12178 = vmatpush3.msra.mxu1 %v15229_v11 }
 0xe30   :  { %12158 = vmatprep.mubr.msk.f32.mxu1 %vm654_vm5, %v3552_v13  ;;  %12179 = vmatprep.subr.mxu1 %v15237_v24 }
 0xe31   :  { %12159 = vmatmul.mubr.msk.f32.gmra.mxu1 %vm654_vm5, %v3554_v18  ;;  %v3378_v18 = vsub.f32 1.0, %v15162_v34 }
 0xe32   :  { %12180 = vmatpush3.msra.mxu1 %v15237_v24 }
 0xe33   :  { %12181 = vmatprep.subr.mxu1 %v15245_v20 }
 0xe34   :  { %12182 = vmatpush3.msra.mxu1 %v15245_v20 }
 0xe35   :  { %12203 = vmatprep.subr.mxu1 %v14975_v63 }
 0xee2   :  { %v12129_v1 = vpop.f32.mrf.mxu1 }
 0xee3   :  { %3360 = vrot.lane.b32.xlu1 %v12129_v1, %s13671_s8 }
 0xee4   :  { %v3335_v42 = vpop.f32.mrf.mxu1 }
 0xee5   :  { %3358 = vrot.lane.b32.xlu0 %v3335_v42, %s13671_s8 }
 0xee8   :  { %v12132_v8 = vpop.f32.mrf.mxu1 }
 0xeea   :  { %v3345_v51 = vpop.f32.mrf.mxu1 }
 0xeec   :  { %v12157_v54 = vpop.f32.mrf.mxu1 }
 0xeed   :  { %3654 = vrot.lane.b32.xlu1 %v12157_v54, %s13671_s8 }
 0xeee   :  { %v3629_v12 = vpop.f32.mrf.mxu1 }
 0xeef   :  { %3652 = vrot.lane.b32.xlu0 %v3629_v12, %s13671_s8  ;;  %v3382_v12 = vmul.f32 %v3378_v18, %v15010_v2  ;;  %v3673_v2 = vsub.f32 1.0, %v15174_v47 }
 0xef1   :  { %v12160_v49 = vpop.f32.mrf.mxu1 }
 0xef2   :  { %3658 = vrot.lane.b32.xlu1 %v12160_v49, %s13671_s8 }
 0xef3   :  { %v3639_v27 = vpop.f32.mrf.mxu1 }
 0xef4   :  { %3656 = vrot.lane.b32.xlu0 %v3639_v27, %s13671_s8 }
 0xef6   :  { %3364 = vrot.lane.b32.xlu1 %v12132_v8, %s13671_s8 }
 0xef8   :  { %3362 = vrot.lane.b32.xlu0 %v3345_v51, %s13671_s8 }
 0xf55   :  { %v3361_v0 = vpop.permute.xlu1 %3360 }
 0xf56   :  { %v3371_v26 = vadd.f32 %v3361_v0, %v15132_v9 }
 0xf57   :  { %v3359_v40 = vpop.permute.xlu0 %3358 }
 0xf58   :  { %13287 = vtanh.f32 %v3371_v26  ;;  %v3370_v53 = vadd.f32 %v3359_v40, %v15136_v58 }
 0xf5a   :  { %13289 = vtanh.f32 %v3370_v53  ;;  %v3674_v53 = vsub.f32 1.0, %v15186_v48 }
 0xf5f   :  { %v3655_v57 = vpop.permute.xlu1 %3654 }
 0xf60   :  { %v3665_v14 = vadd.f32 %v3655_v57, %v15147_v44 }
 0xf61   :  { %v3653_v37 = vpop.permute.xlu0 %3652 }
 0xf62   :  { %13291 = vtanh.f32 %v3665_v14  ;;  %v3664_v55 = vadd.f32 %v3653_v37, %v15150_v61  ;;  %v3678_v37 = vmul.f32 %v3674_v53, %v15065_v45 }
 0xf64   :  { %13293 = vtanh.f32 %v3664_v55  ;;  %v3659_v21 = vpop.permute.xlu1 %3658 }
 0xf65   :  { %v13288_v10 = vpop.eup %13287  ;;  %v3667_v56 = vadd.f32 %v3659_v21, %v15153_v5 }
 0xf66   :  { %v3657_v17 = vpop.permute.xlu0 %3656  ;;  %3392 = vrot.lane.b32.xlu1 %v13288_v10, %s13671_s8 }
 0xf67   :  { %v13290_v9 = vpop.eup %13289  ;;  %13295 = vtanh.f32 %v3667_v56  ;;  %v3666_v58 = vadd.f32 %v3657_v17, %v15156_v43  ;;  %v15337_v17 = vld [vmem:[%s17819_s7 + $0x10] sm:$0xff] }
 0xf68   :  { %v3365_v46 = vpop.permute.xlu1 %3364  ;;  %3390 = vrot.lane.b32.xlu0 %v13290_v9, %s13671_s8 }
 0xf69   :  { %13297 = vtanh.f32 %v3666_v58  ;;  %v3373_v44 = vadd.f32 %v3365_v46, %v15140_v33 }
 0xf6a   :  { %v3363_v62 = vpop.permute.xlu0 %3362 }
 0xf6b   :  { %13299 = vtanh.f32 %v3373_v44  ;;  %v3372_v61 = vadd.f32 %v3363_v62, %v15143_v22  ;;  %v3379_v22 = vsub.f32 1.0, %v15159_v60 }
 0xf6d   :  { %13301 = vtanh.f32 %v3372_v61  ;;  %v3383_v42 = vmul.f32 %v3379_v22, %v15006_v19  ;;  %v3672_v19 = vsub.f32 1.0, %v15178_v30 }
 0xf6f   :  { %v13292_v52 = vpop.eup %13291  ;;  %v3676_v26 = vmul.f32 %v3672_v19, %v15050_v15  ;;  %v3381_v15 = vsub.f32 1.0, %v15167_v41 }
 0xf70   :  { %3686 = vrot.lane.b32.xlu1 %v13292_v52, %s13671_s8  ;;  %v15400_v52 = vld [vmem:[%s17820_s0 + $0x8] sm:$0xff] }
 0xf71   :  { %v13294_v5 = vpop.eup %13293  ;;  %v3385_v45 = vmul.f32 %v3381_v15, %v15073_v39  ;;  %v15436_v15 = vld [vmem:[#allocation2 + $0xa0] sm:$0xff] }
 0xf72   :  { %3684 = vrot.lane.b32.xlu0 %v13294_v5, %s13671_s8 }
 0xf74   :  { %v13296_v6 = vpop.eup %13295 }
 0xf75   :  { %3690 = vrot.lane.b32.xlu1 %v13296_v6, %s13671_s8 }
 0xf76   :  { %v13298_v43 = vpop.eup %13297 }
 0xf77   :  { %3688 = vrot.lane.b32.xlu0 %v13298_v43, %s13671_s8 }
 0xf78   :  { %v13300_v13 = vpop.eup %13299 }
 0xf79   :  { %3396 = vrot.lane.b32.xlu1 %v13300_v13, %s13671_s8  ;;  %v15409_v13 = vld [vmem:[%s17820_s0] sm:$0xff] }
 0xf7a   :  { %v13302_v33 = vpop.eup %13301 }
 0xf7b   :  { %3394 = vrot.lane.b32.xlu0 %v13302_v33, %s13671_s8 }
 0xfd8   :  { %v3393_v1 = vpop.permute.xlu1 %3392 }
 0xfd9   :  { %v3403_v8 = vmul.f32 %v15159_v60, %v3393_v1 }
 0xfda   :  { %v3391_v51 = vpop.permute.xlu0 %3390 }
 0xfdb   :  { %v15278_v54 = vadd.f32 %v3403_v8, %v3383_v42  ;;  %v3402_v49 = vmul.f32 %v15162_v34, %v3391_v51 }
 0xfdd   :  { %v15282_v27 = vadd.f32 %v3402_v49, %v3382_v12  ;;  %3928 = vrot.lane.b32.xlu1 %v15278_v54, %s13672_s3  ;;  %v15418_v12 = vld [vmem:[%s17820_s0 + $0x18] sm:$0xff] }
 0xfdf   :  { %3926 = vrot.lane.b32.xlu0 %v15282_v27, %s13672_s3  ;;  %12183 = vmatprep.mubr.msk.f32.mxu1 %vm654_vm5, %v15282_v27 }
 0xfe0   :  { %12184 = vmatmul.mubr.msk.f32.vlgmr.msra.gmra.mxu1 %vm654_vm5, %v15278_v54 }
 0xfe1   :  { %12204 = vmatpush3.msra.mxu1 %v14975_v63  ;;  %v3677_v63 = vmul.f32 %v3673_v2, %v15054_v59  ;;  %v15426_v2 = vld [vmem:[%s17820_s0 + $0x10] sm:$0xff] }
 0xfe2   :  { %v3687_v60 = vpop.permute.xlu1 %3686  ;;  %12205 = vmatprep.subr.mxu1 %v15025_v38 }
 0xfe3   :  { %12206 = vmatpush3.msra.mxu1 %v15025_v38  ;;  %v3697_v34 = vmul.f32 %v15174_v47, %v3687_v60  ;;  %v3675_v38 = vsub.f32 1.0, %v15182_v35 }
 0xfe4   :  { %v3685_v0 = vpop.permute.xlu0 %3684  ;;  %12207 = vmatprep.subr.mxu1 %v15033_v16 }
 0xfe5   :  { %v3696_v40 = vmul.f32 %v15178_v30, %v3685_v0  ;;  %12208 = vmatpush3.msra.mxu1 %v15033_v16  ;;  %v15309_v14 = vadd.f32 %v3697_v34, %v3677_v63  ;;  %v13619_v16 = vld [vmem:[%s17817_s11 + $0x18] sm:$0xff]  ;;  %v3679_v21 = vmul.f32 %v3675_v38, %v15070_v36  ;;  %v15433_v63 = vld [vmem:[#allocation2 + $0xa8] sm:$0xff] }
 0xfe6   :  { %12209 = vmatprep.subr.mxu1 %v15044_v25 }
 0xfe7   :  { %v15305_v57 = vadd.f32 %v3696_v40, %v3676_v26  ;;  %v3691_v47 = vpop.permute.xlu1 %3690  ;;  %12210 = vmatpush3.msra.mxu1 %v15044_v25  ;;  %v3380_v25 = vsub.f32 1.0, %v15170_v32 }
 0xfe8   :  { %12231 = vmatprep.subr.mxu1 %v13619_v16  ;;  %v3699_v59 = vmul.f32 %v15182_v35, %v3691_v47  ;;  %v15327_v35 = vld [vmem:[%s17819_s7 + $0x18] sm:$0xff] }
 0xfe9   :  { %v3689_v30 = vpop.permute.xlu0 %3688  ;;  %12169 = vmatprep.mubr.msk.f32.mxu0 %vm654_vm5, %v15305_v57  ;;  %v3384_v46 = vmul.f32 %v3380_v25, %v15083_v3  ;;  %v13623_v3 = vld [vmem:[%s17817_s11 + $0x10] sm:$0xff] }
 0xfea   :  { %v3698_v55 = vmul.f32 %v15186_v48, %v3689_v30  ;;  %12170 = vmatmul.mubr.msk.f32.vlgmr.msra.gmra.mxu0 %vm654_vm5, %v15309_v14  ;;  %v15340_v36 = vadd.f32 %v3699_v59, %v3679_v21 }
 0xfeb   :  { %v3397_v10 = vpop.permute.xlu1 %3396  ;;  %12190 = vmatpush3.msra.mxu0 %v15327_v35 }
 0xfec   :  { %v15330_v56 = vadd.f32 %v3698_v55, %v3678_v37  ;;  %v3405_v48 = vmul.f32 %v15167_v41, %v3397_v10  ;;  %12191 = vmatprep.subr.mxu0 %v15337_v17  ;;  %v15352_v41 = vld [vmem:[%s17819_s7 + $0x8] sm:$0xff]  ;;  %v15439_v37 = vld [vmem:[#allocation2 + $0xb8] sm:$0xff]  ;;  %v15442_v10 = vld [vmem:[#allocation2 + $0xb0] sm:$0xff] }
 0xfed   :  { %v3395_v9 = vpop.permute.xlu0 %3394  ;;  %12192 = vmatpush3.msra.mxu0 %v15337_v17 }
 0xfee   :  { %v15343_v58 = vadd.f32 %v3405_v48, %v3385_v45  ;;  %v3404_v39 = vmul.f32 %v15170_v32, %v3395_v9  ;;  %12172 = vmatprep.mubr.msk.f32.mxu0 %vm654_vm5, %v15330_v56  ;;  %12193 = vmatprep.subr.mxu0 %v15352_v41  ;;  %v13625_v32 = vld [vmem:[%s17817_s11] sm:$0xff] }
 0xfef   :  { %12173 = vmatmul.mubr.msk.f32.gmra.mxu0 %vm654_vm5, %v15340_v36 }
 0xff0   :  { %v15357_v44 = vadd.f32 %v3404_v39, %v3384_v46  ;;  %3932 = vrot.lane.b32.xlu1 %v15343_v58, %s13672_s3  ;;  %12194 = vmatpush3.msra.mxu0 %v15352_v41 }
 0xff1   :  { %12195 = vmatprep.subr.mxu0 %v15091_v29 }
 0xff2   :  { %3930 = vrot.lane.b32.xlu0 %v15357_v44, %s13672_s3  ;;  %12186 = vmatprep.mubr.msk.f32.mxu1 %vm654_vm5, %v15357_v44 }
 0xff3   :  { %12187 = vmatmul.mubr.msk.f32.gmra.mxu1 %vm654_vm5, %v15343_v58  ;;  %12196 = vmatpush3.msra.mxu0 %v15091_v29  ;;  %v13624_v29 = vld [vmem:[%s17817_s11 + $0x8] sm:$0xff] }
 0xff4   :  { %4222 = vrot.lane.b32.xlu1 %v15309_v14, %s13672_s3  ;;  %12211 = vmatprep.mubr.msk.f32.mxu1 %vm654_vm5, %v15305_v57 }
 0xff5   :  { %12217 = vmatprep.subr.mxu0 %v15108_v4 }
 0xff6   :  { %4220 = vrot.lane.b32.xlu0 %v15305_v57, %s13672_s3 }
 0xff7   :  { %12212 = vmatmul.mubr.msk.f32.vlgmr.msra.gmra.mxu1 %vm654_vm5, %v15309_v14 }
 0xff8   :  { %4226 = vrot.lane.b32.xlu1 %v15340_v36, %s13672_s3  ;;  %12214 = vmatprep.mubr.msk.f32.mxu1 %vm654_vm5, %v15330_v56 }
 0xff9   :  { %12232 = vmatpush3.msra.mxu1 %v13619_v16 }
 0xffa   :  { %4224 = vrot.lane.b32.xlu0 %v15330_v56, %s13672_s3  ;;  %12233 = vmatprep.subr.mxu1 %v13623_v3 }
 0xffb   :  { %12215 = vmatmul.mubr.msk.f32.gmra.mxu1 %vm654_vm5, %v15340_v36 }
 0xffc   :  { %12234 = vmatpush3.msra.mxu1 %v13623_v3 }
 0xffd   :  { %12235 = vmatprep.subr.mxu1 %v13624_v29 }
 0xffe   :  { %12236 = vmatpush3.msra.mxu1 %v13624_v29 }
 0xfff   :  { %12237 = vmatprep.subr.mxu1 %v13625_v32 }
0x1000   :  { %12238 = vmatpush3.msra.mxu1 %v13625_v32 }
0x1001   :  { %12259 = vmatprep.subr.mxu1 %v15327_v35 }
0x10a0   :  { %v12185_v62 = vpop.f32.mrf.mxu1 }
0x10a2   :  { %v3879_v22 = vpop.f32.mrf.mxu1 }
0x10aa   :  { %v12171_v61 = vpop.f32.mrf.mxu0 }
0x10ab   :  { %v15403_v5 = vadd.f32 %v15400_v52, %v12171_v61 }
0x10ac   :  { %v3782_v6 = vpop.f32.mrf.mxu0 }
0x10ad   :  { %v3899_v43 = vadd.f32 %v12185_v62, %v15403_v5  ;;  %v15412_v33 = vadd.f32 %v15409_v13, %v3782_v6 }
0x10af   :  { %v10846_v18 = vmul.f32 -1.442695, %v3899_v43  ;;  %v3898_v1 = vadd.f32 %v3879_v22, %v15412_v33  ;;  %v12174_v42 = vpop.f32.mrf.mxu0 }
0x10b0   :  { %v15421_v49 = vadd.f32 %v15418_v12, %v12174_v42 }
0x10b1   :  { %13303 = vpow2.f32 %v10846_v18  ;;  %v10845_v8 = vmul.f32 -1.442695, %v3898_v1  ;;  %v3792_v51 = vpop.f32.mrf.mxu0 }
0x10b2   :  { %v15429_v60 = vadd.f32 %v15426_v2, %v3792_v51  ;;  %v3929_v51 = vpop.permute.xlu1 %3928 }
0x10b3   :  { %13305 = vpow2.f32 %v10845_v8  ;;  %v12188_v19 = vpop.f32.mrf.mxu1 }
0x10b4   :  { %v3901_v34 = vadd.f32 %v12188_v19, %v15421_v49 }
0x10b5   :  { %v3889_v0 = vpop.f32.mrf.mxu1 }
0x10b6   :  { %v10848_v26 = vmul.f32 -1.442695, %v3901_v34  ;;  %v3900_v40 = vadd.f32 %v3889_v0, %v15429_v60 }
0x10b7   :  { %v12213_v53 = vpop.f32.mrf.mxu1 }
0x10b8   :  { %13307 = vpow2.f32 %v10848_v26  ;;  %v10847_v38 = vmul.f32 -1.442695, %v3900_v40  ;;  %v4193_v47 = vadd.f32 %v12213_v53, %v15433_v63  ;;  %v3927_v26 = vpop.permute.xlu0 %3926 }
0x10b9   :  { %v4173_v16 = vpop.f32.mrf.mxu1 }
0x10ba   :  { %13309 = vpow2.f32 %v10847_v38  ;;  %v10858_v59 = vmul.f32 -1.442695, %v4193_v47  ;;  %v4192_v30 = vadd.f32 %v4173_v16, %v15436_v15  ;;  %v3933_v47 = vpop.permute.xlu1 %3932 }
0x10bb   :  { %v12216_v55 = vpop.f32.mrf.mxu1 }
0x10bc   :  { %13311 = vpow2.f32 %v10858_v59  ;;  %v10857_v25 = vmul.f32 -1.442695, %v4192_v30  ;;  %v4195_v21 = vadd.f32 %v12216_v55, %v15439_v37  ;;  %v3931_v59 = vpop.permute.xlu0 %3930 }
0x10bd   :  { %v4183_v45 = vpop.f32.mrf.mxu1 }
0x10be   :  { %v13304_v48 = vpop.eup %13303  ;;  %13313 = vpow2.f32 %v10857_v25  ;;  %v10860_v9 = vmul.f32 -1.442695, %v4195_v21  ;;  %v4194_v46 = vadd.f32 %v4183_v45, %v15442_v10  ;;  %v4223_v21 = vpop.permute.xlu1 %4222 }
0x10bf   :  { %v3915_v39 = vadd.f32 1.0, %v13304_v48 }
0x10c0   :  { %v13306_v3 = vpop.eup %13305  ;;  %13315 = vpow2.f32 %v10860_v9  ;;  %v10859_v29 = vmul.f32 -1.442695, %v4194_v46  ;;  %v4221_v9 = vpop.permute.xlu0 %4220 }
0x10c1   :  { %13317 = vrcp.f32 %v3915_v39  ;;  %v3914_v32 = vadd.f32 1.0, %v13306_v3 }
0x10c2   :  { %13319 = vpow2.f32 %v10859_v29 }
0x10c3   :  { %13321 = vrcp.f32 %v3914_v32  ;;  %v4227_v32 = vpop.permute.xlu1 %4226 }
0x10c5   :  { %v13308_v62 = vpop.eup %13307 }
0x10c6   :  { %v3917_v61 = vadd.f32 1.0, %v13308_v62 }
0x10c7   :  { %v13310_v6 = vpop.eup %13309 }
0x10c8   :  { %13323 = vrcp.f32 %v3917_v61  ;;  %v3916_v43 = vadd.f32 1.0, %v13310_v6  ;;  %v4225_v6 = vpop.permute.xlu0 %4224 }
0x10c9   :  { %v13312_v22 = vpop.eup %13311 }
0x10ca   :  { %13325 = vrcp.f32 %v3916_v43  ;;  %v4209_v18 = vadd.f32 1.0, %v13312_v22 }
0x10cb   :  { %v13314_v1 = vpop.eup %13313 }
0x10cc   :  { %13327 = vrcp.f32 %v4209_v18  ;;  %v4208_v42 = vadd.f32 1.0, %v13314_v1 }
0x10cd   :  { %v13316_v8 = vpop.eup %13315 }
0x10ce   :  { %v15445_v19 = vpop.eup %13317  ;;  %13329 = vrcp.f32 %v4208_v42  ;;  %v4211_v34 = vadd.f32 1.0, %v13316_v8 }
0x10cf   :  { %v13320_v0 = vpop.eup %13319  ;;  %v3939_v40 = vmul.f32 %v15445_v19, %v3929_v51 }
0x10d0   :  { %v15448_v53 = vpop.eup %13321  ;;  %13331 = vrcp.f32 %v4211_v34  ;;  %v4210_v38 = vadd.f32 1.0, %v13320_v0 }
0x10d1   :  { %3948 = vrot.lane.b32.xlu1 %v3939_v40, %s13670_s10  ;;  %v3938_v16 = vmul.f32 %v15448_v53, %v3927_v26 }
0x10d2   :  { %13333 = vrcp.f32 %v4210_v38 }
0x10d3   :  { %3946 = vrot.lane.b32.xlu0 %v3938_v16, %s13670_s10 }
0x10d5   :  { %v15453_v30 = vpop.eup %13323 }
0x10d6   :  { %v3941_v55 = vmul.f32 %v15453_v30, %v3933_v47 }
0x10d7   :  { %v15456_v25 = vpop.eup %13325 }
0x10d8   :  { %3952 = vrot.lane.b32.xlu1 %v3941_v55, %s13670_s10  ;;  %v3940_v45 = vmul.f32 %v15456_v25, %v3931_v59 }
0x10d9   :  { %v15460_v48 = vpop.eup %13327 }
0x10da   :  { %3950 = vrot.lane.b32.xlu0 %v3940_v45, %s13670_s10  ;;  %v4233_v46 = vmul.f32 %v15460_v48, %v4223_v21 }
0x10db   :  { %v15464_v39 = vpop.eup %13329 }
0x10dc   :  { %4242 = vrot.lane.b32.xlu1 %v4233_v46, %s13670_s10  ;;  %v4232_v3 = vmul.f32 %v15464_v39, %v4221_v9 }
0x10dd   :  { %v15468_v29 = vpop.eup %13331 }
0x10de   :  { %4240 = vrot.lane.b32.xlu0 %v4232_v3, %s13670_s10  ;;  %v4235_v62 = vmul.f32 %v15468_v29, %v4227_v32 }
0x10df   :  { %v15472_v61 = vpop.eup %13333 }
0x10e0   :  { %4246 = vrot.lane.b32.xlu1 %v4235_v62, %s13670_s10  ;;  %v4234_v43 = vmul.f32 %v15472_v61, %v4225_v6 }
0x10e2   :  { %4244 = vrot.lane.b32.xlu0 %v4234_v43, %s13670_s10 }
0x1143   :  { %v3949_v18 = vpop.permute.xlu1 %3948 }
0x1145   :  { %v3947_v22 = vpop.permute.xlu0 %3946 }
0x1146   :  { %12197 = vmatprep.mubr.msk.f32.mxu0 %vm654_vm5, %v3947_v22 }
0x1147   :  { %12198 = vmatmul.mubr.msk.f32.vlgmr.msra.gmra.mxu0 %vm654_vm5, %v3949_v18  ;;  %v4072_v18 = vsub.f32 1.0, %v15445_v19 }
0x1148   :  { %12218 = vmatpush3.msra.mxu0 %v15108_v4 }
0x1149   :  { %12219 = vmatprep.subr.mxu0 %v15197_v7 }
0x114a   :  { %v3953_v1 = vpop.permute.xlu1 %3952  ;;  %12220 = vmatpush3.msra.mxu0 %v15197_v7 }
0x114b   :  { %12221 = vmatprep.subr.mxu0 %v15204_v50 }
0x114c   :  { %v3951_v42 = vpop.permute.xlu0 %3950  ;;  %12222 = vmatpush3.msra.mxu0 %v15204_v50 }
0x114d   :  { %12200 = vmatprep.mubr.msk.f32.mxu0 %vm654_vm5, %v3951_v42  ;;  %12223 = vmatprep.subr.mxu0 %v15213_v23 }
0x114e   :  { %12201 = vmatmul.mubr.msk.f32.gmra.mxu0 %vm654_vm5, %v3953_v1  ;;  %v4243_v8 = vpop.permute.xlu1 %4242  ;;  %v4071_v1 = vsub.f32 1.0, %v15448_v53 }
0x114f   :  { %12224 = vmatpush3.msra.mxu0 %v15213_v23 }
0x1150   :  { %v4241_v4 = vpop.permute.xlu0 %4240  ;;  %12245 = vmatprep.subr.mxu0 %v15220_v31 }
0x1151   :  { %12225 = vmatprep.mubr.msk.f32.mxu0 %vm654_vm5, %v4241_v4 }
0x1152   :  { %12226 = vmatmul.mubr.msk.f32.vlgmr.msra.gmra.mxu0 %vm654_vm5, %v4243_v8  ;;  %v4247_v50 = vpop.permute.xlu1 %4246  ;;  %v4076_v8 = vmul.f32 %v4072_v18, %v15278_v54  ;;  %v4802_v54 = vld [vmem:[%s17821_s29 + $0x10] sm:$0xff] }
0x1153   :  { %12246 = vmatpush3.msra.mxu0 %v15220_v31 }
0x1154   :  { %v4245_v7 = vpop.permute.xlu0 %4244  ;;  %12247 = vmatprep.subr.mxu0 %v15229_v11 }
0x1155   :  { %12228 = vmatprep.mubr.msk.f32.mxu0 %vm654_vm5, %v4245_v7  ;;  %12248 = vmatpush3.msra.mxu0 %v15229_v11 }
0x1156   :  { %12229 = vmatmul.mubr.msk.f32.gmra.mxu0 %vm654_vm5, %v4247_v50  ;;  %12249 = vmatprep.subr.mxu0 %v15237_v24 }
0x1157   :  { %12250 = vmatpush3.msra.mxu0 %v15237_v24 }
0x1158   :  { %12251 = vmatprep.subr.mxu0 %v15245_v20 }
0x1159   :  { %12252 = vmatpush3.msra.mxu0 %v15245_v20 }
0x1207   :  { %v12199_v23 = vpop.f32.mrf.mxu0 }
0x1208   :  { %4053 = vrot.lane.b32.xlu1 %v12199_v23, %s13671_s8  ;;  %v4075_v23 = vmul.f32 %v4071_v1, %v15282_v27  ;;  %v4801_v27 = vld [vmem:[%s17821_s29 + $0x8] sm:$0xff] }
0x1209   :  { %v4028_v31 = vpop.f32.mrf.mxu0 }
0x120a   :  { %4051 = vrot.lane.b32.xlu0 %v4028_v31, %s13671_s8 }
0x120e   :  { %v12202_v51 = vpop.f32.mrf.mxu0 }
0x1210   :  { %v4038_v34 = vpop.f32.mrf.mxu0 }
0x1212   :  { %v12227_v0 = vpop.f32.mrf.mxu0 }
0x1213   :  { %4347 = vrot.lane.b32.xlu1 %v12227_v0, %s13671_s8  ;;  %v4800_v0 = vld [vmem:[%s17821_s29] sm:$0xff] }
0x1214   :  { %v4322_v11 = vpop.f32.mrf.mxu0 }
0x1215   :  { %4345 = vrot.lane.b32.xlu0 %v4322_v11, %s13671_s8 }
0x1216   :  { %v12230_v26 = vpop.f32.mrf.mxu0 }
0x1217   :  { %4351 = vrot.lane.b32.xlu1 %v12230_v26, %s13671_s8 }
0x1218   :  { %v4332_v24 = vpop.f32.mrf.mxu0 }
0x1219   :  { %4349 = vrot.lane.b32.xlu0 %v4332_v24, %s13671_s8 }
0x121b   :  { %4057 = vrot.lane.b32.xlu1 %v12202_v51, %s13671_s8 }
0x121d   :  { %4055 = vrot.lane.b32.xlu0 %v4038_v34, %s13671_s8 }
0x127a   :  { %v4054_v20 = vpop.permute.xlu1 %4053 }
0x127b   :  { %v4064_v40 = vadd.f32 %v4054_v20, %v15403_v5 }
0x127c   :  { %v4052_v38 = vpop.permute.xlu0 %4051 }
0x127d   :  { %13335 = vtanh.f32 %v4064_v40  ;;  %v4063_v47 = vadd.f32 %v4052_v38, %v15412_v33  ;;  %v4367_v40 = vsub.f32 1.0, %v15472_v61 }
0x127f   :  { %13337 = vtanh.f32 %v4063_v47  ;;  %v4368_v47 = vsub.f32 1.0, %v15468_v29 }
0x1285   :  { %v4348_v16 = vpop.permute.xlu1 %4347 }
0x1286   :  { %v4358_v59 = vadd.f32 %v4348_v16, %v15433_v63 }
0x1287   :  { %v4346_v55 = vpop.permute.xlu0 %4345 }
0x1288   :  { %13339 = vtanh.f32 %v4358_v59  ;;  %v4357_v21 = vadd.f32 %v4346_v55, %v15436_v15  ;;  %v4074_v55 = vsub.f32 1.0, %v15453_v30 }
0x1289   :  { %v4352_v45 = vpop.permute.xlu1 %4351 }
0x128a   :  { %v13336_v9 = vpop.eup %13335  ;;  %13341 = vtanh.f32 %v4357_v21  ;;  %v4360_v46 = vadd.f32 %v4352_v45, %v15439_v37  ;;  %v4803_v37 = vld [vmem:[%s17821_s29 + $0x18] sm:$0xff] }
0x128b   :  { %v4350_v3 = vpop.permute.xlu0 %4349  ;;  %4085 = vrot.lane.b32.xlu1 %v13336_v9, %s13671_s8  ;;  %12273 = vmatprep.subr.mxu0 %v4803_v37  ;;  %v4372_v9 = vmul.f32 %v4368_v47, %v15340_v36 }
0x128c   :  { %v13338_v5 = vpop.eup %13337  ;;  %13343 = vtanh.f32 %v4360_v46  ;;  %v4359_v33 = vadd.f32 %v4350_v3, %v15442_v10 }
0x128d   :  { %v4058_v32 = vpop.permute.xlu1 %4057  ;;  %4083 = vrot.lane.b32.xlu0 %v13338_v5, %s13671_s8 }
0x128e   :  { %13345 = vtanh.f32 %v4359_v33  ;;  %v4066_v63 = vadd.f32 %v4058_v32, %v15421_v49 }
0x128f   :  { %v4056_v62 = vpop.permute.xlu0 %4055 }
0x1290   :  { %13347 = vtanh.f32 %v4066_v63  ;;  %v4065_v15 = vadd.f32 %v4056_v62, %v15429_v60 }
0x1292   :  { %13349 = vtanh.f32 %v4065_v15 }
0x1295   :  { %v13340_v6 = vpop.eup %13339 }
0x1296   :  { %4379 = vrot.lane.b32.xlu1 %v13340_v6, %s13671_s8 }
0x1297   :  { %v13342_v10 = vpop.eup %13341 }
0x1298   :  { %4377 = vrot.lane.b32.xlu0 %v13342_v10, %s13671_s8 }
0x1299   :  { %v13344_v43 = vpop.eup %13343 }
0x129a   :  { %4383 = vrot.lane.b32.xlu1 %v13344_v43, %s13671_s8 }
0x129b   :  { %v13346_v49 = vpop.eup %13345 }
0x129c   :  { %4381 = vrot.lane.b32.xlu0 %v13346_v49, %s13671_s8 }
0x129d   :  { %v13348_v22 = vpop.eup %13347 }
0x129e   :  { %4089 = vrot.lane.b32.xlu1 %v13348_v22, %s13671_s8 }
0x129f   :  { %v13350_v60 = vpop.eup %13349 }
0x12a0   :  { %4087 = vrot.lane.b32.xlu0 %v13350_v60, %s13671_s8 }
0x12fd   :  { %v4086_v42 = vpop.permute.xlu1 %4085 }
0x12fe   :  { %v4096_v4 = vmul.f32 %v15445_v19, %v4086_v42  ;;  %v4365_v19 = vsub.f32 1.0, %v15464_v39  ;;  %v15640_v42 = vld [vmem:[#allocation3 + $0x8] sm:$0xff] }
0x12ff   :  { %v4084_v7 = vpop.permute.xlu0 %4083 }
0x1300   :  { %v15531_v50 = vadd.f32 %v4096_v4, %v4076_v8  ;;  %v4095_v31 = vmul.f32 %v15448_v53, %v4084_v7  ;;  %v4366_v53 = vsub.f32 1.0, %v15460_v48  ;;  %v4369_v24 = vmul.f32 %v4365_v19, %v15305_v57 }
0x1302   :  { %v15535_v51 = vadd.f32 %v4095_v31, %v4075_v23  ;;  %4621 = vrot.lane.b32.xlu1 %v15531_v50, %s13672_s3  ;;  %v4370_v38 = vmul.f32 %v4366_v53, %v15309_v14  ;;  %v4073_v14 = vsub.f32 1.0, %v15456_v25 }
0x1304   :  { %4619 = vrot.lane.b32.xlu0 %v15535_v51, %s13672_s3  ;;  %12253 = vmatprep.mubr.msk.f32.mxu0 %vm654_vm5, %v15535_v51  ;;  %v4077_v36 = vmul.f32 %v4073_v14, %v15357_v44 }
0x1305   :  { %12254 = vmatmul.mubr.msk.f32.vlgmr.msra.gmra.mxu0 %vm654_vm5, %v15531_v50 }
0x1306   :  { %12274 = vmatpush3.msra.mxu0 %v4803_v37 }
0x1307   :  { %12275 = vmatprep.subr.mxu0 %v4802_v54 }
0x1308   :  { %v4380_v34 = vpop.permute.xlu1 %4379  ;;  %12276 = vmatpush3.msra.mxu0 %v4802_v54  ;;  %v15646_v54 = vld [vmem:[#allocation3 + $0x18] sm:$0xff] }
0x1309   :  { %12277 = vmatprep.subr.mxu0 %v4801_v27  ;;  %v4390_v11 = vmul.f32 %v15460_v48, %v4380_v34  ;;  %v15649_v34 = vld [vmem:[#allocation3 + $0x10] sm:$0xff] }
0x130a   :  { %v4378_v26 = vpop.permute.xlu0 %4377  ;;  %12278 = vmatpush3.msra.mxu0 %v4801_v27 }
0x130b   :  { %v4389_v20 = vmul.f32 %v15464_v39, %v4378_v26  ;;  %12279 = vmatprep.subr.mxu0 %v4800_v0  ;;  %v15565_v48 = vadd.f32 %v4390_v11, %v4370_v38  ;;  %v4371_v39 = vmul.f32 %v4367_v40, %v15330_v56 }
0x130c   :  { %v4384_v16 = vpop.permute.xlu1 %4383  ;;  %12280 = vmatpush3.msra.mxu0 %v4800_v0 }
0x130d   :  { %v15562_v59 = vadd.f32 %v4389_v20, %v4369_v24  ;;  %v4392_v21 = vmul.f32 %v15468_v29, %v4384_v16  ;;  %v4078_v29 = vmul.f32 %v4074_v55, %v15343_v58  ;;  %v13630_v58 = vld [vmem:[%s17819_s7] sm:$0xff] }
0x130e   :  { %v4382_v57 = vpop.permute.xlu0 %4381 }
0x130f   :  { %v4391_v45 = vmul.f32 %v15472_v61, %v4382_v57  ;;  %12239 = vmatprep.mubr.msk.f32.mxu1 %vm654_vm5, %v15562_v59  ;;  %v15581_v56 = vadd.f32 %v4392_v21, %v4372_v9 }
0x1310   :  { %v4090_v46 = vpop.permute.xlu1 %4089  ;;  %12240 = vmatmul.mubr.msk.f32.vlgmr.msra.gmra.mxu1 %vm654_vm5, %v15565_v48 }
0x1311   :  { %v15576_v3 = vadd.f32 %v4391_v45, %v4371_v39  ;;  %v4098_v5 = vmul.f32 %v15453_v30, %v4090_v46  ;;  %12260 = vmatpush3.msra.mxu1 %v15327_v35  ;;  %v4936_v45 = vld [vmem:[%s17759_s14 + $0x18] sm:$0xff] }
0x1312   :  { %v4088_v61 = vpop.permute.xlu0 %4087  ;;  %12261 = vmatprep.subr.mxu1 %v15337_v17 }
0x1313   :  { %v15584_v33 = vadd.f32 %v4098_v5, %v4078_v29  ;;  %v4097_v32 = vmul.f32 %v15456_v25, %v4088_v61  ;;  %12242 = vmatprep.mubr.msk.f32.mxu1 %vm654_vm5, %v15576_v3  ;;  %12262 = vmatpush3.msra.mxu1 %v15337_v17 }
0x1314   :  { %12243 = vmatmul.mubr.msk.f32.gmra.mxu1 %vm654_vm5, %v15581_v56  ;;  %12263 = vmatprep.subr.mxu1 %v15352_v41 }
0x1315   :  { %v15594_v35 = vadd.f32 %v4097_v32, %v4077_v36  ;;  %4625 = vrot.lane.b32.xlu1 %v15584_v33, %s13672_s3  ;;  %12264 = vmatpush3.msra.mxu1 %v15352_v41 }
0x1316   :  { %12265 = vmatprep.subr.mxu1 %v13630_v58 }
0x1317   :  { %4623 = vrot.lane.b32.xlu0 %v15594_v35, %s13672_s3  ;;  %12256 = vmatprep.mubr.msk.f32.mxu0 %vm654_vm5, %v15594_v35 }
0x1318   :  { %12257 = vmatmul.mubr.msk.f32.gmra.mxu0 %vm654_vm5, %v15584_v33  ;;  %12266 = vmatpush3.msra.mxu1 %v13630_v58 }
0x1319   :  { %4919 = vrot.lane.b32.xlu1 %v15565_v48, %s13672_s3  ;;  %12281 = vmatprep.mubr.msk.f32.mxu0 %vm654_vm5, %v15562_v59 }
0x131a   :  { %12287 = vmatprep.subr.mxu1 %v4936_v45 }
0x131b   :  { %4917 = vrot.lane.b32.xlu0 %v15562_v59, %s13672_s3 }
0x131c   :  { %12282 = vmatmul.mubr.msk.f32.vlgmr.msra.gmra.mxu0 %vm654_vm5, %v15565_v48 }
0x131d   :  { %4923 = vrot.lane.b32.xlu1 %v15581_v56, %s13672_s3  ;;  %12284 = vmatprep.mubr.msk.f32.mxu0 %vm654_vm5, %v15576_v3 }
0x131f   :  { %4921 = vrot.lane.b32.xlu0 %v15576_v3, %s13672_s3 }
0x1320   :  { %12285 = vmatmul.mubr.msk.f32.gmra.mxu0 %vm654_vm5, %v15581_v56 }
0x1374   :  { %v4622_v5 = vpop.permute.xlu1 %4621 }
0x1376   :  { %v4620_v58 = vpop.permute.xlu0 %4619 }
0x13c5   :  { %v12255_v17 = vpop.f32.mrf.mxu0 }
0x13c7   :  { %v4572_v62 = vpop.f32.mrf.mxu0 }
0x13d0   :  { %v12241_v41 = vpop.f32.mrf.mxu1 }
0x13d1   :  { %v15625_v44 = vadd.f32 %v15400_v52, %v12241_v41 }
0x13d2   :  { %v4475_v30 = vpop.f32.mrf.mxu1 }
0x13d3   :  { %v4592_v25 = vadd.f32 %v12255_v17, %v15625_v44  ;;  %v15629_v63 = vadd.f32 %v15409_v13, %v4475_v30  ;;  %v4626_v30 = vpop.permute.xlu1 %4625 }
0x13d4   :  { %v12244_v15 = vpop.f32.mrf.mxu1 }
0x13d5   :  { %v10874_v37 = vmul.f32 -1.442695, %v4592_v25  ;;  %v4591_v6 = vadd.f32 %v4572_v62, %v15629_v63  ;;  %v15633_v49 = vadd.f32 %v15418_v12, %v12244_v15  ;;  %v15643_v12 = vld [vmem:[#allocation3] sm:$0xff]  ;;  %v4624_v15 = vpop.permute.xlu0 %4623 }
0x13d6   :  { %v4485_v10 = vpop.f32.mrf.mxu1 }
0x13d7   :  { %13351 = vpow2.f32 %v10874_v37  ;;  %v10873_v43 = vmul.f32 -1.442695, %v4591_v6  ;;  %v15636_v52 = vadd.f32 %v15426_v2, %v4485_v10 }
0x13d8   :  { %v12258_v22 = vpop.f32.mrf.mxu0 }
0x13d9   :  { %13353 = vpow2.f32 %v10873_v43  ;;  %v4594_v60 = vadd.f32 %v12258_v22, %v15633_v49  ;;  %v4920_v43 = vpop.permute.xlu1 %4919 }
0x13da   :  { %v4582_v13 = vpop.f32.mrf.mxu0 }
0x13db   :  { %v10876_v18 = vmul.f32 -1.442695, %v4594_v60  ;;  %v4593_v1 = vadd.f32 %v4582_v13, %v15636_v52  ;;  %v4918_v13 = vpop.permute.xlu0 %4917 }
0x13dc   :  { %v12283_v8 = vpop.f32.mrf.mxu0 }
0x13dd   :  { %13355 = vpow2.f32 %v10876_v18  ;;  %v10875_v4 = vmul.f32 -1.442695, %v4593_v1  ;;  %v4890_v7 = vadd.f32 %v12283_v8, %v15640_v42 }
0x13de   :  { %v4870_v23 = vpop.f32.mrf.mxu0 }
0x13df   :  { %13357 = vpow2.f32 %v10875_v4  ;;  %v10886_v31 = vmul.f32 -1.442695, %v4890_v7  ;;  %v4889_v2 = vadd.f32 %v4870_v23, %v15643_v12  ;;  %v4924_v7 = vpop.permute.xlu1 %4923 }
0x13e0   :  { %v12286_v27 = vpop.f32.mrf.mxu0 }
0x13e1   :  { %13359 = vpow2.f32 %v10886_v31  ;;  %v10885_v19 = vmul.f32 -1.442695, %v4889_v2  ;;  %v4892_v53 = vadd.f32 %v12286_v27, %v15646_v54  ;;  %v4922_v2 = vpop.permute.xlu0 %4921 }
0x13e2   :  { %v4880_v0 = vpop.f32.mrf.mxu0 }
0x13e3   :  { %13361 = vpow2.f32 %v10885_v19  ;;  %v10888_v11 = vmul.f32 -1.442695, %v4892_v53  ;;  %v4891_v26 = vadd.f32 %v4880_v0, %v15649_v34  ;;  %v4935_v0 = vld [vmem:[%s17759_s14 + $0x10] sm:$0xff] }
0x13e4   :  { %v13352_v24 = vpop.eup %13351 }
0x13e5   :  { %v4608_v20 = vadd.f32 1.0, %v13352_v24  ;;  %13363 = vpow2.f32 %v10888_v11  ;;  %v10887_v40 = vmul.f32 -1.442695, %v4891_v26  ;;  %v4934_v11 = vld [vmem:[%s17759_s14 + $0x8] sm:$0xff]  ;;  %v4933_v24 = vld [vmem:[%s17759_s14] sm:$0xff] }
0x13e6   :  { %v13354_v38 = vpop.eup %13353 }
0x13e7   :  { %13365 = vrcp.f32 %v4608_v20  ;;  %v4607_v47 = vadd.f32 1.0, %v13354_v38 }
0x13e8   :  { %13367 = vpow2.f32 %v10887_v40 }
0x13e9   :  { %13369 = vrcp.f32 %v4607_v47 }
0x13ea   :  { %v13356_v16 = vpop.eup %13355 }
0x13eb   :  { %v4610_v55 = vadd.f32 1.0, %v13356_v16 }
0x13ec   :  { %v13358_v21 = vpop.eup %13357 }
0x13ed   :  { %13371 = vrcp.f32 %v4610_v55  ;;  %v4609_v57 = vadd.f32 1.0, %v13358_v21 }
0x13ee   :  { %v13360_v39 = vpop.eup %13359 }
0x13ef   :  { %13373 = vrcp.f32 %v4609_v57  ;;  %v4906_v14 = vadd.f32 1.0, %v13360_v39 }
0x13f0   :  { %v13362_v9 = vpop.eup %13361 }
0x13f1   :  { %13375 = vrcp.f32 %v4906_v14  ;;  %v4905_v46 = vadd.f32 1.0, %v13362_v9 }
0x13f2   :  { %v13364_v29 = vpop.eup %13363 }
0x13f3   :  { %13377 = vrcp.f32 %v4905_v46  ;;  %v4908_v61 = vadd.f32 1.0, %v13364_v29  ;;  %v5206_v29 = vld [vmem:[%s17760_s17 + $0x18] sm:$0xff] }
0x13f4   :  { %v15655_v36 = vpop.eup %13365 }
0x13f5   :  { %v13368_v32 = vpop.eup %13367  ;;  %13379 = vrcp.f32 %v4908_v61  ;;  %v4632_v17 = vmul.f32 %v15655_v36, %v4622_v5 }
0x13f6   :  { %v15658_v41 = vpop.eup %13369  ;;  %v4907_v25 = vadd.f32 1.0, %v13368_v32 }
0x13f7   :  { %4641 = vrot.lane.b32.xlu1 %v4632_v17, %s13670_s10  ;;  %v4631_v62 = vmul.f32 %v15658_v41, %v4620_v58  ;;  %v5205_v17 = vld [vmem:[%s17760_s17 + $0x10] sm:$0xff] }
0x13f8   :  { %13381 = vrcp.f32 %v4907_v25 }
0x13f9   :  { %4639 = vrot.lane.b32.xlu0 %v4631_v62, %s13670_s10 }
0x13fa   :  { %v15663_v37 = vpop.eup %13371 }
0x13fb   :  { %v4634_v6 = vmul.f32 %v15663_v37, %v4626_v30  ;;  %v5204_v30 = vld [vmem:[%s17760_s17 + $0x8] sm:$0xff] }
0x13fc   :  { %v15666_v10 = vpop.eup %13373 }
0x13fd   :  { %4645 = vrot.lane.b32.xlu1 %v4634_v6, %s13670_s10  ;;  %v4633_v22 = vmul.f32 %v15666_v10, %v4624_v15  ;;  %v5101_v15 = vld [vmem:[%s17761_s15 + $0x18] sm:$0xff] }
0x13fe   :  { %v15670_v60 = vpop.eup %13375  ;;  %12301 = vmatprep.subr.mxu0 %v5101_v15 }
0x13ff   :  { %4643 = vrot.lane.b32.xlu0 %v4633_v22, %s13670_s10  ;;  %v4930_v18 = vmul.f32 %v15670_v60, %v4920_v43  ;;  %12302 = vmatpush3.msra.mxu0 %v5101_v15  ;;  %v5100_v22 = vld [vmem:[%s17761_s15 + $0x10] sm:$0xff] }
0x1400   :  { %v15674_v1 = vpop.eup %13377  ;;  %12303 = vmatprep.subr.mxu0 %v5100_v22 }
0x1401   :  { %4943 = vrot.lane.b32.xlu1 %v4930_v18, %s13670_s10  ;;  %v4929_v8 = vmul.f32 %v15674_v1, %v4918_v13  ;;  %12304 = vmatpush3.msra.mxu0 %v5100_v22 }
0x1402   :  { %v15678_v4 = vpop.eup %13379 }
0x1403   :  { %4941 = vrot.lane.b32.xlu0 %v4929_v8, %s13670_s10  ;;  %v4932_v23 = vmul.f32 %v15678_v4, %v4924_v7 }
0x1405   :  { %v15682_v31 = vpop.eup %13381  ;;  %4947 = vrot.lane.b32.xlu1 %v4932_v23, %s13670_s10 }
0x1406   :  { %v4931_v27 = vmul.f32 %v15682_v31, %v4922_v2 }
0x1408   :  { %4945 = vrot.lane.b32.xlu0 %v4931_v27, %s13670_s10 }
0x1469   :  { %v4642_v19 = vpop.permute.xlu1 %4641 }
0x146b   :  { %v4640_v53 = vpop.permute.xlu0 %4639 }
0x146c   :  { %12267 = vmatprep.mubr.msk.f32.mxu1 %vm654_vm5, %v4640_v53 }
0x146d   :  { %12268 = vmatmul.mubr.msk.f32.vlgmr.msra.gmra.mxu1 %vm654_vm5, %v4642_v19 }
0x146e   :  { %12288 = vmatpush3.msra.mxu1 %v4936_v45 }
0x146f   :  { %v4646_v26 = vpop.permute.xlu1 %4645  ;;  %12289 = vmatprep.subr.mxu1 %v4935_v0 }
0x1470   :  { %12290 = vmatpush3.msra.mxu1 %v4935_v0 }
0x1471   :  { %v4644_v20 = vpop.permute.xlu0 %4643  ;;  %12291 = vmatprep.subr.mxu1 %v4934_v11 }
0x1472   :  { %12270 = vmatprep.mubr.msk.f32.mxu1 %vm654_vm5, %v4644_v20  ;;  %12292 = vmatpush3.msra.mxu1 %v4934_v11 }
0x1473   :  { %12271 = vmatmul.mubr.msk.f32.gmra.mxu1 %vm654_vm5, %v4646_v26  ;;  %12293 = vmatprep.subr.mxu1 %v4933_v24  ;;  %v4944_v40 = vpop.permute.xlu1 %4943 }
0x1474   :  { %12294 = vmatpush3.msra.mxu1 %v4933_v24  ;;  %v4764_v24 = vsub.f32 1.0, %v15658_v41 }
0x1475   :  { %v4942_v38 = vpop.permute.xlu0 %4941  ;;  %12315 = vmatprep.subr.mxu1 %v5206_v29 }
0x1476   :  { %12295 = vmatprep.mubr.msk.f32.mxu1 %vm654_vm5, %v4942_v38 }
0x1477   :  { %12296 = vmatmul.mubr.msk.f32.vlgmr.msra.gmra.mxu1 %vm654_vm5, %v4944_v40  ;;  %v4948_v16 = vpop.permute.xlu1 %4947 }
0x1478   :  { %12316 = vmatpush3.msra.mxu1 %v5206_v29 }
0x1479   :  { %12317 = vmatprep.subr.mxu1 %v5205_v17 }
0x147a   :  { %v4946_v47 = vpop.permute.xlu0 %4945  ;;  %12318 = vmatpush3.msra.mxu1 %v5205_v17 }
0x147b   :  { %12298 = vmatprep.mubr.msk.f32.mxu1 %vm654_vm5, %v4946_v47  ;;  %12319 = vmatprep.subr.mxu1 %v5204_v30 }
0x147c   :  { %12299 = vmatmul.mubr.msk.f32.gmra.mxu1 %vm654_vm5, %v4948_v16 }
0x147d   :  { %12320 = vmatpush3.msra.mxu1 %v5204_v30 }
0x152d   :  { %v12269_v55 = vpop.f32.mrf.mxu1 }
0x152e   :  { %4746 = vrot.lane.b32.xlu1 %v12269_v55, %s13671_s8  ;;  %v4768_v55 = vmul.f32 %v4764_v24, %v15535_v51  ;;  %v5067_v51 = vsub.f32 1.0, %v15670_v60 }
0x152f   :  { %v4721_v21 = vpop.f32.mrf.mxu1 }
0x1530   :  { %4744 = vrot.lane.b32.xlu0 %v4721_v21, %s13671_s8 }
0x1533   :  { %v12272_v57 = vpop.f32.mrf.mxu1 }
0x1535   :  { %v4731_v39 = vpop.f32.mrf.mxu1 }
0x1537   :  { %v12297_v45 = vpop.f32.mrf.mxu1 }
0x1538   :  { %5048 = vrot.lane.b32.xlu1 %v12297_v45, %s13671_s8 }
0x1539   :  { %v5023_v14 = vpop.f32.mrf.mxu1 }
0x153a   :  { %5046 = vrot.lane.b32.xlu0 %v5023_v14, %s13671_s8 }
0x153c   :  { %v12300_v9 = vpop.f32.mrf.mxu1 }
0x153d   :  { %5052 = vrot.lane.b32.xlu1 %v12300_v9, %s13671_s8  ;;  %v5071_v9 = vmul.f32 %v5067_v51, %v15565_v48 }
0x153e   :  { %v5033_v46 = vpop.f32.mrf.mxu1 }
0x153f   :  { %5050 = vrot.lane.b32.xlu0 %v5033_v46, %s13671_s8  ;;  %v5068_v46 = vsub.f32 1.0, %v15682_v31 }
0x1541   :  { %4750 = vrot.lane.b32.xlu1 %v12272_v57, %s13671_s8 }
0x1543   :  { %4748 = vrot.lane.b32.xlu0 %v4731_v39, %s13671_s8 }
0x15a0   :  { %v4747_v5 = vpop.permute.xlu1 %4746 }
0x15a1   :  { %v4757_v61 = vadd.f32 %v4747_v5, %v15625_v44  ;;  %v5203_v44 = vld [vmem:[%s17760_s17] sm:$0xff]  ;;  %v5069_v5 = vsub.f32 1.0, %v15678_v4 }
0x15a2   :  { %v4745_v32 = vpop.permute.xlu0 %4744  ;;  %12321 = vmatprep.subr.mxu1 %v5203_v44 }
0x15a3   :  { %13383 = vtanh.f32 %v4757_v61  ;;  %v4756_v58 = vadd.f32 %v4745_v32, %v15629_v63  ;;  %12322 = vmatpush3.msra.mxu1 %v5203_v44  ;;  %v5073_v30 = vmul.f32 %v5069_v5, %v15581_v56 }
0x15a5   :  { %13385 = vtanh.f32 %v4756_v58  ;;  %v4767_v58 = vsub.f32 1.0, %v15663_v37 }
0x15aa   :  { %v5049_v25 = vpop.permute.xlu1 %5048 }
0x15ab   :  { %v5059_v63 = vadd.f32 %v5049_v25, %v15640_v42 }
0x15ac   :  { %v5047_v62 = vpop.permute.xlu0 %5046 }
0x15ad   :  { %13387 = vtanh.f32 %v5059_v63  ;;  %v5058_v6 = vadd.f32 %v5047_v62, %v15643_v12  ;;  %v5099_v12 = vld [vmem:[%s17761_s15 + $0x8] sm:$0xff] }
0x15ae   :  { %12305 = vmatprep.subr.mxu0 %v5099_v12 }
0x15af   :  { %13389 = vtanh.f32 %v5058_v6  ;;  %v5053_v43 = vpop.permute.xlu1 %5052  ;;  %12306 = vmatpush3.msra.mxu0 %v5099_v12 }
0x15b0   :  { %v13384_v13 = vpop.eup %13383  ;;  %v5061_v42 = vadd.f32 %v5053_v43, %v15646_v54  ;;  %v5098_v54 = vld [vmem:[%s17761_s15] sm:$0xff] }
0x15b1   :  { %v5051_v18 = vpop.permute.xlu0 %5050  ;;  %4778 = vrot.lane.b32.xlu1 %v13384_v13, %s13671_s8  ;;  %12307 = vmatprep.subr.mxu0 %v5098_v54  ;;  %v5102_v13 = vld [vmem:[%s17763_s16] sm:$0xff] }
0x15b2   :  { %v13386_v8 = vpop.eup %13385  ;;  %13391 = vtanh.f32 %v5061_v42  ;;  %v5060_v7 = vadd.f32 %v5051_v18, %v15649_v34  ;;  %12308 = vmatpush3.msra.mxu0 %v5098_v54 }
0x15b3   :  { %v4751_v23 = vpop.permute.xlu1 %4750  ;;  %4776 = vrot.lane.b32.xlu0 %v13386_v8, %s13671_s8 }
0x15b4   :  { %13393 = vtanh.f32 %v5060_v7  ;;  %v4759_v2 = vadd.f32 %v4751_v23, %v15633_v49 }
0x15b5   :  { %v4749_v27 = vpop.permute.xlu0 %4748 }
0x15b6   :  { %13395 = vtanh.f32 %v4759_v2  ;;  %v4758_v19 = vadd.f32 %v4749_v27, %v15636_v52  ;;  %v4765_v52 = vsub.f32 1.0, %v15655_v36  ;;  %v5105_v2 = vld [vmem:[%s17763_s16 + $0x18] sm:$0xff] }
0x15b8   :  { %13397 = vtanh.f32 %v4758_v19  ;;  %v4769_v40 = vmul.f32 %v4765_v52, %v15531_v50  ;;  %v5066_v50 = vsub.f32 1.0, %v15674_v1 }
0x15ba   :  { %v13388_v34 = vpop.eup %13387  ;;  %v5070_v45 = vmul.f32 %v5066_v50, %v15562_v59  ;;  %v5072_v59 = vmul.f32 %v5068_v46, %v15576_v3  ;;  %v5348_v50 = vld [vmem:[%s17762_s18] sm:$0xff] }
0x15bb   :  { %5080 = vrot.lane.b32.xlu1 %v13388_v34, %s13671_s8 }
0x15bc   :  { %v13390_v53 = vpop.eup %13389 }
0x15bd   :  { %5078 = vrot.lane.b32.xlu0 %v13390_v53, %s13671_s8  ;;  %v5104_v53 = vld [vmem:[%s17763_s16 + $0x10] sm:$0xff] }
0x15bf   :  { %v13392_v0 = vpop.eup %13391 }
0x15c0   :  { %5084 = vrot.lane.b32.xlu1 %v13392_v0, %s13671_s8 }
0x15c1   :  { %v13394_v11 = vpop.eup %13393 }
0x15c2   :  { %5082 = vrot.lane.b32.xlu0 %v13394_v11, %s13671_s8 }
0x15c3   :  { %v13396_v49 = vpop.eup %13395 }
0x15c4   :  { %4782 = vrot.lane.b32.xlu1 %v13396_v49, %s13671_s8 }
0x15c5   :  { %v13398_v26 = vpop.eup %13397 }
0x15c6   :  { %4780 = vrot.lane.b32.xlu0 %v13398_v26, %s13671_s8 }
0x1623   :  { %v4779_v20 = vpop.permute.xlu1 %4778 }
0x1624   :  { %v4789_v38 = vmul.f32 %v15655_v36, %v4779_v20 }
0x1625   :  { %v4777_v47 = vpop.permute.xlu0 %4776 }
0x1626   :  { %v15756_v16 = vadd.f32 %v4789_v38, %v4769_v40  ;;  %v4788_v21 = vmul.f32 %v15658_v41, %v4777_v47 }
0x1628   :  { %v15760_v57 = vadd.f32 %v4788_v21, %v4768_v55  ;;  %5334 = vrot.lane.b32.xlu1 %v15756_v16, %s13672_s3 }
0x162a   :  { %5332 = vrot.lane.b32.xlu0 %v15760_v57, %s13672_s3  ;;  %12323 = vmatprep.mubr.msk.f32.mxu1 %vm654_vm5, %v15760_v57 }
0x162b   :  { %12324 = vmatmul.mubr.msk.f32.vlgmr.msra.gmra.mxu1 %vm654_vm5, %v15756_v16 }
0x162d   :  { %v5081_v36 = vpop.permute.xlu1 %5080 }
0x162e   :  { %v5091_v41 = vmul.f32 %v15670_v60, %v5081_v36 }
0x162f   :  { %v5079_v39 = vpop.permute.xlu0 %5078 }
0x1630   :  { %v5090_v14 = vmul.f32 %v15674_v1, %v5079_v39  ;;  %v15780_v32 = vadd.f32 %v5091_v41, %v5071_v9  ;;  %v4766_v1 = vsub.f32 1.0, %v15666_v10 }
0x1632   :  { %v15777_v29 = vadd.f32 %v5090_v14, %v5070_v45  ;;  %v5085_v61 = vpop.permute.xlu1 %5084 }
0x1633   :  { %v5093_v60 = vmul.f32 %v15678_v4, %v5085_v61  ;;  %v4771_v4 = vmul.f32 %v4767_v58, %v15584_v33  ;;  %v5351_v33 = vld [vmem:[%s17762_s18 + $0x18] sm:$0xff] }
0x1634   :  { %v5083_v17 = vpop.permute.xlu0 %5082  ;;  %12309 = vmatprep.mubr.msk.f32.mxu0 %vm654_vm5, %v15777_v29  ;;  %12329 = vmatprep.subr.mxu0 %v5351_v33 }
0x1635   :  { %v5092_v48 = vmul.f32 %v15682_v31, %v5083_v17  ;;  %12310 = vmatmul.mubr.msk.f32.vlgmr.msra.gmra.mxu0 %vm654_vm5, %v15780_v32  ;;  %v15796_v62 = vadd.f32 %v5093_v60, %v5073_v30  ;;  %v4770_v31 = vmul.f32 %v4766_v1, %v15594_v35  ;;  %v5350_v35 = vld [vmem:[%s17762_s18 + $0x10] sm:$0xff] }
0x1636   :  { %v4783_v44 = vpop.permute.xlu1 %4782  ;;  %12330 = vmatpush3.msra.mxu0 %v5351_v33 }
0x1637   :  { %v15792_v25 = vadd.f32 %v5092_v48, %v5072_v59  ;;  %v4791_v63 = vmul.f32 %v15663_v37, %v4783_v44  ;;  %v5349_v37 = vld [vmem:[%s17762_s18 + $0x8] sm:$0xff]  ;;  %12331 = vmatprep.subr.mxu0 %v5350_v35 }
0x1638   :  { %v4781_v15 = vpop.permute.xlu0 %4780  ;;  %12332 = vmatpush3.msra.mxu0 %v5350_v35  ;;  %v5516_v35 = vld [vmem:[%s17764_s19 + $0x18] sm:$0xff] }
0x1639   :  { %v15798_v3 = vadd.f32 %v4791_v63, %v4771_v4  ;;  %v4790_v6 = vmul.f32 %v15666_v10, %v4781_v15  ;;  %12312 = vmatprep.mubr.msk.f32.mxu0 %vm654_vm5, %v15792_v25  ;;  %12333 = vmatprep.subr.mxu0 %v5349_v37  ;;  %v5103_v10 = vld [vmem:[%s17763_s16 + $0x8] sm:$0xff] }
0x163a   :  { %12313 = vmatmul.mubr.msk.f32.gmra.mxu0 %vm654_vm5, %v15796_v62  ;;  %12343 = vmatprep.subr.mxu1 %v5516_v35 }
0x163b   :  { %v15806_v56 = vadd.f32 %v4790_v6, %v4770_v31  ;;  %5338 = vrot.lane.b32.xlu1 %v15798_v3, %s13672_s3  ;;  %12334 = vmatpush3.msra.mxu0 %v5349_v37 }
0x163c   :  { %12335 = vmatprep.subr.mxu0 %v5348_v50  ;;  %12344 = vmatpush3.msra.mxu1 %v5516_v35 }
0x163d   :  { %5336 = vrot.lane.b32.xlu0 %v15806_v56, %s13672_s3  ;;  %12326 = vmatprep.mubr.msk.f32.mxu1 %vm654_vm5, %v15806_v56 }
0x163e   :  { %12327 = vmatmul.mubr.msk.f32.gmra.mxu1 %vm654_vm5, %v15798_v3  ;;  %12336 = vmatpush3.msra.mxu0 %v5348_v50 }
0x163f   :  { %12357 = vmatprep.subr.mxu0 %v17788_v28 }
0x169a   :  { %v5335_v14 = vpop.permute.xlu1 %5334 }
0x169c   :  { %v5333_v5 = vpop.permute.xlu0 %5332 }
0x16ad   :  { %v5339_v60 = vpop.permute.xlu1 %5338 }
0x16af   :  { %v5337_v48 = vpop.permute.xlu0 %5336 }
0x16eb   :  { %v12325_v43 = vpop.f32.mrf.mxu1 }
0x16ed   :  { %v5285_v7 = vpop.f32.mrf.mxu1 }
0x16f5   :  { %v12311_v22 = vpop.f32.mrf.mxu0 }
0x16f6   :  { %v15831_v42 = vadd.f32 %v12311_v22, %v5103_v10 }
0x16f7   :  { %v5184_v18 = vpop.f32.mrf.mxu0 }
0x16f8   :  { %v5305_v12 = vadd.f32 %v12325_v43, %v15831_v42  ;;  %v15834_v8 = vadd.f32 %v5184_v18, %v5102_v13  ;;  %v5515_v13 = vld [vmem:[%s17764_s19 + $0x10] sm:$0xff] }
0x16f9   :  { %12345 = vmatprep.subr.mxu1 %v5515_v13 }
0x16fa   :  { %v10902_v23 = vmul.f32 -1.442695, %v5305_v12  ;;  %v5304_v54 = vadd.f32 %v5285_v7, %v15834_v8  ;;  %v12314_v27 = vpop.f32.mrf.mxu0  ;;  %12346 = vmatpush3.msra.mxu1 %v5515_v13  ;;  %v5514_v12 = vld [vmem:[%s17764_s19 + $0x8] sm:$0xff]  ;;  %v5622_v13 = vld [vmem:[%s17767_s21] sm:$0x3] }
0x16fb   :  { %v15843_v0 = vadd.f32 %v12314_v27, %v5105_v2  ;;  %12347 = vmatprep.subr.mxu1 %v5514_v12 }
0x16fc   :  { %13399 = vpow2.f32 %v10902_v23  ;;  %v10901_v19 = vmul.f32 -1.442695, %v5304_v54  ;;  %v5194_v34 = vpop.f32.mrf.mxu0  ;;  %12348 = vmatpush3.msra.mxu1 %v5514_v12 }
0x16fd   :  { %v15845_v49 = vadd.f32 %v5194_v34, %v5104_v53 }
0x16fe   :  { %13401 = vpow2.f32 %v10901_v19  ;;  %v12328_v11 = vpop.f32.mrf.mxu1 }
0x16ff   :  { %v5307_v26 = vadd.f32 %v12328_v11, %v15843_v0 }
0x1700   :  { %v5295_v52 = vpop.f32.mrf.mxu1 }
0x1701   :  { %v10904_v24 = vmul.f32 -1.442695, %v5307_v26  ;;  %v5306_v20 = vadd.f32 %v5295_v52, %v15845_v49 }
0x1703   :  { %13403 = vpow2.f32 %v10904_v24  ;;  %v10903_v40 = vmul.f32 -1.442695, %v5306_v20 }
0x1705   :  { %13405 = vpow2.f32 %v10903_v40 }
0x1709   :  { %v13400_v38 = vpop.eup %13399 }
0x170a   :  { %v5321_v47 = vadd.f32 1.0, %v13400_v38 }
0x170b   :  { %v13402_v55 = vpop.eup %13401 }
0x170c   :  { %13407 = vrcp.f32 %v5321_v47  ;;  %v5320_v21 = vadd.f32 1.0, %v13402_v55 }
0x170e   :  { %13409 = vrcp.f32 %v5320_v21 }
0x1710   :  { %v13404_v51 = vpop.eup %13403 }
0x1711   :  { %v5323_v36 = vadd.f32 1.0, %v13404_v51 }
0x1712   :  { %v13406_v41 = vpop.eup %13405 }
0x1713   :  { %13411 = vrcp.f32 %v5323_v36  ;;  %v5322_v39 = vadd.f32 1.0, %v13406_v41 }
0x1715   :  { %13413 = vrcp.f32 %v5322_v39  ;;  %v5709_v39 = vld [vmem:[%s17765_s23 + $0x68] sm:$0xff] }
0x1719   :  { %v15853_v45 = vpop.eup %13407 }
0x171a   :  { %v5345_v9 = vmul.f32 %v15853_v45, %v5335_v14  ;;  %v5482_v53 = vsub.f32 1.0, %v15853_v45  ;;  %v5707_v14 = vld [vmem:[%s17765_s23 + $0x58] sm:$0xff] }
0x171b   :  { %v15856_v46 = vpop.eup %13409 }
0x171c   :  { %5358 = vrot.lane.b32.xlu1 %v5345_v9, %s13670_s10  ;;  %v5344_v61 = vmul.f32 %v15856_v46, %v5333_v5  ;;  %v5481_v34 = vsub.f32 1.0, %v15856_v46  ;;  %v5486_v24 = vmul.f32 %v5482_v53, %v15756_v16  ;;  %v5706_v9 = vld [vmem:[%s17765_s23 + $0x50] sm:$0xff]  ;;  %v5704_v5 = vld [vmem:[%s17765_s23 + $0x40] sm:$0xff] }
0x171e   :  { %5356 = vrot.lane.b32.xlu0 %v5344_v61, %s13670_s10  ;;  %v5485_v26 = vmul.f32 %v5481_v34, %v15760_v57  ;;  %v5703_v61 = vld [vmem:[%s17765_s23 + $0x38] sm:$0xff] }
0x1720   :  { %v15861_v58 = vpop.eup %13411 }
0x1721   :  { %v5347_v17 = vmul.f32 %v15861_v58, %v5339_v60  ;;  %v5484_v47 = vsub.f32 1.0, %v15861_v58  ;;  %v5701_v60 = vld [vmem:[%s17765_s23 + $0x28] sm:$0xff] }
0x1722   :  { %v15864_v59 = vpop.eup %13413 }
0x1723   :  { %5362 = vrot.lane.b32.xlu1 %v5347_v17, %s13670_s10  ;;  %v5346_v1 = vmul.f32 %v15864_v59, %v5337_v48  ;;  %v5483_v38 = vsub.f32 1.0, %v15864_v59  ;;  %v5488_v51 = vmul.f32 %v5484_v47, %v15798_v3  ;;  %v5711_v3 = vld [vmem:[%s17765_s23 + $0x78] sm:$0xff]  ;;  %v5700_v17 = vld [vmem:[%s17765_s23 + $0x20] sm:$0xff]  ;;  %v5698_v48 = vld [vmem:[%s17765_s23 + $0x10] sm:$0xff] }
0x1725   :  { %5360 = vrot.lane.b32.xlu0 %v5346_v1, %s13670_s10  ;;  %v5487_v16 = vmul.f32 %v5483_v38, %v15806_v56  ;;  %v5710_v56 = vld [vmem:[%s17765_s23 + $0x70] sm:$0xff]  ;;  %v5697_v1 = vld [vmem:[%s17765_s23 + $0x8] sm:$0xff]  ;;  %v5794_v38 = vld [vmem:[%s17770_s22] sm:$0xff] }
0x178e   :  { %v5359_v44 = vpop.permute.xlu1 %5358 }
0x1790   :  { %v5357_v30 = vpop.permute.xlu0 %5356 }
0x1791   :  { %12337 = vmatprep.mubr.msk.f32.mxu0 %vm654_vm5, %v5357_v30  ;;  %v5696_v30 = vld [vmem:[%s17765_s23] sm:$0xff] }
0x1792   :  { %12338 = vmatmul.mubr.msk.f32.vlgmr.msra.gmra.mxu0 %vm654_vm5, %v5359_v44 }
0x1795   :  { %v5363_v63 = vpop.permute.xlu1 %5362 }
0x1797   :  { %v5361_v4 = vpop.permute.xlu0 %5360 }
0x1798   :  { %12340 = vmatprep.mubr.msk.f32.mxu0 %vm654_vm5, %v5361_v4 }
0x1799   :  { %12341 = vmatmul.mubr.msk.f32.gmra.mxu0 %vm654_vm5, %v5363_v63  ;;  %v15996_v63 = vld [vmem:[%s17766_s20 + $0x18] sm:$0xff] }
0x179a   :  { %12365 = vmatprep.mubr.msk.f32.mxu0 %vm13673_vm6, %v17788_v28 }
0x1852   :  { %v12339_v15 = vpop.f32.mrf.mxu0 }
0x1853   :  { %5463 = vrot.lane.b32.xlu1 %v12339_v15, %s13671_s8 }
0x1854   :  { %v5438_v31 = vpop.f32.mrf.mxu0 }
0x1855   :  { %5461 = vrot.lane.b32.xlu0 %v5438_v31, %s13671_s8  ;;  %v16001_v31 = vld [vmem:[%s17766_s20 + $0x10] sm:$0xff] }
0x1859   :  { %v12342_v6 = vpop.f32.mrf.mxu0 }
0x185a   :  { %5467 = vrot.lane.b32.xlu1 %v12342_v6, %s13671_s8 }
0x185b   :  { %v5448_v33 = vpop.f32.mrf.mxu0 }
0x185c   :  { %5465 = vrot.lane.b32.xlu0 %v5448_v33, %s13671_s8  ;;  %v16007_v33 = vld [vmem:[%s17766_s20 + $0x8] sm:$0xff] }
0x18c5   :  { %v5464_v37 = vpop.permute.xlu1 %5463 }
0x18c6   :  { %v5474_v10 = vadd.f32 %v5464_v37, %v15831_v42  ;;  %v5513_v42 = vld [vmem:[%s17764_s19] sm:$0xff] }
0x18c7   :  { %v5462_v43 = vpop.permute.xlu0 %5461  ;;  %12349 = vmatprep.subr.mxu1 %v5513_v42 }
0x18c8   :  { %13415 = vtanh.f32 %v5474_v10  ;;  %v5473_v22 = vadd.f32 %v5462_v43, %v15834_v8  ;;  %12350 = vmatpush3.msra.mxu1 %v5513_v42  ;;  %v16013_v10 = vld [vmem:[%s17766_s20] sm:$0xff] }
0x18c9   :  { %12368 = vmatprep.subr.mxu1 %v17788_v28 }
0x18ca   :  { %13417 = vtanh.f32 %v5473_v22 }
0x18cc   :  { %v5468_v18 = vpop.permute.xlu1 %5467 }
0x18cd   :  { %v5476_v7 = vadd.f32 %v5468_v18, %v15843_v0  ;;  %v6085_v18 = vld [vmem:[%s17768_s26 + $0x18] sm:$0xff] }
0x18ce   :  { %v5466_v8 = vpop.permute.xlu0 %5465 }
0x18cf   :  { %13419 = vtanh.f32 %v5476_v7  ;;  %v5475_v23 = vadd.f32 %v5466_v8, %v15845_v49  ;;  %v6084_v7 = vld [vmem:[%s17768_s26 + $0x10] sm:$0xff]  ;;  %v6083_v8 = vld [vmem:[%s17768_s26 + $0x8] sm:$0xff] }
0x18d1   :  { %13421 = vtanh.f32 %v5475_v23  ;;  %v6082_v23 = vld [vmem:[%s17768_s26] sm:$0xff] }
0x18d5   :  { %v13416_v54 = vpop.eup %13415 }
0x18d6   :  { %5495 = vrot.lane.b32.xlu1 %v13416_v54, %s13671_s8 }
0x18d7   :  { %v13418_v2 = vpop.eup %13417 }
0x18d8   :  { %5493 = vrot.lane.b32.xlu0 %v13418_v2, %s13671_s8 }
0x18dc   :  { %v13420_v27 = vpop.eup %13419 }
0x18dd   :  { %5499 = vrot.lane.b32.xlu1 %v13420_v27, %s13671_s8 }
0x18de   :  { %v13422_v19 = vpop.eup %13421 }
0x18df   :  { %5497 = vrot.lane.b32.xlu0 %v13422_v19, %s13671_s8 }
0x1948   :  { %v5496_v0 = vpop.permute.xlu1 %5495 }
0x1949   :  { %v5506_v11 = vmul.f32 %v15853_v45, %v5496_v0  ;;  %v5708_v45 = vld [vmem:[%s17765_s23 + $0x60] sm:$0xff] }
0x194a   :  { %v5494_v49 = vpop.permute.xlu0 %5493 }
0x194b   :  { %v5505_v52 = vmul.f32 %v15856_v46, %v5494_v49  ;;  %v15906_v40 = vadd.f32 %v5506_v11, %v5486_v24  ;;  %v5705_v46 = vld [vmem:[%s17765_s23 + $0x48] sm:$0xff]  ;;  %v5798_v49 = vld [vmem:[%s17769_s24] sm:$0xf] }
0x194d   :  { %v15904_v20 = vadd.f32 %v5505_v52, %v5485_v26 }
0x194f   :  { %v5500_v55 = vpop.permute.xlu1 %5499  ;;  %12351 = vmatprep.mubr.msk.f32.mxu1 %vm654_vm5, %v15904_v20 }
0x1950   :  { %12352 = vmatmul.mubr.msk.f32.vlgmr.msra.gmra.mxu1 %vm654_vm5, %v15906_v40  ;;  %v5508_v57 = vmul.f32 %v15861_v58, %v5500_v55  ;;  %v5702_v58 = vld [vmem:[%s17765_s23 + $0x30] sm:$0xff]  ;;  %v5795_v55 = vld [vmem:[%s17770_s22 + $0x8] sm:$0xff] }
0x1951   :  { %v5498_v21 = vpop.permute.xlu0 %5497  ;;  %12369 = vmatpush3.msra.mxu1 %v5711_v3  ;;  %v5994_v3 = vld [vmem:[%s17771_s25 + $0x68] sm:$0xff] }
0x1952   :  { %v5507_v50 = vmul.f32 %v15864_v59, %v5498_v21  ;;  %v15920_v41 = vadd.f32 %v5508_v57, %v5488_v51  ;;  %12370 = vmatprep.subr.mxu1 %v17788_v28  ;;  %v5699_v59 = vld [vmem:[%s17765_s23 + $0x18] sm:$0xff]  ;;  %v5796_v21 = vld [vmem:[%s17770_s22 + $0x10] sm:$0xff] }
0x1953   :  { %12371 = vmatpush3.msra.mxu1 %v5710_v56  ;;  %v5996_v57 = vld [vmem:[%s17771_s25 + $0x78] sm:$0xff]  ;;  %v5993_v56 = vld [vmem:[%s17771_s25 + $0x60] sm:$0xff] }
0x1954   :  { %v15918_v36 = vadd.f32 %v5507_v50, %v5487_v16  ;;  %12372 = vmatprep.subr.mxu1 %v17788_v28  ;;  %v5995_v50 = vld [vmem:[%s17771_s25 + $0x70] sm:$0xff]  ;;  %v5797_v51 = vld [vmem:[%s17770_s22 + $0x18] sm:$0xff] }
0x1955   :  { %12373 = vmatpush3.msra.mxu1 %v5709_v39  ;;  %v5992_v39 = vld [vmem:[%s17771_s25 + $0x58] sm:$0xff] }
0x1956   :  { %12354 = vmatprep.mubr.msk.f32.mxu1 %vm654_vm5, %v15918_v36  ;;  %12374 = vmatprep.subr.mxu1 %v17788_v28 }
0x1957   :  { %12355 = vmatmul.mubr.msk.f32.gmra.mxu1 %vm654_vm5, %v15920_v41 }
0x1958   :  { %12400 = vmatprep.mubr.msk.f32.mxu1 %vm13673_vm6, %v17788_v28  ;;  %12375 = vmatpush3.msra.mxu1 %v5708_v45  ;;  %v5991_v45 = vld [vmem:[%s17771_s25 + $0x50] sm:$0xff] }
0x1959   :  { %12376 = vmatprep.subr.mxu1 %v17788_v28 }
0x195a   :  { %12377 = vmatpush3.msra.mxu1 %v5707_v14  ;;  %v5990_v14 = vld [vmem:[%s17771_s25 + $0x48] sm:$0xff] }
0x195b   :  { %12378 = vmatprep.subr.mxu1 %v17788_v28 }
0x195c   :  { %12379 = vmatpush3.msra.mxu1 %v5706_v9  ;;  %v5989_v9 = vld [vmem:[%s17771_s25 + $0x40] sm:$0xff] }
0x195d   :  { %12380 = vmatprep.subr.mxu1 %v17788_v28 }
0x195e   :  { %12381 = vmatpush3.msra.mxu1 %v5705_v46  ;;  %v5988_v46 = vld [vmem:[%s17771_s25 + $0x38] sm:$0xff] }
0x195f   :  { %12382 = vmatprep.subr.mxu1 %v17788_v28 }
0x1960   :  { %12383 = vmatpush3.msra.mxu1 %v5704_v5  ;;  %v5987_v5 = vld [vmem:[%s17771_s25 + $0x30] sm:$0xff] }
0x1961   :  { %12384 = vmatprep.subr.mxu1 %v17788_v28 }
0x1962   :  { %12385 = vmatpush3.msra.mxu1 %v5703_v61  ;;  %v5986_v61 = vld [vmem:[%s17771_s25 + $0x28] sm:$0xff] }
0x1963   :  { %12386 = vmatprep.subr.mxu1 %v17788_v28 }
0x1964   :  { %12387 = vmatpush3.msra.mxu1 %v5702_v58  ;;  %v5985_v58 = vld [vmem:[%s17771_s25 + $0x20] sm:$0xff] }
0x1965   :  { %12388 = vmatprep.subr.mxu1 %v17788_v28 }
0x1966   :  { %12389 = vmatpush3.msra.mxu1 %v5701_v60  ;;  %v5984_v60 = vld [vmem:[%s17771_s25 + $0x18] sm:$0xff] }
0x1967   :  { %12390 = vmatprep.subr.mxu1 %v17788_v28 }
0x1968   :  { %12391 = vmatpush3.msra.mxu1 %v5700_v17  ;;  %v5983_v17 = vld [vmem:[%s17771_s25 + $0x10] sm:$0xff] }
0x1969   :  { %12392 = vmatprep.subr.mxu1 %v17788_v28 }
0x196a   :  { %12393 = vmatpush3.msra.mxu1 %v5699_v59  ;;  %v5982_v59 = vld [vmem:[%s17771_s25 + $0x8] sm:$0xff] }
0x196b   :  { %12394 = vmatprep.subr.mxu1 %v17788_v28 }
0x196c   :  { %12395 = vmatpush3.msra.mxu1 %v5698_v48  ;;  %v5981_v48 = vld [vmem:[%s17771_s25] sm:$0xff] }
0x196d   :  { %12396 = vmatprep.subr.mxu1 %v17788_v28 }
0x196e   :  { %12397 = vmatpush3.msra.mxu1 %v5697_v1  ;;  %v6299_v1 = vld [vmem:[%s17821_s29 + $0x18] sm:$0xff] }
0x196f   :  { %12398 = vmatprep.subr.mxu1 %v17788_v28 }
0x1970   :  { %12399 = vmatpush3.msra.mxu1 %v5696_v30 }
0x1971   :  { %12454 = vmatprep.subr.mxu1 %v6085_v18 }
0x1a10   :  { %v12353_v44 = vpop.f32.mrf.mxu1 }
0x1a11   :  { %v5619_v43 = vmul.f32 %v12353_v44, %v16007_v33 }
0x1a12   :  { %v5595_v4 = vpop.f32.mrf.mxu1 }
0x1a13   :  { %v5618_v22 = vmul.f32 %v16013_v10, %v5595_v4 }
0x1a17   :  { %v12356_v15 = vpop.f32.mrf.mxu1 }
0x1a18   :  { %v5621_v6 = vmul.f32 %v12356_v15, %v15996_v63 }
0x1a19   :  { %v5605_v35 = vpop.f32.mrf.mxu1 }
0x1a1a   :  { %v5620_v37 = vmul.f32 %v16001_v31, %v5605_v35  ;;  %12358 = vmatpush3.msra.mxu0 %v5621_v6  ;;  %v6298_v35 = vld [vmem:[%s17821_s29 + $0x10] sm:$0xff] }
0x1a1b   :  { %12359 = vmatprep.subr.mxu0 %v17788_v28 }
0x1a1c   :  { %12360 = vmatpush3.msra.mxu0 %v5620_v37 }
0x1a1d   :  { %12361 = vmatprep.subr.mxu0 %v17788_v28 }
0x1a1e   :  { %12362 = vmatpush3.msra.mxu0 %v5619_v43 }
0x1a1f   :  { %12363 = vmatprep.subr.mxu0 %v17788_v28 }
0x1a20   :  { %12364 = vmatpush3.msra.mxu0 %v5618_v22  ;;  %v6297_v22 = vld [vmem:[%s17821_s29 + $0x8] sm:$0xff] }
0x1a21   :  { %12366 = vmatmul.mubr.msk.f32.vlgmr.msra.gmra.mxu0 %vm654_vm5, %v5622_v13  ;;  %12403 = vmatprep.subr.mxu0 %v17788_v28 }
0x1a22   :  { %12405 = vmatprep.mubr.msk.f32.mxu0 %vm13673_vm6, %v17788_v28  ;;  %12404 = vmatpush3.msk.msra.mxu0 %vm5803_vm8, %v5798_v49 }
0x1ae1   :  { %v5692_v12 = vpop.f32.mrf.mxu0 }
0x1ae2   :  { %12401 = vmatmul.mubr.f32.vlgmr.msra.gmra.mxu1 %v5692_v12  ;;  %v6172_v12 = vld [vmem:[%s17773_s27 + $0x8] sm:$0xff] }
0x1ae3   :  { %12455 = vmatpush3.msra.mxu1 %v6085_v18  ;;  %v12367_v42 = vpop.f32.mrf.mxu0  ;;  %12462 = vmatprep.mubr.msk.f32.mxu1 %vm654_vm5, %v15904_v20 }
0x1ae4   :  { %12456 = vmatprep.subr.mxu1 %v6084_v7 }
0x1ae5   :  { %12457 = vmatpush3.msra.mxu1 %v6084_v7 }
0x1ae6   :  { %12458 = vmatprep.subr.mxu1 %v6083_v8 }
0x1ae7   :  { %12459 = vmatpush3.msra.mxu1 %v6083_v8 }
0x1ae8   :  { %12460 = vmatprep.subr.mxu1 %v6082_v23 }
0x1ae9   :  { %12461 = vmatpush3.msra.mxu1 %v6082_v23  ;;  %v6171_v23 = vld [vmem:[%s17773_s27] sm:$0xff] }
0x1aea   :  { %12463 = vmatmul.mubr.msk.f32.vlgmr.msra.gmra.mxu1 %vm654_vm5, %v15906_v40 }
0x1aeb   :  { %12465 = vmatprep.mubr.msk.f32.mxu1 %vm654_vm5, %v15918_v36 }
0x1aee   :  { %12466 = vmatmul.mubr.msk.f32.gmra.mxu1 %vm654_vm5, %v15920_v41 }
0x1ba2   :  { %v5778_v54 = vpop.f32.mrf.mxu1 }
0x1ba3   :  { %v5783_v2 = vsel %vm5782_vm7, %v5778_v54, -inf }
0x1ba4   :  { %5784 = vmax.xlane.f32.xlu0 %v5783_v2  ;;  %v12402_v27 = vpop.f32.mrf.mxu1 }
0x1bba   :  { %6413 = vrot.lane.b32.xlu0 %v15777_v29, %s13672_s3 }
0x1bbe   :  { %6417 = vrot.lane.b32.xlu0 %v15792_v25, %s13672_s3 }
0x1c2d   :  { %v5785_v19 = vpop.xlane.xlu0 %5784 }
0x1c2e   :  { %v5786_v34 = vsub.f32 %v5778_v54, %v5785_v19  ;;  %v6174_v19 = vld [vmem:[%s17773_s27 + $0x18] sm:$0xff] }
0x1c30   :  { %v5787_v53 = vmul.f32 1.442695, %v5786_v34 }
0x1c32   :  { %13423 = vpow2.f32 %v5787_v53 }
0x1c3f   :  { %v13424_v0 = vpop.eup %13423 }
0x1c40   :  { %v5789_v11 = vsel %vm5782_vm7, %v13424_v0, 0.0 }
0x1c41   :  { %5790 = vadd.xlane.f32.xlu1 %v5789_v11 }
0x1c52   :  { %6415 = vrot.lane.b32.xlu1 %v15780_v32, %s13672_s3 }
0x1c56   :  { %6419 = vrot.lane.b32.xlu1 %v15796_v62, %s13672_s3 }
0x1cca   :  { %v5791_v26 = vpop.xlane.xlu1 %5790 }
0x1ccb   :  { %13425 = vrcp.f32 %v5791_v26  ;;  %v6173_v26 = vld [vmem:[%s17773_s27 + $0x10] sm:$0xff] }
0x1cd8   :  { %v13426_v52 = vpop.eup %13425 }
0x1cd9   :  { %v5793_v24 = vmul.f32 %v13426_v52, %v13424_v0 }
0x1cdb   :  { %12406 = vmatmul.mubr.msk.f32.vlgmr.msra.gmra.mxu0 %vm5799_vm9, %v5793_v24 }
0x1cdc   :  { %12410 = vmatprep.mubr.msk.f32.mxu0 %vm432_vm3, %v5794_v38 }
0x1d9b   :  { %v5873_v47 = vpop.f32.mrf.mxu0 }
0x1d9c   :  { %12408 = vmatprep.subr.msk.mxu0 %vm481_vm2, %v5873_v47 }
0x1d9d   :  { %v12407_v16 = vpop.f32.mrf.mxu0  ;;  %12409 = vmatpush3.msk.msra.mxu0 %vm481_vm2, %v5873_v47 }
0x1d9e   :  { %12411 = vmatmul.mubr.msk.f32.vlgmr.msra.gmra.mxu0 %vm432_vm3, %v5795_v55  ;;  %12416 = vmatprep.subr.mxu0 %v5996_v57  ;;  %v6431_v16 = vld [vmem:[%s17759_s14 + $0x10] sm:$0xff] }
0x1d9f   :  { %12413 = vmatprep.mubr.msk.f32.mxu0 %vm432_vm3, %v5796_v21  ;;  %12417 = vmatpush3.msra.mxu0 %v5996_v57  ;;  %v16192_v21 = vld [vmem:[%s17759_s14 + $0x18] sm:$0xff] }
0x1da0   :  { %12418 = vmatprep.subr.mxu0 %v5995_v50 }
0x1da1   :  { %12419 = vmatpush3.msra.mxu0 %v5995_v50  ;;  %v6430_v50 = vld [vmem:[%s17759_s14 + $0x8] sm:$0xff] }
0x1da2   :  { %12414 = vmatmul.mubr.msk.f32.gmra.mxu0 %vm432_vm3, %v5797_v51  ;;  %12420 = vmatprep.subr.mxu0 %v5994_v3 }
0x1da3   :  { %12421 = vmatpush3.msra.mxu0 %v5994_v3 }
0x1da4   :  { %12422 = vmatprep.subr.mxu0 %v5993_v56 }
0x1da5   :  { %12423 = vmatpush3.msra.mxu0 %v5993_v56  ;;  %v6188_v56 = vld [vmem:[#allocation3 + $0x28] sm:$0xff] }
0x1da6   :  { %12424 = vmatprep.subr.mxu0 %v5992_v39 }
0x1da7   :  { %12425 = vmatpush3.msra.mxu0 %v5992_v39 }
0x1da8   :  { %12426 = vmatprep.subr.mxu0 %v5991_v45 }
0x1da9   :  { %12427 = vmatpush3.msra.mxu0 %v5991_v45 }
0x1daa   :  { %12428 = vmatprep.subr.mxu0 %v5990_v14 }
0x1dab   :  { %12429 = vmatpush3.msra.mxu0 %v5990_v14  ;;  %v6187_v14 = vld [vmem:[#allocation3 + $0x20] sm:$0xff] }
0x1dac   :  { %12430 = vmatprep.subr.mxu0 %v5989_v9 }
0x1dad   :  { %12431 = vmatpush3.msra.mxu0 %v5989_v9 }
0x1dae   :  { %12432 = vmatprep.subr.mxu0 %v5988_v46 }
0x1daf   :  { %12433 = vmatpush3.msra.mxu0 %v5988_v46 }
0x1db0   :  { %12434 = vmatprep.subr.mxu0 %v5987_v5 }
0x1db1   :  { %12435 = vmatpush3.msra.mxu0 %v5987_v5 }
0x1db2   :  { %12436 = vmatprep.subr.mxu0 %v5986_v61 }
0x1db3   :  { %12437 = vmatpush3.msra.mxu0 %v5986_v61 }
0x1db4   :  { %12438 = vmatprep.subr.mxu0 %v5985_v58 }
0x1db5   :  { %12439 = vmatpush3.msra.mxu0 %v5985_v58  ;;  %v6190_v58 = vld [vmem:[#allocation3 + $0x38] sm:$0xff] }
0x1db6   :  { %12440 = vmatprep.subr.mxu0 %v5984_v60 }
0x1db7   :  { %12441 = vmatpush3.msra.mxu0 %v5984_v60 }
0x1db8   :  { %12442 = vmatprep.subr.mxu0 %v5983_v17 }
0x1db9   :  { %12443 = vmatpush3.msra.mxu0 %v5983_v17 }
0x1dba   :  { %12444 = vmatprep.subr.mxu0 %v5982_v59 }
0x1dbb   :  { %12445 = vmatpush3.msra.mxu0 %v5982_v59 }
0x1dbc   :  { %12446 = vmatprep.subr.mxu0 %v5981_v48 }
0x1dbd   :  { %12447 = vmatpush3.msra.mxu0 %v5981_v48 }
0x1dbe   :  { %12476 = vmatprep.subr.mxu0 %v6299_v1 }
0x1e5e   :  { %v12412_v30 = vpop.f32.mrf.mxu0 }
0x1e5f   :  { %v5978_v15 = vmul.f32 %v12412_v30, %v16007_v33  ;;  %v6296_v33 = vld [vmem:[%s17821_s29] sm:$0xff] }
0x1e60   :  { %v5958_v44 = vpop.f32.mrf.mxu0 }
0x1e61   :  { %v5977_v4 = vmul.f32 %v5958_v44, %v16013_v10 }
0x1e62   :  { %v12415_v6 = vpop.f32.mrf.mxu0 }
0x1e63   :  { %12448 = vmatprep.mubr.f32.mxu0 %v5977_v4  ;;  %v5980_v13 = vmul.f32 %v12415_v6, %v15996_v63  ;;  %v6191_v63 = vld [vmem:[%s17772_s12] sm:$0xf] }
0x1e64   :  { %v5968_v37 = vpop.f32.mrf.mxu0  ;;  %12449 = vmatmul.mubr.f32.vlgmr.msra.gmra.mxu0 %v5978_v15  ;;  %12468 = vmatprep.subr.msk.mxu1 %vm5803_vm8, %v6191_v63 }
0x1e65   :  { %v5979_v43 = vmul.f32 %v5968_v37, %v16001_v31  ;;  %12477 = vmatpush3.msra.mxu0 %v6299_v1  ;;  %12469 = vmatpush3.msk.msra.mxu1 %vm5803_vm8, %v6191_v63  ;;  %v12464_v31 = vpop.f32.mrf.mxu1  ;;  %v6189_v1 = vld [vmem:[#allocation3 + $0x30] sm:$0xff] }
0x1e66   :  { %12478 = vmatprep.subr.mxu0 %v6298_v35  ;;  %12490 = vmatprep.subr.mxu1 %v16192_v21 }
0x1e67   :  { %12451 = vmatprep.mubr.f32.mxu0 %v5979_v43  ;;  %12479 = vmatpush3.msra.mxu0 %v6298_v35  ;;  %v6152_v10 = vpop.f32.mrf.mxu1 }
0x1e68   :  { %12452 = vmatmul.mubr.f32.gmra.mxu0 %v5980_v13  ;;  %12480 = vmatprep.subr.mxu0 %v6297_v22 }
0x1e69   :  { %12481 = vmatpush3.msra.mxu0 %v6297_v22  ;;  %12484 = vmatprep.mubr.msk.f32.mxu0 %vm654_vm5, %v15777_v29  ;;  %v12467_v42 = vpop.f32.mrf.mxu1 }
0x1e6a   :  { %12482 = vmatprep.subr.mxu0 %v6296_v33 }
0x1e6b   :  { %12483 = vmatpush3.msra.mxu0 %v6296_v33  ;;  %v6162_v11 = vpop.f32.mrf.mxu1 }
0x1e6c   :  { %12485 = vmatmul.mubr.msk.f32.vlgmr.msra.gmra.mxu0 %vm654_vm5, %v15780_v32 }
0x1e6d   :  { %12487 = vmatprep.mubr.msk.f32.mxu0 %vm654_vm5, %v15792_v25 }
0x1e70   :  { %12488 = vmatmul.mubr.msk.f32.gmra.mxu0 %vm654_vm5, %v15796_v62 }
0x1f24   :  { %v12450_v18 = vpop.f32.mrf.mxu0 }
0x1f25   :  { %v6158_v7 = vadd.f32 %v12464_v31, %v12450_v18  ;;  %v16217_v18 = vld [vmem:[%s17759_s14] sm:$0xff] }
0x1f26   :  { %v6063_v8 = vpop.f32.mrf.mxu0 }
0x1f27   :  { %v6176_v54 = vadd.f32 %v6172_v12, %v6158_v7  ;;  %v6153_v2 = vadd.f32 %v6152_v10, %v6063_v8  ;;  %v6416_v8 = vpop.permute.xlu1 %6415 }
0x1f28   :  { %v12453_v27 = vpop.f32.mrf.mxu0 }
0x1f29   :  { %v6180_v34 = vmax.f32 %v6176_v54, 0.0  ;;  %v6175_v53 = vadd.f32 %v6171_v23, %v6153_v2  ;;  %v6168_v0 = vadd.f32 %v12467_v42, %v12453_v27  ;;  %v16224_v42 = vld [vmem:[%s17760_s17 + $0x18] sm:$0xff]  ;;  %v6414_v54 = vpop.permute.xlu0 %6413 }
0x1f2a   :  { %v6073_v49 = vpop.f32.mrf.mxu0 }
0x1f2b   :  { %v6179_v52 = vmax.f32 %v6175_v53, 0.0  ;;  %v6178_v24 = vadd.f32 %v6174_v19, %v6168_v0  ;;  %v6163_v38 = vadd.f32 %v6162_v11, %v6073_v49  ;;  %6184 = vst.msk [vmem:[%s17774_s28 + $0x8] sm:$0xff] %vm5799_vm9, %v6180_v34  ;;  %v6420_v53 = vpop.permute.xlu1 %6419 }
0x1f2c   :  { %v12486_v51 = vpop.f32.mrf.mxu0 }
0x1f2d   :  { %v6182_v47 = vmax.f32 %v6178_v24, 0.0  ;;  %v6177_v55 = vadd.f32 %v6173_v26, %v6163_v38  ;;  %12470 = vmatprep.mubr.msk.f32.mxu1 %vm5799_vm9, %v6179_v52  ;;  %6183 = vst.msk [vmem:[%s17774_s28] sm:$0xff] %vm5799_vm9, %v6179_v52  ;;  %v6418_v49 = vpop.permute.xlu0 %6417  ;;  %v16247_v38 = vld [vmem:[%s17760_s17 + $0x10] sm:$0xff] }
0x1f2e   :  { %12471 = vmatmul.mubr.msk.f32.vlgmr.msra.gmra.mxu1 %vm5799_vm9, %v6180_v34  ;;  %v6366_v3 = vpop.f32.mrf.mxu0 }
0x1f2f   :  { %v6181_v57 = vmax.f32 %v6177_v55, 0.0  ;;  %6186 = vst.msk [vmem:[%s17774_s28 + $0x18] sm:$0xff] %vm5799_vm9, %v6182_v47  ;;  %12491 = vmatpush3.msra.mxu1 %v16192_v21 }
0x1f30   :  { %12492 = vmatprep.subr.mxu1 %v6431_v16  ;;  %v12489_v61 = vpop.f32.mrf.mxu0 }
0x1f31   :  { %12473 = vmatprep.mubr.msk.f32.mxu1 %vm5799_vm9, %v6181_v57  ;;  %6185 = vst.msk [vmem:[%s17774_s28 + $0x10] sm:$0xff] %vm5799_vm9, %v6181_v57  ;;  %12493 = vmatpush3.msra.mxu1 %v6431_v16  ;;  %v13631_v57 = vld [vmem:[%s17760_s17 + $0x8] sm:$0xff]  ;;  %v13632_v16 = vld [vmem:[%s17760_s17] sm:$0xff] }
0x1f32   :  { %12474 = vmatmul.mubr.msk.f32.gmra.mxu1 %vm5799_vm9, %v6182_v47  ;;  %12494 = vmatprep.subr.mxu1 %v6430_v50  ;;  %v6376_v6 = vpop.f32.mrf.mxu0 }
0x1f33   :  { %12495 = vmatpush3.msra.mxu1 %v6430_v50 }
0x1f34   :  { %12496 = vmatprep.subr.mxu1 %v16217_v18 }
0x1f35   :  { %12497 = vmatpush3.msra.mxu1 %v16217_v18 }
0x1f36   :  { %12518 = vmatprep.subr.mxu1 %v16224_v42 }
0x1fee   :  { %v12472_v39 = vpop.f32.mrf.mxu1 }
0x1fef   :  { %v16202_v45 = vadd.f32 %v12472_v39, %v6188_v56  ;;  %v16276_v39 = vld [vmem:[%s17761_s15 + $0x18] sm:$0xff] }
0x1ff0   :  { %v6273_v9 = vpop.f32.mrf.mxu1  ;;  %12504 = vmatprep.subr.mxu0 %v16276_v39 }
0x1ff1   :  { %v6386_v46 = vadd.f32 %v12486_v51, %v16202_v45  ;;  %v16205_v5 = vadd.f32 %v6273_v9, %v6187_v14  ;;  %12505 = vmatpush3.msra.mxu0 %v16276_v39 }
0x1ff2   :  { %v12475_v60 = vpop.f32.mrf.mxu1 }
0x1ff3   :  { %v10935_v17 = vmul.f32 -1.442695, %v6386_v46  ;;  %v6385_v59 = vadd.f32 %v6366_v3, %v16205_v5  ;;  %v16208_v48 = vadd.f32 %v12475_v60, %v6190_v58 }
0x1ff4   :  { %v6283_v30 = vpop.f32.mrf.mxu1 }
0x1ff5   :  { %13427 = vpow2.f32 %v10935_v17  ;;  %v10934_v44 = vmul.f32 -1.442695, %v6385_v59  ;;  %v6388_v4 = vadd.f32 %v12489_v61, %v16208_v48  ;;  %v16211_v15 = vadd.f32 %v6283_v30, %v6189_v1  ;;  %v16286_v17 = vld [vmem:[%s17761_s15 + $0x10] sm:$0xff] }
0x1ff6   :  { %12506 = vmatprep.subr.mxu0 %v16286_v17 }
0x1ff7   :  { %13429 = vpow2.f32 %v10934_v44  ;;  %v10937_v35 = vmul.f32 -1.442695, %v6388_v4  ;;  %v6387_v37 = vadd.f32 %v6376_v6, %v16211_v15  ;;  %12507 = vmatpush3.msra.mxu0 %v16286_v17 }
0x1ff9   :  { %13431 = vpow2.f32 %v10937_v35  ;;  %v10936_v43 = vmul.f32 -1.442695, %v6387_v37 }
0x1ffb   :  { %13433 = vpow2.f32 %v10936_v43 }
0x2002   :  { %v13428_v22 = vpop.eup %13427 }
0x2003   :  { %v6402_v13 = vadd.f32 1.0, %v13428_v22 }
0x2004   :  { %v13430_v33 = vpop.eup %13429 }
0x2005   :  { %13435 = vrcp.f32 %v6402_v13  ;;  %v6401_v63 = vadd.f32 1.0, %v13430_v33 }
0x2006   :  { %v13432_v31 = vpop.eup %13431 }
0x2007   :  { %13437 = vrcp.f32 %v6401_v63  ;;  %v6404_v10 = vadd.f32 1.0, %v13432_v31 }
0x2008   :  { %v13434_v12 = vpop.eup %13433 }
0x2009   :  { %13439 = vrcp.f32 %v6404_v10  ;;  %v6403_v7 = vadd.f32 1.0, %v13434_v12 }
0x200b   :  { %13441 = vrcp.f32 %v6403_v7 }
0x2012   :  { %v16227_v23 = vpop.eup %13435 }
0x2013   :  { %v6426_v2 = vmul.f32 %v16227_v23, %v6416_v8  ;;  %v6563_v6 = vsub.f32 1.0, %v16227_v23 }
0x2014   :  { %v16230_v27 = vpop.eup %13437 }
0x2015   :  { %6439 = vrot.lane.b32.xlu1 %v6426_v2, %s13670_s10  ;;  %v6425_v19 = vmul.f32 %v16230_v27, %v6414_v54  ;;  %v6567_v63 = vmul.f32 %v6563_v6, %v15780_v32 }
0x2016   :  { %v16234_v34 = vpop.eup %13439 }
0x2017   :  { %6437 = vrot.lane.b32.xlu0 %v6425_v19, %s13670_s10  ;;  %v6428_v0 = vmul.f32 %v16234_v34, %v6420_v53  ;;  %v6565_v31 = vsub.f32 1.0, %v16234_v34  ;;  %v16360_v19 = vld [vmem:[%s17762_s18 + $0x8] sm:$0xff] }
0x2018   :  { %v16238_v11 = vpop.eup %13441  ;;  %v16369_v53 = vld [vmem:[%s17763_s16 + $0x8] sm:$0xff] }
0x2019   :  { %6443 = vrot.lane.b32.xlu1 %v6428_v0, %s13670_s10  ;;  %v6427_v26 = vmul.f32 %v16238_v11, %v6418_v49  ;;  %v6564_v33 = vsub.f32 1.0, %v16238_v11  ;;  %v6569_v2 = vmul.f32 %v6565_v31, %v15796_v62  ;;  %v16353_v62 = vld [vmem:[%s17762_s18 + $0x10] sm:$0xff]  ;;  %v16374_v49 = vld [vmem:[%s17763_s16] sm:$0xff] }
0x201b   :  { %6441 = vrot.lane.b32.xlu0 %v6427_v26, %s13670_s10 }
0x2087   :  { %v6440_v52 = vpop.permute.xlu1 %6439 }
0x2089   :  { %v6438_v24 = vpop.permute.xlu0 %6437 }
0x208a   :  { %12498 = vmatprep.mubr.msk.f32.mxu1 %vm654_vm5, %v6438_v24  ;;  %v16382_v24 = vld [vmem:[%s17763_s16 + $0x18] sm:$0xff] }
0x208b   :  { %12499 = vmatmul.mubr.msk.f32.vlgmr.msra.gmra.mxu1 %vm654_vm5, %v6440_v52  ;;  %v6444_v55 = vpop.permute.xlu1 %6443 }
0x208c   :  { %12519 = vmatpush3.msra.mxu1 %v16224_v42 }
0x208d   :  { %12520 = vmatprep.subr.mxu1 %v16247_v38  ;;  %v6442_v47 = vpop.permute.xlu0 %6441 }
0x208e   :  { %12501 = vmatprep.mubr.msk.f32.mxu1 %vm654_vm5, %v6442_v47  ;;  %12521 = vmatpush3.msra.mxu1 %v16247_v38 }
0x208f   :  { %12502 = vmatmul.mubr.msk.f32.gmra.mxu1 %vm654_vm5, %v6444_v55  ;;  %12522 = vmatprep.subr.mxu1 %v13631_v57 }
0x2090   :  { %12523 = vmatpush3.msra.mxu1 %v13631_v57  ;;  %12526 = vmatprep.mubr.msk.f32.mxu1 %vm654_vm5, %v15904_v20 }
0x2091   :  { %12524 = vmatprep.subr.mxu1 %v13632_v16 }
0x2092   :  { %12525 = vmatpush3.msra.mxu1 %v13632_v16 }
0x2093   :  { %12527 = vmatmul.mubr.msk.f32.vlgmr.msra.gmra.mxu1 %vm654_vm5, %v15906_v40 }
0x2094   :  { %12529 = vmatprep.mubr.msk.f32.mxu1 %vm654_vm5, %v15918_v36 }
0x2097   :  { %12530 = vmatmul.mubr.msk.f32.gmra.mxu1 %vm654_vm5, %v15920_v41 }
0x214b   :  { %v12500_v50 = vpop.f32.mrf.mxu1 }
0x214c   :  { %6544 = vrot.lane.b32.xlu1 %v12500_v50, %s13671_s8  ;;  %v16391_v50 = vld [vmem:[%s17763_s16 + $0x10] sm:$0xff] }
0x214d   :  { %v6519_v51 = vpop.f32.mrf.mxu1 }
0x214e   :  { %6542 = vrot.lane.b32.xlu0 %v6519_v51, %s13671_s8 }
0x214f   :  { %v12503_v3 = vpop.f32.mrf.mxu1 }
0x2150   :  { %6548 = vrot.lane.b32.xlu1 %v12503_v3, %s13671_s8 }
0x2151   :  { %v6529_v56 = vpop.f32.mrf.mxu1 }
0x2152   :  { %6546 = vrot.lane.b32.xlu0 %v6529_v56, %s13671_s8 }
0x21be   :  { %v6545_v14 = vpop.permute.xlu1 %6544 }
0x21bf   :  { %v6555_v9 = vadd.f32 %v6545_v14, %v16202_v45  ;;  %v16294_v45 = vld [vmem:[%s17761_s15 + $0x8] sm:$0xff] }
0x21c0   :  { %v6543_v46 = vpop.permute.xlu0 %6542  ;;  %12508 = vmatprep.subr.mxu0 %v16294_v45 }
0x21c1   :  { %13443 = vtanh.f32 %v6555_v9  ;;  %v6554_v61 = vadd.f32 %v6543_v46, %v16205_v5  ;;  %12509 = vmatpush3.msra.mxu0 %v16294_v45  ;;  %v16301_v5 = vld [vmem:[%s17761_s15] sm:$0xff] }
0x21c2   :  { %v6549_v58 = vpop.permute.xlu1 %6548  ;;  %12510 = vmatprep.subr.mxu0 %v16301_v5 }
0x21c3   :  { %13445 = vtanh.f32 %v6554_v61  ;;  %v6557_v60 = vadd.f32 %v6549_v58, %v16208_v48  ;;  %12511 = vmatpush3.msra.mxu0 %v16301_v5 }
0x21c4   :  { %v6547_v59 = vpop.permute.xlu0 %6546 }
0x21c5   :  { %13447 = vtanh.f32 %v6557_v60  ;;  %v6556_v1 = vadd.f32 %v6547_v59, %v16211_v15  ;;  %v6562_v15 = vsub.f32 1.0, %v16230_v27 }
0x21c7   :  { %13449 = vtanh.f32 %v6556_v1  ;;  %v6566_v22 = vmul.f32 %v6562_v15, %v15777_v29 }
0x21ce   :  { %v13444_v48 = vpop.eup %13443 }
0x21cf   :  { %6576 = vrot.lane.b32.xlu1 %v13444_v48, %s13671_s8 }
0x21d0   :  { %v13446_v30 = vpop.eup %13445 }
0x21d1   :  { %6574 = vrot.lane.b32.xlu0 %v13446_v30, %s13671_s8 }
0x21d2   :  { %v13448_v44 = vpop.eup %13447 }
0x21d3   :  { %6580 = vrot.lane.b32.xlu1 %v13448_v44, %s13671_s8 }
0x21d4   :  { %v13450_v4 = vpop.eup %13449 }
0x21d5   :  { %6578 = vrot.lane.b32.xlu0 %v13450_v4, %s13671_s8 }
0x21d7   :  { %6818 = vrot.lane.b32.xlu1 %v15906_v40, %s13672_s3 }
0x21d9   :  { %6816 = vrot.lane.b32.xlu0 %v15904_v20, %s13672_s3 }
0x21db   :  { %6822 = vrot.lane.b32.xlu1 %v15920_v41, %s13672_s3 }
0x21dd   :  { %6820 = vrot.lane.b32.xlu0 %v15918_v36, %s13672_s3 }
0x2241   :  { %v6577_v35 = vpop.permute.xlu1 %6576 }
0x2242   :  { %v6587_v37 = vmul.f32 %v16227_v23, %v6577_v35  ;;  %v6568_v23 = vmul.f32 %v6564_v33, %v15792_v25  ;;  %v16348_v25 = vld [vmem:[%s17762_s18 + $0x18] sm:$0xff]  ;;  %v16405_v35 = vld [vmem:[%s17762_s18] sm:$0xff] }
0x2243   :  { %v6575_v43 = vpop.permute.xlu0 %6574  ;;  %12532 = vmatprep.subr.mxu0 %v16348_v25 }
0x2244   :  { %v6586_v13 = vmul.f32 %v16230_v27, %v6575_v43  ;;  %v16327_v7 = vadd.f32 %v6587_v37, %v6567_v63 }
0x2245   :  { %v6581_v10 = vpop.permute.xlu1 %6580 }
0x2246   :  { %v16325_v12 = vadd.f32 %v6586_v13, %v6566_v22  ;;  %v6589_v8 = vmul.f32 %v16234_v34, %v6581_v10  ;;  %v12528_v34 = vpop.f32.mrf.mxu1 }
0x2247   :  { %v6579_v54 = vpop.permute.xlu0 %6578 }
0x2248   :  { %v6588_v29 = vmul.f32 %v16238_v11, %v6579_v54  ;;  %12512 = vmatprep.mubr.msk.f32.mxu0 %vm654_vm5, %v16325_v12  ;;  %v16339_v27 = vadd.f32 %v6589_v8, %v6569_v2  ;;  %v6769_v0 = vpop.f32.mrf.mxu1 }
0x2249   :  { %12513 = vmatmul.mubr.msk.f32.vlgmr.msra.gmra.mxu0 %vm654_vm5, %v16327_v7  ;;  %v6819_v22 = vpop.permute.xlu1 %6818 }
0x224a   :  { %v16337_v32 = vadd.f32 %v6588_v29, %v6568_v23  ;;  %12533 = vmatpush3.msra.mxu0 %v16348_v25  ;;  %v12531_v57 = vpop.f32.mrf.mxu1 }
0x224b   :  { %12534 = vmatprep.subr.mxu0 %v16353_v62  ;;  %v6817_v33 = vpop.permute.xlu0 %6816 }
0x224c   :  { %12515 = vmatprep.mubr.msk.f32.mxu0 %vm654_vm5, %v16337_v32  ;;  %12535 = vmatpush3.msra.mxu0 %v16353_v62  ;;  %v6779_v58 = vpop.f32.mrf.mxu1 }
0x224d   :  { %12516 = vmatmul.mubr.msk.f32.gmra.mxu0 %vm654_vm5, %v16339_v27  ;;  %12536 = vmatprep.subr.mxu0 %v16360_v19  ;;  %v6823_v54 = vpop.permute.xlu1 %6822 }
0x224e   :  { %12537 = vmatpush3.msra.mxu0 %v16360_v19 }
0x224f   :  { %12538 = vmatprep.subr.mxu0 %v16405_v35  ;;  %v6821_v2 = vpop.permute.xlu0 %6820 }
0x2250   :  { %12539 = vmatpush3.msra.mxu0 %v16405_v35 }
0x2251   :  { %12560 = vmatprep.subr.mxu0 %v17788_v28 }
0x2309   :  { %v12514_v11 = vpop.f32.mrf.mxu0 }
0x230a   :  { %v16377_v26 = vadd.f32 %v12514_v11, %v16369_v53 }
0x230b   :  { %v6680_v52 = vpop.f32.mrf.mxu0 }
0x230c   :  { %v6789_v47 = vadd.f32 %v12528_v34, %v16377_v26  ;;  %v16386_v55 = vadd.f32 %v6680_v52, %v16374_v49 }
0x230d   :  { %v12517_v16 = vpop.f32.mrf.mxu0 }
0x230e   :  { %v10951_v51 = vmul.f32 -1.442695, %v6789_v47  ;;  %v6788_v3 = vadd.f32 %v6769_v0, %v16386_v55  ;;  %v16395_v56 = vadd.f32 %v12517_v16, %v16382_v24 }
0x230f   :  { %v6690_v14 = vpop.f32.mrf.mxu0 }
0x2310   :  { %13451 = vpow2.f32 %v10951_v51  ;;  %v10950_v9 = vmul.f32 -1.442695, %v6788_v3  ;;  %v6791_v46 = vadd.f32 %v12531_v57, %v16395_v56  ;;  %v16399_v61 = vadd.f32 %v6690_v14, %v16391_v50  ;;  %v16439_v14 = vld [vmem:[%s17764_s19 + $0x18] sm:$0xff] }
0x2311   :  { %12546 = vmatprep.subr.mxu1 %v16439_v14 }
0x2312   :  { %13453 = vpow2.f32 %v10950_v9  ;;  %v10953_v60 = vmul.f32 -1.442695, %v6791_v46  ;;  %v6790_v59 = vadd.f32 %v6779_v58, %v16399_v61  ;;  %12547 = vmatpush3.msra.mxu1 %v16439_v14 }
0x2314   :  { %13455 = vpow2.f32 %v10953_v60  ;;  %v10952_v1 = vmul.f32 -1.442695, %v6790_v59 }
0x2316   :  { %13457 = vpow2.f32 %v10952_v1 }
0x231d   :  { %v13452_v48 = vpop.eup %13451 }
0x231e   :  { %v6805_v30 = vadd.f32 1.0, %v13452_v48  ;;  %v16449_v48 = vld [vmem:[%s17764_s19 + $0x10] sm:$0xff] }
0x231f   :  { %v13454_v44 = vpop.eup %13453  ;;  %12548 = vmatprep.subr.mxu1 %v16449_v48 }
0x2320   :  { %13459 = vrcp.f32 %v6805_v30  ;;  %v6804_v4 = vadd.f32 1.0, %v13454_v44  ;;  %12549 = vmatpush3.msra.mxu1 %v16449_v48 }
0x2321   :  { %v13456_v15 = vpop.eup %13455 }
0x2322   :  { %13461 = vrcp.f32 %v6804_v4  ;;  %v6807_v6 = vadd.f32 1.0, %v13456_v15 }
0x2323   :  { %v13458_v37 = vpop.eup %13457 }
0x2324   :  { %13463 = vrcp.f32 %v6807_v6  ;;  %v6806_v43 = vadd.f32 1.0, %v13458_v37 }
0x2326   :  { %13465 = vrcp.f32 %v6806_v43 }
0x232d   :  { %v16410_v13 = vpop.eup %13459 }
0x232e   :  { %v6829_v63 = vmul.f32 %v16410_v13, %v6819_v22  ;;  %v6966_v37 = vsub.f32 1.0, %v16410_v13 }
0x232f   :  { %v16413_v31 = vpop.eup %13461 }
0x2330   :  { %6842 = vrot.lane.b32.xlu1 %v6829_v63, %s13670_s10  ;;  %v6828_v10 = vmul.f32 %v16413_v31, %v6817_v33  ;;  %v6965_v6 = vsub.f32 1.0, %v16413_v31 }
0x2331   :  { %v16417_v8 = vpop.eup %13463 }
0x2332   :  { %6840 = vrot.lane.b32.xlu0 %v6828_v10, %s13670_s10  ;;  %v6831_v23 = vmul.f32 %v16417_v8, %v6823_v54  ;;  %v6969_v63 = vmul.f32 %v6965_v6, %v15904_v20 }
0x2333   :  { %v16421_v29 = vpop.eup %13465 }
0x2334   :  { %6846 = vrot.lane.b32.xlu1 %v6831_v23, %s13670_s10  ;;  %v6830_v34 = vmul.f32 %v16421_v29, %v6821_v2  ;;  %v6967_v54 = vsub.f32 1.0, %v16421_v29  ;;  %v6970_v23 = vmul.f32 %v6966_v37, %v15906_v40  ;;  %v6968_v2 = vsub.f32 1.0, %v16417_v8  ;;  %v16622_v37 = vld [vmem:[%s17766_s20 + $0x10] sm:$0xff] }
0x2336   :  { %6844 = vrot.lane.b32.xlu0 %v6830_v34, %s13670_s10 }
0x23a2   :  { %v6843_v0 = vpop.permute.xlu1 %6842 }
0x23a4   :  { %v6841_v11 = vpop.permute.xlu0 %6840 }
0x23a5   :  { %12540 = vmatprep.mubr.msk.f32.mxu0 %vm654_vm5, %v6841_v11 }
0x23a6   :  { %12541 = vmatmul.mubr.msk.f32.vlgmr.msra.gmra.mxu0 %vm654_vm5, %v6843_v0  ;;  %v6847_v47 = vpop.permute.xlu1 %6846 }
0x23a8   :  { %v6845_v52 = vpop.permute.xlu0 %6844 }
0x23a9   :  { %12543 = vmatprep.mubr.msk.f32.mxu0 %vm654_vm5, %v6845_v52 }
0x23aa   :  { %12544 = vmatmul.mubr.msk.f32.gmra.mxu0 %vm654_vm5, %v6847_v47 }
0x23ab   :  { %12568 = vmatprep.mubr.msk.f32.mxu0 %vm13673_vm6, %v17788_v28 }
0x2466   :  { %v12542_v57 = vpop.f32.mrf.mxu0 }
0x2467   :  { %6947 = vrot.lane.b32.xlu1 %v12542_v57, %s13671_s8 }
0x2468   :  { %v6922_v16 = vpop.f32.mrf.mxu0 }
0x2469   :  { %6945 = vrot.lane.b32.xlu0 %v6922_v16, %s13671_s8  ;;  %v16532_v16 = vld [vmem:[%s17765_s23 + $0x58] sm:$0xff] }
0x246a   :  { %v12545_v51 = vpop.f32.mrf.mxu0 }
0x246b   :  { %6951 = vrot.lane.b32.xlu1 %v12545_v51, %s13671_s8  ;;  %v16539_v51 = vld [vmem:[%s17765_s23 + $0x50] sm:$0xff] }
0x246c   :  { %v6932_v3 = vpop.f32.mrf.mxu0 }
0x246d   :  { %6949 = vrot.lane.b32.xlu0 %v6932_v3, %s13671_s8  ;;  %v16546_v3 = vld [vmem:[%s17765_s23 + $0x48] sm:$0xff] }
0x24d9   :  { %v6948_v9 = vpop.permute.xlu1 %6947 }
0x24da   :  { %v6958_v46 = vadd.f32 %v6948_v9, %v16377_v26  ;;  %v16457_v26 = vld [vmem:[%s17764_s19 + $0x8] sm:$0xff]  ;;  %v16553_v9 = vld [vmem:[%s17765_s23 + $0x40] sm:$0xff] }
0x24db   :  { %v6946_v58 = vpop.permute.xlu0 %6945  ;;  %12550 = vmatprep.subr.mxu1 %v16457_v26 }
0x24dc   :  { %13467 = vtanh.f32 %v6958_v46  ;;  %v6957_v60 = vadd.f32 %v6946_v58, %v16386_v55  ;;  %12551 = vmatpush3.msra.mxu1 %v16457_v26  ;;  %v16464_v55 = vld [vmem:[%s17764_s19] sm:$0xff]  ;;  %v16560_v46 = vld [vmem:[%s17765_s23 + $0x38] sm:$0xff]  ;;  %v16567_v58 = vld [vmem:[%s17765_s23 + $0x30] sm:$0xff] }
0x24dd   :  { %v6952_v59 = vpop.permute.xlu1 %6951  ;;  %12552 = vmatprep.subr.mxu1 %v16464_v55 }
0x24de   :  { %13469 = vtanh.f32 %v6957_v60  ;;  %v6960_v1 = vadd.f32 %v6952_v59, %v16395_v56  ;;  %12553 = vmatpush3.msra.mxu1 %v16464_v55  ;;  %v16574_v60 = vld [vmem:[%s17765_s23 + $0x28] sm:$0xff]  ;;  %v16581_v59 = vld [vmem:[%s17765_s23 + $0x20] sm:$0xff] }
0x24df   :  { %v6950_v30 = vpop.permute.xlu0 %6949  ;;  %12571 = vmatprep.subr.mxu1 %v17788_v28 }
0x24e0   :  { %13471 = vtanh.f32 %v6960_v1  ;;  %v6959_v44 = vadd.f32 %v6950_v30, %v16399_v61  ;;  %v16588_v1 = vld [vmem:[%s17765_s23 + $0x18] sm:$0xff]  ;;  %v16595_v30 = vld [vmem:[%s17765_s23 + $0x10] sm:$0xff] }
0x24e2   :  { %13473 = vtanh.f32 %v6959_v44  ;;  %v16602_v44 = vld [vmem:[%s17765_s23 + $0x8] sm:$0xff] }
0x24e9   :  { %v13468_v56 = vpop.eup %13467 }
0x24ea   :  { %6979 = vrot.lane.b32.xlu1 %v13468_v56, %s13671_s8  ;;  %v16609_v56 = vld [vmem:[%s17765_s23] sm:$0xff] }
0x24eb   :  { %v13470_v61 = vpop.eup %13469 }
0x24ec   :  { %6977 = vrot.lane.b32.xlu0 %v13470_v61, %s13671_s8 }
0x24ed   :  { %v13472_v4 = vpop.eup %13471 }
0x24ee   :  { %6983 = vrot.lane.b32.xlu1 %v13472_v4, %s13671_s8 }
0x24ef   :  { %v13474_v15 = vpop.eup %13473 }
0x24f0   :  { %6981 = vrot.lane.b32.xlu0 %v13474_v15, %s13671_s8  ;;  %v16617_v15 = vld [vmem:[%s17766_s20 + $0x18] sm:$0xff] }
0x255c   :  { %v6980_v43 = vpop.permute.xlu1 %6979 }
0x255d   :  { %v6990_v22 = vmul.f32 %v16410_v13, %v6980_v43  ;;  %v6971_v13 = vmul.f32 %v6967_v54, %v15918_v36  ;;  %v16506_v36 = vld [vmem:[%s17765_s23 + $0x78] sm:$0xff] }
0x255e   :  { %v6978_v33 = vpop.permute.xlu0 %6977 }
0x255f   :  { %v6989_v10 = vmul.f32 %v16413_v31, %v6978_v33  ;;  %v16483_v11 = vadd.f32 %v6990_v22, %v6970_v23  ;;  %v6972_v31 = vmul.f32 %v6968_v2, %v15920_v41  ;;  %v16511_v41 = vld [vmem:[%s17765_s23 + $0x70] sm:$0xff]  ;;  %v16628_v22 = vld [vmem:[%s17766_s20 + $0x8] sm:$0xff]  ;;  %v7106_v2 = vld [vmem:[%s17767_s21] sm:$0x3] }
0x2560   :  { %v6984_v34 = vpop.permute.xlu1 %6983 }
0x2561   :  { %v16481_v0 = vadd.f32 %v6989_v10, %v6969_v63  ;;  %v6992_v52 = vmul.f32 %v16417_v8, %v6984_v34  ;;  %v16518_v8 = vld [vmem:[%s17765_s23 + $0x68] sm:$0xff]  ;;  %v16634_v10 = vld [vmem:[%s17766_s20] sm:$0xff]  ;;  %v16651_v34 = vld [vmem:[%s17768_s26 + $0x18] sm:$0xff] }
0x2562   :  { %v6982_v47 = vpop.permute.xlu0 %6981 }
0x2563   :  { %v6991_v20 = vmul.f32 %v16421_v29, %v6982_v47  ;;  %12554 = vmatprep.mubr.msk.f32.mxu1 %vm654_vm5, %v16481_v0  ;;  %v16495_v57 = vadd.f32 %v6992_v52, %v6972_v31  ;;  %v16525_v29 = vld [vmem:[%s17765_s23 + $0x60] sm:$0xff]  ;;  %v16657_v47 = vld [vmem:[%s17768_s26 + $0x10] sm:$0xff] }
0x2564   :  { %12555 = vmatmul.mubr.msk.f32.vlgmr.msra.gmra.mxu1 %vm654_vm5, %v16483_v11  ;;  %v16672_v31 = vld [vmem:[%s17768_s26] sm:$0xff] }
0x2565   :  { %v16493_v40 = vadd.f32 %v6991_v20, %v6971_v13  ;;  %12572 = vmatpush3.msra.mxu1 %v16506_v36  ;;  %v16665_v20 = vld [vmem:[%s17768_s26 + $0x8] sm:$0xff]  ;;  %17822 = vst [vmem:[#allocation4_spill] sm:$0xff] %v16672_v31 }
0x2566   :  { %12573 = vmatprep.subr.mxu1 %v17788_v28 }
0x2567   :  { %12557 = vmatprep.mubr.msk.f32.mxu1 %vm654_vm5, %v16493_v40  ;;  %12574 = vmatpush3.msra.mxu1 %v16511_v41 }
0x2568   :  { %12558 = vmatmul.mubr.msk.f32.gmra.mxu1 %vm654_vm5, %v16495_v57  ;;  %12575 = vmatprep.subr.mxu1 %v17788_v28 }
0x2569   :  { %12603 = vmatprep.mubr.msk.f32.mxu1 %vm13673_vm6, %v17788_v28  ;;  %12576 = vmatpush3.msra.mxu1 %v16518_v8 }
0x256a   :  { %12577 = vmatprep.subr.mxu1 %v17788_v28 }
0x256b   :  { %12578 = vmatpush3.msra.mxu1 %v16525_v29 }
0x256c   :  { %12579 = vmatprep.subr.mxu1 %v17788_v28 }
0x256d   :  { %12580 = vmatpush3.msra.mxu1 %v16532_v16 }
0x256e   :  { %12581 = vmatprep.subr.mxu1 %v17788_v28 }
0x256f   :  { %12582 = vmatpush3.msra.mxu1 %v16539_v51 }
0x2570   :  { %12583 = vmatprep.subr.mxu1 %v17788_v28 }
0x2571   :  { %12584 = vmatpush3.msra.mxu1 %v16546_v3 }
0x2572   :  { %12585 = vmatprep.subr.mxu1 %v17788_v28 }
0x2573   :  { %12586 = vmatpush3.msra.mxu1 %v16553_v9 }
0x2574   :  { %12587 = vmatprep.subr.mxu1 %v17788_v28 }
0x2575   :  { %12588 = vmatpush3.msra.mxu1 %v16560_v46 }
0x2576   :  { %12589 = vmatprep.subr.mxu1 %v17788_v28 }
0x2577   :  { %12590 = vmatpush3.msra.mxu1 %v16567_v58 }
0x2578   :  { %12591 = vmatprep.subr.mxu1 %v17788_v28 }
0x2579   :  { %12592 = vmatpush3.msra.mxu1 %v16574_v60 }
0x257a   :  { %12593 = vmatprep.subr.mxu1 %v17788_v28 }
0x257b   :  { %12594 = vmatpush3.msra.mxu1 %v16581_v59 }
0x257c   :  { %12595 = vmatprep.subr.mxu1 %v17788_v28 }
0x257d   :  { %12596 = vmatpush3.msra.mxu1 %v16588_v1 }
0x257e   :  { %12597 = vmatprep.subr.mxu1 %v17788_v28 }
0x257f   :  { %12598 = vmatpush3.msra.mxu1 %v16595_v30 }
0x2580   :  { %12599 = vmatprep.subr.mxu1 %v17788_v28 }
0x2581   :  { %12600 = vmatpush3.msra.mxu1 %v16602_v44 }
0x2582   :  { %12601 = vmatprep.subr.mxu1 %v17788_v28 }
0x2583   :  { %12602 = vmatpush3.msra.mxu1 %v16609_v56 }
0x2584   :  { %12657 = vmatprep.subr.mxu1 %v16651_v34 }
0x2624   :  { %v12556_v61 = vpop.f32.mrf.mxu1 }
0x2625   :  { %v7103_v54 = vmul.f32 %v12556_v61, %v16628_v22 }
0x2626   :  { %v7079_v4 = vpop.f32.mrf.mxu1 }
0x2627   :  { %v7102_v23 = vmul.f32 %v16634_v10, %v7079_v4 }
0x2628   :  { %v12559_v6 = vpop.f32.mrf.mxu1 }
0x2629   :  { %v7105_v43 = vmul.f32 %v12559_v6, %v16617_v15 }
0x262a   :  { %v7089_v33 = vpop.f32.mrf.mxu1 }
0x262b   :  { %v7104_v63 = vmul.f32 %v16622_v37, %v7089_v33  ;;  %12561 = vmatpush3.msra.mxu0 %v7105_v43 }
0x262c   :  { %12562 = vmatprep.subr.mxu0 %v17788_v28 }
0x262d   :  { %12563 = vmatpush3.msra.mxu0 %v7104_v63 }
0x262e   :  { %12564 = vmatprep.subr.mxu0 %v17788_v28 }
0x262f   :  { %12565 = vmatpush3.msra.mxu0 %v7103_v54 }
0x2630   :  { %12566 = vmatprep.subr.mxu0 %v17788_v28 }
0x2631   :  { %12567 = vmatpush3.msra.mxu0 %v7102_v23 }
0x2632   :  { %12569 = vmatmul.mubr.msk.f32.vlgmr.msra.gmra.mxu0 %vm654_vm5, %v7106_v2  ;;  %12606 = vmatprep.subr.mxu0 %v17788_v28  ;;  %v7281_v2 = vld [vmem:[%s17769_s24] sm:$0xf] }
0x2633   :  { %12608 = vmatprep.mubr.msk.f32.mxu0 %vm13673_vm6, %v17788_v28  ;;  %12607 = vmatpush3.msk.msra.mxu0 %vm5803_vm8, %v7281_v2  ;;  %v13638_v2 = vld [vmem:[%s17770_s22 + $0x18] sm:$0xff] }
0x26f2   :  { %v7176_v52 = vpop.f32.mrf.mxu0 }
0x26f3   :  { %12604 = vmatmul.mubr.f32.vlgmr.msra.gmra.mxu1 %v7176_v52 }
0x26f4   :  { %12658 = vmatpush3.msra.mxu1 %v16651_v34  ;;  %v12570_v13 = vpop.f32.mrf.mxu0  ;;  %12665 = vmatprep.mubr.msk.f32.mxu1 %vm654_vm5, %v16481_v0 }
0x26f5   :  { %12659 = vmatprep.subr.mxu1 %v16657_v47 }
0x26f6   :  { %12660 = vmatpush3.msra.mxu1 %v16657_v47 }
0x26f7   :  { %12661 = vmatprep.subr.mxu1 %v16665_v20 }
0x26f8   :  { %12662 = vmatpush3.msra.mxu1 %v16665_v20 }
0x26f9   :  { %12663 = vmatprep.subr.mxu1 %v16672_v31 }
0x26fa   :  { %12664 = vmatpush3.msra.mxu1 %v16672_v31 }
0x26fb   :  { %12666 = vmatmul.mubr.msk.f32.vlgmr.msra.gmra.mxu1 %vm654_vm5, %v16483_v11 }
0x26fc   :  { %12668 = vmatprep.mubr.msk.f32.mxu1 %vm654_vm5, %v16493_v40 }
0x26ff   :  { %12669 = vmatmul.mubr.msk.f32.gmra.mxu1 %vm654_vm5, %v16495_v57 }
0x27b3   :  { %v7262_v61 = vpop.f32.mrf.mxu1 }
0x27b4   :  { %v7266_v4 = vsel %vm5782_vm7, %v7262_v61, -inf }
0x27b5   :  { %7267 = vmax.xlane.f32.xlu0 %v7266_v4  ;;  %v12605_v6 = vpop.f32.mrf.mxu1  ;;  %v13633_v4 = vld [vmem:[%s17770_s22] sm:$0xff] }
0x27cb   :  { %7907 = vrot.lane.b32.xlu0 %v16325_v12, %s13672_s3 }
0x27cf   :  { %7911 = vrot.lane.b32.xlu0 %v16337_v32, %s13672_s3 }
0x283e   :  { %v7268_v43 = vpop.xlane.xlu0 %7267 }
0x283f   :  { %v7269_v33 = vsub.f32 %v7262_v61, %v7268_v43 }
0x2841   :  { %v7270_v63 = vmul.f32 1.442695, %v7269_v33  ;;  %v13634_v33 = vld [vmem:[%s17770_s22 + $0x8] sm:$0xff] }
0x2843   :  { %13475 = vpow2.f32 %v7270_v63  ;;  %v13635_v63 = vld [vmem:[%s17771_s25 + $0x78] sm:$0xff] }
0x2850   :  { %v13476_v54 = vpop.eup %13475 }
0x2851   :  { %v7272_v23 = vsel %vm5782_vm7, %v13476_v54, 0.0 }
0x2852   :  { %7273 = vadd.xlane.f32.xlu1 %v7272_v23  ;;  %v13637_v23 = vld [vmem:[%s17771_s25 + $0x70] sm:$0xff] }
0x2863   :  { %7909 = vrot.lane.b32.xlu1 %v16327_v7, %s13672_s3 }
0x2867   :  { %7913 = vrot.lane.b32.xlu1 %v16339_v27, %s13672_s3 }
0x28db   :  { %v7274_v52 = vpop.xlane.xlu1 %7273 }
0x28dc   :  { %13477 = vrcp.f32 %v7274_v52  ;;  %v13639_v52 = vld [vmem:[%s17771_s25 + $0x68] sm:$0xff] }
0x28e9   :  { %v13478_v13 = vpop.eup %13477 }
0x28ea   :  { %v7276_v61 = vmul.f32 %v13478_v13, %v13476_v54  ;;  %v13636_v54 = vld [vmem:[%s17770_s22 + $0x10] sm:$0xff]  ;;  %v13640_v13 = vld [vmem:[%s17771_s25 + $0x60] sm:$0xff] }
0x28ec   :  { %12609 = vmatmul.mubr.msk.f32.vlgmr.msra.gmra.mxu0 %vm5799_vm9, %v7276_v61  ;;  %v13641_v61 = vld [vmem:[%s17771_s25 + $0x58] sm:$0xff] }
0x28ed   :  { %12613 = vmatprep.mubr.msk.f32.mxu0 %vm432_vm3, %v13633_v4  ;;  %v13642_v4 = vld [vmem:[%s17771_s25 + $0x50] sm:$0xff] }
0x29ac   :  { %v7354_v6 = vpop.f32.mrf.mxu0 }
0x29ad   :  { %12611 = vmatprep.subr.msk.mxu0 %vm481_vm2, %v7354_v6 }
0x29ae   :  { %v12610_v43 = vpop.f32.mrf.mxu0  ;;  %12612 = vmatpush3.msk.msra.mxu0 %vm481_vm2, %v7354_v6  ;;  %v13643_v6 = vld [vmem:[%s17771_s25 + $0x48] sm:$0xff] }
0x29af   :  { %12614 = vmatmul.mubr.msk.f32.vlgmr.msra.gmra.mxu0 %vm432_vm3, %v13634_v33  ;;  %12619 = vmatprep.subr.mxu0 %v13635_v63  ;;  %v13644_v43 = vld [vmem:[%s17771_s25 + $0x40] sm:$0xff]  ;;  %v13645_v33 = vld [vmem:[%s17771_s25 + $0x38] sm:$0xff] }
0x29b0   :  { %12616 = vmatprep.mubr.msk.f32.mxu0 %vm432_vm3, %v13636_v54  ;;  %12620 = vmatpush3.msra.mxu0 %v13635_v63  ;;  %v13646_v63 = vld [vmem:[%s17771_s25 + $0x30] sm:$0xff]  ;;  %v13647_v54 = vld [vmem:[%s17771_s25 + $0x28] sm:$0xff] }
0x29b1   :  { %12621 = vmatprep.subr.mxu0 %v13637_v23 }
0x29b2   :  { %12622 = vmatpush3.msra.mxu0 %v13637_v23  ;;  %v13648_v23 = vld [vmem:[%s17771_s25 + $0x20] sm:$0xff] }
0x29b3   :  { %12617 = vmatmul.mubr.msk.f32.gmra.mxu0 %vm432_vm3, %v13638_v2  ;;  %12623 = vmatprep.subr.mxu0 %v13639_v52  ;;  %v13649_v2 = vld [vmem:[%s17771_s25 + $0x18] sm:$0xff] }
0x29b4   :  { %12624 = vmatpush3.msra.mxu0 %v13639_v52  ;;  %v13650_v52 = vld [vmem:[%s17771_s25 + $0x10] sm:$0xff] }
0x29b5   :  { %12625 = vmatprep.subr.mxu0 %v13640_v13 }
0x29b6   :  { %12626 = vmatpush3.msra.mxu0 %v13640_v13  ;;  %v13651_v13 = vld [vmem:[%s17771_s25 + $0x8] sm:$0xff] }
0x29b7   :  { %12627 = vmatprep.subr.mxu0 %v13641_v61 }
0x29b8   :  { %12628 = vmatpush3.msra.mxu0 %v13641_v61  ;;  %v13652_v61 = vld [vmem:[%s17771_s25] sm:$0xff] }
0x29b9   :  { %12629 = vmatprep.subr.mxu0 %v13642_v4 }
0x29ba   :  { %12630 = vmatpush3.msra.mxu0 %v13642_v4  ;;  %v13653_v4 = vld [vmem:[%s17821_s29 + $0x18] sm:$0xff] }
0x29bb   :  { %12631 = vmatprep.subr.mxu0 %v13643_v6 }
0x29bc   :  { %12632 = vmatpush3.msra.mxu0 %v13643_v6 }
0x29bd   :  { %12633 = vmatprep.subr.mxu0 %v13644_v43 }
0x29be   :  { %12634 = vmatpush3.msra.mxu0 %v13644_v43 }
0x29bf   :  { %12635 = vmatprep.subr.mxu0 %v13645_v33 }
0x29c0   :  { %12636 = vmatpush3.msra.mxu0 %v13645_v33 }
0x29c1   :  { %12637 = vmatprep.subr.mxu0 %v13646_v63 }
0x29c2   :  { %12638 = vmatpush3.msra.mxu0 %v13646_v63 }
0x29c3   :  { %12639 = vmatprep.subr.mxu0 %v13647_v54 }
0x29c4   :  { %12640 = vmatpush3.msra.mxu0 %v13647_v54 }
0x29c5   :  { %12641 = vmatprep.subr.mxu0 %v13648_v23 }
0x29c6   :  { %12642 = vmatpush3.msra.mxu0 %v13648_v23 }
0x29c7   :  { %12643 = vmatprep.subr.mxu0 %v13649_v2 }
0x29c8   :  { %12644 = vmatpush3.msra.mxu0 %v13649_v2 }
0x29c9   :  { %12645 = vmatprep.subr.mxu0 %v13650_v52 }
0x29ca   :  { %12646 = vmatpush3.msra.mxu0 %v13650_v52 }
0x29cb   :  { %12647 = vmatprep.subr.mxu0 %v13651_v13 }
0x29cc   :  { %12648 = vmatpush3.msra.mxu0 %v13651_v13  ;;  %v13654_v13 = vld [vmem:[%s17821_s29 + $0x10] sm:$0xff] }
0x29cd   :  { %12649 = vmatprep.subr.mxu0 %v13652_v61 }
0x29ce   :  { %12650 = vmatpush3.msra.mxu0 %v13652_v61  ;;  %v13655_v61 = vld [vmem:[%s17821_s29 + $0x8] sm:$0xff] }
0x29cf   :  { %12679 = vmatprep.subr.mxu0 %v13653_v4 }
0x2a6f   :  { %v12615_v6 = vpop.f32.mrf.mxu0 }
0x2a70   :  { %v7459_v63 = vmul.f32 %v12615_v6, %v16628_v22 }
0x2a71   :  { %v7439_v43 = vpop.f32.mrf.mxu0 }
0x2a72   :  { %v7458_v33 = vmul.f32 %v7439_v43, %v16634_v10 }
0x2a73   :  { %v12618_v54 = vpop.f32.mrf.mxu0 }
0x2a74   :  { %12651 = vmatprep.mubr.f32.mxu0 %v7458_v33  ;;  %v7461_v52 = vmul.f32 %v12618_v54, %v16617_v15 }
0x2a75   :  { %v7449_v23 = vpop.f32.mrf.mxu0  ;;  %12652 = vmatmul.mubr.f32.vlgmr.msra.gmra.mxu0 %v7459_v63 }
0x2a76   :  { %v7460_v2 = vmul.f32 %v7449_v23, %v16622_v37  ;;  %12680 = vmatpush3.msra.mxu0 %v13653_v4  ;;  %v13656_v4 = vld [vmem:[%s17821_s29] sm:$0xff] }
0x2a77   :  { %12681 = vmatprep.subr.mxu0 %v13654_v13 }
0x2a78   :  { %12654 = vmatprep.mubr.f32.mxu0 %v7460_v2  ;;  %12682 = vmatpush3.msra.mxu0 %v13654_v13 }
0x2a79   :  { %12655 = vmatmul.mubr.f32.gmra.mxu0 %v7461_v52  ;;  %12683 = vmatprep.subr.mxu0 %v13655_v61  ;;  %v13658_v52 = vld [vmem:[%s17773_s27] sm:$0xff] }
0x2a7a   :  { %12684 = vmatpush3.msra.mxu0 %v13655_v61  ;;  %12687 = vmatprep.mubr.msk.f32.mxu0 %vm654_vm5, %v16325_v12 }
0x2a7b   :  { %12685 = vmatprep.subr.mxu0 %v13656_v4 }
0x2a7c   :  { %12686 = vmatpush3.msra.mxu0 %v13656_v4 }
0x2a7d   :  { %12688 = vmatmul.mubr.msk.f32.vlgmr.msra.gmra.mxu0 %vm654_vm5, %v16327_v7  ;;  %12707 = vmatprep.subr.mxu0 %v16276_v39 }
0x2a7e   :  { %12690 = vmatprep.mubr.msk.f32.mxu0 %vm654_vm5, %v16337_v32  ;;  %12708 = vmatpush3.msra.mxu0 %v16276_v39  ;;  %v7689_v39 = vld [vmem:[%s17772_s12] sm:$0xf] }
0x2a7f   :  { %12709 = vmatprep.subr.mxu0 %v16286_v17  ;;  %12671 = vmatprep.subr.msk.mxu1 %vm5803_vm8, %v7689_v39 }
0x2a80   :  { %12710 = vmatpush3.msra.mxu0 %v16286_v17  ;;  %12672 = vmatpush3.msk.msra.mxu1 %vm5803_vm8, %v7689_v39  ;;  %v12667_v17 = vpop.f32.mrf.mxu1 }
0x2a81   :  { %12691 = vmatmul.mubr.msk.f32.gmra.mxu0 %vm654_vm5, %v16339_v27  ;;  %12711 = vmatprep.subr.mxu0 %v16294_v45 }
0x2a82   :  { %12712 = vmatpush3.msra.mxu0 %v16294_v45  ;;  %12693 = vmatprep.subr.mxu1 %v16192_v21  ;;  %v7633_v6 = vpop.f32.mrf.mxu1 }
0x2a83   :  { %12713 = vmatprep.subr.mxu0 %v16301_v5 }
0x2a84   :  { %12714 = vmatpush3.msra.mxu0 %v16301_v5  ;;  %v12670_v33 = vpop.f32.mrf.mxu1  ;;  %v13657_v5 = vld [vmem:[%s17773_s27 + $0x8] sm:$0xff] }
0x2a85   :  { %12735 = vmatprep.subr.mxu0 %v16348_v25 }
0x2a86   :  { %v7643_v4 = vpop.f32.mrf.mxu1 }
0x2b35   :  { %v12653_v43 = vpop.f32.mrf.mxu0 }
0x2b36   :  { %v7639_v45 = vadd.f32 %v12667_v17, %v12653_v43 }
0x2b37   :  { %v7544_v63 = vpop.f32.mrf.mxu0 }
0x2b38   :  { %v7634_v54 = vadd.f32 %v7633_v6, %v7544_v63  ;;  %v16807_v23 = vadd.f32 %v13657_v5, %v7639_v45  ;;  %v13659_v45 = vld [vmem:[%s17773_s27 + $0x18] sm:$0xff]  ;;  %v13660_v5 = vld [vmem:[%s17773_s27 + $0x10] sm:$0xff] }
0x2b39   :  { %v12656_v2 = vpop.f32.mrf.mxu0 }
0x2b3a   :  { %17823 = vst [vmem:[#allocation5_spill] sm:$0xff] %v16807_v23  ;;  %v16812_v13 = vadd.f32 %v13658_v52, %v7634_v54  ;;  %v7649_v61 = vadd.f32 %v12670_v33, %v12656_v2  ;;  %v17785_v6 = vmax.f32 %v16807_v23, 0.0  ;;  %v13661_v52 = vld [vmem:[%s17759_s14 + $0x10] sm:$0xff] }
0x2b3b   :  { %v7554_v39 = vpop.f32.mrf.mxu0 }
0x2b3c   :  { %17824 = vst [vmem:[#allocation6_spill] sm:$0xff] %v16812_v13  ;;  %v17787_v17 = vmax.f32 %v16812_v13, 0.0  ;;  %v7644_v43 = vadd.f32 %v7643_v4, %v7554_v39  ;;  %v16819_v63 = vadd.f32 %v13659_v45, %v7649_v61  ;;  %v7686_v39 = vld [vmem:[#allocation3 + $0x48] sm:$0xff] }
0x2b3d   :  { %v12689_v61 = vpop.f32.mrf.mxu0 }
0x2b3e   :  { %17825 = vst [vmem:[#allocation7_spill] sm:$0xff] %v16819_v63  ;;  %v16824_v54 = vadd.f32 %v13660_v5, %v7644_v43  ;;  %12673 = vmatprep.mubr.msk.f32.mxu1 %vm5799_vm9, %v17787_v17  ;;  %v17784_v2 = vmax.f32 %v16819_v63, 0.0  ;;  %v7685_v5 = vld [vmem:[#allocation3 + $0x40] sm:$0xff] }
0x2b3f   :  { %12674 = vmatmul.mubr.msk.f32.vlgmr.msra.gmra.mxu1 %vm5799_vm9, %v17785_v6  ;;  %v7860_v4 = vpop.f32.mrf.mxu0 }
0x2b40   :  { %17826 = vst [vmem:[#allocation8_spill] sm:$0xff] %v16824_v54  ;;  %v17786_v33 = vmax.f32 %v16824_v54, 0.0  ;;  %12694 = vmatpush3.msra.mxu1 %v16192_v21  ;;  %v13662_v21 = vld [vmem:[%s17759_s14 + $0x8] sm:$0xff] }
0x2b41   :  { %12695 = vmatprep.subr.mxu1 %v13661_v52 }
0x2b42   :  { %12676 = vmatprep.mubr.msk.f32.mxu1 %vm5799_vm9, %v17786_v33  ;;  %12696 = vmatpush3.msra.mxu1 %v13661_v52  ;;  %v12692_v33 = vpop.f32.mrf.mxu0 }
0x2b43   :  { %12677 = vmatmul.mubr.msk.f32.gmra.mxu1 %vm5799_vm9, %v17784_v2  ;;  %12697 = vmatprep.subr.mxu1 %v13662_v21 }
0x2b44   :  { %12698 = vmatpush3.msra.mxu1 %v13662_v21  ;;  %v7688_v21 = vld [vmem:[#allocation3 + $0x58] sm:$0xff]  ;;  %v7870_v13 = vpop.f32.mrf.mxu0 }
0x2b45   :  { %12699 = vmatprep.subr.mxu1 %v16217_v18 }
0x2b46   :  { %12700 = vmatpush3.msra.mxu1 %v16217_v18 }
0x2b47   :  { %12721 = vmatprep.subr.mxu1 %v16224_v42  ;;  %v7687_v42 = vld [vmem:[#allocation3 + $0x50] sm:$0xff] }
0x2bff   :  { %v12675_v43 = vpop.f32.mrf.mxu1 }
0x2c00   :  { %v16850_v45 = vadd.f32 %v12675_v43, %v7686_v39 }
0x2c01   :  { %v7767_v52 = vpop.f32.mrf.mxu1 }
0x2c02   :  { %v7880_v2 = vadd.f32 %v12689_v61, %v16850_v45  ;;  %v16853_v6 = vadd.f32 %v7767_v52, %v7685_v5 }
0x2c03   :  { %v12678_v17 = vpop.f32.mrf.mxu1 }
0x2c04   :  { %v10984_v28 = vmul.f32 -1.442695, %v7880_v2  ;;  %v7879_v18 = vadd.f32 %v7860_v4, %v16853_v6  ;;  %v16856_v63 = vadd.f32 %v12678_v17, %v7688_v21 }
0x2c05   :  { %v7777_v23 = vpop.f32.mrf.mxu1 }
0x2c06   :  { %13479 = vpow2.f32 %v10984_v28  ;;  %v10983_v54 = vmul.f32 -1.442695, %v7879_v18  ;;  %v7882_v39 = vadd.f32 %v12692_v33, %v16856_v63  ;;  %v16859_v43 = vadd.f32 %v7777_v23, %v7687_v42  ;;  %v7910_v33 = vpop.permute.xlu1 %7909  ;;  %v7908_v42 = vpop.permute.xlu0 %7907 }
0x2c08   :  { %13481 = vpow2.f32 %v10983_v54  ;;  %v10986_v61 = vmul.f32 -1.442695, %v7882_v39  ;;  %v7881_v5 = vadd.f32 %v7870_v13, %v16859_v43 }
0x2c0a   :  { %13483 = vpow2.f32 %v10986_v61  ;;  %v10985_v52 = vmul.f32 -1.442695, %v7881_v5 }
0x2c0c   :  { %13485 = vpow2.f32 %v10985_v52  ;;  %v7914_v52 = vpop.permute.xlu1 %7913 }
0x2c13   :  { %v13480_v2 = vpop.eup %13479 }
0x2c14   :  { %v7896_v4 = vadd.f32 1.0, %v13480_v2 }
0x2c15   :  { %v13482_v17 = vpop.eup %13481 }
0x2c16   :  { %13487 = vrcp.f32 %v7896_v4  ;;  %v7895_v21 = vadd.f32 1.0, %v13482_v17  ;;  %v7912_v4 = vpop.permute.xlu0 %7911 }
0x2c17   :  { %v13484_v31 = vpop.eup %13483 }
0x2c18   :  { %13489 = vrcp.f32 %v7895_v21  ;;  %v7898_v28 = vadd.f32 1.0, %v13484_v31 }
0x2c19   :  { %v13486_v18 = vpop.eup %13485 }
0x2c1a   :  { %13491 = vrcp.f32 %v7898_v28  ;;  %v7897_v23 = vadd.f32 1.0, %v13486_v18  ;;  %v13663_v18 = vld [vmem:[%s17760_s17 + $0x18] sm:$0xff] }
0x2c1c   :  { %13493 = vrcp.f32 %v7897_v23  ;;  %v16886_v23 = vld [vmem:[%s17760_s17 + $0x8] sm:$0xff] }
0x2c23   :  { %v16862_v54 = vpop.eup %13487 }
0x2c24   :  { %v7920_v13 = vmul.f32 %v16862_v54, %v7910_v33 }
0x2c25   :  { %v16865_v39 = vpop.eup %13489 }
0x2c26   :  { %7933 = vrot.lane.b32.xlu1 %v7920_v13, %s13670_s10  ;;  %v7919_v61 = vmul.f32 %v16865_v39, %v7908_v42  ;;  %v13664_v13 = vld [vmem:[%s17760_s17 + $0x10] sm:$0xff] }
0x2c27   :  { %v16869_v5 = vpop.eup %13491 }
0x2c28   :  { %7931 = vrot.lane.b32.xlu0 %v7919_v61, %s13670_s10  ;;  %v7922_v31 = vmul.f32 %v16869_v5, %v7914_v52  ;;  %v16896_v61 = vld [vmem:[%s17760_s17] sm:$0xff] }
0x2c29   :  { %v16873_v2 = vpop.eup %13493 }
0x2c2a   :  { %7937 = vrot.lane.b32.xlu1 %v7922_v31, %s13670_s10  ;;  %v7921_v17 = vmul.f32 %v16873_v2, %v7912_v4 }
0x2c2c   :  { %7935 = vrot.lane.b32.xlu0 %v7921_v17, %s13670_s10 }
0x2c98   :  { %v7934_v21 = vpop.permute.xlu1 %7933 }
0x2c9a   :  { %v7932_v28 = vpop.permute.xlu0 %7931 }
0x2c9b   :  { %12701 = vmatprep.mubr.msk.f32.mxu1 %vm654_vm5, %v7932_v28 }
0x2c9c   :  { %12702 = vmatmul.mubr.msk.f32.vlgmr.msra.gmra.mxu1 %vm654_vm5, %v7934_v21  ;;  %v7938_v42 = vpop.permute.xlu1 %7937 }
0x2c9d   :  { %12722 = vmatpush3.msra.mxu1 %v13663_v18 }
0x2c9e   :  { %12723 = vmatprep.subr.mxu1 %v16247_v38  ;;  %v7936_v33 = vpop.permute.xlu0 %7935  ;;  %v17827_v38 = vmov 0.0  }
0x2c9f   :  { %12704 = vmatprep.mubr.msk.f32.mxu1 %vm654_vm5, %v7936_v33  ;;  %12724 = vmatpush3.msra.mxu1 %v13664_v13 }
0x2ca0   :  { %12705 = vmatmul.mubr.msk.f32.gmra.mxu1 %vm654_vm5, %v7938_v42  ;;  %12725 = vmatprep.subr.mxu1 %v16886_v23 }
0x2ca1   :  { %12726 = vmatpush3.msra.mxu1 %v16886_v23  ;;  %12729 = vmatprep.mubr.msk.f32.mxu1 %vm654_vm5, %v16481_v0 }
0x2ca2   :  { %12727 = vmatprep.subr.mxu1 %v16896_v61 }
0x2ca3   :  { %12728 = vmatpush3.msra.mxu1 %v16896_v61 }
0x2ca4   :  { %12730 = vmatmul.mubr.msk.f32.vlgmr.msra.gmra.mxu1 %vm654_vm5, %v16483_v11  ;;  %12749 = vmatprep.subr.mxu1 %v16439_v14 }
0x2ca5   :  { %12732 = vmatprep.mubr.msk.f32.mxu1 %vm654_vm5, %v16493_v40  ;;  %12750 = vmatpush3.msra.mxu1 %v16439_v14 }
0x2ca6   :  { %12751 = vmatprep.subr.mxu1 %v16449_v48 }
0x2ca7   :  { %12752 = vmatpush3.msra.mxu1 %v16449_v48 }
0x2ca8   :  { %12733 = vmatmul.mubr.msk.f32.gmra.mxu1 %vm654_vm5, %v16495_v57  ;;  %12753 = vmatprep.subr.mxu1 %v16457_v26 }
0x2ca9   :  { %12754 = vmatpush3.msra.mxu1 %v16457_v26 }
0x2caa   :  { %12755 = vmatprep.subr.mxu1 %v16464_v55 }
0x2cab   :  { %12756 = vmatpush3.msra.mxu1 %v16464_v55 }
0x2cac   :  { %12774 = vmatprep.subr.mxu1 %v17827_v38 }
0x2d5c   :  { %v12703_v52 = vpop.f32.mrf.mxu1 }
0x2d5d   :  { %8038 = vrot.lane.b32.xlu1 %v12703_v52, %s13671_s8 }
0x2d5e   :  { %v8013_v14 = vpop.f32.mrf.mxu1 }
0x2d5f   :  { %8036 = vrot.lane.b32.xlu0 %v8013_v14, %s13671_s8 }
0x2d60   :  { %v12706_v48 = vpop.f32.mrf.mxu1 }
0x2d61   :  { %8042 = vrot.lane.b32.xlu1 %v12706_v48, %s13671_s8 }
0x2d62   :  { %v8023_v31 = vpop.f32.mrf.mxu1 }
0x2d63   :  { %8040 = vrot.lane.b32.xlu0 %v8023_v31, %s13671_s8 }
0x2dcf   :  { %v8039_v4 = vpop.permute.xlu1 %8038 }
0x2dd0   :  { %v8049_v26 = vadd.f32 %v8039_v4, %v16850_v45 }
0x2dd1   :  { %v8037_v17 = vpop.permute.xlu0 %8036 }
0x2dd2   :  { %13495 = vtanh.f32 %v8049_v26  ;;  %v8048_v55 = vadd.f32 %v8037_v17, %v16853_v6  ;;  %v8056_v6 = vsub.f32 1.0, %v16865_v39  ;;  %v8058_v26 = vsub.f32 1.0, %v16873_v2 }
0x2dd3   :  { %v8043_v21 = vpop.permute.xlu1 %8042 }
0x2dd4   :  { %13497 = vtanh.f32 %v8048_v55  ;;  %v8051_v28 = vadd.f32 %v8043_v21, %v16856_v63  ;;  %v8057_v63 = vsub.f32 1.0, %v16862_v54  ;;  %v8060_v31 = vmul.f32 %v8056_v6, %v16325_v12 }
0x2dd5   :  { %v8041_v18 = vpop.permute.xlu0 %8040  ;;  %v8059_v55 = vsub.f32 1.0, %v16869_v5 }
0x2dd6   :  { %13499 = vtanh.f32 %v8051_v28  ;;  %v8050_v33 = vadd.f32 %v8041_v18, %v16859_v43  ;;  %v8061_v17 = vmul.f32 %v8057_v63, %v16327_v7 }
0x2dd8   :  { %13501 = vtanh.f32 %v8050_v33 }
0x2ddf   :  { %v13496_v42 = vpop.eup %13495 }
0x2de0   :  { %8070 = vrot.lane.b32.xlu1 %v13496_v42, %s13671_s8 }
0x2de1   :  { %v13498_v13 = vpop.eup %13497 }
0x2de2   :  { %8068 = vrot.lane.b32.xlu0 %v13498_v13, %s13671_s8 }
0x2de3   :  { %v13500_v45 = vpop.eup %13499 }
0x2de4   :  { %8074 = vrot.lane.b32.xlu1 %v13500_v45, %s13671_s8 }
0x2de5   :  { %v13502_v52 = vpop.eup %13501 }
0x2de6   :  { %8072 = vrot.lane.b32.xlu0 %v13502_v52, %s13671_s8 }
0x2de8   :  { %8312 = vrot.lane.b32.xlu1 %v16483_v11, %s13672_s3 }
0x2dea   :  { %8310 = vrot.lane.b32.xlu0 %v16481_v0, %s13672_s3 }
0x2dec   :  { %8316 = vrot.lane.b32.xlu1 %v16495_v57, %s13672_s3 }
0x2dee   :  { %8314 = vrot.lane.b32.xlu0 %v16493_v40, %s13672_s3 }
0x2e52   :  { %v8071_v43 = vpop.permute.xlu1 %8070 }
0x2e53   :  { %v8081_v14 = vmul.f32 %v16862_v54, %v8071_v43  ;;  %v8062_v54 = vmul.f32 %v8058_v26, %v16337_v32  ;;  %v12731_v32 = vpop.f32.mrf.mxu1 }
0x2e54   :  { %v8069_v48 = vpop.permute.xlu0 %8068 }
0x2e55   :  { %v8080_v4 = vmul.f32 %v16865_v39, %v8069_v48  ;;  %v16950_v18 = vadd.f32 %v8081_v14, %v8061_v17  ;;  %v8063_v39 = vmul.f32 %v8059_v55, %v16339_v27  ;;  %v8263_v27 = vpop.f32.mrf.mxu1 }
0x2e56   :  { %v8075_v21 = vpop.permute.xlu1 %8074 }
0x2e57   :  { %v16948_v28 = vadd.f32 %v8080_v4, %v8060_v31  ;;  %v8083_v33 = vmul.f32 %v16869_v5, %v8075_v21  ;;  %v12734_v52 = vpop.f32.mrf.mxu1 }
0x2e58   :  { %v8073_v42 = vpop.permute.xlu0 %8072 }
0x2e59   :  { %v8082_v12 = vmul.f32 %v16873_v2, %v8073_v42  ;;  %12715 = vmatprep.mubr.msk.f32.mxu0 %vm654_vm5, %v16948_v28  ;;  %v16963_v13 = vadd.f32 %v8083_v33, %v8063_v39  ;;  %v8273_v31 = vpop.f32.mrf.mxu1 }
0x2e5a   :  { %12716 = vmatmul.mubr.msk.f32.vlgmr.msra.gmra.mxu0 %vm654_vm5, %v16950_v18 }
0x2e5b   :  { %v16960_v7 = vadd.f32 %v8082_v12, %v8062_v54  ;;  %12736 = vmatpush3.msra.mxu0 %v16348_v25  ;;  %v8313_v12 = vpop.permute.xlu1 %8312 }
0x2e5c   :  { %12737 = vmatprep.subr.mxu0 %v16353_v62 }
0x2e5d   :  { %12718 = vmatprep.mubr.msk.f32.mxu0 %vm654_vm5, %v16960_v7  ;;  %12738 = vmatpush3.msra.mxu0 %v16353_v62 }
0x2e5e   :  { %12719 = vmatmul.mubr.msk.f32.gmra.mxu0 %vm654_vm5, %v16963_v13  ;;  %12739 = vmatprep.subr.mxu0 %v16360_v19 }
0x2e5f   :  { %12740 = vmatpush3.msra.mxu0 %v16360_v19 }
0x2e60   :  { %12741 = vmatprep.subr.mxu0 %v16405_v35 }
0x2e61   :  { %12742 = vmatpush3.msra.mxu0 %v16405_v35 }
0x2e62   :  { %12763 = vmatprep.subr.mxu0 %v17827_v38 }
0x2f1a   :  { %v12717_v25 = vpop.f32.mrf.mxu0 }
0x2f1b   :  { %v16977_v5 = vadd.f32 %v12717_v25, %v16369_v53 }
0x2f1c   :  { %v8174_v62 = vpop.f32.mrf.mxu0 }
0x2f1d   :  { %v8283_v2 = vadd.f32 %v12731_v32, %v16977_v5  ;;  %v16981_v45 = vadd.f32 %v8174_v62, %v16374_v49  ;;  %v8311_v32 = vpop.permute.xlu0 %8310 }
0x2f1e   :  { %v12720_v19 = vpop.f32.mrf.mxu0 }
0x2f1f   :  { %v11000_v6 = vmul.f32 -1.442695, %v8283_v2  ;;  %v8282_v63 = vadd.f32 %v8263_v27, %v16981_v45  ;;  %v16985_v35 = vadd.f32 %v12720_v19, %v16382_v24 }
0x2f20   :  { %v8184_v43 = vpop.f32.mrf.mxu0 }
0x2f21   :  { %13503 = vpow2.f32 %v11000_v6  ;;  %v10999_v14 = vmul.f32 -1.442695, %v8282_v63  ;;  %v8285_v53 = vadd.f32 %v12734_v52, %v16985_v35  ;;  %v16989_v48 = vadd.f32 %v8184_v43, %v16391_v50  ;;  %v8317_v52 = vpop.permute.xlu1 %8316  ;;  %v8315_v63 = vpop.permute.xlu0 %8314 }
0x2f23   :  { %13505 = vpow2.f32 %v10999_v14  ;;  %v11002_v49 = vmul.f32 -1.442695, %v8285_v53  ;;  %v8284_v4 = vadd.f32 %v8273_v31, %v16989_v48 }
0x2f25   :  { %13507 = vpow2.f32 %v11002_v49  ;;  %v11001_v26 = vmul.f32 -1.442695, %v8284_v4 }
0x2f27   :  { %13509 = vpow2.f32 %v11001_v26 }
0x2f2e   :  { %v13504_v17 = vpop.eup %13503 }
0x2f2f   :  { %v8299_v55 = vadd.f32 1.0, %v13504_v17 }
0x2f30   :  { %v13506_v24 = vpop.eup %13505 }
0x2f31   :  { %13511 = vrcp.f32 %v8299_v55  ;;  %v8298_v21 = vadd.f32 1.0, %v13506_v24 }
0x2f32   :  { %v13508_v33 = vpop.eup %13507 }
0x2f33   :  { %13513 = vrcp.f32 %v8298_v21  ;;  %v8301_v42 = vadd.f32 1.0, %v13508_v33 }
0x2f34   :  { %v13510_v54 = vpop.eup %13509 }
0x2f35   :  { %13515 = vrcp.f32 %v8301_v42  ;;  %v8300_v50 = vadd.f32 1.0, %v13510_v54 }
0x2f37   :  { %13517 = vrcp.f32 %v8300_v50 }
0x2f3e   :  { %v13512_v39 = vpop.eup %13511 }
0x2f3f   :  { %v8323_v27 = vmul.f32 %v13512_v39, %v8313_v12 }
0x2f40   :  { %v13514_v25 = vpop.eup %13513 }
0x2f41   :  { %8336 = vrot.lane.b32.xlu1 %v8323_v27, %s13670_s10  ;;  %v8322_v62 = vmul.f32 %v13514_v25, %v8311_v32 }
0x2f42   :  { %v16993_v2 = vpop.eup %13515 }
0x2f43   :  { %8334 = vrot.lane.b32.xlu0 %v8322_v62, %s13670_s10  ;;  %v8325_v19 = vmul.f32 %v16993_v2, %v8317_v52 }
0x2f44   :  { %v13518_v6 = vpop.eup %13517 }
0x2f45   :  { %8340 = vrot.lane.b32.xlu1 %v8325_v19, %s13670_s10  ;;  %v8324_v43 = vmul.f32 %v13518_v6, %v8315_v63  ;;  %v8460_v19 = vsub.f32 1.0, %v13512_v39 }
0x2f47   :  { %8338 = vrot.lane.b32.xlu0 %v8324_v43, %s13670_s10 }
0x2fb3   :  { %v8337_v14 = vpop.permute.xlu1 %8336 }
0x2fb5   :  { %v8335_v53 = vpop.permute.xlu0 %8334 }
0x2fb6   :  { %12743 = vmatprep.mubr.msk.f32.mxu0 %vm654_vm5, %v8335_v53  ;;  %v8461_v53 = vsub.f32 1.0, %v13518_v6 }
0x2fb7   :  { %12744 = vmatmul.mubr.msk.f32.vlgmr.msra.gmra.mxu0 %vm654_vm5, %v8337_v14  ;;  %v8341_v49 = vpop.permute.xlu1 %8340 }
0x2fb9   :  { %v8339_v31 = vpop.permute.xlu0 %8338 }
0x2fba   :  { %12746 = vmatprep.mubr.msk.f32.mxu0 %vm654_vm5, %v8339_v31  ;;  %v8464_v31 = vmul.f32 %v8460_v19, %v16483_v11  ;;  %v8963_v19 = vld [vmem:[%s17771_s25 + $0x38] sm:$0xff] }
0x2fbb   :  { %12747 = vmatmul.mubr.msk.f32.gmra.mxu0 %vm654_vm5, %v8341_v49  ;;  %v8462_v49 = vsub.f32 1.0, %v16993_v2 }
0x2fbc   :  { %12771 = vmatprep.mubr.msk.f32.mxu0 %vm13673_vm6, %v17827_v38 }
0x3077   :  { %v12745_v4 = vpop.f32.mrf.mxu0 }
0x3078   :  { %8441 = vrot.lane.b32.xlu1 %v12745_v4, %s13671_s8 }
0x3079   :  { %v8416_v26 = vpop.f32.mrf.mxu0 }
0x307a   :  { %8439 = vrot.lane.b32.xlu0 %v8416_v26, %s13671_s8 }
0x307b   :  { %v12748_v17 = vpop.f32.mrf.mxu0 }
0x307c   :  { %8445 = vrot.lane.b32.xlu1 %v12748_v17, %s13671_s8 }
0x307d   :  { %v8426_v55 = vpop.f32.mrf.mxu0 }
0x307e   :  { %8443 = vrot.lane.b32.xlu0 %v8426_v55, %s13671_s8 }
0x30ea   :  { %v8442_v24 = vpop.permute.xlu1 %8441 }
0x30eb   :  { %v8452_v21 = vadd.f32 %v8442_v24, %v16977_v5 }
0x30ec   :  { %v8440_v33 = vpop.permute.xlu0 %8439 }
0x30ed   :  { %13519 = vtanh.f32 %v8452_v21  ;;  %v8451_v42 = vadd.f32 %v8440_v33, %v16981_v45  ;;  %v8459_v45 = vsub.f32 1.0, %v13514_v25  ;;  %v8465_v21 = vmul.f32 %v8461_v53, %v16493_v40  ;;  %v8971_v33 = vld [vmem:[%s17771_s25 + $0x78] sm:$0xff]  ;;  %v8957_v53 = vld [vmem:[%s17771_s25 + $0x8] sm:$0xff] }
0x30ee   :  { %v8446_v54 = vpop.permute.xlu1 %8445 }
0x30ef   :  { %13521 = vtanh.f32 %v8451_v42  ;;  %v8454_v50 = vadd.f32 %v8446_v54, %v16985_v35  ;;  %v8773_v42 = vld [vmem:[%s17770_s22 + $0x10] sm:$0xff] }
0x30f0   :  { %v8444_v12 = vpop.permute.xlu0 %8443 }
0x30f1   :  { %13523 = vtanh.f32 %v8454_v50  ;;  %v8453_v32 = vadd.f32 %v8444_v12, %v16989_v48  ;;  %v8463_v48 = vmul.f32 %v8459_v45, %v16481_v0  ;;  %v8466_v0 = vmul.f32 %v8462_v49, %v16495_v57  ;;  %v8970_v50 = vld [vmem:[%s17771_s25 + $0x70] sm:$0xff]  ;;  %v8774_v12 = vld [vmem:[%s17770_s22 + $0x18] sm:$0xff]  ;;  %v8964_v45 = vld [vmem:[%s17771_s25 + $0x40] sm:$0xff] }
0x30f2   :  { %v9287_v49 = vld [vmem:[%s17821_s29 + $0x18] sm:$0xff] }
0x30f3   :  { %13525 = vtanh.f32 %v8453_v32  ;;  %v8969_v32 = vld [vmem:[%s17771_s25 + $0x68] sm:$0xff] }
0x30fa   :  { %v13520_v27 = vpop.eup %13519 }
0x30fb   :  { %8473 = vrot.lane.b32.xlu1 %v13520_v27, %s13671_s8  ;;  %v8968_v27 = vld [vmem:[%s17771_s25 + $0x60] sm:$0xff] }
0x30fc   :  { %v13522_v62 = vpop.eup %13521 }
0x30fd   :  { %8471 = vrot.lane.b32.xlu0 %v13522_v62, %s13671_s8  ;;  %v8967_v62 = vld [vmem:[%s17771_s25 + $0x58] sm:$0xff] }
0x30fe   :  { %v13524_v5 = vpop.eup %13523 }
0x30ff   :  { %8477 = vrot.lane.b32.xlu1 %v13524_v5, %s13671_s8  ;;  %v8966_v5 = vld [vmem:[%s17771_s25 + $0x50] sm:$0xff] }
0x3100   :  { %v13526_v52 = vpop.eup %13525 }
0x3101   :  { %8475 = vrot.lane.b32.xlu0 %v13526_v52, %s13671_s8  ;;  %v8965_v52 = vld [vmem:[%s17771_s25 + $0x48] sm:$0xff] }
0x316d   :  { %v8474_v35 = vpop.permute.xlu1 %8473 }
0x316e   :  { %v8484_v63 = vmul.f32 %v13512_v39, %v8474_v35  ;;  %v8962_v35 = vld [vmem:[%s17771_s25 + $0x30] sm:$0xff] }
0x316f   :  { %v8472_v43 = vpop.permute.xlu0 %8471 }
0x3170   :  { %v8483_v14 = vmul.f32 %v13514_v25, %v8472_v43  ;;  %v17022_v17 = vadd.f32 %v8484_v63, %v8464_v31  ;;  %v8961_v63 = vld [vmem:[%s17771_s25 + $0x28] sm:$0xff]  ;;  %v8960_v43 = vld [vmem:[%s17771_s25 + $0x20] sm:$0xff] }
0x3171   :  { %v8478_v4 = vpop.permute.xlu1 %8477  ;;  %v8956_v31 = vld [vmem:[%s17771_s25] sm:$0xff] }
0x3172   :  { %v17020_v26 = vadd.f32 %v8483_v14, %v8463_v48  ;;  %v8486_v55 = vmul.f32 %v16993_v2, %v8478_v4  ;;  %v8959_v48 = vld [vmem:[%s17771_s25 + $0x18] sm:$0xff]  ;;  %v8958_v14 = vld [vmem:[%s17771_s25 + $0x10] sm:$0xff] }
0x3173   :  { %v8476_v24 = vpop.permute.xlu0 %8475 }
0x3174   :  { %v8485_v39 = vmul.f32 %v13518_v6, %v8476_v24  ;;  %12757 = vmatprep.mubr.msk.f32.mxu1 %vm654_vm5, %v17020_v26  ;;  %v17034_v25 = vadd.f32 %v8486_v55, %v8466_v0  ;;  %v8772_v6 = vld [vmem:[%s17770_s22 + $0x8] sm:$0xff]  ;;  %v13665_v24 = vld [vmem:[%s17766_s20] sm:$0xff] }
0x3175   :  { %12758 = vmatmul.mubr.msk.f32.vlgmr.msra.gmra.mxu1 %vm654_vm5, %v17022_v17 }
0x3176   :  { %v17031_v11 = vadd.f32 %v8485_v39, %v8465_v21  ;;  %12775 = vmatpush3.msra.mxu1 %v16506_v36  ;;  %v13666_v39 = vld [vmem:[%s17766_s20 + $0x8] sm:$0xff] }
0x3177   :  { %12776 = vmatprep.subr.mxu1 %v17827_v38 }
0x3178   :  { %12760 = vmatprep.mubr.msk.f32.mxu1 %vm654_vm5, %v17031_v11  ;;  %12777 = vmatpush3.msra.mxu1 %v16511_v41 }
0x3179   :  { %12761 = vmatmul.mubr.msk.f32.gmra.mxu1 %vm654_vm5, %v17034_v25  ;;  %12778 = vmatprep.subr.mxu1 %v17827_v38 }
0x317a   :  { %12779 = vmatpush3.msra.mxu1 %v16518_v8  ;;  %12806 = vmatprep.mubr.msk.f32.mxu1 %vm13673_vm6, %v17827_v38 }
0x317b   :  { %12780 = vmatprep.subr.mxu1 %v17827_v38 }
0x317c   :  { %12781 = vmatpush3.msra.mxu1 %v16525_v29 }
0x317d   :  { %12782 = vmatprep.subr.mxu1 %v17827_v38 }
0x317e   :  { %12783 = vmatpush3.msra.mxu1 %v16532_v16 }
0x317f   :  { %12784 = vmatprep.subr.mxu1 %v17827_v38 }
0x3180   :  { %12785 = vmatpush3.msra.mxu1 %v16539_v51 }
0x3181   :  { %12786 = vmatprep.subr.mxu1 %v17827_v38 }
0x3182   :  { %12787 = vmatpush3.msra.mxu1 %v16546_v3  ;;  %v8600_v3 = vld [vmem:[%s17767_s21] sm:$0x3] }
0x3183   :  { %12788 = vmatprep.subr.mxu1 %v17827_v38 }
0x3184   :  { %12789 = vmatpush3.msra.mxu1 %v16553_v9 }
0x3185   :  { %12790 = vmatprep.subr.mxu1 %v17827_v38 }
0x3186   :  { %12791 = vmatpush3.msra.mxu1 %v16560_v46 }
0x3187   :  { %12792 = vmatprep.subr.mxu1 %v17827_v38 }
0x3188   :  { %12793 = vmatpush3.msra.mxu1 %v16567_v58  ;;  %v17828_v58 = vld [vmem:[#allocation4_spill] sm:$0xff] }
0x3189   :  { %12794 = vmatprep.subr.mxu1 %v17827_v38 }
0x318a   :  { %12795 = vmatpush3.msra.mxu1 %v16574_v60 }
0x318b   :  { %12796 = vmatprep.subr.mxu1 %v17827_v38 }
0x318c   :  { %12797 = vmatpush3.msra.mxu1 %v16581_v59 }
0x318d   :  { %12798 = vmatprep.subr.mxu1 %v17827_v38 }
0x318e   :  { %12799 = vmatpush3.msra.mxu1 %v16588_v1 }
0x318f   :  { %12800 = vmatprep.subr.mxu1 %v17827_v38 }
0x3190   :  { %12801 = vmatpush3.msra.mxu1 %v16595_v30 }
0x3191   :  { %12802 = vmatprep.subr.mxu1 %v17827_v38 }
0x3192   :  { %12803 = vmatpush3.msra.mxu1 %v16602_v44 }
0x3193   :  { %12804 = vmatprep.subr.mxu1 %v17827_v38 }
0x3194   :  { %12805 = vmatpush3.msra.mxu1 %v16609_v56 }
0x3195   :  { %12860 = vmatprep.subr.mxu1 %v16651_v34 }
0x3235   :  { %v12759_v40 = vpop.f32.mrf.mxu1 }
0x3236   :  { %v8597_v16 = vmul.f32 %v12759_v40, %v16628_v22  ;;  %v8775_v22 = vld [vmem:[%s17769_s24] sm:$0xf] }
0x3237   :  { %v8573_v57 = vpop.f32.mrf.mxu1 }
0x3238   :  { %v8596_v51 = vmul.f32 %v8573_v57, %v16634_v10  ;;  %v9286_v57 = vld [vmem:[%s17821_s29 + $0x10] sm:$0xff] }
0x3239   :  { %v12762_v36 = vpop.f32.mrf.mxu1 }
0x323a   :  { %v8599_v41 = vmul.f32 %v12762_v36, %v16617_v15 }
0x323b   :  { %v8583_v8 = vpop.f32.mrf.mxu1 }
0x323c   :  { %v8598_v29 = vmul.f32 %v8583_v8, %v16622_v37  ;;  %12764 = vmatpush3.msra.mxu0 %v8599_v41  ;;  %v13667_v41 = vld [vmem:[%s17766_s20 + $0x10] sm:$0xff] }
0x323d   :  { %12765 = vmatprep.subr.mxu0 %v17827_v38 }
0x323e   :  { %12766 = vmatpush3.msra.mxu0 %v8598_v29  ;;  %v9285_v29 = vld [vmem:[%s17821_s29 + $0x8] sm:$0xff] }
0x323f   :  { %12767 = vmatprep.subr.mxu0 %v17827_v38 }
0x3240   :  { %12768 = vmatpush3.msra.mxu0 %v8597_v16  ;;  %v13668_v16 = vld [vmem:[%s17766_s20 + $0x18] sm:$0xff] }
0x3241   :  { %12769 = vmatprep.subr.mxu0 %v17827_v38 }
0x3242   :  { %12770 = vmatpush3.msra.mxu0 %v8596_v51 }
0x3243   :  { %12772 = vmatmul.mubr.msk.f32.vlgmr.msra.gmra.mxu0 %vm654_vm5, %v8600_v3  ;;  %12809 = vmatprep.subr.mxu0 %v17827_v38  ;;  %v9284_v3 = vld [vmem:[%s17821_s29] sm:$0xff] }
0x3244   :  { %12811 = vmatprep.mubr.msk.f32.mxu0 %vm13673_vm6, %v17827_v38  ;;  %12810 = vmatpush3.msk.msra.mxu0 %vm5803_vm8, %v8775_v22 }
0x3303   :  { %v8670_v9 = vpop.f32.mrf.mxu0 }
0x3304   :  { %12807 = vmatmul.mubr.f32.vlgmr.msra.gmra.mxu1 %v8670_v9  ;;  %v9183_v9 = vld [vmem:[%s17772_s12] sm:$0xf] }
0x3305   :  { %12861 = vmatpush3.msra.mxu1 %v16651_v34  ;;  %v12773_v46 = vpop.f32.mrf.mxu0  ;;  %12868 = vmatprep.mubr.msk.f32.mxu1 %vm654_vm5, %v17020_v26 }
0x3306   :  { %12862 = vmatprep.subr.mxu1 %v16657_v47 }
0x3307   :  { %12863 = vmatpush3.msra.mxu1 %v16657_v47 }
0x3308   :  { %12864 = vmatprep.subr.mxu1 %v16665_v20 }
0x3309   :  { %12865 = vmatpush3.msra.mxu1 %v16665_v20  ;;  %v8771_v20 = vld [vmem:[%s17770_s22] sm:$0xff] }
0x330a   :  { %12866 = vmatprep.subr.mxu1 %v17828_v58 }
0x330b   :  { %12867 = vmatpush3.msra.mxu1 %v17828_v58 }
0x330c   :  { %12869 = vmatmul.mubr.msk.f32.vlgmr.msra.gmra.mxu1 %vm654_vm5, %v17022_v17  ;;  %12874 = vmatprep.subr.msk.mxu1 %vm5803_vm8, %v9183_v9 }
0x330d   :  { %12871 = vmatprep.mubr.msk.f32.mxu1 %vm654_vm5, %v17031_v11  ;;  %12875 = vmatpush3.msk.msra.mxu1 %vm5803_vm8, %v9183_v9 }
0x3310   :  { %12872 = vmatmul.mubr.msk.f32.gmra.mxu1 %vm654_vm5, %v17034_v25 }
0x33c4   :  { %v8756_v60 = vpop.f32.mrf.mxu1 }
0x33c5   :  { %v8760_v59 = vsel %vm5782_vm7, %v8756_v60, -inf }
0x33c6   :  { %8761 = vmax.xlane.f32.xlu0 %v8760_v59  ;;  %v12808_v1 = vpop.f32.mrf.mxu1 }
0x33c7   :  { %v9147_v1 = vld [vmem:[%s17773_s27 + $0x8] sm:$0xff] }
0x33cc   :  { %v12870_v46 = vpop.f32.mrf.mxu1 }
0x33ce   :  { %v9127_v58 = vpop.f32.mrf.mxu1 }
0x33dc   :  { %9401 = vrot.lane.b32.xlu0 %v16948_v28, %s13672_s3 }
0x33e0   :  { %9405 = vrot.lane.b32.xlu0 %v16960_v7, %s13672_s3 }
0x344f   :  { %v8762_v30 = vpop.xlane.xlu0 %8761 }
0x3450   :  { %v8763_v44 = vsub.f32 %v8756_v60, %v8762_v30  ;;  %v12873_v30 = vpop.f32.mrf.mxu1 }
0x3452   :  { %v8764_v56 = vmul.f32 1.442695, %v8763_v44 }
0x3454   :  { %13527 = vpow2.f32 %v8764_v56  ;;  %v9146_v56 = vld [vmem:[%s17773_s27] sm:$0xff] }
0x3461   :  { %v13528_v15 = vpop.eup %13527 }
0x3462   :  { %v8766_v37 = vsel %vm5782_vm7, %v13528_v15, 0.0 }
0x3463   :  { %8767 = vadd.xlane.f32.xlu1 %v8766_v37 }
0x3474   :  { %9403 = vrot.lane.b32.xlu1 %v16950_v18, %s13672_s3 }
0x3478   :  { %9407 = vrot.lane.b32.xlu1 %v16963_v13, %s13672_s3 }
0x34ec   :  { %v8768_v10 = vpop.xlane.xlu1 %8767 }
0x34ed   :  { %13529 = vrcp.f32 %v8768_v10 }
0x34fa   :  { %v13530_v34 = vpop.eup %13529 }
0x34fb   :  { %v8770_v47 = vmul.f32 %v13530_v34, %v13528_v15 }
0x34fd   :  { %12812 = vmatmul.mubr.msk.f32.vlgmr.msra.gmra.mxu0 %vm5799_vm9, %v8770_v47  ;;  %v9149_v47 = vld [vmem:[%s17773_s27 + $0x18] sm:$0xff] }
0x34fe   :  { %12816 = vmatprep.mubr.msk.f32.mxu0 %vm432_vm3, %v8771_v20  ;;  %v9137_v20 = vpop.f32.mrf.mxu1 }
0x35bd   :  { %v8848_v2 = vpop.f32.mrf.mxu0 }
0x35be   :  { %12814 = vmatprep.subr.msk.mxu0 %vm481_vm2, %v8848_v2 }
0x35bf   :  { %v12813_v54 = vpop.f32.mrf.mxu0  ;;  %12815 = vmatpush3.msk.msra.mxu0 %vm481_vm2, %v8848_v2 }
0x35c0   :  { %12817 = vmatmul.mubr.msk.f32.vlgmr.msra.gmra.mxu0 %vm432_vm3, %v8772_v6  ;;  %12822 = vmatprep.subr.mxu0 %v8971_v33  ;;  %v9148_v6 = vld [vmem:[%s17773_s27 + $0x10] sm:$0xff] }
0x35c1   :  { %12819 = vmatprep.mubr.msk.f32.mxu0 %vm432_vm3, %v8773_v42  ;;  %12823 = vmatpush3.msra.mxu0 %v8971_v33 }
0x35c2   :  { %12824 = vmatprep.subr.mxu0 %v8970_v50 }
0x35c3   :  { %12825 = vmatpush3.msra.mxu0 %v8970_v50 }
0x35c4   :  { %12820 = vmatmul.mubr.msk.f32.gmra.mxu0 %vm432_vm3, %v8774_v12  ;;  %12826 = vmatprep.subr.mxu0 %v8969_v32 }
0x35c5   :  { %12827 = vmatpush3.msra.mxu0 %v8969_v32 }
0x35c6   :  { %12828 = vmatprep.subr.mxu0 %v8968_v27 }
0x35c7   :  { %12829 = vmatpush3.msra.mxu0 %v8968_v27 }
0x35c8   :  { %12830 = vmatprep.subr.mxu0 %v8967_v62 }
0x35c9   :  { %12831 = vmatpush3.msra.mxu0 %v8967_v62  ;;  %v9420_v62 = vld [vmem:[%s17759_s14 + $0x18] sm:$0xff] }
0x35ca   :  { %12832 = vmatprep.subr.mxu0 %v8966_v5  ;;  %12896 = vmatprep.subr.mxu1 %v9420_v62 }
0x35cb   :  { %12833 = vmatpush3.msra.mxu0 %v8966_v5  ;;  %v9419_v5 = vld [vmem:[%s17759_s14 + $0x10] sm:$0xff] }
0x35cc   :  { %12834 = vmatprep.subr.mxu0 %v8965_v52 }
0x35cd   :  { %12835 = vmatpush3.msra.mxu0 %v8965_v52  ;;  %v9418_v52 = vld [vmem:[%s17759_s14 + $0x8] sm:$0xff] }
0x35ce   :  { %12836 = vmatprep.subr.mxu0 %v8964_v45 }
0x35cf   :  { %12837 = vmatpush3.msra.mxu0 %v8964_v45 }
0x35d0   :  { %12838 = vmatprep.subr.mxu0 %v8963_v19 }
0x35d1   :  { %12839 = vmatpush3.msra.mxu0 %v8963_v19 }
0x35d2   :  { %12840 = vmatprep.subr.mxu0 %v8962_v35 }
0x35d3   :  { %12841 = vmatpush3.msra.mxu0 %v8962_v35  ;;  %v9180_v35 = vld [vmem:[#allocation3 + $0x68] sm:$0xff] }
0x35d4   :  { %12842 = vmatprep.subr.mxu0 %v8961_v63 }
0x35d5   :  { %12843 = vmatpush3.msra.mxu0 %v8961_v63 }
0x35d6   :  { %12844 = vmatprep.subr.mxu0 %v8960_v43 }
0x35d7   :  { %12845 = vmatpush3.msra.mxu0 %v8960_v43 }
0x35d8   :  { %12846 = vmatprep.subr.mxu0 %v8959_v48 }
0x35d9   :  { %12847 = vmatpush3.msra.mxu0 %v8959_v48  ;;  %v9179_v48 = vld [vmem:[#allocation3 + $0x60] sm:$0xff] }
0x35da   :  { %12848 = vmatprep.subr.mxu0 %v8958_v14 }
0x35db   :  { %12849 = vmatpush3.msra.mxu0 %v8958_v14 }
0x35dc   :  { %12850 = vmatprep.subr.mxu0 %v8957_v53 }
0x35dd   :  { %12851 = vmatpush3.msra.mxu0 %v8957_v53 }
0x35de   :  { %12852 = vmatprep.subr.mxu0 %v8956_v31 }
0x35df   :  { %12853 = vmatpush3.msra.mxu0 %v8956_v31 }
0x35e0   :  { %12882 = vmatprep.subr.mxu0 %v9287_v49 }
0x3680   :  { %v12818_v4 = vpop.f32.mrf.mxu0 }
0x3681   :  { %v8953_v0 = vmul.f32 %v13666_v39, %v12818_v4  ;;  %v9182_v4 = vld [vmem:[#allocation3 + $0x78] sm:$0xff] }
0x3682   :  { %v8933_v55 = vpop.f32.mrf.mxu0 }
0x3683   :  { %v8952_v21 = vmul.f32 %v13665_v24, %v8933_v55 }
0x3684   :  { %v12821_v40 = vpop.f32.mrf.mxu0 }
0x3685   :  { %12854 = vmatprep.mubr.f32.mxu0 %v8952_v21  ;;  %v8955_v51 = vmul.f32 %v13668_v16, %v12821_v40 }
0x3686   :  { %v8943_v36 = vpop.f32.mrf.mxu0  ;;  %12855 = vmatmul.mubr.f32.vlgmr.msra.gmra.mxu0 %v8953_v0  ;;  %v9181_v0 = vld [vmem:[#allocation3 + $0x70] sm:$0xff] }
0x3687   :  { %v8954_v8 = vmul.f32 %v13667_v41, %v8943_v36  ;;  %12883 = vmatpush3.msra.mxu0 %v9287_v49 }
0x3688   :  { %12884 = vmatprep.subr.mxu0 %v9286_v57 }
0x3689   :  { %12857 = vmatprep.mubr.f32.mxu0 %v8954_v8  ;;  %12885 = vmatpush3.msra.mxu0 %v9286_v57 }
0x368a   :  { %12858 = vmatmul.mubr.f32.gmra.mxu0 %v8955_v51  ;;  %12886 = vmatprep.subr.mxu0 %v9285_v29 }
0x368b   :  { %12887 = vmatpush3.msra.mxu0 %v9285_v29  ;;  %12890 = vmatprep.mubr.msk.f32.mxu0 %vm654_vm5, %v16948_v28 }
0x368c   :  { %12888 = vmatprep.subr.mxu0 %v9284_v3 }
0x368d   :  { %12889 = vmatpush3.msra.mxu0 %v9284_v3 }
0x368e   :  { %12891 = vmatmul.mubr.msk.f32.vlgmr.msra.gmra.mxu0 %vm654_vm5, %v16950_v18 }
0x368f   :  { %12893 = vmatprep.mubr.msk.f32.mxu0 %vm654_vm5, %v16960_v7 }
0x3692   :  { %12894 = vmatmul.mubr.msk.f32.gmra.mxu0 %vm654_vm5, %v16963_v13 }
0x3746   :  { %v12856_v60 = vpop.f32.mrf.mxu0 }
0x3747   :  { %v9133_v59 = vadd.f32 %v12870_v46, %v12856_v60 }
0x3748   :  { %v9038_v44 = vpop.f32.mrf.mxu0 }
0x3749   :  { %v9128_v15 = vadd.f32 %v9127_v58, %v9038_v44  ;;  %v17226_v37 = vadd.f32 %v9147_v1, %v9133_v59  ;;  %v9417_v1 = vld [vmem:[%s17759_s14] sm:$0xff] }
0x374a   :  { %v12859_v22 = vpop.f32.mrf.mxu0 }
0x374b   :  { %v17228_v10 = vadd.f32 %v9146_v56, %v9128_v15  ;;  %v9143_v34 = vadd.f32 %v12873_v30, %v12859_v22  ;;  %v9155_v54 = vmax.f32 %v17226_v37, 0.0  ;;  %v9690_v56 = vld [vmem:[%s17760_s17 + $0x18] sm:$0xff]  ;;  %v9404_v15 = vpop.permute.xlu1 %9403 }
0x374c   :  { %v9048_v2 = vpop.f32.mrf.mxu0 }
0x374d   :  { %v9154_v33 = vmax.f32 %v17228_v10, 0.0  ;;  %v9138_v42 = vadd.f32 %v9137_v20, %v9048_v2  ;;  %v17238_v50 = vadd.f32 %v9149_v47, %v9143_v34  ;;  %v9402_v34 = vpop.permute.xlu0 %9401 }
0x374e   :  { %v12892_v45 = vpop.f32.mrf.mxu0 }
0x374f   :  { %v17240_v12 = vadd.f32 %v9148_v6, %v9138_v42  ;;  %12876 = vmatprep.mubr.msk.f32.mxu1 %vm5799_vm9, %v9154_v33  ;;  %v9157_v27 = vmax.f32 %v17238_v50, 0.0  ;;  %v9408_v42 = vpop.permute.xlu1 %9407 }
0x3750   :  { %12877 = vmatmul.mubr.msk.f32.vlgmr.msra.gmra.mxu1 %vm5799_vm9, %v9155_v54  ;;  %v9354_v19 = vpop.f32.mrf.mxu0 }
0x3751   :  { %v9156_v32 = vmax.f32 %v17240_v12, 0.0  ;;  %12897 = vmatpush3.msra.mxu1 %v9420_v62 }
0x3752   :  { %12898 = vmatprep.subr.mxu1 %v9419_v5  ;;  %v12895_v49 = vpop.f32.mrf.mxu0 }
0x3753   :  { %12879 = vmatprep.mubr.msk.f32.mxu1 %vm5799_vm9, %v9156_v32  ;;  %12899 = vmatpush3.msra.mxu1 %v9419_v5 }
0x3754   :  { %12880 = vmatmul.mubr.msk.f32.gmra.mxu1 %vm5799_vm9, %v9157_v27  ;;  %12900 = vmatprep.subr.mxu1 %v9418_v52  ;;  %v9364_v8 = vpop.f32.mrf.mxu0 }
0x3755   :  { %12901 = vmatpush3.msra.mxu1 %v9418_v52  ;;  %v9406_v52 = vpop.permute.xlu0 %9405 }
0x3756   :  { %12902 = vmatprep.subr.mxu1 %v9417_v1 }
0x3757   :  { %12903 = vmatpush3.msra.mxu1 %v9417_v1 }
0x3758   :  { %12924 = vmatprep.subr.mxu1 %v9690_v56 }
0x3810   :  { %v12878_v63 = vpop.f32.mrf.mxu1 }
0x3811   :  { %v17265_v43 = vadd.f32 %v12878_v63, %v9180_v35  ;;  %v9689_v63 = vld [vmem:[%s17760_s17 + $0x10] sm:$0xff] }
0x3812   :  { %v9261_v14 = vpop.f32.mrf.mxu1 }
0x3813   :  { %v9374_v53 = vadd.f32 %v12892_v45, %v17265_v43  ;;  %v17268_v31 = vadd.f32 %v9261_v14, %v9179_v48 }
0x3814   :  { %v12881_v55 = vpop.f32.mrf.mxu1 }
0x3815   :  { %v11033_v24 = vmul.f32 -1.442695, %v9374_v53  ;;  %v9373_v21 = vadd.f32 %v9354_v19, %v17268_v31  ;;  %v17271_v39 = vadd.f32 %v12881_v55, %v9182_v4 }
0x3816   :  { %v9271_v40 = vpop.f32.mrf.mxu1 }
0x3817   :  { %13531 = vpow2.f32 %v11033_v24  ;;  %v11032_v57 = vmul.f32 -1.442695, %v9373_v21  ;;  %v9376_v36 = vadd.f32 %v12895_v49, %v17271_v39  ;;  %v17274_v41 = vadd.f32 %v9271_v40, %v9181_v0 }
0x3819   :  { %13533 = vpow2.f32 %v11032_v57  ;;  %v11035_v29 = vmul.f32 -1.442695, %v9376_v36  ;;  %v9375_v16 = vadd.f32 %v9364_v8, %v17274_v41  ;;  %v9584_v36 = vld [vmem:[%s17761_s15 + $0x10] sm:$0xff] }
0x381b   :  { %13535 = vpow2.f32 %v11035_v29  ;;  %v11034_v51 = vmul.f32 -1.442695, %v9375_v16 }
0x381d   :  { %13537 = vpow2.f32 %v11034_v51 }
0x3824   :  { %v13532_v3 = vpop.eup %13531 }
0x3825   :  { %v9390_v9 = vadd.f32 1.0, %v13532_v3 }
0x3826   :  { %v13534_v46 = vpop.eup %13533 }
0x3827   :  { %13539 = vrcp.f32 %v9390_v9  ;;  %v9389_v58 = vadd.f32 1.0, %v13534_v46 }
0x3828   :  { %v13536_v60 = vpop.eup %13535 }
0x3829   :  { %13541 = vrcp.f32 %v9389_v58  ;;  %v9392_v59 = vadd.f32 1.0, %v13536_v60 }
0x382a   :  { %v13538_v30 = vpop.eup %13537 }
0x382b   :  { %13543 = vrcp.f32 %v9392_v59  ;;  %v9391_v44 = vadd.f32 1.0, %v13538_v30 }
0x382d   :  { %13545 = vrcp.f32 %v9391_v44 }
0x3834   :  { %v17283_v22 = vpop.eup %13539 }
0x3835   :  { %v9414_v47 = vmul.f32 %v17283_v22, %v9404_v15  ;;  %v9551_v9 = vsub.f32 1.0, %v17283_v22 }
0x3836   :  { %v17286_v20 = vpop.eup %13541 }
0x3837   :  { %9427 = vrot.lane.b32.xlu1 %v9414_v47, %s13670_s10  ;;  %v9413_v2 = vmul.f32 %v17286_v20, %v9402_v34  ;;  %v9550_v3 = vsub.f32 1.0, %v17286_v20  ;;  %v9555_v44 = vmul.f32 %v9551_v9, %v16950_v18 }
0x3838   :  { %v17290_v6 = vpop.eup %13543 }
0x3839   :  { %9425 = vrot.lane.b32.xlu0 %v9413_v2, %s13670_s10  ;;  %v9416_v62 = vmul.f32 %v17290_v6, %v9408_v42  ;;  %v9554_v59 = vmul.f32 %v9550_v3, %v16948_v28 }
0x383a   :  { %v17294_v5 = vpop.eup %13545 }
0x383b   :  { %9431 = vrot.lane.b32.xlu1 %v9416_v62, %s13670_s10  ;;  %v9415_v45 = vmul.f32 %v17294_v5, %v9406_v52  ;;  %v9552_v30 = vsub.f32 1.0, %v17294_v5  ;;  %v9587_v52 = vld [vmem:[%s17763_s16 + $0x8] sm:$0xff] }
0x383d   :  { %9429 = vrot.lane.b32.xlu0 %v9415_v45, %s13670_s10  ;;  %v9556_v62 = vmul.f32 %v9552_v30, %v16960_v7  ;;  %v9822_v7 = vld [vmem:[%s17762_s18 + $0x10] sm:$0xff] }
0x38a9   :  { %v9428_v19 = vpop.permute.xlu1 %9427 }
0x38ab   :  { %v9426_v35 = vpop.permute.xlu0 %9425 }
0x38ac   :  { %12904 = vmatprep.mubr.msk.f32.mxu1 %vm654_vm5, %v9426_v35  ;;  %v9586_v35 = vld [vmem:[%s17763_s16] sm:$0xff] }
0x38ad   :  { %12905 = vmatmul.mubr.msk.f32.vlgmr.msra.gmra.mxu1 %vm654_vm5, %v9428_v19  ;;  %v9432_v14 = vpop.permute.xlu1 %9431 }
0x38ae   :  { %12925 = vmatpush3.msra.mxu1 %v9690_v56  ;;  %v9553_v56 = vsub.f32 1.0, %v17290_v6 }
0x38af   :  { %12926 = vmatprep.subr.mxu1 %v9689_v63  ;;  %v9430_v48 = vpop.permute.xlu0 %9429 }
0x38b0   :  { %12907 = vmatprep.mubr.msk.f32.mxu1 %vm654_vm5, %v9430_v48  ;;  %12927 = vmatpush3.msra.mxu1 %v9689_v63  ;;  %v9557_v28 = vmul.f32 %v9553_v56, %v16963_v13  ;;  %v9821_v13 = vld [vmem:[%s17762_s18 + $0x8] sm:$0xff] }
0x38b1   :  { %12908 = vmatmul.mubr.msk.f32.gmra.mxu1 %vm654_vm5, %v9432_v14  ;;  %12928 = vmatprep.subr.mxu1 %v16886_v23  ;;  %v9589_v14 = vld [vmem:[%s17763_s16 + $0x18] sm:$0xff] }
0x38b2   :  { %12929 = vmatpush3.msra.mxu1 %v16886_v23  ;;  %12932 = vmatprep.mubr.msk.f32.mxu1 %vm654_vm5, %v17020_v26 }
0x38b3   :  { %12930 = vmatprep.subr.mxu1 %v16896_v61 }
0x38b4   :  { %12931 = vmatpush3.msra.mxu1 %v16896_v61  ;;  %v9585_v61 = vld [vmem:[%s17761_s15 + $0x18] sm:$0xff] }
0x38b5   :  { %12933 = vmatmul.mubr.msk.f32.vlgmr.msra.gmra.mxu1 %vm654_vm5, %v17022_v17  ;;  %12910 = vmatprep.subr.mxu0 %v9585_v61 }
0x38b6   :  { %12935 = vmatprep.mubr.msk.f32.mxu1 %vm654_vm5, %v17031_v11  ;;  %12911 = vmatpush3.msra.mxu0 %v9585_v61  ;;  %v9588_v61 = vld [vmem:[%s17763_s16 + $0x10] sm:$0xff] }
0x38b7   :  { %12912 = vmatprep.subr.mxu0 %v9584_v36 }
0x38b8   :  { %12913 = vmatpush3.msra.mxu0 %v9584_v36 }
0x38b9   :  { %12936 = vmatmul.mubr.msk.f32.gmra.mxu1 %vm654_vm5, %v17034_v25 }
0x396d   :  { %v12906_v53 = vpop.f32.mrf.mxu1 }
0x396e   :  { %9532 = vrot.lane.b32.xlu1 %v12906_v53, %s13671_s8 }
0x396f   :  { %v9507_v23 = vpop.f32.mrf.mxu1 }
0x3970   :  { %9530 = vrot.lane.b32.xlu0 %v9507_v23, %s13671_s8 }
0x3971   :  { %v12909_v49 = vpop.f32.mrf.mxu1 }
0x3972   :  { %9536 = vrot.lane.b32.xlu1 %v12909_v49, %s13671_s8 }
0x3973   :  { %v9517_v4 = vpop.f32.mrf.mxu1 }
0x3974   :  { %9534 = vrot.lane.b32.xlu0 %v9517_v4, %s13671_s8 }
0x39e0   :  { %v9533_v55 = vpop.permute.xlu1 %9532 }
0x39e1   :  { %v9543_v24 = vadd.f32 %v9533_v55, %v17265_v43  ;;  %v9583_v43 = vld [vmem:[%s17761_s15 + $0x8] sm:$0xff] }
0x39e2   :  { %v9531_v21 = vpop.permute.xlu0 %9530  ;;  %12914 = vmatprep.subr.mxu0 %v9583_v43 }
0x39e3   :  { %13547 = vtanh.f32 %v9543_v24  ;;  %v9542_v0 = vadd.f32 %v9531_v21, %v17268_v31  ;;  %12915 = vmatpush3.msra.mxu0 %v9583_v43  ;;  %v9582_v31 = vld [vmem:[%s17761_s15] sm:$0xff] }
0x39e4   :  { %v9537_v40 = vpop.permute.xlu1 %9536  ;;  %12916 = vmatprep.subr.mxu0 %v9582_v31 }
0x39e5   :  { %13549 = vtanh.f32 %v9542_v0  ;;  %v9545_v57 = vadd.f32 %v9537_v40, %v17271_v39  ;;  %12917 = vmatpush3.msra.mxu0 %v9582_v31 }
0x39e6   :  { %v9535_v8 = vpop.permute.xlu0 %9534 }
0x39e7   :  { %13551 = vtanh.f32 %v9545_v57  ;;  %v9544_v29 = vadd.f32 %v9535_v8, %v17274_v41 }
0x39e9   :  { %13553 = vtanh.f32 %v9544_v29 }
0x39f0   :  { %v13548_v39 = vpop.eup %13547 }
0x39f1   :  { %9564 = vrot.lane.b32.xlu1 %v13548_v39, %s13671_s8 }
0x39f2   :  { %v13550_v16 = vpop.eup %13549 }
0x39f3   :  { %9562 = vrot.lane.b32.xlu0 %v13550_v16, %s13671_s8 }
0x39f4   :  { %v13552_v41 = vpop.eup %13551 }
0x39f5   :  { %9568 = vrot.lane.b32.xlu1 %v13552_v41, %s13671_s8 }
0x39f6   :  { %v13554_v51 = vpop.eup %13553 }
0x39f7   :  { %9566 = vrot.lane.b32.xlu0 %v13554_v51, %s13671_s8 }
0x39f9   :  { %9806 = vrot.lane.b32.xlu1 %v17022_v17, %s13672_s3 }
0x39fb   :  { %9804 = vrot.lane.b32.xlu0 %v17020_v26, %s13672_s3 }
0x39fd   :  { %9810 = vrot.lane.b32.xlu1 %v17034_v25, %s13672_s3 }
0x39ff   :  { %9808 = vrot.lane.b32.xlu0 %v17031_v11, %s13672_s3 }
0x3a63   :  { %v9565_v46 = vpop.permute.xlu1 %9564 }
0x3a64   :  { %v9575_v58 = vmul.f32 %v17283_v22, %v9565_v46  ;;  %v9820_v46 = vld [vmem:[%s17762_s18] sm:$0xff] }
0x3a65   :  { %v9563_v60 = vpop.permute.xlu0 %9562 }
0x3a66   :  { %v9574_v1 = vmul.f32 %v17286_v20, %v9563_v60  ;;  %v9579_v47 = vadd.f32 %v9575_v58, %v9555_v44 }
0x3a67   :  { %v9569_v15 = vpop.permute.xlu1 %9568 }
0x3a68   :  { %v9578_v34 = vadd.f32 %v9574_v1, %v9554_v59  ;;  %v9577_v2 = vmul.f32 %v17290_v6, %v9569_v15  ;;  %v9823_v6 = vld [vmem:[%s17762_s18 + $0x18] sm:$0xff] }
0x3a69   :  { %v9567_v42 = vpop.permute.xlu0 %9566  ;;  %12938 = vmatprep.subr.mxu0 %v9823_v6 }
0x3a6a   :  { %v9576_v22 = vmul.f32 %v17294_v5, %v9567_v42  ;;  %12918 = vmatprep.mubr.msk.f32.mxu0 %vm654_vm5, %v9578_v34  ;;  %v9581_v18 = vadd.f32 %v9577_v2, %v9557_v28  ;;  %v12934_v5 = vpop.f32.mrf.mxu1 }
0x3a6b   :  { %12919 = vmatmul.mubr.msk.f32.vlgmr.msra.gmra.mxu0 %vm654_vm5, %v9579_v47  ;;  %v9807_v59 = vpop.permute.xlu1 %9806 }
0x3a6c   :  { %v9580_v20 = vadd.f32 %v9576_v22, %v9556_v62  ;;  %12939 = vmatpush3.msra.mxu0 %v9823_v6  ;;  %v9757_v45 = vpop.f32.mrf.mxu1 }
0x3a6d   :  { %12940 = vmatprep.subr.mxu0 %v9822_v7  ;;  %v9805_v30 = vpop.permute.xlu0 %9804 }
0x3a6e   :  { %12921 = vmatprep.mubr.msk.f32.mxu0 %vm654_vm5, %v9580_v20  ;;  %12941 = vmatpush3.msra.mxu0 %v9822_v7  ;;  %v12937_v49 = vpop.f32.mrf.mxu1 }
0x3a6f   :  { %12922 = vmatmul.mubr.msk.f32.gmra.mxu0 %vm654_vm5, %v9581_v18  ;;  %12942 = vmatprep.subr.mxu0 %v9821_v13  ;;  %v9811_v47 = vpop.permute.xlu1 %9810 }
0x3a70   :  { %12943 = vmatpush3.msra.mxu0 %v9821_v13  ;;  %v9767_v8 = vpop.f32.mrf.mxu1 }
0x3a71   :  { %12944 = vmatprep.subr.mxu0 %v9820_v46  ;;  %v9809_v62 = vpop.permute.xlu0 %9808 }
0x3a72   :  { %12945 = vmatpush3.msra.mxu0 %v9820_v46 }
0x3a73   :  { %12966 = vmatprep.subr.mxu0 %v17827_v38 }
0x3b2b   :  { %v12920_v19 = vpop.f32.mrf.mxu0 }
0x3b2c   :  { %v17381_v63 = vadd.f32 %v12920_v19, %v9587_v52 }
0x3b2d   :  { %v9668_v48 = vpop.f32.mrf.mxu0 }
0x3b2e   :  { %v9777_v53 = vadd.f32 %v12934_v5, %v17381_v63  ;;  %v17387_v23 = vadd.f32 %v9668_v48, %v9586_v35 }
0x3b2f   :  { %v12923_v4 = vpop.f32.mrf.mxu0 }
0x3b30   :  { %v11049_v55 = vmul.f32 -1.442695, %v9777_v53  ;;  %v9776_v24 = vadd.f32 %v9757_v45, %v17387_v23  ;;  %v17393_v21 = vadd.f32 %v12923_v4, %v9589_v14  ;;  %v9988_v45 = vld [vmem:[%s17764_s19 + $0x18] sm:$0xff]  ;;  %v9987_v4 = vld [vmem:[%s17764_s19 + $0x10] sm:$0xff] }
0x3b31   :  { %v9678_v0 = vpop.f32.mrf.mxu0  ;;  %12952 = vmatprep.subr.mxu1 %v9988_v45 }
0x3b32   :  { %13555 = vpow2.f32 %v11049_v55  ;;  %v11048_v40 = vmul.f32 -1.442695, %v9776_v24  ;;  %v9779_v57 = vadd.f32 %v12937_v49, %v17393_v21  ;;  %v17396_v36 = vadd.f32 %v9678_v0, %v9588_v61  ;;  %12953 = vmatpush3.msra.mxu1 %v9988_v45 }
0x3b33   :  { %12954 = vmatprep.subr.mxu1 %v9987_v4 }
0x3b34   :  { %13557 = vpow2.f32 %v11048_v40  ;;  %v11051_v29 = vmul.f32 -1.442695, %v9779_v57  ;;  %v9778_v43 = vadd.f32 %v9767_v8, %v17396_v36  ;;  %12955 = vmatpush3.msra.mxu1 %v9987_v4 }
0x3b36   :  { %13559 = vpow2.f32 %v11051_v29  ;;  %v11050_v31 = vmul.f32 -1.442695, %v9778_v43 }
0x3b38   :  { %13561 = vpow2.f32 %v11050_v31 }
0x3b3f   :  { %v13556_v39 = vpop.eup %13555 }
0x3b40   :  { %v9793_v16 = vadd.f32 1.0, %v13556_v39 }
0x3b41   :  { %v13558_v41 = vpop.eup %13557 }
0x3b42   :  { %13563 = vrcp.f32 %v9793_v16  ;;  %v9792_v51 = vadd.f32 1.0, %v13558_v41 }
0x3b43   :  { %v13560_v3 = vpop.eup %13559 }
0x3b44   :  { %13565 = vrcp.f32 %v9792_v51  ;;  %v9795_v9 = vadd.f32 1.0, %v13560_v3 }
0x3b45   :  { %v13562_v58 = vpop.eup %13561 }
0x3b46   :  { %13567 = vrcp.f32 %v9795_v9  ;;  %v9794_v60 = vadd.f32 1.0, %v13562_v58 }
0x3b48   :  { %13569 = vrcp.f32 %v9794_v60 }
0x3b4f   :  { %v17403_v1 = vpop.eup %13563 }
0x3b50   :  { %v9817_v44 = vmul.f32 %v17403_v1, %v9807_v59 }
0x3b51   :  { %v17406_v56 = vpop.eup %13565 }
0x3b52   :  { %9830 = vrot.lane.b32.xlu1 %v9817_v44, %s13670_s10  ;;  %v9816_v15 = vmul.f32 %v17406_v56, %v9805_v30  ;;  %v9953_v57 = vsub.f32 1.0, %v17406_v56  ;;  %v10181_v44 = vld [vmem:[%s17765_s23 + $0x68] sm:$0xff] }
0x3b53   :  { %v17410_v34 = vpop.eup %13567 }
0x3b54   :  { %9828 = vrot.lane.b32.xlu0 %v9816_v15, %s13670_s10  ;;  %v9819_v2 = vmul.f32 %v17410_v34, %v9811_v47  ;;  %v9957_v31 = vmul.f32 %v9953_v57, %v17020_v26  ;;  %v9956_v51 = vsub.f32 1.0, %v17410_v34  ;;  %v10179_v15 = vld [vmem:[%s17765_s23 + $0x58] sm:$0xff]  ;;  %v10177_v47 = vld [vmem:[%s17765_s23 + $0x48] sm:$0xff] }
0x3b55   :  { %v17414_v42 = vpop.eup %13569 }
0x3b56   :  { %9834 = vrot.lane.b32.xlu1 %v9819_v2, %s13670_s10  ;;  %v9818_v22 = vmul.f32 %v17414_v42, %v9809_v62  ;;  %v9955_v16 = vsub.f32 1.0, %v17414_v42  ;;  %v10176_v2 = vld [vmem:[%s17765_s23 + $0x40] sm:$0xff]  ;;  %v10174_v62 = vld [vmem:[%s17765_s23 + $0x30] sm:$0xff] }
0x3b58   :  { %9832 = vrot.lane.b32.xlu0 %v9818_v22, %s13670_s10  ;;  %v9959_v59 = vmul.f32 %v9955_v16, %v17031_v11  ;;  %v10183_v11 = vld [vmem:[%s17765_s23 + $0x78] sm:$0xff]  ;;  %v10173_v22 = vld [vmem:[%s17765_s23 + $0x28] sm:$0xff] }
0x3bc4   :  { %v9831_v28 = vpop.permute.xlu1 %9830 }
0x3bc6   :  { %v9829_v20 = vpop.permute.xlu0 %9828 }
0x3bc7   :  { %12946 = vmatprep.mubr.msk.f32.mxu0 %vm654_vm5, %v9829_v20  ;;  %v10171_v20 = vld [vmem:[%s17765_s23 + $0x18] sm:$0xff] }
0x3bc8   :  { %12947 = vmatmul.mubr.msk.f32.vlgmr.msra.gmra.mxu0 %vm654_vm5, %v9831_v28  ;;  %v9835_v6 = vpop.permute.xlu1 %9834  ;;  %v10172_v28 = vld [vmem:[%s17765_s23 + $0x20] sm:$0xff] }
0x3bca   :  { %v9833_v18 = vpop.permute.xlu0 %9832 }
0x3bcb   :  { %12949 = vmatprep.mubr.msk.f32.mxu0 %vm654_vm5, %v9833_v18  ;;  %v10170_v18 = vld [vmem:[%s17765_s23 + $0x10] sm:$0xff] }
0x3bcc   :  { %12950 = vmatmul.mubr.msk.f32.gmra.mxu0 %vm654_vm5, %v9835_v6  ;;  %v10169_v6 = vld [vmem:[%s17765_s23 + $0x8] sm:$0xff] }
0x3bcd   :  { %12974 = vmatprep.mubr.msk.f32.mxu0 %vm13673_vm6, %v17827_v38 }
0x3c88   :  { %v12948_v7 = vpop.f32.mrf.mxu0 }
0x3c89   :  { %9935 = vrot.lane.b32.xlu1 %v12948_v7, %s13671_s8  ;;  %v10168_v7 = vld [vmem:[%s17765_s23] sm:$0xff] }
0x3c8a   :  { %v9910_v13 = vpop.f32.mrf.mxu0 }
0x3c8b   :  { %9933 = vrot.lane.b32.xlu0 %v9910_v13, %s13671_s8 }
0x3c8c   :  { %v12951_v5 = vpop.f32.mrf.mxu0 }
0x3c8d   :  { %9939 = vrot.lane.b32.xlu1 %v12951_v5, %s13671_s8 }
0x3c8e   :  { %v9920_v52 = vpop.f32.mrf.mxu0 }
0x3c8f   :  { %9937 = vrot.lane.b32.xlu0 %v9920_v52, %s13671_s8  ;;  %v17546_v52 = vld [vmem:[%s17766_s20 + $0x18] sm:$0xff] }
0x3cfb   :  { %v9936_v19 = vpop.permute.xlu1 %9935 }
0x3cfc   :  { %v9946_v35 = vadd.f32 %v9936_v19, %v17381_v63  ;;  %v9986_v63 = vld [vmem:[%s17764_s19 + $0x8] sm:$0xff]  ;;  %v17551_v19 = vld [vmem:[%s17766_s20 + $0x10] sm:$0xff] }
0x3cfd   :  { %v9934_v48 = vpop.permute.xlu0 %9933  ;;  %12956 = vmatprep.subr.mxu1 %v9986_v63 }
0x3cfe   :  { %13571 = vtanh.f32 %v9946_v35  ;;  %v9945_v14 = vadd.f32 %v9934_v48, %v17387_v23  ;;  %12957 = vmatpush3.msra.mxu1 %v9986_v63  ;;  %v9985_v23 = vld [vmem:[%s17764_s19] sm:$0xff]  ;;  %v17557_v48 = vld [vmem:[%s17766_s20 + $0x8] sm:$0xff]  ;;  %v10554_v63 = vld [vmem:[%s17768_s26 + $0x18] sm:$0xff] }
0x3cff   :  { %v9940_v53 = vpop.permute.xlu1 %9939  ;;  %12958 = vmatprep.subr.mxu1 %v9985_v23 }
0x3d00   :  { %13573 = vtanh.f32 %v9945_v14  ;;  %v9948_v49 = vadd.f32 %v9940_v53, %v17393_v21  ;;  %12959 = vmatpush3.msra.mxu1 %v9985_v23 }
0x3d01   :  { %v9938_v61 = vpop.permute.xlu0 %9937  ;;  %12977 = vmatprep.subr.mxu1 %v17827_v38 }
0x3d02   :  { %13575 = vtanh.f32 %v9948_v49  ;;  %v9947_v55 = vadd.f32 %v9938_v61, %v17396_v36  ;;  %v9954_v36 = vsub.f32 1.0, %v17403_v1  ;;  %v17563_v49 = vld [vmem:[%s17766_s20] sm:$0xff] }
0x3d04   :  { %13577 = vtanh.f32 %v9947_v55  ;;  %v9958_v41 = vmul.f32 %v9954_v36, %v17022_v17  ;;  %v10094_v55 = vld [vmem:[%s17767_s21] sm:$0x3] }
0x3d0b   :  { %v13572_v24 = vpop.eup %13571 }
0x3d0c   :  { %9967 = vrot.lane.b32.xlu1 %v13572_v24, %s13671_s8  ;;  %v10553_v24 = vld [vmem:[%s17768_s26 + $0x10] sm:$0xff] }
0x3d0d   :  { %v13574_v21 = vpop.eup %13573 }
0x3d0e   :  { %9965 = vrot.lane.b32.xlu0 %v13574_v21, %s13671_s8 }
0x3d0f   :  { %v13576_v0 = vpop.eup %13575 }
0x3d10   :  { %9971 = vrot.lane.b32.xlu1 %v13576_v0, %s13671_s8  ;;  %v10551_v0 = vld [vmem:[%s17768_s26] sm:$0xff] }
0x3d11   :  { %v13578_v40 = vpop.eup %13577 }
0x3d12   :  { %9969 = vrot.lane.b32.xlu0 %v13578_v40, %s13671_s8 }
0x3d7e   :  { %v9968_v8 = vpop.permute.xlu1 %9967 }
0x3d7f   :  { %v9978_v29 = vmul.f32 %v17403_v1, %v9968_v8  ;;  %v9960_v1 = vmul.f32 %v9956_v51, %v17034_v25  ;;  %v10182_v25 = vld [vmem:[%s17765_s23 + $0x70] sm:$0xff] }
0x3d80   :  { %v9966_v43 = vpop.permute.xlu0 %9965  ;;  %v17829_v8 = vld [vmem:[#allocation6_spill] sm:$0xff] }
0x3d81   :  { %v9977_v39 = vmul.f32 %v17406_v56, %v9966_v43  ;;  %v17460_v46 = vadd.f32 %v9978_v29, %v9958_v41  ;;  %v10180_v56 = vld [vmem:[%s17765_s23 + $0x60] sm:$0xff]  ;;  %v17830_v29 = vmax.f32 %v17829_v8, 0.0 }
0x3d82   :  { %v9972_v3 = vpop.permute.xlu1 %9971  ;;  %v17831_v43 = vld [vmem:[#allocation8_spill] sm:$0xff] }
0x3d83   :  { %v17458_v9 = vadd.f32 %v9977_v39, %v9957_v31  ;;  %v9980_v58 = vmul.f32 %v17410_v34, %v9972_v3  ;;  %v10178_v34 = vld [vmem:[%s17765_s23 + $0x50] sm:$0xff]  ;;  %v17832_v31 = vmax.f32 %v17831_v43, 0.0  ;;  %v10640_v8 = vld [vmem:[%s17773_s27] sm:$0xff] }
0x3d84   :  { %v9970_v60 = vpop.permute.xlu0 %9969 }
0x3d85   :  { %v9979_v26 = vmul.f32 %v17414_v42, %v9970_v60  ;;  %12960 = vmatprep.mubr.msk.f32.mxu1 %vm654_vm5, %v17458_v9  ;;  %v17472_v30 = vadd.f32 %v9980_v58, %v9960_v1  ;;  %v10175_v42 = vld [vmem:[%s17765_s23 + $0x38] sm:$0xff] }
0x3d86   :  { %12961 = vmatmul.mubr.msk.f32.vlgmr.msra.gmra.mxu1 %vm654_vm5, %v17460_v46  ;;  %v17835_v58 = vld [vmem:[#allocation7_spill] sm:$0xff] }
0x3d87   :  { %v17470_v17 = vadd.f32 %v9979_v26, %v9959_v59  ;;  %12978 = vmatpush3.msra.mxu1 %v10183_v11  ;;  %v17836_v60 = vmax.f32 %v17835_v58, 0.0  ;;  %v10269_v59 = vld [vmem:[%s17769_s24] sm:$0xf] }
0x3d88   :  { %12979 = vmatprep.subr.mxu1 %v17827_v38 }
0x3d89   :  { %12963 = vmatprep.mubr.msk.f32.mxu1 %vm654_vm5, %v17470_v17  ;;  %12980 = vmatpush3.msra.mxu1 %v10182_v25  ;;  %v10266_v25 = vld [vmem:[%s17770_s22 + $0x8] sm:$0xff] }
0x3d8a   :  { %12964 = vmatmul.mubr.msk.f32.gmra.mxu1 %vm654_vm5, %v17472_v30  ;;  %12981 = vmatprep.subr.mxu1 %v17827_v38 }
0x3d8b   :  { %13009 = vmatprep.mubr.msk.f32.mxu1 %vm13673_vm6, %v17827_v38  ;;  %12982 = vmatpush3.msra.mxu1 %v10181_v44  ;;  %v10465_v44 = vld [vmem:[%s17771_s25 + $0x78] sm:$0xff] }
0x3d8c   :  { %12983 = vmatprep.subr.mxu1 %v17827_v38 }
0x3d8d   :  { %12984 = vmatpush3.msra.mxu1 %v10180_v56  ;;  %v10267_v56 = vld [vmem:[%s17770_s22 + $0x10] sm:$0xff] }
0x3d8e   :  { %12985 = vmatprep.subr.mxu1 %v17827_v38 }
0x3d8f   :  { %12986 = vmatpush3.msra.mxu1 %v10179_v15 }
0x3d90   :  { %12987 = vmatprep.subr.mxu1 %v17827_v38 }
0x3d91   :  { %12988 = vmatpush3.msra.mxu1 %v10178_v34  ;;  %v10464_v34 = vld [vmem:[%s17771_s25 + $0x70] sm:$0xff] }
0x3d92   :  { %12989 = vmatprep.subr.mxu1 %v17827_v38 }
0x3d93   :  { %12990 = vmatpush3.msra.mxu1 %v10177_v47  ;;  %v10268_v47 = vld [vmem:[%s17770_s22 + $0x18] sm:$0xff] }
0x3d94   :  { %12991 = vmatprep.subr.mxu1 %v17827_v38 }
0x3d95   :  { %12992 = vmatpush3.msra.mxu1 %v10176_v2  ;;  %v10463_v2 = vld [vmem:[%s17771_s25 + $0x68] sm:$0xff] }
0x3d96   :  { %12993 = vmatprep.subr.mxu1 %v17827_v38 }
0x3d97   :  { %12994 = vmatpush3.msra.mxu1 %v10175_v42  ;;  %v10462_v42 = vld [vmem:[%s17771_s25 + $0x60] sm:$0xff] }
0x3d98   :  { %12995 = vmatprep.subr.mxu1 %v17827_v38 }
0x3d99   :  { %12996 = vmatpush3.msra.mxu1 %v10174_v62  ;;  %v10461_v62 = vld [vmem:[%s17771_s25 + $0x58] sm:$0xff] }
0x3d9a   :  { %12997 = vmatprep.subr.mxu1 %v17827_v38 }
0x3d9b   :  { %12998 = vmatpush3.msra.mxu1 %v10173_v22  ;;  %v10460_v22 = vld [vmem:[%s17771_s25 + $0x50] sm:$0xff] }
0x3d9c   :  { %12999 = vmatprep.subr.mxu1 %v17827_v38 }
0x3d9d   :  { %13000 = vmatpush3.msra.mxu1 %v10172_v28  ;;  %v10459_v28 = vld [vmem:[%s17771_s25 + $0x48] sm:$0xff] }
0x3d9e   :  { %13001 = vmatprep.subr.mxu1 %v17827_v38 }
0x3d9f   :  { %13002 = vmatpush3.msra.mxu1 %v10171_v20  ;;  %v10458_v20 = vld [vmem:[%s17771_s25 + $0x40] sm:$0xff] }
0x3da0   :  { %13003 = vmatprep.subr.mxu1 %v17827_v38 }
0x3da1   :  { %13004 = vmatpush3.msra.mxu1 %v10170_v18  ;;  %v10457_v18 = vld [vmem:[%s17771_s25 + $0x38] sm:$0xff] }
0x3da2   :  { %13005 = vmatprep.subr.mxu1 %v17827_v38 }
0x3da3   :  { %13006 = vmatpush3.msra.mxu1 %v10169_v6  ;;  %v10456_v6 = vld [vmem:[%s17771_s25 + $0x30] sm:$0xff] }
0x3da4   :  { %13007 = vmatprep.subr.mxu1 %v17827_v38 }
0x3da5   :  { %13008 = vmatpush3.msra.mxu1 %v10168_v7  ;;  %v10455_v7 = vld [vmem:[%s17771_s25 + $0x28] sm:$0xff] }
0x3da6   :  { %13063 = vmatprep.subr.mxu1 %v10554_v63 }
0x3e46   :  { %v12962_v13 = vpop.f32.mrf.mxu1 }
0x3e47   :  { %v10091_v4 = vmul.f32 %v12962_v13, %v17557_v48  ;;  %v10454_v13 = vld [vmem:[%s17771_s25 + $0x20] sm:$0xff] }
0x3e48   :  { %v10067_v5 = vpop.f32.mrf.mxu1 }
0x3e49   :  { %v10090_v61 = vmul.f32 %v17563_v49, %v10067_v5  ;;  %v10453_v5 = vld [vmem:[%s17771_s25 + $0x18] sm:$0xff] }
0x3e4a   :  { %v12965_v45 = vpop.f32.mrf.mxu1 }
0x3e4b   :  { %v10093_v35 = vmul.f32 %v12965_v45, %v17546_v52  ;;  %v10452_v45 = vld [vmem:[%s17771_s25 + $0x10] sm:$0xff] }
0x3e4c   :  { %v10077_v14 = vpop.f32.mrf.mxu1 }
0x3e4d   :  { %v10092_v53 = vmul.f32 %v17551_v19, %v10077_v14  ;;  %12967 = vmatpush3.msra.mxu0 %v10093_v35  ;;  %v10451_v35 = vld [vmem:[%s17771_s25 + $0x8] sm:$0xff]  ;;  %v10450_v14 = vld [vmem:[%s17771_s25] sm:$0xff] }
0x3e4e   :  { %12968 = vmatprep.subr.mxu0 %v17827_v38 }
0x3e4f   :  { %12969 = vmatpush3.msra.mxu0 %v10092_v53 }
0x3e50   :  { %12970 = vmatprep.subr.mxu0 %v17827_v38 }
0x3e51   :  { %12971 = vmatpush3.msra.mxu0 %v10091_v4 }
0x3e52   :  { %12972 = vmatprep.subr.mxu0 %v17827_v38 }
0x3e53   :  { %12973 = vmatpush3.msra.mxu0 %v10090_v61 }
0x3e54   :  { %12975 = vmatmul.mubr.msk.f32.vlgmr.msra.gmra.mxu0 %vm654_vm5, %v10094_v55  ;;  %13012 = vmatprep.subr.mxu0 %v17827_v38 }
0x3e55   :  { %13014 = vmatprep.mubr.msk.f32.mxu0 %vm13673_vm6, %v17827_v38  ;;  %v10552_v38 = vld [vmem:[%s17768_s26 + $0x8] sm:$0xff]  ;;  %s13675_s26 = smov 8   ;;  %13013 = vmatpush3.msk.msra.mxu0 %vm5803_vm8, %v10269_v59 }
0x3f14   :  { %v10164_v23 = vpop.f32.mrf.mxu0 }
0x3f15   :  { %13010 = vmatmul.mubr.f32.vlgmr.msra.gmra.mxu1 %v10164_v23 }
0x3f16   :  { %13064 = vmatpush3.msra.mxu1 %v10554_v63  ;;  %v12976_v21 = vpop.f32.mrf.mxu0  ;;  %13071 = vmatprep.mubr.msk.f32.mxu1 %vm654_vm5, %v17458_v9  ;;  %v17833_v9 = vld [vmem:[#allocation5_spill] sm:$0xff] }
0x3f17   :  { %13065 = vmatprep.subr.mxu1 %v10553_v24 }
0x3f18   :  { %13066 = vmatpush3.msra.mxu1 %v10553_v24 }
0x3f19   :  { %13067 = vmatprep.subr.mxu1 %v10552_v38 }
0x3f1a   :  { %13068 = vmatpush3.msra.mxu1 %v10552_v38 }
0x3f1b   :  { %13069 = vmatprep.subr.mxu1 %v10551_v0 }
0x3f1c   :  { %13070 = vmatpush3.msra.mxu1 %v10551_v0 }
0x3f1d   :  { %13072 = vmatmul.mubr.msk.f32.vlgmr.msra.gmra.mxu1 %vm654_vm5, %v17460_v46  ;;  %v17834_v46 = vmax.f32 %v17833_v9, 0.0 }
0x3f1e   :  { %13074 = vmatprep.mubr.msk.f32.mxu1 %vm654_vm5, %v17470_v17 }
0x3f21   :  { %13075 = vmatmul.mubr.msk.f32.gmra.mxu1 %vm654_vm5, %v17472_v30  ;;  %v10265_v30 = vld [vmem:[%s17770_s22] sm:$0xff] }
0x3fd5   :  { %v10250_v40 = vpop.f32.mrf.mxu1 }
0x3fd6   :  { %v10254_v57 = vsel %vm5782_vm7, %v10250_v40, -inf }
0x3fd7   :  { %10255 = vmax.xlane.f32.xlu0 %v10254_v57  ;;  %v13011_v36 = vpop.f32.mrf.mxu1  ;;  %v10641_v57 = vld [vmem:[%s17773_s27 + $0x8] sm:$0xff] }
0x3fdd   :  { %v13073_v38 = vpop.f32.mrf.mxu1 }
0x3fdf   :  { %v10621_v0 = vpop.f32.mrf.mxu1 }
0x3fe1   :  { %v13076_v36 = vpop.f32.mrf.mxu1 }
0x3fed   :  { %7668 = vrot.lane.b32.xlu0 %v17830_v29, %s13674_s5 }
0x3ff1   :  { %7672 = vrot.lane.b32.xlu0 %v17832_v31, %s13674_s5 }
0x3ff5   :  { %9162 = vrot.lane.b32.xlu0 %v9154_v33, %s13675_s26 }
0x3ff9   :  { %9166 = vrot.lane.b32.xlu0 %v9156_v32, %s13675_s26 }
0x4060   :  { %v10256_v39 = vpop.xlane.xlu0 %10255 }
0x4061   :  { %v10257_v16 = vsub.f32 %v10250_v40, %v10256_v39 }
0x4063   :  { %v10258_v41 = vmul.f32 1.442695, %v10257_v16 }
0x4064   :  { %v7669_v51 = vpop.permute.xlu0 %7668 }
0x4065   :  { %13579 = vpow2.f32 %v10258_v41  ;;  %7681 = vst.msk [vmem:[%s17774_s28] sm:$0xff] %vm7680_vm10, %v7669_v51  ;;  %v10631_v41 = vpop.f32.mrf.mxu1 }
0x4068   :  { %v7673_v3 = vpop.permute.xlu0 %7672 }
0x4069   :  { %7683 = vst.msk [vmem:[%s17774_s28 + $0x10] sm:$0xff] %vm7680_vm10, %v7673_v3  ;;  %v10642_v3 = vld [vmem:[%s17773_s27 + $0x10] sm:$0xff] }
0x406c   :  { %v9163_v10 = vpop.permute.xlu0 %9162 }
0x406d   :  { %9175 = vst.msk [vmem:[%s17774_s28] sm:$0xff] %vm9174_vm11, %v9163_v10 }
0x4070   :  { %v9167_v33 = vpop.permute.xlu0 %9166 }
0x4071   :  { %9177 = vst.msk [vmem:[%s17774_s28 + $0x10] sm:$0xff] %vm9174_vm11, %v9167_v33 }
0x4072   :  { %v13580_v12 = vpop.eup %13579 }
0x4073   :  { %v10260_v32 = vsel %vm5782_vm7, %v13580_v12, 0.0 }
0x4074   :  { %10261 = vadd.xlane.f32.xlu1 %v10260_v32 }
0x4085   :  { %7670 = vrot.lane.b32.xlu1 %v17834_v46, %s13674_s5 }
0x4089   :  { %7674 = vrot.lane.b32.xlu1 %v17836_v60, %s13674_s5 }
0x408d   :  { %9164 = vrot.lane.b32.xlu1 %v9155_v54, %s13675_s26 }
0x4091   :  { %9168 = vrot.lane.b32.xlu1 %v9157_v27, %s13675_s26 }
0x40fd   :  { %v10262_v26 = vpop.xlane.xlu1 %10261 }
0x40fe   :  { %13581 = vrcp.f32 %v10262_v26 }
0x4101   :  { %v7671_v1 = vpop.permute.xlu1 %7670 }
0x4102   :  { %7682 = vst.msk [vmem:[%s17774_s28 + $0x8] sm:$0xff] %vm7680_vm10, %v7671_v1 }
0x4105   :  { %v7675_v17 = vpop.permute.xlu1 %7674 }
0x4106   :  { %7684 = vst.msk [vmem:[%s17774_s28 + $0x18] sm:$0xff] %vm7680_vm10, %v7675_v17 }
0x4109   :  { %v9165_v37 = vpop.permute.xlu1 %9164 }
0x410a   :  { %9176 = vst.msk [vmem:[%s17774_s28 + $0x8] sm:$0xff] %vm9174_vm11, %v9165_v37 }
0x410b   :  { %v13582_v54 = vpop.eup %13581 }
0x410c   :  { %v10264_v50 = vmul.f32 %v13582_v54, %v13580_v12 }
0x410d   :  { %v9169_v27 = vpop.permute.xlu1 %9168 }
0x410e   :  { %9178 = vst.msk [vmem:[%s17774_s28 + $0x18] sm:$0xff] %vm9174_vm11, %v9169_v27  ;;  %13015 = vmatmul.mubr.msk.f32.vlgmr.msra.gmra.mxu0 %vm5799_vm9, %v10264_v50 }
0x410f   :  { %13019 = vmatprep.mubr.msk.f32.mxu0 %vm432_vm3, %v10265_v30 }
0x41ce   :  { %v10342_v11 = vpop.f32.mrf.mxu0 }
0x41cf   :  { %13017 = vmatprep.subr.msk.mxu0 %vm481_vm2, %v10342_v11 }
0x41d0   :  { %v13016_v15 = vpop.f32.mrf.mxu0  ;;  %13018 = vmatpush3.msk.msra.mxu0 %vm481_vm2, %v10342_v11 }
0x41d1   :  { %13020 = vmatmul.mubr.msk.f32.vlgmr.msra.gmra.mxu0 %vm432_vm3, %v10266_v25  ;;  %13025 = vmatprep.subr.mxu0 %v10465_v44 }
0x41d2   :  { %13022 = vmatprep.mubr.msk.f32.mxu0 %vm432_vm3, %v10267_v56  ;;  %13026 = vmatpush3.msra.mxu0 %v10465_v44 }
0x41d3   :  { %13027 = vmatprep.subr.mxu0 %v10464_v34 }
0x41d4   :  { %13028 = vmatpush3.msra.mxu0 %v10464_v34 }
0x41d5   :  { %13023 = vmatmul.mubr.msk.f32.gmra.mxu0 %vm432_vm3, %v10268_v47  ;;  %13029 = vmatprep.subr.mxu0 %v10463_v2 }
0x41d6   :  { %13030 = vmatpush3.msra.mxu0 %v10463_v2 }
0x41d7   :  { %13031 = vmatprep.subr.mxu0 %v10462_v42 }
0x41d8   :  { %13032 = vmatpush3.msra.mxu0 %v10462_v42 }
0x41d9   :  { %13033 = vmatprep.subr.mxu0 %v10461_v62 }
0x41da   :  { %13034 = vmatpush3.msra.mxu0 %v10461_v62 }
0x41db   :  { %13035 = vmatprep.subr.mxu0 %v10460_v22 }
0x41dc   :  { %13036 = vmatpush3.msra.mxu0 %v10460_v22 }
0x41dd   :  { %13037 = vmatprep.subr.mxu0 %v10459_v28 }
0x41de   :  { %13038 = vmatpush3.msra.mxu0 %v10459_v28 }
0x41df   :  { %13039 = vmatprep.subr.mxu0 %v10458_v20 }
0x41e0   :  { %13040 = vmatpush3.msra.mxu0 %v10458_v20 }
0x41e1   :  { %13041 = vmatprep.subr.mxu0 %v10457_v18 }
0x41e2   :  { %13042 = vmatpush3.msra.mxu0 %v10457_v18 }
0x41e3   :  { %13043 = vmatprep.subr.mxu0 %v10456_v6 }
0x41e4   :  { %13044 = vmatpush3.msra.mxu0 %v10456_v6 }
0x41e5   :  { %13045 = vmatprep.subr.mxu0 %v10455_v7 }
0x41e6   :  { %13046 = vmatpush3.msra.mxu0 %v10455_v7 }
0x41e7   :  { %13047 = vmatprep.subr.mxu0 %v10454_v13 }
0x41e8   :  { %13048 = vmatpush3.msra.mxu0 %v10454_v13 }
0x41e9   :  { %13049 = vmatprep.subr.mxu0 %v10453_v5 }
0x41ea   :  { %13050 = vmatpush3.msra.mxu0 %v10453_v5 }
0x41eb   :  { %13051 = vmatprep.subr.mxu0 %v10452_v45 }
0x41ec   :  { %13052 = vmatpush3.msra.mxu0 %v10452_v45 }
0x41ed   :  { %13053 = vmatprep.subr.mxu0 %v10451_v35 }
0x41ee   :  { %13054 = vmatpush3.msra.mxu0 %v10451_v35 }
0x41ef   :  { %13055 = vmatprep.subr.mxu0 %v10450_v14 }
0x41f0   :  { %13056 = vmatpush3.msra.mxu0 %v10450_v14 }
0x4291   :  { %v13021_v53 = vpop.f32.mrf.mxu0 }
0x4292   :  { %v10447_v55 = vmul.f32 %v13021_v53, %v17557_v48 }
0x4293   :  { %v10427_v4 = vpop.f32.mrf.mxu0 }
0x4294   :  { %v10446_v61 = vmul.f32 %v10427_v4, %v17563_v49 }
0x4295   :  { %v13024_v63 = vpop.f32.mrf.mxu0 }
0x4296   :  { %13057 = vmatprep.mubr.f32.mxu0 %v10446_v61  ;;  %v10449_v21 = vmul.f32 %v13024_v63, %v17546_v52  ;;  %v10643_v52 = vld [vmem:[%s17773_s27 + $0x18] sm:$0xff] }
0x4297   :  { %v10437_v23 = vpop.f32.mrf.mxu0  ;;  %13058 = vmatmul.mubr.f32.vlgmr.msra.gmra.mxu0 %v10447_v55 }
0x4298   :  { %v10448_v24 = vmul.f32 %v10437_v23, %v17551_v19 }
0x429a   :  { %13060 = vmatprep.mubr.f32.mxu0 %v10448_v24 }
0x429b   :  { %13061 = vmatmul.mubr.f32.gmra.mxu0 %v10449_v21 }
0x4357   :  { %v13059_v40 = vpop.f32.mrf.mxu0 }
0x4358   :  { %v10627_v49 = vadd.f32 %v13073_v38, %v13059_v40 }
0x4359   :  { %v10532_v48 = vpop.f32.mrf.mxu0 }
0x435a   :  { %v10645_v29 = vadd.f32 %v10641_v57, %v10627_v49  ;;  %v10622_v19 = vadd.f32 %v10621_v0, %v10532_v48 }
0x435b   :  { %v13062_v43 = vpop.f32.mrf.mxu0 }
0x435c   :  { %v10649_v31 = vmax.f32 %v10645_v29, 0.0  ;;  %v10644_v39 = vadd.f32 %v10640_v8, %v10622_v19  ;;  %v10637_v16 = vadd.f32 %v13076_v36, %v13062_v43 }
0x435d   :  { %v10542_v51 = vpop.f32.mrf.mxu0 }
0x435e   :  { %v10648_v10 = vmax.f32 %v10644_v39, 0.0  ;;  %v10647_v33 = vadd.f32 %v10643_v52, %v10637_v16  ;;  %v10632_v12 = vadd.f32 %v10631_v41, %v10542_v51  ;;  %10658 = vrot.lane.b32.xlu1 %v10649_v31, %s13676_s9 }
0x4360   :  { %v10651_v32 = vmax.f32 %v10647_v33, 0.0  ;;  %v10646_v9 = vadd.f32 %v10642_v3, %v10632_v12  ;;  %10656 = vrot.lane.b32.xlu0 %v10648_v10, %s13676_s9 }
0x4362   :  { %v10650_v46 = vmax.f32 %v10646_v9, 0.0  ;;  %10662 = vrot.lane.b32.xlu1 %v10651_v32, %s13676_s9 }
0x4364   :  { %10660 = vrot.lane.b32.xlu0 %v10650_v46, %s13676_s9 }
0x43d0   :  { %v10659_v58 = vpop.permute.xlu1 %10658 }
0x43d1   :  { %10670 = vst.msk [vmem:[%s17774_s28 + $0x8] sm:$0xff] %vm10668_vm12, %v10659_v58 }
0x43d2   :  { %v10657_v60 = vpop.permute.xlu0 %10656 }
0x43d3   :  { %10669 = vst.msk [vmem:[%s17774_s28] sm:$0xff] %vm10668_vm12, %v10657_v60 }
0x43d4   :  { %v10663_v59 = vpop.permute.xlu1 %10662 }
0x43d5   :  { %10672 = vst.msk [vmem:[%s17774_s28 + $0x18] sm:$0xff] %vm10668_vm12, %v10663_v59 }
0x43d6   :  { %v10661_v26 = vpop.permute.xlu0 %10660 }
0x43d7   :  { %10671 = vst.msk [vmem:[%s17774_s28 + $0x10] sm:$0xff] %vm10668_vm12, %v10661_v26 }

</bundles_post_ra>
